<compile_context>
chip_gen: v5e
topology: v5e:2x2
jax: 0.10.0
libtpu: 0.0.40
codegen_flags: <defaults>
</compile_context>

<pallas_src>
import jax
import jax.numpy as jnp
from jax.experimental import pallas as pl
from jax.experimental.pallas import tpu as pltpu


def _make_fused_kernel(N, KH, KW, C1, OH1, OW1, OH2, OW2, CPAD):
    S2 = OH2 * OW2

    def kernel(p1_ref, w1_ref, b1_ref, w2p_ref, b2_ref, o_ref, p2_ref):
        # ---- Conv1 + bias + ReLU: ONE im2col matmul (N*S1, K1) @ (K1, C1) ----
        act1 = jnp.dot(p1_ref[...], w1_ref[...],
                       preferred_element_type=jnp.float32)           # (N*144, 20)
        act1 = jnp.maximum(act1 + b1_ref[...], 0.0)
        act1_4d = act1.reshape(N, OH1, OW1, C1)                       # (N, 12, 12, 20), VMEM-resident

        # ---- Build conv2's im2col patches, 128-lane stride per tap ----
        # The padding lanes [C1:CPAD) must be zero (scratch is uninitialized);
        # the matching rows of w2p are zero too, so the padded-K matmul is exact.
        p2_ref[...] = jnp.zeros_like(p2_ref)
        for kh in range(KH):
            for kw in range(KW):
                c0 = (kh * KW + kw) * CPAD                            # multiple of 128
                win = act1_4d[:, kh:kh + OH2, kw:kw + OW2, :]         # (N, 8, 8, 20)
                p2_ref[:, c0:c0 + C1] = win.reshape(N * S2, C1)

        # ---- Conv2 + bias + ReLU: ONE natural NN MXU matmul (no operand transpose) ----
        out2 = jnp.dot(p2_ref[...], w2p_ref[...],
                       preferred_element_type=jnp.float32)            # (N*64, 64)
        out2 = jnp.maximum(out2 + b2_ref[...], 0.0)
        # Lane-dense output block: transpose only the small result (N*S2, C2) -> (C2, N*S2).
        o_ref[...] = out2.T.astype(o_ref.dtype)                       # (64, 128)

    return kernel


@jax.jit
def sequential_forward(x_nchw, params):
    """nn.Sequential(Conv2d(1,20,5), ReLU, Conv2d(20,64,5), ReLU) on NCHW input."""
    (w1, b1), (w2, b2) = params
    N, Cin, H, W = x_nchw.shape
    KH, KW, _, C1 = w1.shape                      # (5, 5, 1, 20)  HWIO
    _, _, _, C2 = w2.shape                        # (5, 5, 20, 64) HWIO
    OH1, OW1 = H - KH + 1, W - KW + 1
    OH2, OW2 = OH1 - KH + 1, OW1 - KW + 1
    S1, S2 = OH1 * OW1, OH2 * OW2
    K1 = KH * KW * Cin
    CPAD = 128                                    # lane-tile aligned per-tap stride
    K2P = KH * KW * CPAD

    # ---- wrapper-side layout plumbing (tiny tensors, fused by XLA under jit) ----
    # conv1 im2col patches (N*S1, K1); column order (kh, kw, ci) matches HWIO flatten.
    # TODO(synk): at larger spatial sizes build these patches in-kernel from the raw
    # image to avoid the 5.76x HBM expansion; negligible at 16x16.
    cols = []
    for kh in range(KH):
        for kw in range(KW):
            for ci in range(Cin):
                cols.append(x_nchw[:, ci, kh:kh + OH1, kw:kw + OW1].reshape(N, S1))
    patches1 = jnp.stack(cols, axis=-1).reshape(N * S1, K1).astype(jnp.float32)   # (288, 25)

    w1_mat = w1.reshape(K1, C1).astype(jnp.float32)                    # (25, 20)
    b1_row = b1.reshape(1, C1).astype(jnp.float32)                     # (1, 20)
    # conv2 weights zero-padded along the channel axis to 128 rows per tap.
    w2_pad = jnp.pad(w2.reshape(KH * KW, C1, C2).astype(jnp.float32),
                     ((0, 0), (0, CPAD - C1), (0, 0))).reshape(K2P, C2)  # (3200, 64)
    b2_row = b2.reshape(1, C2).astype(jnp.float32)                     # (1, 64)

    kernel = _make_fused_kernel(N, KH, KW, C1, OH1, OW1, OH2, OW2, CPAD)

    cost = pl.CostEstimate(
        flops=2 * N * (S1 * K1 * C1 + S2 * KH * KW * C1 * C2),
        transcendentals=0,
        bytes_accessed=4 * (N * S1 * K1 + K1 * C1 + C1 + K2P * C2 + C2 + C2 * N * S2),
    )

    out_t = pl.pallas_call(
        kernel,
        out_shape=jax.ShapeDtypeStruct((C2, N * S2), jnp.float32),
        grid=(1,),
        in_specs=[
            pl.BlockSpec((N * S1, K1), lambda i: (0, 0)),
            pl.BlockSpec((K1, C1), lambda i: (0, 0)),
            pl.BlockSpec((1, C1), lambda i: (0, 0)),
            pl.BlockSpec((K2P, C2), lambda i: (0, 0)),
            pl.BlockSpec((1, C2), lambda i: (0, 0)),
        ],
        out_specs=pl.BlockSpec((C2, N * S2), lambda i: (0, 0)),
        scratch_shapes=[
            pltpu.VMEM((N * S2, K2P), jnp.float32),   # conv2 padded im2col patches (128, 3200)
        ],
        compiler_params=pltpu.CompilerParams(
            dimension_semantics=("arbitrary",)),
        cost_estimate=cost,
    )(patches1, w1_mat, b1_row, w2_pad, b2_row)

    # (C2, N*S2) -> (N, C2, OH, OW): one tiny (32 KiB) wrapper-side transpose.
    return out_t.reshape(C2, N, OH2, OW2).transpose(1, 0, 2, 3)


def init_conv_params(key, cin, cout, k):
    """Deterministic PyTorch-like uniform init (kaiming-uniform bound)."""
    kw_key, kb_key = jax.random.split(key)
    fan_in = cin * k * k
    bound = 1.0 / jnp.sqrt(fan_in)
    w = jax.random.uniform(kw_key, (k, k, cin, cout), jnp.float32, -bound, bound)  # HWIO
    b = jax.random.uniform(kb_key, (cout,), jnp.float32, -bound, bound)
    return w, b


def _reference_forward(x_nchw, params):
    """Pure-JAX reference (lax.conv) for the correctness check."""
    (w1, b1), (w2, b2) = params
    dn1 = jax.lax.conv_dimension_numbers(x_nchw.shape, w1.shape,
                                         ("NCHW", "HWIO", "NCHW"))
    y = jax.lax.conv_general_dilated(x_nchw, w1, (1, 1), "VALID",
                                     dimension_numbers=dn1)
    y = jnp.maximum(y + b1[None, :, None, None], 0.0)
    dn2 = jax.lax.conv_dimension_numbers(y.shape, w2.shape,
                                         ("NCHW", "HWIO", "NCHW"))
    y = jax.lax.conv_general_dilated(y, w2, (1, 1), "VALID",
                                     dimension_numbers=dn2)
    y = jnp.maximum(y + b2[None, :, None, None], 0.0)
    return y


if __name__ == "__main__":
    key = jax.random.PRNGKey(0)
    k_x, k_p1, k_p2 = jax.random.split(key, 3)

    # input (2, 1, 16, 16) -> conv1 (2, 20, 12, 12) -> conv2 (2, 64, 8, 8)
    x = jax.random.normal(k_x, (2, 1, 16, 16), jnp.float32)
    params = (init_conv_params(k_p1, 1, 20, 5),
              init_conv_params(k_p2, 20, 64, 5))

    out = jax.block_until_ready(sequential_forward(x, params))
    assert out.shape == (2, 64, 8, 8), out.shape

    ref = jax.block_until_ready(_reference_forward(x, params))
    max_err = float(jnp.max(jnp.abs(out - ref)))
    assert jnp.allclose(out, ref, atol=2e-3, rtol=2e-3), max_err

    print("KERNEL_OK")
</pallas_src>

<mosaic_0001>
module attributes {stable_mosaic.version = 11 : i64} {
  func.func @kernel(%arg0: i32, %arg1: memref<288x25xf32, #tpu.memory_space<vmem>>, %arg2: memref<25x20xf32, #tpu.memory_space<vmem>>, %arg3: memref<1x20xf32, #tpu.memory_space<vmem>>, %arg4: memref<3200x64xf32, #tpu.memory_space<vmem>>, %arg5: memref<1x64xf32, #tpu.memory_space<vmem>>, %arg6: memref<64x128xf32, #tpu.memory_space<vmem>>, %arg7: memref<128x3200xf32, #tpu.memory_space<vmem>>) attributes {dimension_semantics = [#tpu.dimension_semantics<arbitrary>], iteration_bounds = array<i64: 1>, scalar_prefetch = 0 : i64, scratch_operands = 1 : i64, tpu.core_type = #tpu.core_type<tc>, window_params = [{pipeline_mode = #tpu.pipeline_mode<synchronous>, transform_indices = @transform_0, window_bounds = array<i64: 288, 25>}, {pipeline_mode = #tpu.pipeline_mode<synchronous>, transform_indices = @transform_1, window_bounds = array<i64: 25, 20>}, {pipeline_mode = #tpu.pipeline_mode<synchronous>, transform_indices = @transform_2, window_bounds = array<i64: 1, 20>}, {pipeline_mode = #tpu.pipeline_mode<synchronous>, transform_indices = @transform_3, window_bounds = array<i64: 3200, 64>}, {pipeline_mode = #tpu.pipeline_mode<synchronous>, transform_indices = @transform_4, window_bounds = array<i64: 1, 64>}, {pipeline_mode = #tpu.pipeline_mode<synchronous>, transform_indices = @transform_5, window_bounds = array<i64: 64, 128>}]} {
    %c0 = arith.constant 0 : index
    %c0_0 = arith.constant 0 : index
    %0 = vector.load %arg1[%c0, %c0_0] : memref<288x25xf32, #tpu.memory_space<vmem>>, vector<288x25xf32>
    %c0_1 = arith.constant 0 : index
    %c0_2 = arith.constant 0 : index
    %1 = vector.load %arg2[%c0_1, %c0_2] : memref<25x20xf32, #tpu.memory_space<vmem>>, vector<25x20xf32>
    %cst = arith.constant dense<0.000000e+00> : vector<288x20xf32>
    %2 = tpu.matmul %0, %1, %cst {dimension_numbers = #tpu.dot_dimension_numbers<[1], [0], [0], [1], [0, 0, 1, 1], [], []>} : vector<288x25xf32>, vector<25x20xf32>, vector<288x20xf32> -> vector<288x20xf32>
    %c0_3 = arith.constant 0 : index
    %c0_4 = arith.constant 0 : index
    %3 = vector.load %arg3[%c0_3, %c0_4] : memref<1x20xf32, #tpu.memory_space<vmem>>, vector<1x20xf32>
    %4 = vector.broadcast %3 : vector<1x20xf32> to vector<288x20xf32>
    %5 = arith.addf %2, %4 : vector<288x20xf32>
    %cst_5 = arith.constant 0.000000e+00 : f32
    %6 = vector.broadcast %cst_5 : f32 to vector<288x20xf32>
    %7 = arith.maximumf %5, %6 : vector<288x20xf32>
    %8 = vector.shape_cast %7 : vector<288x20xf32> to vector<2x12x12x20xf32>
    %cst_6 = arith.constant 0.000000e+00 : f32
    %9 = vector.broadcast %cst_6 : f32 to vector<128x3200xf32>
    %c0_7 = arith.constant 0 : index
    %c0_8 = arith.constant 0 : index
    %10 = vector.load %arg7[%c0_7, %c0_8] : memref<128x3200xf32, #tpu.memory_space<vmem>>, vector<128x3200xf32>
    tpu.vector_store %arg7[%c0_7, %c0_8], %9 {strides = array<i32>} : memref<128x3200xf32, #tpu.memory_space<vmem>>, vector<128x3200xf32>,
    %11 = vector.extract_strided_slice %8 {offsets = [0, 0, 0, 0], sizes = [2, 8, 8, 20], strides = [1, 1, 1, 1]} : vector<2x12x12x20xf32> to vector<2x8x8x20xf32>
    %12 = vector.shape_cast %11 : vector<2x8x8x20xf32> to vector<128x20xf32>
    %c0_9 = arith.constant 0 : index
    %c0_10 = arith.constant 0 : index
    %13 = vector.load %arg7[%c0_9, %c0_10] : memref<128x3200xf32, #tpu.memory_space<vmem>>, vector<128x20xf32>
    tpu.vector_store %arg7[%c0_9, %c0_10], %12 {strides = array<i32>} : memref<128x3200xf32, #tpu.memory_space<vmem>>, vector<128x20xf32>,
    %14 = vector.extract_strided_slice %8 {offsets = [0, 0, 1, 0], sizes = [2, 8, 8, 20], strides = [1, 1, 1, 1]} : vector<2x12x12x20xf32> to vector<2x8x8x20xf32>
    %15 = vector.shape_cast %14 : vector<2x8x8x20xf32> to vector<128x20xf32>
    %c0_11 = arith.constant 0 : index
    %c128 = arith.constant 128 : index
    %16 = vector.load %arg7[%c0_11, %c128] : memref<128x3200xf32, #tpu.memory_space<vmem>>, vector<128x20xf32>
    tpu.vector_store %arg7[%c0_11, %c128], %15 {strides = array<i32>} : memref<128x3200xf32, #tpu.memory_space<vmem>>, vector<128x20xf32>,
    %17 = vector.extract_strided_slice %8 {offsets = [0, 0, 2, 0], sizes = [2, 8, 8, 20], strides = [1, 1, 1, 1]} : vector<2x12x12x20xf32> to vector<2x8x8x20xf32>
    %18 = vector.shape_cast %17 : vector<2x8x8x20xf32> to vector<128x20xf32>
    %c0_12 = arith.constant 0 : index
    %c256 = arith.constant 256 : index
    %19 = vector.load %arg7[%c0_12, %c256] : memref<128x3200xf32, #tpu.memory_space<vmem>>, vector<128x20xf32>
    tpu.vector_store %arg7[%c0_12, %c256], %18 {strides = array<i32>} : memref<128x3200xf32, #tpu.memory_space<vmem>>, vector<128x20xf32>,
    %20 = vector.extract_strided_slice %8 {offsets = [0, 0, 3, 0], sizes = [2, 8, 8, 20], strides = [1, 1, 1, 1]} : vector<2x12x12x20xf32> to vector<2x8x8x20xf32>
    %21 = vector.shape_cast %20 : vector<2x8x8x20xf32> to vector<128x20xf32>
    %c0_13 = arith.constant 0 : index
    %c384 = arith.constant 384 : index
    %22 = vector.load %arg7[%c0_13, %c384] : memref<128x3200xf32, #tpu.memory_space<vmem>>, vector<128x20xf32>
    tpu.vector_store %arg7[%c0_13, %c384], %21 {strides = array<i32>} : memref<128x3200xf32, #tpu.memory_space<vmem>>, vector<128x20xf32>,
    %23 = vector.extract_strided_slice %8 {offsets = [0, 0, 4, 0], sizes = [2, 8, 8, 20], strides = [1, 1, 1, 1]} : vector<2x12x12x20xf32> to vector<2x8x8x20xf32>
    %24 = vector.shape_cast %23 : vector<2x8x8x20xf32> to vector<128x20xf32>
    %c0_14 = arith.constant 0 : index
    %c512 = arith.constant 512 : index
    %25 = vector.load %arg7[%c0_14, %c512] : memref<128x3200xf32, #tpu.memory_space<vmem>>, vector<128x20xf32>
    tpu.vector_store %arg7[%c0_14, %c512], %24 {strides = array<i32>} : memref<128x3200xf32, #tpu.memory_space<vmem>>, vector<128x20xf32>,
    %26 = vector.extract_strided_slice %8 {offsets = [0, 1, 0, 0], sizes = [2, 8, 8, 20], strides = [1, 1, 1, 1]} : vector<2x12x12x20xf32> to vector<2x8x8x20xf32>
    %27 = vector.shape_cast %26 : vector<2x8x8x20xf32> to vector<128x20xf32>
    %c0_15 = arith.constant 0 : index
    %c640 = arith.constant 640 : index
    %28 = vector.load %arg7[%c0_15, %c640] : memref<128x3200xf32, #tpu.memory_space<vmem>>, vector<128x20xf32>
    tpu.vector_store %arg7[%c0_15, %c640], %27 {strides = array<i32>} : memref<128x3200xf32, #tpu.memory_space<vmem>>, vector<128x20xf32>,
    %29 = vector.extract_strided_slice %8 {offsets = [0, 1, 1, 0], sizes = [2, 8, 8, 20], strides = [1, 1, 1, 1]} : vector<2x12x12x20xf32> to vector<2x8x8x20xf32>
    %30 = vector.shape_cast %29 : vector<2x8x8x20xf32> to vector<128x20xf32>
    %c0_16 = arith.constant 0 : index
    %c768 = arith.constant 768 : index
    %31 = vector.load %arg7[%c0_16, %c768] : memref<128x3200xf32, #tpu.memory_space<vmem>>, vector<128x20xf32>
    tpu.vector_store %arg7[%c0_16, %c768], %30 {strides = array<i32>} : memref<128x3200xf32, #tpu.memory_space<vmem>>, vector<128x20xf32>,
    %32 = vector.extract_strided_slice %8 {offsets = [0, 1, 2, 0], sizes = [2, 8, 8, 20], strides = [1, 1, 1, 1]} : vector<2x12x12x20xf32> to vector<2x8x8x20xf32>
    %33 = vector.shape_cast %32 : vector<2x8x8x20xf32> to vector<128x20xf32>
    %c0_17 = arith.constant 0 : index
    %c896 = arith.constant 896 : index
    %34 = vector.load %arg7[%c0_17, %c896] : memref<128x3200xf32, #tpu.memory_space<vmem>>, vector<128x20xf32>
    tpu.vector_store %arg7[%c0_17, %c896], %33 {strides = array<i32>} : memref<128x3200xf32, #tpu.memory_space<vmem>>, vector<128x20xf32>,
    %35 = vector.extract_strided_slice %8 {offsets = [0, 1, 3, 0], sizes = [2, 8, 8, 20], strides = [1, 1, 1, 1]} : vector<2x12x12x20xf32> to vector<2x8x8x20xf32>
    %36 = vector.shape_cast %35 : vector<2x8x8x20xf32> to vector<128x20xf32>
    %c0_18 = arith.constant 0 : index
    %c1024 = arith.constant 1024 : index
    %37 = vector.load %arg7[%c0_18, %c1024] : memref<128x3200xf32, #tpu.memory_space<vmem>>, vector<128x20xf32>
    tpu.vector_store %arg7[%c0_18, %c1024], %36 {strides = array<i32>} : memref<128x3200xf32, #tpu.memory_space<vmem>>, vector<128x20xf32>,
    %38 = vector.extract_strided_slice %8 {offsets = [0, 1, 4, 0], sizes = [2, 8, 8, 20], strides = [1, 1, 1, 1]} : vector<2x12x12x20xf32> to vector<2x8x8x20xf32>
    %39 = vector.shape_cast %38 : vector<2x8x8x20xf32> to vector<128x20xf32>
    %c0_19 = arith.constant 0 : index
    %c1152 = arith.constant 1152 : index
    %40 = vector.load %arg7[%c0_19, %c1152] : memref<128x3200xf32, #tpu.memory_space<vmem>>, vector<128x20xf32>
    tpu.vector_store %arg7[%c0_19, %c1152], %39 {strides = array<i32>} : memref<128x3200xf32, #tpu.memory_space<vmem>>, vector<128x20xf32>,
    %41 = vector.extract_strided_slice %8 {offsets = [0, 2, 0, 0], sizes = [2, 8, 8, 20], strides = [1, 1, 1, 1]} : vector<2x12x12x20xf32> to vector<2x8x8x20xf32>
    %42 = vector.shape_cast %41 : vector<2x8x8x20xf32> to vector<128x20xf32>
    %c0_20 = arith.constant 0 : index
    %c1280 = arith.constant 1280 : index
    %43 = vector.load %arg7[%c0_20, %c1280] : memref<128x3200xf32, #tpu.memory_space<vmem>>, vector<128x20xf32>
    tpu.vector_store %arg7[%c0_20, %c1280], %42 {strides = array<i32>} : memref<128x3200xf32, #tpu.memory_space<vmem>>, vector<128x20xf32>,
    %44 = vector.extract_strided_slice %8 {offsets = [0, 2, 1, 0], sizes = [2, 8, 8, 20], strides = [1, 1, 1, 1]} : vector<2x12x12x20xf32> to vector<2x8x8x20xf32>
    %45 = vector.shape_cast %44 : vector<2x8x8x20xf32> to vector<128x20xf32>
    %c0_21 = arith.constant 0 : index
    %c1408 = arith.constant 1408 : index
    %46 = vector.load %arg7[%c0_21, %c1408] : memref<128x3200xf32, #tpu.memory_space<vmem>>, vector<128x20xf32>
    tpu.vector_store %arg7[%c0_21, %c1408], %45 {strides = array<i32>} : memref<128x3200xf32, #tpu.memory_space<vmem>>, vector<128x20xf32>,
    %47 = vector.extract_strided_slice %8 {offsets = [0, 2, 2, 0], sizes = [2, 8, 8, 20], strides = [1, 1, 1, 1]} : vector<2x12x12x20xf32> to vector<2x8x8x20xf32>
    %48 = vector.shape_cast %47 : vector<2x8x8x20xf32> to vector<128x20xf32>
    %c0_22 = arith.constant 0 : index
    %c1536 = arith.constant 1536 : index
    %49 = vector.load %arg7[%c0_22, %c1536] : memref<128x3200xf32, #tpu.memory_space<vmem>>, vector<128x20xf32>
    tpu.vector_store %arg7[%c0_22, %c1536], %48 {strides = array<i32>} : memref<128x3200xf32, #tpu.memory_space<vmem>>, vector<128x20xf32>,
    %50 = vector.extract_strided_slice %8 {offsets = [0, 2, 3, 0], sizes = [2, 8, 8, 20], strides = [1, 1, 1, 1]} : vector<2x12x12x20xf32> to vector<2x8x8x20xf32>
    %51 = vector.shape_cast %50 : vector<2x8x8x20xf32> to vector<128x20xf32>
    %c0_23 = arith.constant 0 : index
    %c1664 = arith.constant 1664 : index
    %52 = vector.load %arg7[%c0_23, %c1664] : memref<128x3200xf32, #tpu.memory_space<vmem>>, vector<128x20xf32>
    tpu.vector_store %arg7[%c0_23, %c1664], %51 {strides = array<i32>} : memref<128x3200xf32, #tpu.memory_space<vmem>>, vector<128x20xf32>,
    %53 = vector.extract_strided_slice %8 {offsets = [0, 2, 4, 0], sizes = [2, 8, 8, 20], strides = [1, 1, 1, 1]} : vector<2x12x12x20xf32> to vector<2x8x8x20xf32>
    %54 = vector.shape_cast %53 : vector<2x8x8x20xf32> to vector<128x20xf32>
    %c0_24 = arith.constant 0 : index
    %c1792 = arith.constant 1792 : index
    %55 = vector.load %arg7[%c0_24, %c1792] : memref<128x3200xf32, #tpu.memory_space<vmem>>, vector<128x20xf32>
    tpu.vector_store %arg7[%c0_24, %c1792], %54 {strides = array<i32>} : memref<128x3200xf32, #tpu.memory_space<vmem>>, vector<128x20xf32>,
    %56 = vector.extract_strided_slice %8 {offsets = [0, 3, 0, 0], sizes = [2, 8, 8, 20], strides = [1, 1, 1, 1]} : vector<2x12x12x20xf32> to vector<2x8x8x20xf32>
    %57 = vector.shape_cast %56 : vector<2x8x8x20xf32> to vector<128x20xf32>
    %c0_25 = arith.constant 0 : index
    %c1920 = arith.constant 1920 : index
    %58 = vector.load %arg7[%c0_25, %c1920] : memref<128x3200xf32, #tpu.memory_space<vmem>>, vector<128x20xf32>
    tpu.vector_store %arg7[%c0_25, %c1920], %57 {strides = array<i32>} : memref<128x3200xf32, #tpu.memory_space<vmem>>, vector<128x20xf32>,
    %59 = vector.extract_strided_slice %8 {offsets = [0, 3, 1, 0], sizes = [2, 8, 8, 20], strides = [1, 1, 1, 1]} : vector<2x12x12x20xf32> to vector<2x8x8x20xf32>
    %60 = vector.shape_cast %59 : vector<2x8x8x20xf32> to vector<128x20xf32>
    %c0_26 = arith.constant 0 : index
    %c2048 = arith.constant 2048 : index
    %61 = vector.load %arg7[%c0_26, %c2048] : memref<128x3200xf32, #tpu.memory_space<vmem>>, vector<128x20xf32>
    tpu.vector_store %arg7[%c0_26, %c2048], %60 {strides = array<i32>} : memref<128x3200xf32, #tpu.memory_space<vmem>>, vector<128x20xf32>,
    %62 = vector.extract_strided_slice %8 {offsets = [0, 3, 2, 0], sizes = [2, 8, 8, 20], strides = [1, 1, 1, 1]} : vector<2x12x12x20xf32> to vector<2x8x8x20xf32>
    %63 = vector.shape_cast %62 : vector<2x8x8x20xf32> to vector<128x20xf32>
    %c0_27 = arith.constant 0 : index
    %c2176 = arith.constant 2176 : index
    %64 = vector.load %arg7[%c0_27, %c2176] : memref<128x3200xf32, #tpu.memory_space<vmem>>, vector<128x20xf32>
    tpu.vector_store %arg7[%c0_27, %c2176], %63 {strides = array<i32>} : memref<128x3200xf32, #tpu.memory_space<vmem>>, vector<128x20xf32>,
    %65 = vector.extract_strided_slice %8 {offsets = [0, 3, 3, 0], sizes = [2, 8, 8, 20], strides = [1, 1, 1, 1]} : vector<2x12x12x20xf32> to vector<2x8x8x20xf32>
    %66 = vector.shape_cast %65 : vector<2x8x8x20xf32> to vector<128x20xf32>
    %c0_28 = arith.constant 0 : index
    %c2304 = arith.constant 2304 : index
    %67 = vector.load %arg7[%c0_28, %c2304] : memref<128x3200xf32, #tpu.memory_space<vmem>>, vector<128x20xf32>
    tpu.vector_store %arg7[%c0_28, %c2304], %66 {strides = array<i32>} : memref<128x3200xf32, #tpu.memory_space<vmem>>, vector<128x20xf32>,
    %68 = vector.extract_strided_slice %8 {offsets = [0, 3, 4, 0], sizes = [2, 8, 8, 20], strides = [1, 1, 1, 1]} : vector<2x12x12x20xf32> to vector<2x8x8x20xf32>
    %69 = vector.shape_cast %68 : vector<2x8x8x20xf32> to vector<128x20xf32>
    %c0_29 = arith.constant 0 : index
    %c2432 = arith.constant 2432 : index
    %70 = vector.load %arg7[%c0_29, %c2432] : memref<128x3200xf32, #tpu.memory_space<vmem>>, vector<128x20xf32>
    tpu.vector_store %arg7[%c0_29, %c2432], %69 {strides = array<i32>} : memref<128x3200xf32, #tpu.memory_space<vmem>>, vector<128x20xf32>,
    %71 = vector.extract_strided_slice %8 {offsets = [0, 4, 0, 0], sizes = [2, 8, 8, 20], strides = [1, 1, 1, 1]} : vector<2x12x12x20xf32> to vector<2x8x8x20xf32>
    %72 = vector.shape_cast %71 : vector<2x8x8x20xf32> to vector<128x20xf32>
    %c0_30 = arith.constant 0 : index
    %c2560 = arith.constant 2560 : index
    %73 = vector.load %arg7[%c0_30, %c2560] : memref<128x3200xf32, #tpu.memory_space<vmem>>, vector<128x20xf32>
    tpu.vector_store %arg7[%c0_30, %c2560], %72 {strides = array<i32>} : memref<128x3200xf32, #tpu.memory_space<vmem>>, vector<128x20xf32>,
    %74 = vector.extract_strided_slice %8 {offsets = [0, 4, 1, 0], sizes = [2, 8, 8, 20], strides = [1, 1, 1, 1]} : vector<2x12x12x20xf32> to vector<2x8x8x20xf32>
    %75 = vector.shape_cast %74 : vector<2x8x8x20xf32> to vector<128x20xf32>
    %c0_31 = arith.constant 0 : index
    %c2688 = arith.constant 2688 : index
    %76 = vector.load %arg7[%c0_31, %c2688] : memref<128x3200xf32, #tpu.memory_space<vmem>>, vector<128x20xf32>
    tpu.vector_store %arg7[%c0_31, %c2688], %75 {strides = array<i32>} : memref<128x3200xf32, #tpu.memory_space<vmem>>, vector<128x20xf32>,
    %77 = vector.extract_strided_slice %8 {offsets = [0, 4, 2, 0], sizes = [2, 8, 8, 20], strides = [1, 1, 1, 1]} : vector<2x12x12x20xf32> to vector<2x8x8x20xf32>
    %78 = vector.shape_cast %77 : vector<2x8x8x20xf32> to vector<128x20xf32>
    %c0_32 = arith.constant 0 : index
    %c2816 = arith.constant 2816 : index
    %79 = vector.load %arg7[%c0_32, %c2816] : memref<128x3200xf32, #tpu.memory_space<vmem>>, vector<128x20xf32>
    tpu.vector_store %arg7[%c0_32, %c2816], %78 {strides = array<i32>} : memref<128x3200xf32, #tpu.memory_space<vmem>>, vector<128x20xf32>,
    %80 = vector.extract_strided_slice %8 {offsets = [0, 4, 3, 0], sizes = [2, 8, 8, 20], strides = [1, 1, 1, 1]} : vector<2x12x12x20xf32> to vector<2x8x8x20xf32>
    %81 = vector.shape_cast %80 : vector<2x8x8x20xf32> to vector<128x20xf32>
    %c0_33 = arith.constant 0 : index
    %c2944 = arith.constant 2944 : index
    %82 = vector.load %arg7[%c0_33, %c2944] : memref<128x3200xf32, #tpu.memory_space<vmem>>, vector<128x20xf32>
    tpu.vector_store %arg7[%c0_33, %c2944], %81 {strides = array<i32>} : memref<128x3200xf32, #tpu.memory_space<vmem>>, vector<128x20xf32>,
    %83 = vector.extract_strided_slice %8 {offsets = [0, 4, 4, 0], sizes = [2, 8, 8, 20], strides = [1, 1, 1, 1]} : vector<2x12x12x20xf32> to vector<2x8x8x20xf32>
    %84 = vector.shape_cast %83 : vector<2x8x8x20xf32> to vector<128x20xf32>
    %c0_34 = arith.constant 0 : index
    %c3072 = arith.constant 3072 : index
    %85 = vector.load %arg7[%c0_34, %c3072] : memref<128x3200xf32, #tpu.memory_space<vmem>>, vector<128x20xf32>
    tpu.vector_store %arg7[%c0_34, %c3072], %84 {strides = array<i32>} : memref<128x3200xf32, #tpu.memory_space<vmem>>, vector<128x20xf32>,
    %c0_35 = arith.constant 0 : index
    %c0_36 = arith.constant 0 : index
    %86 = vector.load %arg7[%c0_35, %c0_36] : memref<128x3200xf32, #tpu.memory_space<vmem>>, vector<128x3200xf32>
    %c0_37 = arith.constant 0 : index
    %c0_38 = arith.constant 0 : index
    %87 = vector.load %arg4[%c0_37, %c0_38] : memref<3200x64xf32, #tpu.memory_space<vmem>>, vector<3200x64xf32>
    %cst_39 = arith.constant dense<0.000000e+00> : vector<128x64xf32>
    %88 = tpu.matmul %86, %87, %cst_39 {dimension_numbers = #tpu.dot_dimension_numbers<[1], [0], [0], [1], [0, 0, 1, 1], [], []>} : vector<128x3200xf32>, vector<3200x64xf32>, vector<128x64xf32> -> vector<128x64xf32>
    %c0_40 = arith.constant 0 : index
    %c0_41 = arith.constant 0 : index
    %89 = vector.load %arg5[%c0_40, %c0_41] : memref<1x64xf32, #tpu.memory_space<vmem>>, vector<1x64xf32>
    %90 = vector.broadcast %89 : vector<1x64xf32> to vector<128x64xf32>
    %91 = arith.addf %88, %90 : vector<128x64xf32>
    %cst_42 = arith.constant 0.000000e+00 : f32
    %92 = vector.broadcast %cst_42 : f32 to vector<128x64xf32>
    %93 = arith.maximumf %91, %92 : vector<128x64xf32>
    %94 = tpu.transpose %93, [1, 0] : vector<128x64xf32> -> vector<64x128xf32>
    %c0_43 = arith.constant 0 : index
    %c0_44 = arith.constant 0 : index
    %95 = vector.load %arg6[%c0_43, %c0_44] : memref<64x128xf32, #tpu.memory_space<vmem>>, vector<64x128xf32>
    tpu.vector_store %arg6[%c0_43, %c0_44], %94 {strides = array<i32>} : memref<64x128xf32, #tpu.memory_space<vmem>>, vector<64x128xf32>,
    return
  }
  func.func @transform_0(%arg0: i32) -> (i32, i32) {
    %c0_i32 = arith.constant 0 : i32
    %c0_i32_0 = arith.constant 0 : i32
    %c0_i32_1 = arith.constant 0 : i32
    return %c0_i32, %c0_i32_0 : i32, i32
  }
  func.func @transform_1(%arg0: i32) -> (i32, i32) {
    %c0_i32 = arith.constant 0 : i32
    %c0_i32_0 = arith.constant 0 : i32
    %c0_i32_1 = arith.constant 0 : i32
    return %c0_i32, %c0_i32_0 : i32, i32
  }
  func.func @transform_2(%arg0: i32) -> (i32, i32) {
    %c0_i32 = arith.constant 0 : i32
    %c0_i32_0 = arith.constant 0 : i32
    %c0_i32_1 = arith.constant 0 : i32
    return %c0_i32, %c0_i32_0 : i32, i32
  }
  func.func @transform_3(%arg0: i32) -> (i32, i32) {
    %c0_i32 = arith.constant 0 : i32
    %c0_i32_0 = arith.constant 0 : i32
    %c0_i32_1 = arith.constant 0 : i32
    return %c0_i32, %c0_i32_0 : i32, i32
  }
  func.func @transform_4(%arg0: i32) -> (i32, i32) {
    %c0_i32 = arith.constant 0 : i32
    %c0_i32_0 = arith.constant 0 : i32
    %c0_i32_1 = arith.constant 0 : i32
    return %c0_i32, %c0_i32_0 : i32, i32
  }
  func.func @transform_5(%arg0: i32) -> (i32, i32) {
    %c0_i32 = arith.constant 0 : i32
    %c0_i32_0 = arith.constant 0 : i32
    %c0_i32_1 = arith.constant 0 : i32
    return %c0_i32, %c0_i32_0 : i32, i32
  }
}

</mosaic_0001>

<bundles_post_ra>
// kernel: sequential_forward.1
= control target key start
LH: loop header
LB: loop body
LE: loop exit
PB: predicated region body
PF: predicated region fallthrough
CT: control target
= control target key end

     0   :  { %vm173_vm0 = vcmask 1040384   ;;  %vm64_vm1 = vcmask 203776   ;;  %v6153_v19 = vmov 0.0   ;;  %vm881_vm2 = vcmask 162816   ;;  %s11294_s1 = inlined_call_operand.vmem [shape: f32[25,20], index: 1, kind: input, shape index: {}]   ;;  %s11295_s0 = inlined_call_operand.vmem [shape: f32[288,25], index: 0, kind: input, shape index: {}]   ;;  %s11296_s2 = inlined_call_operand.vmem [shape: f32[1,20], index: 2, kind: input, shape index: {}]   ;;  %s11297_s3 = inlined_call_operand.vmem [shape: f32[3200,64], index: 3, kind: input, shape index: {}]   ;;  %s11298_s4 = inlined_call_operand.vmem [shape: f32[1,64], index: 4, kind: input, shape index: {}]   ;;  %s11299_s5 = inlined_call_operand.vmem [shape: f32[64,128], index: 5, kind: output, shape index: {}]  }
   0x1   :  { %v59_v0 = vld [vmem:[%s11294_s1 + $0x18] sm:$0x1]  ;;  %v58_v1 = vld [vmem:[%s11294_s1 + $0x10] sm:$0xff]  ;;  %v57_v2 = vld [vmem:[%s11294_s1 + $0x8] sm:$0xff]  ;;  %410 = vst [vmem:[#allocation2] sm:$0xff] %v6153_v19  ;;  %vm898_vm3 = vcmask 1042432  }
   0x2   :  { %5987 = vmatpush.msk.msra.mxu0 %vm173_vm0, %v59_v0  ;;  %v56_v3 = vld [vmem:[%s11294_s1] sm:$0xff]  ;;  %v21_v5 = vld [vmem:[%s11295_s0 + $0x8] sm:$0xff]  ;;  %v22_v6 = vld [vmem:[%s11295_s0 + $0x10] sm:$0xff]  ;;  %411 = vst [vmem:[#allocation2 + $0x8] sm:$0xff] %v6153_v19  ;;  %vm899_vm4 = vcmask 1046532   ;;  %vm1100_vm6 = vcmask 1041408  }
   0x3   :  { %v20_v4 = vld [vmem:[%s11295_s0] sm:$0xff]  ;;  %v23_v7 = vld [vmem:[%s11295_s0 + $0x18] sm:$0xff]  ;;  %v25_v9 = vld [vmem:[%s11295_s0 + $0x28] sm:$0xff]  ;;  %412 = vst [vmem:[#allocation2 + $0x10] sm:$0xff] %v6153_v19  ;;  %vm1101_vm7 = vcmask 1045508   ;;  %vm1302_vm9 = vcmask 1044484  }
   0x4   :  { %190 = vmatpush.msra.mxu0 %v58_v1  ;;  %v24_v8 = vld [vmem:[%s11295_s0 + $0x20] sm:$0xff]  ;;  %v26_v10 = vld [vmem:[%s11295_s0 + $0x30] sm:$0xff]  ;;  %v27_v11 = vld [vmem:[%s11295_s0 + $0x38] sm:$0xff]  ;;  %413 = vst [vmem:[#allocation2 + $0x18] sm:$0xff] %v6153_v19 }
   0x5   :  { %v28_v12 = vld [vmem:[%s11295_s0 + $0x40] sm:$0xff]  ;;  %v29_v13 = vld [vmem:[%s11295_s0 + $0x48] sm:$0xff]  ;;  %v30_v14 = vld [vmem:[%s11295_s0 + $0x50] sm:$0xff]  ;;  %414 = vst [vmem:[#allocation2 + $0x20] sm:$0xff] %v6153_v19 }
   0x6   :  { %191 = vmatpush.msra.mxu0 %v57_v2  ;;  %v31_v15 = vld [vmem:[%s11295_s0 + $0x58] sm:$0xff]  ;;  %v32_v16 = vld [vmem:[%s11295_s0 + $0x60] sm:$0xff]  ;;  %v33_v17 = vld [vmem:[%s11295_s0 + $0x68] sm:$0xff]  ;;  %415 = vst [vmem:[#allocation2 + $0x28] sm:$0xff] %v6153_v19 }
   0x7   :  { %v34_v18 = vld [vmem:[%s11295_s0 + $0x70] sm:$0xff]  ;;  %416 = vst [vmem:[#allocation2 + $0x30] sm:$0xff] %v6153_v19  ;;  %v35_v20 = vld [vmem:[%s11295_s0 + $0x78] sm:$0xff]  ;;  %v6277_v21 = vld [vmem:[%s11296_s2] ss:$0 sm:$0xff] }
   0x8   :  { %192 = vmatpush.msra.mxu0 %v56_v3  ;;  %417 = vst [vmem:[#allocation2 + $0x38] sm:$0xff] %v6153_v19  ;;  %v36_v23 = vld [vmem:[%s11295_s0 + $0x80] sm:$0xff]  ;;  %v37_v28 = vld [vmem:[%s11295_s0 + $0x88] sm:$0xff]  ;;  %v38_v34 = vld [vmem:[%s11295_s0 + $0x90] sm:$0xff] }
   0x9   :  { %5988 = vmatmul.msk.f32.vlgmr.msra.gmra.mxu0 %vm64_vm1, %v20_v4  ;;  %418 = vst [vmem:[#allocation2 + $0x40] sm:$0xff] %v6153_v19  ;;  %v39_v38 = vld [vmem:[%s11295_s0 + $0x98] sm:$0xff]  ;;  %v40_v43 = vld [vmem:[%s11295_s0 + $0xa0] sm:$0xff]  ;;  %v41_v48 = vld [vmem:[%s11295_s0 + $0xa8] sm:$0xff] }
   0xa   :  { %419 = vst [vmem:[#allocation2 + $0x48] sm:$0xff] %v6153_v19  ;;  %v42_v52 = vld [vmem:[%s11295_s0 + $0xb0] sm:$0xff]  ;;  %v43_v57 = vld [vmem:[%s11295_s0 + $0xb8] sm:$0xff]  ;;  %v44_v63 = vld [vmem:[%s11295_s0 + $0xc0] sm:$0xff] }
   0xb   :  { %420 = vst [vmem:[#allocation2 + $0x50] sm:$0xff] %v6153_v19  ;;  %v45_v3 = vld [vmem:[%s11295_s0 + $0xc8] sm:$0xff]  ;;  %vm6962_vm5 = vmor %vm898_vm3, %vm899_vm4 }
   0xc   :  { %421 = vst [vmem:[#allocation2 + $0x58] sm:$0xff] %v6153_v19  ;;  %vm7030_vm8 = vmor %vm1100_vm6, %vm1101_vm7 }
   0xd   :  { %422 = vst [vmem:[#allocation2 + $0x60] sm:$0xff] %v6153_v19  ;;  %vm7079_vm10 = vmor %vm173_vm0, %vm1302_vm9 }
   0xe   :  { %423 = vst [vmem:[#allocation2 + $0x68] sm:$0xff] %v6153_v19 }
   0xf   :  { %424 = vst [vmem:[#allocation2 + $0x70] sm:$0xff] %v6153_v19 }
  0x10   :  { %425 = vst [vmem:[#allocation2 + $0x78] sm:$0xff] %v6153_v19 }
  0x11   :  { %5989 = vmatmul.msk.f32.gmra.mxu0 %vm64_vm1, %v21_v5  ;;  %426 = vst [vmem:[#allocation2 + $0x80] sm:$0xff] %v6153_v19 }
  0x12   :  { %427 = vst [vmem:[#allocation2 + $0x88] sm:$0xff] %v6153_v19 }
  0x13   :  { %428 = vst [vmem:[#allocation2 + $0x90] sm:$0xff] %v6153_v19 }
  0x14   :  { %429 = vst [vmem:[#allocation2 + $0x98] sm:$0xff] %v6153_v19 }
  0x15   :  { %430 = vst [vmem:[#allocation2 + $0xa0] sm:$0xff] %v6153_v19 }
  0x16   :  { %431 = vst [vmem:[#allocation2 + $0xa8] sm:$0xff] %v6153_v19 }
  0x17   :  { %432 = vst [vmem:[#allocation2 + $0xb0] sm:$0xff] %v6153_v19 }
  0x18   :  { %433 = vst [vmem:[#allocation2 + $0xb8] sm:$0xff] %v6153_v19 }
  0x19   :  { %5990 = vmatmul.msk.f32.gmra.mxu0 %vm64_vm1, %v22_v6  ;;  %434 = vst [vmem:[#allocation2 + $0xc0] sm:$0xff] %v6153_v19 }
  0x1a   :  { %435 = vst [vmem:[#allocation2 + $0xc8] sm:$0xff] %v6153_v19 }
  0x1b   :  { %436 = vst [vmem:[#allocation2 + $0xd0] sm:$0xff] %v6153_v19 }
  0x1c   :  { %437 = vst [vmem:[#allocation2 + $0xd8] sm:$0xff] %v6153_v19 }
  0x1d   :  { %438 = vst [vmem:[#allocation2 + $0xe0] sm:$0xff] %v6153_v19 }
  0x1e   :  { %439 = vst [vmem:[#allocation2 + $0xe8] sm:$0xff] %v6153_v19 }
  0x1f   :  { %440 = vst [vmem:[#allocation2 + $0xf0] sm:$0xff] %v6153_v19 }
  0x20   :  { %441 = vst [vmem:[#allocation2 + $0xf8] sm:$0xff] %v6153_v19 }
  0x21   :  { %5991 = vmatmul.msk.f32.gmra.mxu0 %vm64_vm1, %v23_v7  ;;  %442 = vst [vmem:[#allocation2 + $0x100] sm:$0xff] %v6153_v19 }
  0x22   :  { %443 = vst [vmem:[#allocation2 + $0x108] sm:$0xff] %v6153_v19 }
  0x23   :  { %444 = vst [vmem:[#allocation2 + $0x110] sm:$0xff] %v6153_v19 }
  0x24   :  { %445 = vst [vmem:[#allocation2 + $0x118] sm:$0xff] %v6153_v19 }
  0x25   :  { %446 = vst [vmem:[#allocation2 + $0x120] sm:$0xff] %v6153_v19 }
  0x26   :  { %447 = vst [vmem:[#allocation2 + $0x128] sm:$0xff] %v6153_v19 }
  0x27   :  { %448 = vst [vmem:[#allocation2 + $0x130] sm:$0xff] %v6153_v19 }
  0x28   :  { %449 = vst [vmem:[#allocation2 + $0x138] sm:$0xff] %v6153_v19 }
  0x29   :  { %5992 = vmatmul.msk.f32.gmra.mxu0 %vm64_vm1, %v24_v8  ;;  %450 = vst [vmem:[#allocation2 + $0x140] sm:$0xff] %v6153_v19 }
  0x2a   :  { %451 = vst [vmem:[#allocation2 + $0x148] sm:$0xff] %v6153_v19 }
  0x2b   :  { %452 = vst [vmem:[#allocation2 + $0x150] sm:$0xff] %v6153_v19 }
  0x2c   :  { %453 = vst [vmem:[#allocation2 + $0x158] sm:$0xff] %v6153_v19 }
  0x2d   :  { %454 = vst [vmem:[#allocation2 + $0x160] sm:$0xff] %v6153_v19 }
  0x2e   :  { %455 = vst [vmem:[#allocation2 + $0x168] sm:$0xff] %v6153_v19 }
  0x2f   :  { %456 = vst [vmem:[#allocation2 + $0x170] sm:$0xff] %v6153_v19 }
  0x30   :  { %457 = vst [vmem:[#allocation2 + $0x178] sm:$0xff] %v6153_v19 }
  0x31   :  { %5993 = vmatmul.msk.f32.gmra.mxu0 %vm64_vm1, %v25_v9  ;;  %458 = vst [vmem:[#allocation2 + $0x180] sm:$0xff] %v6153_v19  ;;  %v46_v9 = vld [vmem:[%s11295_s0 + $0xd0] sm:$0xff] }
  0x32   :  { %459 = vst [vmem:[#allocation2 + $0x188] sm:$0xff] %v6153_v19 }
  0x33   :  { %460 = vst [vmem:[#allocation2 + $0x190] sm:$0xff] %v6153_v19 }
  0x34   :  { %461 = vst [vmem:[#allocation2 + $0x198] sm:$0xff] %v6153_v19 }
  0x35   :  { %462 = vst [vmem:[#allocation2 + $0x1a0] sm:$0xff] %v6153_v19 }
  0x36   :  { %463 = vst [vmem:[#allocation2 + $0x1a8] sm:$0xff] %v6153_v19 }
  0x37   :  { %464 = vst [vmem:[#allocation2 + $0x1b0] sm:$0xff] %v6153_v19 }
  0x38   :  { %465 = vst [vmem:[#allocation2 + $0x1b8] sm:$0xff] %v6153_v19 }
  0x39   :  { %5994 = vmatmul.msk.f32.gmra.mxu0 %vm64_vm1, %v26_v10  ;;  %466 = vst [vmem:[#allocation2 + $0x1c0] sm:$0xff] %v6153_v19 }
  0x3a   :  { %467 = vst [vmem:[#allocation2 + $0x1c8] sm:$0xff] %v6153_v19 }
  0x3b   :  { %468 = vst [vmem:[#allocation2 + $0x1d0] sm:$0xff] %v6153_v19 }
  0x3c   :  { %469 = vst [vmem:[#allocation2 + $0x1d8] sm:$0xff] %v6153_v19 }
  0x3d   :  { %470 = vst [vmem:[#allocation2 + $0x1e0] sm:$0xff] %v6153_v19 }
  0x3e   :  { %471 = vst [vmem:[#allocation2 + $0x1e8] sm:$0xff] %v6153_v19 }
  0x3f   :  { %472 = vst [vmem:[#allocation2 + $0x1f0] sm:$0xff] %v6153_v19 }
  0x40   :  { %473 = vst [vmem:[#allocation2 + $0x1f8] sm:$0xff] %v6153_v19 }
  0x41   :  { %5995 = vmatmul.msk.f32.gmra.mxu0 %vm64_vm1, %v27_v11  ;;  %474 = vst [vmem:[#allocation2 + $0x200] sm:$0xff] %v6153_v19 }
  0x42   :  { %475 = vst [vmem:[#allocation2 + $0x208] sm:$0xff] %v6153_v19 }
  0x43   :  { %476 = vst [vmem:[#allocation2 + $0x210] sm:$0xff] %v6153_v19 }
  0x44   :  { %477 = vst [vmem:[#allocation2 + $0x218] sm:$0xff] %v6153_v19 }
  0x45   :  { %478 = vst [vmem:[#allocation2 + $0x220] sm:$0xff] %v6153_v19 }
  0x46   :  { %479 = vst [vmem:[#allocation2 + $0x228] sm:$0xff] %v6153_v19 }
  0x47   :  { %480 = vst [vmem:[#allocation2 + $0x230] sm:$0xff] %v6153_v19 }
  0x48   :  { %481 = vst [vmem:[#allocation2 + $0x238] sm:$0xff] %v6153_v19 }
  0x49   :  { %5996 = vmatmul.msk.f32.gmra.mxu0 %vm64_vm1, %v28_v12  ;;  %482 = vst [vmem:[#allocation2 + $0x240] sm:$0xff] %v6153_v19 }
  0x4a   :  { %483 = vst [vmem:[#allocation2 + $0x248] sm:$0xff] %v6153_v19 }
  0x4b   :  { %484 = vst [vmem:[#allocation2 + $0x250] sm:$0xff] %v6153_v19 }
  0x4c   :  { %485 = vst [vmem:[#allocation2 + $0x258] sm:$0xff] %v6153_v19 }
  0x4d   :  { %486 = vst [vmem:[#allocation2 + $0x260] sm:$0xff] %v6153_v19 }
  0x4e   :  { %487 = vst [vmem:[#allocation2 + $0x268] sm:$0xff] %v6153_v19 }
  0x4f   :  { %488 = vst [vmem:[#allocation2 + $0x270] sm:$0xff] %v6153_v19 }
  0x50   :  { %489 = vst [vmem:[#allocation2 + $0x278] sm:$0xff] %v6153_v19 }
  0x51   :  { %5997 = vmatmul.msk.f32.gmra.mxu0 %vm64_vm1, %v29_v13  ;;  %490 = vst [vmem:[#allocation2 + $0x280] sm:$0xff] %v6153_v19 }
  0x52   :  { %491 = vst [vmem:[#allocation2 + $0x288] sm:$0xff] %v6153_v19 }
  0x53   :  { %492 = vst [vmem:[#allocation2 + $0x290] sm:$0xff] %v6153_v19 }
  0x54   :  { %493 = vst [vmem:[#allocation2 + $0x298] sm:$0xff] %v6153_v19 }
  0x55   :  { %494 = vst [vmem:[#allocation2 + $0x2a0] sm:$0xff] %v6153_v19 }
  0x56   :  { %495 = vst [vmem:[#allocation2 + $0x2a8] sm:$0xff] %v6153_v19 }
  0x57   :  { %496 = vst [vmem:[#allocation2 + $0x2b0] sm:$0xff] %v6153_v19 }
  0x58   :  { %497 = vst [vmem:[#allocation2 + $0x2b8] sm:$0xff] %v6153_v19 }
  0x59   :  { %5998 = vmatmul.msk.f32.gmra.mxu0 %vm64_vm1, %v30_v14  ;;  %498 = vst [vmem:[#allocation2 + $0x2c0] sm:$0xff] %v6153_v19 }
  0x5a   :  { %499 = vst [vmem:[#allocation2 + $0x2c8] sm:$0xff] %v6153_v19 }
  0x5b   :  { %500 = vst [vmem:[#allocation2 + $0x2d0] sm:$0xff] %v6153_v19 }
  0x5c   :  { %501 = vst [vmem:[#allocation2 + $0x2d8] sm:$0xff] %v6153_v19 }
  0x5d   :  { %502 = vst [vmem:[#allocation2 + $0x2e0] sm:$0xff] %v6153_v19 }
  0x5e   :  { %503 = vst [vmem:[#allocation2 + $0x2e8] sm:$0xff] %v6153_v19 }
  0x5f   :  { %504 = vst [vmem:[#allocation2 + $0x2f0] sm:$0xff] %v6153_v19 }
  0x60   :  { %505 = vst [vmem:[#allocation2 + $0x2f8] sm:$0xff] %v6153_v19 }
  0x61   :  { %5999 = vmatmul.msk.f32.gmra.mxu0 %vm64_vm1, %v31_v15  ;;  %v47_v15 = vld [vmem:[%s11295_s0 + $0xd8] sm:$0xff]  ;;  %506 = vst [vmem:[#allocation2 + $0x300] sm:$0xff] %v6153_v19 }
  0x62   :  { %507 = vst [vmem:[#allocation2 + $0x308] sm:$0xff] %v6153_v19 }
  0x63   :  { %508 = vst [vmem:[#allocation2 + $0x310] sm:$0xff] %v6153_v19 }
  0x64   :  { %509 = vst [vmem:[#allocation2 + $0x318] sm:$0xff] %v6153_v19 }
  0x65   :  { %510 = vst [vmem:[#allocation2 + $0x320] sm:$0xff] %v6153_v19 }
  0x66   :  { %511 = vst [vmem:[#allocation2 + $0x328] sm:$0xff] %v6153_v19 }
  0x67   :  { %512 = vst [vmem:[#allocation2 + $0x330] sm:$0xff] %v6153_v19 }
  0x68   :  { %513 = vst [vmem:[#allocation2 + $0x338] sm:$0xff] %v6153_v19 }
  0x69   :  { %6000 = vmatmul.msk.f32.gmra.mxu0 %vm64_vm1, %v32_v16  ;;  %514 = vst [vmem:[#allocation2 + $0x340] sm:$0xff] %v6153_v19 }
  0x6a   :  { %515 = vst [vmem:[#allocation2 + $0x348] sm:$0xff] %v6153_v19 }
  0x6b   :  { %516 = vst [vmem:[#allocation2 + $0x350] sm:$0xff] %v6153_v19 }
  0x6c   :  { %517 = vst [vmem:[#allocation2 + $0x358] sm:$0xff] %v6153_v19 }
  0x6d   :  { %518 = vst [vmem:[#allocation2 + $0x360] sm:$0xff] %v6153_v19 }
  0x6e   :  { %519 = vst [vmem:[#allocation2 + $0x368] sm:$0xff] %v6153_v19 }
  0x6f   :  { %520 = vst [vmem:[#allocation2 + $0x370] sm:$0xff] %v6153_v19 }
  0x70   :  { %521 = vst [vmem:[#allocation2 + $0x378] sm:$0xff] %v6153_v19 }
  0x71   :  { %6001 = vmatmul.msk.f32.gmra.mxu0 %vm64_vm1, %v33_v17  ;;  %522 = vst [vmem:[#allocation2 + $0x380] sm:$0xff] %v6153_v19 }
  0x72   :  { %523 = vst [vmem:[#allocation2 + $0x388] sm:$0xff] %v6153_v19 }
  0x73   :  { %524 = vst [vmem:[#allocation2 + $0x390] sm:$0xff] %v6153_v19 }
  0x74   :  { %525 = vst [vmem:[#allocation2 + $0x398] sm:$0xff] %v6153_v19 }
  0x75   :  { %526 = vst [vmem:[#allocation2 + $0x3a0] sm:$0xff] %v6153_v19 }
  0x76   :  { %527 = vst [vmem:[#allocation2 + $0x3a8] sm:$0xff] %v6153_v19 }
  0x77   :  { %528 = vst [vmem:[#allocation2 + $0x3b0] sm:$0xff] %v6153_v19 }
  0x78   :  { %529 = vst [vmem:[#allocation2 + $0x3b8] sm:$0xff] %v6153_v19 }
  0x79   :  { %6002 = vmatmul.msk.f32.gmra.mxu0 %vm64_vm1, %v34_v18  ;;  %530 = vst [vmem:[#allocation2 + $0x3c0] sm:$0xff] %v6153_v19 }
  0x7a   :  { %531 = vst [vmem:[#allocation2 + $0x3c8] sm:$0xff] %v6153_v19 }
  0x7b   :  { %532 = vst [vmem:[#allocation2 + $0x3d0] sm:$0xff] %v6153_v19 }
  0x7c   :  { %533 = vst [vmem:[#allocation2 + $0x3d8] sm:$0xff] %v6153_v19 }
  0x7d   :  { %534 = vst [vmem:[#allocation2 + $0x3e0] sm:$0xff] %v6153_v19 }
  0x7e   :  { %535 = vst [vmem:[#allocation2 + $0x3e8] sm:$0xff] %v6153_v19 }
  0x7f   :  { %536 = vst [vmem:[#allocation2 + $0x3f0] sm:$0xff] %v6153_v19 }
  0x80   :  { %537 = vst [vmem:[#allocation2 + $0x3f8] sm:$0xff] %v6153_v19 }
  0x81   :  { %6003 = vmatmul.msk.f32.gmra.mxu0 %vm64_vm1, %v35_v20  ;;  %v48_v20 = vld [vmem:[%s11295_s0 + $0xe0] sm:$0xff]  ;;  %538 = vst [vmem:[#allocation2 + $0x400] sm:$0xff] %v6153_v19 }
  0x82   :  { %539 = vst [vmem:[#allocation2 + $0x408] sm:$0xff] %v6153_v19 }
  0x83   :  { %540 = vst [vmem:[#allocation2 + $0x410] sm:$0xff] %v6153_v19 }
  0x84   :  { %541 = vst [vmem:[#allocation2 + $0x418] sm:$0xff] %v6153_v19 }
  0x85   :  { %542 = vst [vmem:[#allocation2 + $0x420] sm:$0xff] %v6153_v19 }
  0x86   :  { %v194_v22 = vpop.f32.mrf.mxu0  ;;  %543 = vst [vmem:[#allocation2 + $0x428] sm:$0xff] %v6153_v19 }
  0x87   :  { %v195_v24 = vadd.f32 %v6277_v21, %v194_v22  ;;  %v3913_v22 = vld [vmem:[%s11297_s3 + $0x78] sm:$0xff]  ;;  %544 = vst [vmem:[#allocation2 + $0x430] sm:$0xff] %v6153_v19 }
  0x88   :  { %4302 = vmatpush.msrb.mxu0 %v3913_v22  ;;  %6096 = vmatpush.msra.mxu1 %v3913_v22  ;;  %545 = vst [vmem:[#allocation2 + $0x438] sm:$0xff] %v6153_v19 }
  0x89   :  { %v6289_v25 = vmax.f32 %v195_v24, 0.0  ;;  %6004 = vmatmul.msk.f32.gmra.mxu0 %vm64_vm1, %v36_v23  ;;  %v3912_v23 = vld [vmem:[%s11297_s3 + $0x70] sm:$0xff]  ;;  %546 = vst [vmem:[#allocation2 + $0x440] sm:$0xff] %v6153_v19 }
  0x8a   :  { %4303 = vmatpush.msrb.mxu0 %v3912_v23  ;;  %6097 = vmatpush.msra.mxu1 %v3912_v23  ;;  %547 = vst [vmem:[#allocation2 + $0x448] sm:$0xff] %v6153_v19 }
  0x8b   :  { %v6295_v26 = vrot.slane %v6289_v25, 4  ;;  %810 = vst [vmem:[#allocation1] ss:$2 sm:$0xff] %v6289_v25 }
  0x8c   :  { %548 = vst [vmem:[#allocation2 + $0x450] sm:$0xff] %v6153_v19 }
  0x8d   :  { %812 = vst [vmem:[#allocation1 + $0x1] ss:$2 sm:$0xff] %v6295_v26 }
  0x8e   :  { %v197_v27 = vpop.f32.mrf.mxu0  ;;  %549 = vst [vmem:[#allocation2 + $0x458] sm:$0xff] %v6153_v19 }
  0x8f   :  { %v198_v29 = vadd.f32 %v6277_v21, %v197_v27  ;;  %v49_v27 = vld [vmem:[%s11295_s0 + $0xe8] sm:$0xff]  ;;  %550 = vst [vmem:[#allocation2 + $0x460] sm:$0xff] %v6153_v19 }
  0x90   :  { %551 = vst [vmem:[#allocation2 + $0x468] sm:$0xff] %v6153_v19 }
  0x91   :  { %v6307_v30 = vmax.f32 %v198_v29, 0.0  ;;  %6005 = vmatmul.msk.f32.gmra.mxu0 %vm64_vm1, %v37_v28  ;;  %v3911_v28 = vld [vmem:[%s11297_s3 + $0x68] sm:$0xff]  ;;  %v3910_v29 = vld [vmem:[%s11297_s3 + $0x60] sm:$0xff]  ;;  %552 = vst [vmem:[#allocation2 + $0x470] sm:$0xff] %v6153_v19 }
  0x92   :  { %4304 = vmatpush.msrb.mxu0 %v3911_v28  ;;  %6098 = vmatpush.msra.mxu1 %v3911_v28  ;;  %553 = vst [vmem:[#allocation2 + $0x478] sm:$0xff] %v6153_v19 }
  0x93   :  { %v6313_v31 = vrot.slane %v6307_v30, 4  ;;  %554 = vst [vmem:[#allocation2 + $0x480] sm:$0xff] %v6153_v19 }
  0x94   :  { %v825_v32 = vld.sshfl [vmem:[#allocation1] sm:$0xff pattern:$0x75316420]  ;;  %4305 = vmatpush.msrb.mxu0 %v3910_v29  ;;  %6099 = vmatpush.msra.mxu1 %v3910_v29  ;;  %555 = vst [vmem:[#allocation2 + $0x488] sm:$0xff] %v6153_v19 }
  0x95   :  { %814 = vst [vmem:[#allocation1 + $0x10] ss:$2 sm:$0xff] %v6313_v31 }
  0x96   :  { %v200_v33 = vpop.f32.mrf.mxu0  ;;  %882 = vst.msk [vmem:[#allocation2] sm:$0xff] %vm881_vm2, %v825_v32  ;;  %v3909_v32 = vld [vmem:[%s11297_s3 + $0x58] sm:$0xff] }
  0x97   :  { %v201_v35 = vadd.f32 %v6277_v21, %v200_v33  ;;  %4306 = vmatpush.msrb.mxu0 %v3909_v32  ;;  %6100 = vmatpush.msra.mxu1 %v3909_v32  ;;  %v3908_v33 = vld [vmem:[%s11297_s3 + $0x50] sm:$0xff]  ;;  %556 = vst [vmem:[#allocation2 + $0x490] sm:$0xff] %v6153_v19  ;;  %v6907_v32 = vld [vmem:[%s11296_s2] ss:$0 sm:$0xff] }
  0x98   :  { %557 = vst [vmem:[#allocation2 + $0x498] sm:$0xff] %v6153_v19 }
  0x99   :  { %v6325_v36 = vmax.f32 %v201_v35, 0.0  ;;  %6006 = vmatmul.msk.f32.gmra.mxu0 %vm64_vm1, %v38_v34  ;;  %v50_v35 = vld [vmem:[%s11295_s0 + $0xf0] sm:$0xff]  ;;  %6101 = vmatpush.msra.mxu1 %v3908_v33  ;;  %558 = vst [vmem:[#allocation2 + $0x4a0] sm:$0xff] %v6153_v19 }
  0x9a   :  { %4307 = vmatpush.msrb.mxu0 %v3908_v33  ;;  %559 = vst [vmem:[#allocation2 + $0x4a8] sm:$0xff] %v6153_v19 }
  0x9b   :  { %816 = vst [vmem:[#allocation1 + $0x11] ss:$2 sm:$0xff] %v6325_v36 }
  0x9c   :  { %560 = vst [vmem:[#allocation2 + $0x4b0] sm:$0xff] %v6153_v19 }
  0x9d   :  { %561 = vst [vmem:[#allocation2 + $0x4b8] sm:$0xff] %v6153_v19 }
  0x9e   :  { %v203_v37 = vpop.f32.mrf.mxu0  ;;  %562 = vst [vmem:[#allocation2 + $0x4c0] sm:$0xff] %v6153_v19 }
  0x9f   :  { %v204_v39 = vadd.f32 %v6277_v21, %v203_v37  ;;  %v3907_v37 = vld [vmem:[%s11297_s3 + $0x48] sm:$0xff]  ;;  %563 = vst [vmem:[#allocation2 + $0x4c8] sm:$0xff] %v6153_v19 }
  0xa0   :  { %4308 = vmatpush.msrb.mxu0 %v3907_v37  ;;  %6102 = vmatpush.msra.mxu1 %v3907_v37  ;;  %564 = vst [vmem:[#allocation2 + $0x4d0] sm:$0xff] %v6153_v19 }
  0xa1   :  { %v6340_v40 = vmax.f32 %v204_v39, 0.0  ;;  %6007 = vmatmul.msk.f32.gmra.mxu0 %vm64_vm1, %v39_v38  ;;  %v3906_v38 = vld [vmem:[%s11297_s3 + $0x40] sm:$0xff]  ;;  %v3905_v39 = vld [vmem:[%s11297_s3 + $0x38] sm:$0xff]  ;;  %565 = vst [vmem:[#allocation2 + $0x4d8] sm:$0xff] %v6153_v19 }
  0xa2   :  { %v6418_v61 = vld.sshfl [vmem:[#allocation1 + $0x10] sm:$0xff pattern:$0x75316420]  ;;  %4309 = vmatpush.msrb.mxu0 %v3906_v38  ;;  %6103 = vmatpush.msra.mxu1 %v3906_v38  ;;  %566 = vst [vmem:[#allocation2 + $0x4e0] sm:$0xff] %v6153_v19 }
  0xa3   :  { %v6346_v41 = vrot.slane %v6340_v40, 4  ;;  %818 = vst [vmem:[#allocation1 + $0x20] ss:$2 sm:$0xff] %v6340_v40 }
  0xa4   :  { %4310 = vmatpush.msrb.mxu0 %v3905_v39  ;;  %6104 = vmatpush.msra.mxu1 %v3905_v39  ;;  %567 = vst [vmem:[#allocation2 + $0x4e8] sm:$0xff] %v6153_v19 }
  0xa5   :  { %820 = vst [vmem:[#allocation1 + $0x21] ss:$2 sm:$0xff] %v6346_v41 }
  0xa6   :  { %v206_v42 = vpop.f32.mrf.mxu0  ;;  %568 = vst [vmem:[#allocation2 + $0x4f0] sm:$0xff] %v6153_v19 }
  0xa7   :  { %v207_v44 = vadd.f32 %v6277_v21, %v206_v42  ;;  %v3904_v42 = vld [vmem:[%s11297_s3 + $0x30] sm:$0xff]  ;;  %569 = vst [vmem:[#allocation2 + $0x4f8] sm:$0xff] %v6153_v19 }
  0xa8   :  { %4311 = vmatpush.msrb.mxu0 %v3904_v42  ;;  %6105 = vmatpush.msra.mxu1 %v3904_v42  ;;  %570 = vst [vmem:[#allocation2 + $0x500] sm:$0xff] %v6153_v19 }
  0xa9   :  { %v6358_v45 = vmax.f32 %v207_v44, 0.0  ;;  %6008 = vmatmul.msk.f32.gmra.mxu0 %vm64_vm1, %v40_v43  ;;  %v51_v44 = vld [vmem:[%s11295_s0 + $0xf8] sm:$0xff]  ;;  %571 = vst [vmem:[#allocation2 + $0x508] sm:$0xff] %v6153_v19 }
  0xaa   :  { %572 = vst [vmem:[#allocation2 + $0x510] sm:$0xff] %v6153_v19 }
  0xab   :  { %v6364_v46 = vrot.slane %v6358_v45, 4  ;;  %573 = vst [vmem:[#allocation2 + $0x518] sm:$0xff] %v6153_v19 }
  0xac   :  { %v6448_v6 = vld.sshfl [vmem:[#allocation1 + $0x20] sm:$0xff pattern:$0x75316420]  ;;  %574 = vst [vmem:[#allocation2 + $0x520] sm:$0xff] %v6153_v19 }
  0xad   :  { %822 = vst [vmem:[#allocation1 + $0x30] ss:$2 sm:$0xff] %v6364_v46 }
  0xae   :  { %v209_v47 = vpop.f32.mrf.mxu0  ;;  %575 = vst [vmem:[#allocation2 + $0x528] sm:$0xff] %v6153_v19 }
  0xaf   :  { %v210_v49 = vadd.f32 %v6277_v21, %v209_v47  ;;  %v3903_v47 = vld [vmem:[%s11297_s3 + $0x28] sm:$0xff]  ;;  %576 = vst [vmem:[#allocation2 + $0x530] sm:$0xff] %v6153_v19 }
  0xb0   :  { %4312 = vmatpush.msrb.mxu0 %v3903_v47  ;;  %6106 = vmatpush.msra.mxu1 %v3903_v47  ;;  %577 = vst [vmem:[#allocation2 + $0x538] sm:$0xff] %v6153_v19 }
  0xb1   :  { %v6376_v50 = vmax.f32 %v210_v49, 0.0  ;;  %6009 = vmatmul.msk.f32.gmra.mxu0 %vm64_vm1, %v41_v48  ;;  %v3902_v48 = vld [vmem:[%s11297_s3 + $0x20] sm:$0xff]  ;;  %v3901_v49 = vld [vmem:[%s11297_s3 + $0x18] sm:$0xff]  ;;  %578 = vst [vmem:[#allocation2 + $0x540] sm:$0xff] %v6153_v19 }
  0xb2   :  { %4313 = vmatpush.msrb.mxu0 %v3902_v48  ;;  %6107 = vmatpush.msra.mxu1 %v3902_v48  ;;  %579 = vst [vmem:[#allocation2 + $0x548] sm:$0xff] %v6153_v19 }
  0xb3   :  { %11633 = vst [vmem:[#allocation3_spill] sm:$0xff] %v6376_v50 }
  0xb4   :  { %824 = vst [vmem:[#allocation1 + $0x31] ss:$2 sm:$0xff] %v6376_v50  ;;  %4314 = vmatpush.msrb.mxu0 %v3901_v49  ;;  %6108 = vmatpush.msra.mxu1 %v3901_v49 }
  0xb5   :  { %580 = vst [vmem:[#allocation2 + $0x550] sm:$0xff] %v6153_v19 }
  0xb6   :  { %v212_v51 = vpop.f32.mrf.mxu0  ;;  %581 = vst [vmem:[#allocation2 + $0x558] sm:$0xff] %v6153_v19 }
  0xb7   :  { %v213_v53 = vadd.f32 %v6277_v21, %v212_v51  ;;  %v3900_v51 = vld [vmem:[%s11297_s3 + $0x10] sm:$0xff]  ;;  %582 = vst [vmem:[#allocation2 + $0x560] sm:$0xff] %v6153_v19 }
  0xb8   :  { %4315 = vmatpush.msrb.mxu0 %v3900_v51  ;;  %6109 = vmatpush.msra.mxu1 %v3900_v51  ;;  %583 = vst [vmem:[#allocation2 + $0x568] sm:$0xff] %v6153_v19 }
  0xb9   :  { %v6391_v54 = vmax.f32 %v213_v53, 0.0  ;;  %6010 = vmatmul.msk.f32.gmra.mxu0 %vm64_vm1, %v42_v52  ;;  %v52_v53 = vld [vmem:[%s11295_s0 + $0x100] sm:$0xff]  ;;  %584 = vst [vmem:[#allocation2 + $0x570] sm:$0xff] %v6153_v19 }
  0xba   :  { %585 = vst [vmem:[#allocation2 + $0x578] sm:$0xff] %v6153_v19 }
  0xbb   :  { %11634 = vst [vmem:[#allocation4_spill] sm:$0xff] %v6391_v54  ;;  %v6397_v55 = vrot.slane %v6391_v54, 4  ;;  %v6473_v13 = vld.sshfl [vmem:[#allocation1 + $0x30] sm:$0xff pattern:$0x75316420] }
  0xbc   :  { %829 = vst [vmem:[#allocation1] ss:$2 sm:$0xff] %v6391_v54 }
  0xbd   :  { %11635 = vst [vmem:[#allocation5_spill] sm:$0xff] %v6397_v55 }
  0xbe   :  { %830 = vst [vmem:[#allocation1 + $0x1] ss:$2 sm:$0xff] %v6397_v55  ;;  %v215_v56 = vpop.f32.mrf.mxu0 }
  0xbf   :  { %v216_v58 = vadd.f32 %v6277_v21, %v215_v56  ;;  %v3899_v56 = vld [vmem:[%s11297_s3 + $0x8] sm:$0xff]  ;;  %586 = vst [vmem:[#allocation2 + $0x580] sm:$0xff] %v6153_v19 }
  0xc0   :  { %4316 = vmatpush.msrb.mxu0 %v3899_v56  ;;  %6110 = vmatpush.msra.mxu1 %v3899_v56  ;;  %587 = vst [vmem:[#allocation2 + $0x588] sm:$0xff] %v6153_v19 }
  0xc1   :  { %v6409_v59 = vmax.f32 %v216_v58, 0.0  ;;  %6011 = vmatmul.msk.f32.gmra.mxu0 %vm64_vm1, %v43_v57  ;;  %v3898_v57 = vld [vmem:[%s11297_s3] sm:$0xff]  ;;  %588 = vst [vmem:[#allocation2 + $0x590] sm:$0xff] %v6153_v19 }
  0xc2   :  { %4317 = vmatpush.msrb.mxu0 %v3898_v57  ;;  %6111 = vmatpush.msra.mxu1 %v3898_v57  ;;  %589 = vst [vmem:[#allocation2 + $0x598] sm:$0xff] %v6153_v19 }
  0xc3   :  { %11636 = vst [vmem:[#allocation6_spill] sm:$0xff] %v6409_v59  ;;  %v6415_v60 = vrot.slane %v6409_v59, 4 }
  0xc4   :  { %590 = vst [vmem:[#allocation2 + $0x5a0] sm:$0xff] %v6153_v19 }
  0xc5   :  { %11637 = vst [vmem:[#allocation7_spill] sm:$0xff] %v6415_v60 }
  0xc6   :  { %831 = vst [vmem:[#allocation1 + $0x10] ss:$2 sm:$0xff] %v6415_v60  ;;  %v218_v62 = vpop.f32.mrf.mxu0 }
  0xc7   :  { %v219_v0 = vadd.f32 %v6277_v21, %v218_v62  ;;  %v53_v62 = vld [vmem:[%s11295_s0 + $0x108] sm:$0xff]  ;;  %591 = vst [vmem:[#allocation2 + $0x5a8] sm:$0xff] %v6153_v19 }
  0xc8   :  { %592 = vst [vmem:[#allocation2 + $0x5b0] sm:$0xff] %v6153_v19 }
  0xc9   :  { %v6429_v1 = vmax.f32 %v219_v0, 0.0  ;;  %6012 = vmatmul.msk.f32.gmra.mxu0 %vm64_vm1, %v44_v63  ;;  %v54_v0 = vld [vmem:[%s11295_s0 + $0x110] sm:$0xff]  ;;  %593 = vst [vmem:[#allocation2 + $0x5b8] sm:$0xff] %v6153_v19 }
  0xca   :  { %594 = vst [vmem:[#allocation2 + $0x5c0] sm:$0xff] %v6153_v19 }
  0xcb   :  { %11638 = vst [vmem:[#allocation8_spill] sm:$0xff] %v6429_v1 }
  0xcc   :  { %832 = vst [vmem:[#allocation1 + $0x11] ss:$2 sm:$0xff] %v6429_v1 }
  0xcd   :  { %595 = vst [vmem:[#allocation2 + $0x5c8] sm:$0xff] %v6153_v19 }
  0xce   :  { %v221_v2 = vpop.f32.mrf.mxu0  ;;  %596 = vst [vmem:[#allocation2 + $0x5d0] sm:$0xff] %v6153_v19 }
  0xcf   :  { %v222_v4 = vadd.f32 %v6277_v21, %v221_v2  ;;  %597 = vst [vmem:[#allocation2 + $0x5d8] sm:$0xff] %v6153_v19 }
  0xd0   :  { %598 = vst [vmem:[#allocation2 + $0x5e0] sm:$0xff] %v6153_v19 }
  0xd1   :  { %v6444_v5 = vmax.f32 %v222_v4, 0.0  ;;  %6013 = vmatmul.msk.f32.gmra.mxu0 %vm64_vm1, %v45_v3  ;;  %v6635_v4 = vld.sshfl [vmem:[#allocation1] sm:$0xff pattern:$0x75316420]  ;;  %599 = vst [vmem:[#allocation2 + $0x5e8] sm:$0xff] %v6153_v19 }
  0xd2   :  { %600 = vst [vmem:[#allocation2 + $0x5f0] sm:$0xff] %v6153_v19 }
  0xd3   :  { %11639 = vst [vmem:[#allocation9_spill] sm:$0xff] %v6444_v5  ;;  %v6452_v7 = vrot.slane %v6444_v5, 4 }
  0xd4   :  { %833 = vst [vmem:[#allocation1 + $0x20] ss:$2 sm:$0xff] %v6444_v5 }
  0xd5   :  { %11640 = vst [vmem:[#allocation10_spill] sm:$0xff] %v6452_v7 }
  0xd6   :  { %834 = vst [vmem:[#allocation1 + $0x21] ss:$2 sm:$0xff] %v6452_v7  ;;  %v224_v8 = vpop.f32.mrf.mxu0 }
  0xd7   :  { %v225_v10 = vadd.f32 %v6277_v21, %v224_v8  ;;  %601 = vst [vmem:[#allocation2 + $0x5f8] sm:$0xff] %v6153_v19 }
  0xd8   :  { %602 = vst [vmem:[#allocation2 + $0x600] sm:$0xff] %v6153_v19 }
  0xd9   :  { %v6464_v11 = vmax.f32 %v225_v10, 0.0  ;;  %6014 = vmatmul.msk.f32.gmra.mxu0 %vm64_vm1, %v46_v9  ;;  %v55_v10 = vld [vmem:[%s11295_s0 + $0x118] sm:$0xff]  ;;  %603 = vst [vmem:[#allocation2 + $0x608] sm:$0xff] %v6153_v19 }
  0xda   :  { %604 = vst [vmem:[#allocation2 + $0x610] sm:$0xff] %v6153_v19 }
  0xdb   :  { %11641 = vst [vmem:[#allocation11_spill] sm:$0xff] %v6464_v11  ;;  %v6470_v12 = vrot.slane %v6464_v11, 4 }
  0xdc   :  { %605 = vst [vmem:[#allocation2 + $0x618] sm:$0xff] %v6153_v19 }
  0xdd   :  { %11642 = vst [vmem:[#allocation12_spill] sm:$0xff] %v6470_v12  ;;  %v839_v39 = vld.sshfl [vmem:[#allocation1 + $0x20] sm:$0xff pattern:$0x75316420] }
  0xde   :  { %835 = vst [vmem:[#allocation1 + $0x30] ss:$2 sm:$0xff] %v6470_v12  ;;  %v227_v14 = vpop.f32.mrf.mxu0 }
  0xdf   :  { %v228_v16 = vadd.f32 %v6277_v21, %v227_v14  ;;  %606 = vst [vmem:[#allocation2 + $0x620] sm:$0xff] %v6153_v19 }
  0xe0   :  { %607 = vst [vmem:[#allocation2 + $0x628] sm:$0xff] %v6153_v19 }
  0xe1   :  { %v6484_v17 = vmax.f32 %v228_v16, 0.0  ;;  %6015 = vmatmul.msk.f32.gmra.mxu0 %vm64_vm1, %v47_v15  ;;  %608 = vst [vmem:[#allocation2 + $0x630] sm:$0xff] %v6153_v19 }
  0xe2   :  { %609 = vst [vmem:[#allocation2 + $0x638] sm:$0xff] %v6153_v19 }
  0xe3   :  { %11643 = vst [vmem:[#allocation13_spill] sm:$0xff] %v6484_v17 }
  0xe4   :  { %836 = vst [vmem:[#allocation1 + $0x31] ss:$2 sm:$0xff] %v6484_v17 }
  0xe5   :  { %610 = vst [vmem:[#allocation2 + $0x640] sm:$0xff] %v6153_v19 }
  0xe6   :  { %v6492_v18 = vpop.f32.mrf.mxu0  ;;  %611 = vst [vmem:[#allocation2 + $0x648] sm:$0xff] %v6153_v19 }
  0xe7   :  { %11644 = vst [vmem:[#allocation14_spill] sm:$0xff] %v6492_v18  ;;  %v6042_v18 = vrot.slane %v6340_v40, 10 }
  0xe8   :  { %612 = vst [vmem:[#allocation2 + $0x650] sm:$0xff] %v6153_v19 }
  0xe9   :  { %6016 = vmatmul.msk.f32.gmra.mxu0 %vm64_vm1, %v48_v20  ;;  %v6660_v20 = vld.sshfl [vmem:[#allocation1 + $0x10] sm:$0xff pattern:$0x75316420]  ;;  %613 = vst [vmem:[#allocation2 + $0x658] sm:$0xff] %v6153_v19 }
  0xea   :  { %614 = vst [vmem:[#allocation2 + $0x660] sm:$0xff] %v6153_v19 }
  0xeb   :  { %615 = vst [vmem:[#allocation2 + $0x668] sm:$0xff] %v6153_v19  ;;  %v840_v57 = vld.sshfl [vmem:[#allocation1 + $0x30] sm:$0xff pattern:$0x75316420] }
  0xec   :  { %616 = vst [vmem:[#allocation2 + $0x670] sm:$0xff] %v6153_v19 }
  0xed   :  { %617 = vst [vmem:[#allocation2 + $0x678] sm:$0xff] %v6153_v19 }
  0xee   :  { %v6512_v24 = vpop.f32.mrf.mxu0  ;;  %618 = vst [vmem:[#allocation2 + $0x680] sm:$0xff] %v6153_v19 }
  0xef   :  { %11645 = vst [vmem:[#allocation15_spill] sm:$0xff] %v6512_v24 }
  0xf0   :  { %619 = vst [vmem:[#allocation2 + $0x688] sm:$0xff] %v6153_v19 }
  0xf1   :  { %6017 = vmatmul.msk.f32.gmra.mxu0 %vm64_vm1, %v49_v27  ;;  %v3498_v27 = vld [vmem:[#allocation2] sm:$0xff]  ;;  %620 = vst [vmem:[#allocation2 + $0x690] sm:$0xff] %v6153_v19 }
  0xf2   :  { %621 = vst [vmem:[#allocation2 + $0x698] sm:$0xff] %v6153_v19 }
  0xf3   :  { %622 = vst [vmem:[#allocation2 + $0x6a0] sm:$0xff] %v6153_v19 }
  0xf4   :  { %623 = vst [vmem:[#allocation2 + $0x6a8] sm:$0xff] %v6153_v19 }
  0xf5   :  { %624 = vst [vmem:[#allocation2 + $0x6b0] sm:$0xff] %v6153_v19 }
  0xf6   :  { %v6538_v34 = vpop.f32.mrf.mxu0  ;;  %625 = vst [vmem:[#allocation2 + $0x6b8] sm:$0xff] %v6153_v19 }
  0xf7   :  { %11646 = vst [vmem:[#allocation16_spill] sm:$0xff] %v6538_v34 }
  0xf8   :  { %626 = vst [vmem:[#allocation2 + $0x6c0] sm:$0xff] %v6153_v19 }
  0xf9   :  { %6018 = vmatmul.msk.f32.gmra.mxu0 %vm64_vm1, %v50_v35  ;;  %627 = vst [vmem:[#allocation2 + $0x6c8] sm:$0xff] %v6153_v19 }
  0xfa   :  { %628 = vst [vmem:[#allocation2 + $0x6d0] sm:$0xff] %v6153_v19 }
  0xfb   :  { %629 = vst [vmem:[#allocation2 + $0x6d8] sm:$0xff] %v6153_v19 }
  0xfc   :  { %630 = vst [vmem:[#allocation2 + $0x6e0] sm:$0xff] %v6153_v19 }
  0xfd   :  { %631 = vst [vmem:[#allocation2 + $0x6e8] sm:$0xff] %v6153_v19 }
  0xfe   :  { %v6564_v43 = vpop.f32.mrf.mxu0  ;;  %632 = vst [vmem:[#allocation2 + $0x6f0] sm:$0xff] %v6153_v19 }
  0xff   :  { %11647 = vst [vmem:[#allocation17_spill] sm:$0xff] %v6564_v43  ;;  %v6026_v43 = vrot.slane %v6340_v40, 9 }
 0x100   :  { %633 = vst [vmem:[#allocation2 + $0x6f8] sm:$0xff] %v6153_v19 }
 0x101   :  { %6019 = vmatmul.msk.f32.gmra.mxu0 %vm64_vm1, %v51_v44  ;;  %634 = vst [vmem:[#allocation2 + $0x700] sm:$0xff] %v6153_v19 }
 0x102   :  { %635 = vst [vmem:[#allocation2 + $0x708] sm:$0xff] %v6153_v19 }
 0x103   :  { %636 = vst [vmem:[#allocation2 + $0x710] sm:$0xff] %v6153_v19 }
 0x104   :  { %637 = vst [vmem:[#allocation2 + $0x718] sm:$0xff] %v6153_v19 }
 0x105   :  { %638 = vst [vmem:[#allocation2 + $0x720] sm:$0xff] %v6153_v19 }
 0x106   :  { %v6590_v52 = vpop.f32.mrf.mxu0  ;;  %639 = vst [vmem:[#allocation2 + $0x728] sm:$0xff] %v6153_v19 }
 0x107   :  { %11648 = vst [vmem:[#allocation18_spill] sm:$0xff] %v6590_v52  ;;  %v6029_v52 = vrot.slane %v6415_v60, 9 }
 0x108   :  { %640 = vst [vmem:[#allocation2 + $0x730] sm:$0xff] %v6153_v19 }
 0x109   :  { %6020 = vmatmul.msk.f32.gmra.mxu0 %vm64_vm1, %v52_v53  ;;  %641 = vst [vmem:[#allocation2 + $0x738] sm:$0xff] %v6153_v19 }
 0x10a   :  { %642 = vst [vmem:[#allocation2 + $0x740] sm:$0xff] %v6153_v19 }
 0x10b   :  { %643 = vst [vmem:[#allocation2 + $0x748] sm:$0xff] %v6153_v19 }
 0x10c   :  { %644 = vst [vmem:[#allocation2 + $0x750] sm:$0xff] %v6153_v19 }
 0x10d   :  { %645 = vst [vmem:[#allocation2 + $0x758] sm:$0xff] %v6153_v19 }
 0x10e   :  { %v6610_v58 = vpop.f32.mrf.mxu0  ;;  %646 = vst [vmem:[#allocation2 + $0x760] sm:$0xff] %v6153_v19 }
 0x10f   :  { %11649 = vst [vmem:[#allocation19_spill] sm:$0xff] %v6610_v58  ;;  %v938_v58 = vrot.slane %v6429_v1, 5 }
 0x110   :  { %647 = vst [vmem:[#allocation2 + $0x768] sm:$0xff] %v6153_v19 }
 0x111   :  { %6021 = vmatmul.msk.f32.gmra.mxu0 %vm64_vm1, %v53_v62  ;;  %648 = vst [vmem:[#allocation2 + $0x770] sm:$0xff] %v6153_v19 }
 0x112   :  { %649 = vst [vmem:[#allocation2 + $0x778] sm:$0xff] %v6153_v19 }
 0x113   :  { %650 = vst [vmem:[#allocation2 + $0x780] sm:$0xff] %v6153_v19 }
 0x114   :  { %651 = vst [vmem:[#allocation2 + $0x788] sm:$0xff] %v6153_v19 }
 0x115   :  { %652 = vst [vmem:[#allocation2 + $0x790] sm:$0xff] %v6153_v19 }
 0x116   :  { %v248_v63 = vpop.f32.mrf.mxu0  ;;  %653 = vst [vmem:[#allocation2 + $0x798] sm:$0xff] %v6153_v19 }
 0x117   :  { %v249_v2 = vadd.f32 %v6277_v21, %v248_v63  ;;  %654 = vst [vmem:[#allocation2 + $0x7a0] sm:$0xff] %v6153_v19 }
 0x118   :  { %655 = vst [vmem:[#allocation2 + $0x7a8] sm:$0xff] %v6153_v19 }
 0x119   :  { %v6631_v3 = vmax.f32 %v249_v2, 0.0  ;;  %6022 = vmatmul.msk.f32.gmra.mxu0 %vm64_vm1, %v54_v0  ;;  %656 = vst [vmem:[#allocation2 + $0x7b0] sm:$0xff] %v6153_v19  ;;  %v903_v0 = vrot.slane %v6295_v26, 5 }
 0x11a   :  { %657 = vst [vmem:[#allocation2 + $0x7b8] sm:$0xff] %v6153_v19 }
 0x11b   :  { %v6639_v8 = vrot.slane %v6631_v3, 4  ;;  %841 = vst [vmem:[#allocation1] ss:$2 sm:$0xff] %v6631_v3 }
 0x11c   :  { %658 = vst [vmem:[#allocation2 + $0x7c0] sm:$0xff] %v6153_v19 }
 0x11d   :  { %842 = vst [vmem:[#allocation1 + $0x1] ss:$2 sm:$0xff] %v6639_v8 }
 0x11e   :  { %v251_v9 = vpop.f32.mrf.mxu0  ;;  %659 = vst [vmem:[#allocation2 + $0x7c8] sm:$0xff] %v6153_v19 }
 0x11f   :  { %v252_v14 = vadd.f32 %v6277_v21, %v251_v9  ;;  %660 = vst [vmem:[#allocation2 + $0x7d0] sm:$0xff] %v6153_v19  ;;  %v906_v9 = vrot.slane %v6307_v30, 5 }
 0x120   :  { %661 = vst [vmem:[#allocation2 + $0x7d8] sm:$0xff] %v6153_v19 }
 0x121   :  { %v6651_v15 = vmax.f32 %v252_v14, 0.0  ;;  %6023 = vmatmul.msk.f32.gmra.mxu0 %vm64_vm1, %v55_v10  ;;  %662 = vst [vmem:[#allocation2 + $0x7e0] sm:$0xff] %v6153_v19  ;;  %v3929_v10 = vld [vmem:[%s11297_s3 + $0xf8] sm:$0xff]  ;;  %v3928_v14 = vld [vmem:[%s11297_s3 + $0xf0] sm:$0xff] }
 0x122   :  { %663 = vst [vmem:[#allocation2 + $0x7e8] sm:$0xff] %v6153_v19  ;;  %4367 = vmatpush.msra.mxu2 %v3929_v10 }
 0x123   :  { %v6657_v16 = vrot.slane %v6651_v15, 4  ;;  %664 = vst [vmem:[#allocation2 + $0x7f0] sm:$0xff] %v6153_v19  ;;  %v962_v10 = vrot.slane %v6651_v15, 5 }
 0x124   :  { %665 = vst [vmem:[#allocation2 + $0x7f8] sm:$0xff] %v6153_v19  ;;  %v849_v49 = vld.sshfl [vmem:[#allocation1] sm:$0xff pattern:$0x75316420]  ;;  %4368 = vmatpush.msra.mxu2 %v3928_v14  ;;  %v6032_v14 = vrot.slane %v6631_v3, 9 }
 0x125   :  { %843 = vst [vmem:[#allocation1 + $0x10] ss:$2 sm:$0xff] %v6657_v16 }
 0x126   :  { %v254_v22 = vpop.f32.mrf.mxu0  ;;  %666 = vst [vmem:[#allocation2 + $0x800] sm:$0xff] %v6153_v19 }
 0x127   :  { %v255_v23 = vadd.f32 %v6277_v21, %v254_v22  ;;  %667 = vst [vmem:[#allocation2 + $0x808] sm:$0xff] %v6153_v19  ;;  %v6841_v21 = vld [vmem:[#allocation2 + $0x8] sm:$0xff]  ;;  %v6024_v22 = vrot.slane %v6289_v25, 9 }
 0x128   :  { %668 = vst [vmem:[#allocation2 + $0x810] sm:$0xff] %v6153_v19 }
 0x129   :  { %v6668_v28 = vmax.f32 %v255_v23, 0.0  ;;  %4318 = vmatmul.f32.vlgmr.msrb.gmra.mxu0 %v3498_v27  ;;  %669 = vst [vmem:[#allocation2 + $0x818] sm:$0xff] %v6153_v19 }
 0x12a   :  { %670 = vst [vmem:[#allocation2 + $0x820] sm:$0xff] %v6153_v19 }
 0x12b   :  { %844 = vst [vmem:[#allocation1 + $0x11] ss:$2 sm:$0xff] %v6668_v28 }
 0x12c   :  { %671 = vst [vmem:[#allocation2 + $0x828] sm:$0xff] %v6153_v19 }
 0x12d   :  { %672 = vst [vmem:[#allocation2 + $0x830] sm:$0xff] %v6153_v19 }
 0x12e   :  { %673 = vst [vmem:[#allocation2 + $0x838] sm:$0xff] %v6153_v19 }
 0x12f   :  { %674 = vst [vmem:[#allocation2 + $0x840] sm:$0xff] %v6153_v19 }
 0x130   :  { %675 = vst [vmem:[#allocation2 + $0x848] sm:$0xff] %v6153_v19 }
 0x131   :  { %676 = vst [vmem:[#allocation2 + $0x850] sm:$0xff] %v6153_v19 }
 0x132   :  { %677 = vst [vmem:[#allocation2 + $0x858] sm:$0xff] %v6153_v19  ;;  %v850_v53 = vld.sshfl [vmem:[#allocation1 + $0x10] sm:$0xff pattern:$0x75316420] }
 0x133   :  { %678 = vst [vmem:[#allocation2 + $0x860] sm:$0xff] %v6153_v19 }
 0x134   :  { %679 = vst [vmem:[#allocation2 + $0x868] sm:$0xff] %v6153_v19 }
 0x135   :  { %680 = vst [vmem:[#allocation2 + $0x870] sm:$0xff] %v6153_v19 }
 0x136   :  { %681 = vst [vmem:[#allocation2 + $0x878] sm:$0xff] %v6153_v19 }
 0x137   :  { %682 = vst [vmem:[#allocation2 + $0x880] sm:$0xff] %v6153_v19 }
 0x138   :  { %683 = vst [vmem:[#allocation2 + $0x888] sm:$0xff] %v6153_v19 }
 0x139   :  { %684 = vst [vmem:[#allocation2 + $0x890] sm:$0xff] %v6153_v19 }
 0x13a   :  { %685 = vst [vmem:[#allocation2 + $0x898] sm:$0xff] %v6153_v19 }
 0x13b   :  { %686 = vst [vmem:[#allocation2 + $0x8a0] sm:$0xff] %v6153_v19 }
 0x13c   :  { %687 = vst [vmem:[#allocation2 + $0x8a8] sm:$0xff] %v6153_v19 }
 0x13d   :  { %688 = vst [vmem:[#allocation2 + $0x8b0] sm:$0xff] %v6153_v19 }
 0x13e   :  { %689 = vst [vmem:[#allocation2 + $0x8b8] sm:$0xff] %v6153_v19 }
 0x13f   :  { %690 = vst [vmem:[#allocation2 + $0x8c0] sm:$0xff] %v6153_v19 }
 0x140   :  { %691 = vst [vmem:[#allocation2 + $0x8c8] sm:$0xff] %v6153_v19 }
 0x141   :  { %692 = vst [vmem:[#allocation2 + $0x8d0] sm:$0xff] %v6153_v19 }
 0x142   :  { %693 = vst [vmem:[#allocation2 + $0x8d8] sm:$0xff] %v6153_v19 }
 0x143   :  { %694 = vst [vmem:[#allocation2 + $0x8e0] sm:$0xff] %v6153_v19 }
 0x144   :  { %695 = vst [vmem:[#allocation2 + $0x8e8] sm:$0xff] %v6153_v19 }
 0x145   :  { %696 = vst [vmem:[#allocation2 + $0x8f0] sm:$0xff] %v6153_v19 }
 0x146   :  { %697 = vst [vmem:[#allocation2 + $0x8f8] sm:$0xff] %v6153_v19 }
 0x147   :  { %698 = vst [vmem:[#allocation2 + $0x900] sm:$0xff] %v6153_v19 }
 0x148   :  { %699 = vst [vmem:[#allocation2 + $0x908] sm:$0xff] %v6153_v19 }
 0x149   :  { %700 = vst [vmem:[#allocation2 + $0x910] sm:$0xff] %v6153_v19 }
 0x14a   :  { %701 = vst [vmem:[#allocation2 + $0x918] sm:$0xff] %v6153_v19 }
 0x14b   :  { %702 = vst [vmem:[#allocation2 + $0x920] sm:$0xff] %v6153_v19 }
 0x14c   :  { %703 = vst [vmem:[#allocation2 + $0x928] sm:$0xff] %v6153_v19 }
 0x14d   :  { %704 = vst [vmem:[#allocation2 + $0x930] sm:$0xff] %v6153_v19 }
 0x14e   :  { %705 = vst [vmem:[#allocation2 + $0x938] sm:$0xff] %v6153_v19 }
 0x14f   :  { %706 = vst [vmem:[#allocation2 + $0x940] sm:$0xff] %v6153_v19 }
 0x150   :  { %707 = vst [vmem:[#allocation2 + $0x948] sm:$0xff] %v6153_v19 }
 0x151   :  { %708 = vst [vmem:[#allocation2 + $0x950] sm:$0xff] %v6153_v19 }
 0x152   :  { %709 = vst [vmem:[#allocation2 + $0x958] sm:$0xff] %v6153_v19 }
 0x153   :  { %710 = vst [vmem:[#allocation2 + $0x960] sm:$0xff] %v6153_v19 }
 0x154   :  { %711 = vst [vmem:[#allocation2 + $0x968] sm:$0xff] %v6153_v19 }
 0x155   :  { %712 = vst [vmem:[#allocation2 + $0x970] sm:$0xff] %v6153_v19 }
 0x156   :  { %713 = vst [vmem:[#allocation2 + $0x978] sm:$0xff] %v6153_v19 }
 0x157   :  { %714 = vst [vmem:[#allocation2 + $0x980] sm:$0xff] %v6153_v19 }
 0x158   :  { %715 = vst [vmem:[#allocation2 + $0x988] sm:$0xff] %v6153_v19 }
 0x159   :  { %716 = vst [vmem:[#allocation2 + $0x990] sm:$0xff] %v6153_v19 }
 0x15a   :  { %717 = vst [vmem:[#allocation2 + $0x998] sm:$0xff] %v6153_v19 }
 0x15b   :  { %718 = vst [vmem:[#allocation2 + $0x9a0] sm:$0xff] %v6153_v19 }
 0x15c   :  { %719 = vst [vmem:[#allocation2 + $0x9a8] sm:$0xff] %v6153_v19 }
 0x15d   :  { %720 = vst [vmem:[#allocation2 + $0x9b0] sm:$0xff] %v6153_v19 }
 0x15e   :  { %721 = vst [vmem:[#allocation2 + $0x9b8] sm:$0xff] %v6153_v19 }
 0x15f   :  { %722 = vst [vmem:[#allocation2 + $0x9c0] sm:$0xff] %v6153_v19 }
 0x160   :  { %723 = vst [vmem:[#allocation2 + $0x9c8] sm:$0xff] %v6153_v19 }
 0x161   :  { %724 = vst [vmem:[#allocation2 + $0x9d0] sm:$0xff] %v6153_v19 }
 0x162   :  { %725 = vst [vmem:[#allocation2 + $0x9d8] sm:$0xff] %v6153_v19 }
 0x163   :  { %726 = vst [vmem:[#allocation2 + $0x9e0] sm:$0xff] %v6153_v19 }
 0x164   :  { %727 = vst [vmem:[#allocation2 + $0x9e8] sm:$0xff] %v6153_v19 }
 0x165   :  { %728 = vst [vmem:[#allocation2 + $0x9f0] sm:$0xff] %v6153_v19 }
 0x166   :  { %729 = vst [vmem:[#allocation2 + $0x9f8] sm:$0xff] %v6153_v19 }
 0x167   :  { %730 = vst [vmem:[#allocation2 + $0xa00] sm:$0xff] %v6153_v19 }
 0x168   :  { %731 = vst [vmem:[#allocation2 + $0xa08] sm:$0xff] %v6153_v19 }
 0x169   :  { %732 = vst [vmem:[#allocation2 + $0xa10] sm:$0xff] %v6153_v19 }
 0x16a   :  { %733 = vst [vmem:[#allocation2 + $0xa18] sm:$0xff] %v6153_v19 }
 0x16b   :  { %734 = vst [vmem:[#allocation2 + $0xa20] sm:$0xff] %v6153_v19 }
 0x16c   :  { %735 = vst [vmem:[#allocation2 + $0xa28] sm:$0xff] %v6153_v19 }
 0x16d   :  { %736 = vst [vmem:[#allocation2 + $0xa30] sm:$0xff] %v6153_v19 }
 0x16e   :  { %737 = vst [vmem:[#allocation2 + $0xa38] sm:$0xff] %v6153_v19 }
 0x16f   :  { %738 = vst [vmem:[#allocation2 + $0xa40] sm:$0xff] %v6153_v19  ;;  %v257_v19 = vpop.f32.mrf.mxu0 }
 0x170   :  { %739 = vst [vmem:[#allocation2 + $0xa48] sm:$0xff] %v6841_v21  ;;  %v258_v33 = vadd.f32 %v6907_v32, %v257_v19  ;;  %v3927_v19 = vld [vmem:[%s11297_s3 + $0xe8] sm:$0xff] }
 0x171   :  { %740 = vst [vmem:[#allocation2 + $0xa50] sm:$0xff] %v6841_v21  ;;  %4369 = vmatpush.msra.mxu2 %v3927_v19 }
 0x172   :  { %741 = vst [vmem:[#allocation2 + $0xa58] sm:$0xff] %v6841_v21  ;;  %v6914_v37 = vmax.f32 %v258_v33, 0.0 }
 0x173   :  { %742 = vst [vmem:[#allocation2 + $0xa60] sm:$0xff] %v6841_v21 }
 0x174   :  { %743 = vst [vmem:[#allocation2 + $0xa68] sm:$0xff] %v6841_v21  ;;  %v6921_v38 = vrot.slane %v6914_v37, 4 }
 0x175   :  { %744 = vst [vmem:[#allocation2 + $0xa70] sm:$0xff] %v6841_v21 }
 0x176   :  { %745 = vst [vmem:[#allocation2 + $0xa78] sm:$0xff] %v6841_v21 }
 0x177   :  { %746 = vst [vmem:[#allocation2 + $0xa80] sm:$0xff] %v6841_v21  ;;  %v260_v29 = vpop.f32.mrf.mxu0 }
 0x178   :  { %747 = vst [vmem:[#allocation2 + $0xa88] sm:$0xff] %v6841_v21  ;;  %v261_v42 = vadd.f32 %v6907_v32, %v260_v29  ;;  %v904_v29 = vsel %vm6962_vm5, %v6024_v22, %v903_v0 }
 0x179   :  { %748 = vst [vmem:[#allocation2 + $0xa90] sm:$0xff] %v6841_v21 }
 0x17a   :  { %749 = vst [vmem:[#allocation2 + $0xa98] sm:$0xff] %v6841_v21  ;;  %v6932_v47 = vmax.f32 %v261_v42, 0.0  ;;  %v3926_v42 = vld [vmem:[%s11297_s3 + $0xe0] sm:$0xff] }
 0x17b   :  { %750 = vst [vmem:[#allocation2 + $0xaa0] sm:$0xff] %v6841_v21  ;;  %4370 = vmatpush.msra.mxu2 %v3926_v42 }
 0x17c   :  { %751 = vst [vmem:[#allocation2 + $0xaa8] sm:$0xff] %v6841_v21 }
 0x17d   :  { %752 = vst [vmem:[#allocation2 + $0xab0] sm:$0xff] %v6841_v21 }
 0x17e   :  { %753 = vst [vmem:[#allocation2 + $0xab8] sm:$0xff] %v6841_v21 }
 0x17f   :  { %754 = vst [vmem:[#allocation2 + $0xac0] sm:$0xff] %v6841_v21  ;;  %v263_v35 = vpop.f32.mrf.mxu0 }
 0x180   :  { %755 = vst [vmem:[#allocation2 + $0xac8] sm:$0xff] %v6841_v21  ;;  %v264_v51 = vadd.f32 %v6907_v32, %v263_v35 }
 0x181   :  { %756 = vst [vmem:[#allocation2 + $0xad0] sm:$0xff] %v6841_v21 }
 0x182   :  { %757 = vst [vmem:[#allocation2 + $0xad8] sm:$0xff] %v6841_v21  ;;  %v6950_v62 = vmax.f32 %v264_v51, 0.0  ;;  %v934_v51 = vrot.slane %v6409_v59, 5 }
 0x183   :  { %758 = vst [vmem:[#allocation2 + $0xae0] sm:$0xff] %v6841_v21 }
 0x184   :  { %759 = vst [vmem:[#allocation2 + $0xae8] sm:$0xff] %v6841_v21 }
 0x185   :  { %760 = vst [vmem:[#allocation2 + $0xaf0] sm:$0xff] %v6841_v21 }
 0x186   :  { %761 = vst [vmem:[#allocation2 + $0xaf8] sm:$0xff] %v6841_v21 }
 0x187   :  { %762 = vst [vmem:[#allocation2 + $0xb00] sm:$0xff] %v6841_v21  ;;  %v266_v44 = vpop.f32.mrf.mxu0 }
 0x188   :  { %763 = vst [vmem:[#allocation2 + $0xb08] sm:$0xff] %v6841_v21  ;;  %v267_v48 = vadd.f32 %v6907_v32, %v266_v44 }
 0x189   :  { %764 = vst [vmem:[#allocation2 + $0xb10] sm:$0xff] %v6841_v21 }
 0x18a   :  { %765 = vst [vmem:[#allocation2 + $0xb18] sm:$0xff] %v6841_v21 }
 0x18b   :  { %766 = vst [vmem:[#allocation2 + $0xb20] sm:$0xff] %v6841_v21 }
 0x18c   :  { %767 = vst [vmem:[#allocation2 + $0xb28] sm:$0xff] %v6841_v21 }
 0x18d   :  { %768 = vst [vmem:[#allocation2 + $0xb30] sm:$0xff] %v6841_v21 }
 0x18e   :  { %769 = vst [vmem:[#allocation2 + $0xb38] sm:$0xff] %v6841_v21 }
 0x18f   :  { %770 = vst [vmem:[#allocation2 + $0xb40] sm:$0xff] %v6841_v21 }
 0x190   :  { %771 = vst [vmem:[#allocation2 + $0xb48] sm:$0xff] %v6841_v21 }
 0x191   :  { %772 = vst [vmem:[#allocation2 + $0xb50] sm:$0xff] %v6841_v21 }
 0x192   :  { %773 = vst [vmem:[#allocation2 + $0xb58] sm:$0xff] %v6841_v21 }
 0x193   :  { %774 = vst [vmem:[#allocation2 + $0xb60] sm:$0xff] %v6841_v21 }
 0x194   :  { %775 = vst [vmem:[#allocation2 + $0xb68] sm:$0xff] %v6841_v21 }
 0x195   :  { %776 = vst [vmem:[#allocation2 + $0xb70] sm:$0xff] %v6841_v21 }
 0x196   :  { %777 = vst [vmem:[#allocation2 + $0xb78] sm:$0xff] %v6841_v21 }
 0x197   :  { %778 = vst [vmem:[#allocation2 + $0xb80] sm:$0xff] %v6841_v21 }
 0x198   :  { %779 = vst [vmem:[#allocation2 + $0xb88] sm:$0xff] %v6841_v21 }
 0x199   :  { %780 = vst [vmem:[#allocation2 + $0xb90] sm:$0xff] %v6841_v21 }
 0x19a   :  { %781 = vst [vmem:[#allocation2 + $0xb98] sm:$0xff] %v6841_v21 }
 0x19b   :  { %782 = vst [vmem:[#allocation2 + $0xba0] sm:$0xff] %v6841_v21 }
 0x19c   :  { %783 = vst [vmem:[#allocation2 + $0xba8] sm:$0xff] %v6841_v21 }
 0x19d   :  { %784 = vst [vmem:[#allocation2 + $0xbb0] sm:$0xff] %v6841_v21 }
 0x19e   :  { %785 = vst [vmem:[#allocation2 + $0xbb8] sm:$0xff] %v6841_v21 }
 0x19f   :  { %786 = vst [vmem:[#allocation2 + $0xbc0] sm:$0xff] %v6841_v21 }
 0x1a0   :  { %787 = vst [vmem:[#allocation2 + $0xbc8] sm:$0xff] %v6841_v21 }
 0x1a1   :  { %788 = vst [vmem:[#allocation2 + $0xbd0] sm:$0xff] %v6841_v21 }
 0x1a2   :  { %789 = vst [vmem:[#allocation2 + $0xbd8] sm:$0xff] %v6841_v21 }
 0x1a3   :  { %790 = vst [vmem:[#allocation2 + $0xbe0] sm:$0xff] %v6841_v21 }
 0x1a4   :  { %791 = vst [vmem:[#allocation2 + $0xbe8] sm:$0xff] %v6841_v21 }
 0x1a5   :  { %792 = vst [vmem:[#allocation2 + $0xbf0] sm:$0xff] %v6841_v21 }
 0x1a6   :  { %793 = vst [vmem:[#allocation2 + $0xbf8] sm:$0xff] %v6841_v21 }
 0x1a7   :  { %794 = vst [vmem:[#allocation2 + $0xc00] sm:$0xff] %v6841_v21 }
 0x1a8   :  { %795 = vst [vmem:[#allocation2 + $0xc08] sm:$0xff] %v6841_v21 }
 0x1a9   :  { %796 = vst [vmem:[#allocation2 + $0xc10] sm:$0xff] %v6841_v21 }
 0x1aa   :  { %797 = vst [vmem:[#allocation2 + $0xc18] sm:$0xff] %v6841_v21 }
 0x1ab   :  { %798 = vst [vmem:[#allocation2 + $0xc20] sm:$0xff] %v6841_v21 }
 0x1ac   :  { %799 = vst [vmem:[#allocation2 + $0xc28] sm:$0xff] %v6841_v21 }
 0x1ad   :  { %800 = vst [vmem:[#allocation2 + $0xc30] sm:$0xff] %v6841_v21 }
 0x1ae   :  { %801 = vst [vmem:[#allocation2 + $0xc38] sm:$0xff] %v6841_v21 }
 0x1af   :  { %802 = vst [vmem:[#allocation2 + $0xc40] sm:$0xff] %v6841_v21 }
 0x1b0   :  { %803 = vst [vmem:[#allocation2 + $0xc48] sm:$0xff] %v6841_v21 }
 0x1b1   :  { %804 = vst [vmem:[#allocation2 + $0xc50] sm:$0xff] %v6841_v21 }
 0x1b2   :  { %805 = vst [vmem:[#allocation2 + $0xc58] sm:$0xff] %v6841_v21 }
 0x1b3   :  { %806 = vst [vmem:[#allocation2 + $0xc60] sm:$0xff] %v6841_v21 }
 0x1b4   :  { %807 = vst [vmem:[#allocation2 + $0xc68] sm:$0xff] %v6841_v21 }
 0x1b5   :  { %808 = vst [vmem:[#allocation2 + $0xc70] sm:$0xff] %v6841_v21 }
 0x1b6   :  { %809 = vst [vmem:[#allocation2 + $0xc78] sm:$0xff] %v6841_v21  ;;  %v905_v21 = vrot.slane %v903_v0, 4 }
 0x1b7   :  { %845 = vst [vmem:[#allocation1 + $0x20] ss:$2 sm:$0xff] %v6914_v37 }
 0x1b8   :  { %846 = vst [vmem:[#allocation1 + $0x21] ss:$2 sm:$0xff] %v6921_v38 }
 0x1b9   :  { %883 = vst.msk [vmem:[#allocation2 + $0xc8] sm:$0xff] %vm881_vm2, %v6418_v61  ;;  %v6944_v61 = vrot.slane %v6932_v47, 4 }
 0x1ba   :  { %884 = vst.msk [vmem:[#allocation2 + $0x190] sm:$0xff] %vm881_vm2, %v6448_v6  ;;  %v6946_v6 = vmax.f32 %v267_v48, 0.0 }
 0x1bb   :  { %885 = vst.msk [vmem:[#allocation2 + $0x258] sm:$0xff] %vm881_vm2, %v6473_v13 }
 0x1bc   :  { %886 = vst.msk [vmem:[#allocation2 + $0x320] sm:$0xff] %vm881_vm2, %v6635_v4  ;;  %v6955_v63 = vrot.slane %v6946_v6, 4  ;;  %v11653_v4 = vmov 0 }
 0x1bd   :  { %887 = vst.msk [vmem:[#allocation2 + $0x3e8] sm:$0xff] %vm881_vm2, %v6660_v20  ;;  %v11654_v4 = vsel %vm6962_vm5, 4294967295, %v11653_v4  ;;  %v269_v20 = vpop.f32.mrf.mxu0 }
 0x1be   :  { %888 = vst.msk [vmem:[#allocation2 + $0x4b0] sm:$0xff] %vm881_vm2, %v839_v39  ;;  %v270_v27 = vadd.f32 %v6907_v32, %v269_v20  ;;  %v907_v39 = vsel %vm6962_vm5, %v905_v21, %v906_v9  ;;  %v959_v9 = vrot.slane %v6639_v8, 5  ;;  %v987_v19 = vrot.slane %v6955_v63, 5 }
 0x1bf   :  { %11650 = vst [vmem:[#allocation20_spill] sm:$0xff] %v6946_v6  ;;  %v851_v56 = vld.sshfl [vmem:[#allocation1 + $0x20] sm:$0xff pattern:$0x75316420] }
 0x1c0   :  { %890 = vst.msk [vmem:[#allocation2 + $0x640] sm:$0xff] %vm881_vm2, %v849_v49  ;;  %v3523_v13 = vld [vmem:[#allocation2 + $0xc8] sm:$0xff]  ;;  %v6981_v35 = vmax.f32 %v270_v27, 0.0  ;;  %v931_v49 = vrot.slane %v6397_v55, 5  ;;  %v961_v20 = vrot.slane %v959_v9, 4  ;;  %v960_v22 = vsel %vm6962_vm5, %v6032_v14, %v959_v9 }
 0x1c1   :  { %891 = vst.msk [vmem:[#allocation2 + $0x708] sm:$0xff] %vm881_vm2, %v850_v53  ;;  %4321 = vmatmul.f32.gmra.mxu0 %v3523_v13  ;;  %v3548_v2 = vld [vmem:[#allocation2 + $0x190] sm:$0xff]  ;;  %v6028_v53 = vrot.slane %v6391_v54, 9 }
 0x1c2   :  { %11651 = vst [vmem:[#allocation21_spill] sm:$0xff] %v6950_v62  ;;  %v6989_v44 = vrot.slane %v6981_v35, 4  ;;  %v3573_v48 = vld [vmem:[#allocation2 + $0x258] sm:$0xff]  ;;  %v963_v27 = vsel %vm6962_vm5, %v961_v20, %v962_v10 }
 0x1c3   :  { %892 = vst.msk [vmem:[#allocation2 + $0x7d0] sm:$0xff] %vm881_vm2, %v851_v56  ;;  %v933_v56 = vrot.slane %v931_v49, 4  ;;  %v6998_v13 = vsel %vm6962_vm5, %v6028_v53, %v931_v49  ;;  %v1105_v53 = vrot.slane %v6295_v26, 6 }
 0x1c4   :  { %847 = vst [vmem:[#allocation1 + $0x30] ss:$2 sm:$0xff] %v6944_v61  ;;  %v3623_v21 = vld [vmem:[#allocation2 + $0x3e8] sm:$0xff] }
 0x1c5   :  { %11652 = vst [vmem:[#allocation22_spill] sm:$0xff] %v6955_v63  ;;  %v7002_v0 = vsel %vm6962_vm5, %v933_v56, %v934_v51  ;;  %v3648_v49 = vld [vmem:[#allocation2 + $0x4b0] sm:$0xff]  ;;  %v11662_v56 = vmov 0  ;;  %v1107_v10 = vrot.slane %v1105_v53, 4 }
 0x1c6   :  { %889 = vst.msk [vmem:[#allocation2 + $0x578] sm:$0xff] %vm881_vm2, %v840_v57  ;;  %v11663_v56 = vsel %vm7030_vm8, 4294967295, %v11662_v56 }
 0x1c7   :  { %848 = vst [vmem:[#allocation1 + $0x31] ss:$2 sm:$0xff] %v6950_v62 }
 0x1c8   :  { %853 = vst [vmem:[#allocation1] ss:$2 sm:$0xff] %v6946_v6 }
 0x1c9   :  { %854 = vst [vmem:[#allocation1 + $0x1] ss:$2 sm:$0xff] %v6955_v63  ;;  %4324 = vmatmul.f32.gmra.mxu0 %v3548_v2  ;;  %v3598_v2 = vld [vmem:[#allocation2 + $0x320] sm:$0xff] }
 0x1ca   :  { %11655 = vst [vmem:[#allocation23_spill] sm:$0xff] %v11654_v4  ;;  %v6043_v4 = vrot.slane %v6364_v46, 10 }
 0x1cb   :  { %11656 = vst [vmem:[#allocation24_spill] sm:$0xff] %v6981_v35 }
 0x1cc   :  { %11657 = vst [vmem:[#allocation25_spill] sm:$0xff] %v6989_v44 }
 0x1cd   :  { %855 = vst [vmem:[#allocation1 + $0x10] ss:$2 sm:$0xff] %v6989_v44  ;;  %v3673_v9 = vld [vmem:[#allocation2 + $0x578] sm:$0xff] }
 0x1ce   :  { %v852_v23 = vld.sshfl [vmem:[#allocation1 + $0x30] sm:$0xff pattern:$0x75316420]  ;;  %11658 = vst [vmem:[#allocation26_spill] sm:$0xff] %v6998_v13 }
 0x1cf   :  { %893 = vst.msk [vmem:[#allocation2 + $0x898] sm:$0xff] %vm881_vm2, %v852_v23 }
 0x1d0   :  { %v861_v33 = vld.sshfl [vmem:[#allocation1] sm:$0xff pattern:$0x75316420]  ;;  %11659 = vst [vmem:[#allocation27_spill] sm:$0xff] %v7002_v0 }
 0x1d1   :  { %1013 = vst [vmem:[#allocation1] ss:$2 sm:$0xff] %v904_v29  ;;  %4327 = vmatmul.f32.gmra.mxu0 %v3573_v48  ;;  %v6036_v29 = vrot.slane %v6946_v6, 9  ;;  %v989_v48 = vrot.slane %v987_v19, 4 }
 0x1d2   :  { %1015 = vst [vmem:[#allocation1 + $0x1] ss:$2 sm:$0xff] %v907_v39 }
 0x1d3   :  { %894 = vst.msk [vmem:[#allocation2 + $0x960] sm:$0xff] %vm881_vm2, %v861_v33  ;;  %v990_v33 = vrot.slane %v6981_v35, 5  ;;  %v7020_v39 = vsel %vm6962_vm5, %v6036_v29, %v987_v19 }
 0x1d4   :  { %11660 = vst [vmem:[#allocation28_spill] sm:$0xff] %v7020_v39 }
 0x1d5   :  { %v7026_v51 = vsel %vm6962_vm5, %v989_v48, %v990_v33  ;;  %11664 = vst [vmem:[#allocation30_spill] sm:$0xff] %v11663_v56  ;;  %v1161_v48 = vrot.slane %v6639_v8, 6 }
 0x1d6   :  { %11661 = vst [vmem:[#allocation29_spill] sm:$0xff] %v7026_v51 }
 0x1d9   :  { %v1028_v57 = vld.sshfl [vmem:[#allocation1] sm:$0xff pattern:$0x75316420]  ;;  %4330 = vmatmul.f32.gmra.mxu0 %v3598_v2  ;;  %v6040_v2 = vrot.slane %v6289_v25, 10 }
 0x1da   :  { %1032 = vst [vmem:[#allocation1] ss:$2 sm:$0xff] %v6998_v13 }
 0x1db   :  { %1033 = vst [vmem:[#allocation1 + $0x1] ss:$2 sm:$0xff] %v7002_v0  ;;  %v1106_v14 = vsel %vm7030_vm8, %v6040_v2, %v1105_v53  ;;  %v6048_v53 = vrot.slane %v6631_v3, 10 }
 0x1dc   :  { %1084 = vst.msk [vmem:[#allocation2 + $0x8] sm:$0xff] %vm881_vm2, %v1028_v57  ;;  %v1108_v57 = vrot.slane %v6307_v30, 6 }
 0x1dd   :  { %v1162_v2 = vsel %vm7030_vm8, %v6048_v53, %v1161_v48  ;;  %v6056_v53 = vrot.slane %v6289_v25, 11 }
 0x1e1   :  { %4333 = vmatmul.f32.gmra.mxu0 %v3623_v21  ;;  %v6044_v21 = vrot.slane %v6391_v54, 10 }
 0x1e2   :  { %v1040_v23 = vld.sshfl [vmem:[#allocation1] sm:$0xff pattern:$0x75316420] }
 0x1e3   :  { %1044 = vst [vmem:[#allocation1] ss:$2 sm:$0xff] %v960_v22  ;;  %v1109_v22 = vsel %vm7030_vm8, %v1107_v10, %v1108_v57  ;;  %v1163_v57 = vrot.slane %v1161_v48, 4  ;;  %v11669_v48 = vmov 0 }
 0x1e4   :  { %1045 = vst [vmem:[#allocation1 + $0x1] ss:$2 sm:$0xff] %v963_v27  ;;  %v1136_v27 = vrot.slane %v6409_v59, 6  ;;  %v11670_v48 = vsel %vm7079_vm10, 4294967295, %v11669_v48 }
 0x1e5   :  { %1088 = vst.msk [vmem:[#allocation2 + $0x328] sm:$0xff] %vm881_vm2, %v1040_v23  ;;  %v1133_v23 = vrot.slane %v6397_v55, 6 }
 0x1e6   :  { %11671 = vst [vmem:[#allocation35_spill] sm:$0xff] %v11670_v48  ;;  %v11781_v48 = vld [vmem:[#allocation14_spill] sm:$0xff] }
 0x1e7   :  { %v1135_v19 = vrot.slane %v1133_v23, 4  ;;  %v7046_v29 = vsel %vm7030_vm8, %v6044_v21, %v1133_v23 }
 0x1e8   :  { %11665 = vst [vmem:[#allocation31_spill] sm:$0xff] %v7046_v29 }
 0x1e9   :  { %4336 = vmatmul.f32.gmra.mxu0 %v3648_v49  ;;  %v1164_v49 = vrot.slane %v6651_v15, 6 }
 0x1eb   :  { %v1052_v42 = vld.sshfl [vmem:[#allocation1] sm:$0xff pattern:$0x75316420]  ;;  %v1165_v10 = vsel %vm7030_vm8, %v1163_v57, %v1164_v49  ;;  %v1309_v49 = vrot.slane %v6307_v30, 7 }
 0x1ec   :  { %1056 = vst [vmem:[#allocation1] ss:$2 sm:$0xff] %v7020_v39  ;;  %v1112_v39 = vrot.slane %v6325_v36, 6 }
 0x1ed   :  { %1092 = vst.msk [vmem:[#allocation2 + $0x648] sm:$0xff] %vm881_vm2, %v1052_v42  ;;  %v7050_v42 = vsel %vm7030_vm8, %v1135_v19, %v1136_v27 }
 0x1ee   :  { %1057 = vst [vmem:[#allocation1 + $0x1] ss:$2 sm:$0xff] %v7026_v51  ;;  %v6034_v51 = vrot.slane %v6914_v37, 9 }
 0x1ef   :  { %11666 = vst [vmem:[#allocation32_spill] sm:$0xff] %v7050_v42 }
 0x1f1   :  { %4339 = vmatmul.f32.gmra.mxu0 %v3673_v9 }
 0x1f5   :  { %v1064_v20 = vld.sshfl [vmem:[#allocation1] sm:$0xff pattern:$0x75316420] }
 0x1f6   :  { %1215 = vst [vmem:[#allocation1] ss:$2 sm:$0xff] %v1106_v14  ;;  %v1189_v14 = vrot.slane %v6955_v63, 6 }
 0x1f7   :  { %1217 = vst [vmem:[#allocation1 + $0x1] ss:$2 sm:$0xff] %v1109_v22  ;;  %v6052_v22 = vrot.slane %v6946_v6, 10 }
 0x1f8   :  { %1096 = vst.msk [vmem:[#allocation2 + $0x968] sm:$0xff] %vm881_vm2, %v1064_v20  ;;  %v1192_v20 = vrot.slane %v6981_v35, 6  ;;  %v1191_v23 = vrot.slane %v1189_v14, 4 }
 0x1f9   :  { %v7068_v27 = vsel %vm7030_vm8, %v6052_v22, %v1189_v14  ;;  %v1334_v14 = vrot.slane %v6397_v55, 7  ;;  %v6060_v22 = vrot.slane %v6391_v54, 11 }
 0x1fa   :  { %11667 = vst [vmem:[#allocation33_spill] sm:$0xff] %v7068_v27  ;;  %v7072_v19 = vsel %vm7030_vm8, %v1191_v23, %v1192_v20  ;;  %v1337_v20 = vrot.slane %v6409_v59, 7 }
 0x1fb   :  { %11668 = vst [vmem:[#allocation34_spill] sm:$0xff] %v7072_v19  ;;  %v1336_v23 = vrot.slane %v1334_v14, 4  ;;  %v7095_v25 = vsel %vm7079_vm10, %v6060_v22, %v1334_v14  ;;  %v1390_v22 = vrot.slane %v6955_v63, 7 }
 0x1fc   :  { %11672 = vst [vmem:[#allocation36_spill] sm:$0xff] %v7095_v25 }
 0x1fe   :  { %v1230_v33 = vld.sshfl [vmem:[#allocation1] sm:$0xff pattern:$0x75316420] }
 0x1ff   :  { %1234 = vst [vmem:[#allocation1] ss:$2 sm:$0xff] %v7046_v29 }
 0x200   :  { %1235 = vst [vmem:[#allocation1 + $0x1] ss:$2 sm:$0xff] %v7050_v42 }
 0x201   :  { %1286 = vst.msk [vmem:[#allocation2 + $0x10] sm:$0xff] %vm881_vm2, %v1230_v33  ;;  %v1306_v33 = vrot.slane %v6295_v26, 7 }
 0x203   :  { %v1308_v57 = vrot.slane %v1306_v33, 4 }
 0x207   :  { %v1242_v9 = vld.sshfl [vmem:[#allocation1] sm:$0xff pattern:$0x75316420] }
 0x208   :  { %1246 = vst [vmem:[#allocation1] ss:$2 sm:$0xff] %v1162_v2  ;;  %v1307_v2 = vsel %vm7079_vm10, %v6056_v53, %v1306_v33  ;;  %v7099_v33 = vsel %vm7079_vm10, %v1336_v23, %v1337_v20  ;;  %v1365_v53 = vrot.slane %v6651_v15, 7  ;;  %v3698_v20 = vld [vmem:[#allocation2 + $0x640] sm:$0xff]  ;;  %v1393_v23 = vrot.slane %v6981_v35, 7 }
 0x209   :  { %1247 = vst [vmem:[#allocation1 + $0x1] ss:$2 sm:$0xff] %v1165_v10  ;;  %v1310_v10 = vsel %vm7079_vm10, %v1308_v57, %v1309_v49  ;;  %v1362_v49 = vrot.slane %v6639_v8, 7  ;;  %v6064_v57 = vrot.slane %v6631_v3, 11  ;;  %4342 = vmatmul.f32.gmra.mxu0 %v3698_v20  ;;  %v6068_v3 = vrot.slane %v6946_v6, 11  ;;  %v3921_v20 = vld [vmem:[%s11297_s3 + $0xb8] sm:$0xff] }
 0x20a   :  { %1290 = vst.msk [vmem:[#allocation2 + $0x330] sm:$0xff] %vm881_vm2, %v1242_v9 }
 0x20b   :  { %11673 = vst [vmem:[#allocation37_spill] sm:$0xff] %v7099_v33 }
 0x210   :  { %v1254_v21 = vld.sshfl [vmem:[#allocation1] sm:$0xff pattern:$0x75316420] }
 0x211   :  { %1258 = vst [vmem:[#allocation1] ss:$2 sm:$0xff] %v7068_v27 }
 0x212   :  { %1259 = vst [vmem:[#allocation1 + $0x1] ss:$2 sm:$0xff] %v7072_v19  ;;  %v6030_v19 = vrot.slane %v6444_v5, 9 }
 0x213   :  { %1294 = vst.msk [vmem:[#allocation2 + $0x650] sm:$0xff] %vm881_vm2, %v1254_v21 }
 0x219   :  { %v1266_v9 = vld.sshfl [vmem:[#allocation1] sm:$0xff pattern:$0x75316420] }
 0x21a   :  { %1416 = vst [vmem:[#allocation1] ss:$2 sm:$0xff] %v1307_v2  ;;  %v1364_v2 = vrot.slane %v1362_v49, 4 }
 0x21b   :  { %1418 = vst [vmem:[#allocation1 + $0x1] ss:$2 sm:$0xff] %v1310_v10 }
 0x21c   :  { %1298 = vst.msk [vmem:[#allocation2 + $0x970] sm:$0xff] %vm881_vm2, %v1266_v9  ;;  %v1363_v9 = vsel %vm7079_vm10, %v6064_v57, %v1362_v49  ;;  %v1366_v14 = vsel %vm7079_vm10, %v1364_v2, %v1365_v53  ;;  %v7117_v49 = vsel %vm7079_vm10, %v6068_v3, %v1390_v22 }
 0x21d   :  { %11674 = vst [vmem:[#allocation38_spill] sm:$0xff] %v7117_v49 }
 0x222   :  { %v1431_v21 = vld.sshfl [vmem:[#allocation1] sm:$0xff pattern:$0x75316420] }
 0x223   :  { %1435 = vst [vmem:[#allocation1] ss:$2 sm:$0xff] %v7095_v25  ;;  %v3942_v25 = vld [vmem:[%s11297_s3 + $0x160] sm:$0xff] }
 0x224   :  { %1436 = vst [vmem:[#allocation1 + $0x1] ss:$2 sm:$0xff] %v7099_v33  ;;  %v948_v33 = vrot.slane %v6464_v11, 5 }
 0x225   :  { %1487 = vst.msk [vmem:[#allocation2 + $0x18] sm:$0xff] %vm881_vm2, %v1431_v21  ;;  %v1392_v21 = vrot.slane %v1390_v22, 4 }
 0x227   :  { %v7121_v53 = vsel %vm7079_vm10, %v1392_v21, %v1393_v23  ;;  %v272_v23 = vpop.f32.mrf.mxu0  ;;  %v3920_v21 = vld [vmem:[%s11297_s3 + $0xb0] sm:$0xff] }
 0x228   :  { %11675 = vst [vmem:[#allocation39_spill] sm:$0xff] %v7121_v53  ;;  %v273_v3 = vadd.f32 %v6907_v32, %v272_v23 }
 0x22b   :  { %v1443_v10 = vld.sshfl [vmem:[#allocation1] sm:$0xff pattern:$0x75316420] }
 0x22c   :  { %1447 = vst [vmem:[#allocation1] ss:$2 sm:$0xff] %v1363_v9 }
 0x22d   :  { %1448 = vst [vmem:[#allocation1 + $0x1] ss:$2 sm:$0xff] %v1366_v14  ;;  %v3924_v14 = vld [vmem:[%s11297_s3 + $0xd0] sm:$0xff] }
 0x22e   :  { %1491 = vst.msk [vmem:[#allocation2 + $0x338] sm:$0xff] %vm881_vm2, %v1443_v10  ;;  %v3925_v10 = vld [vmem:[%s11297_s3 + $0xd8] sm:$0xff] }
 0x22f   :  { %4371 = vmatpush.msra.mxu2 %v3925_v10  ;;  %v3798_v10 = vld [vmem:[#allocation2 + $0x960] sm:$0xff] }
 0x230   :  { %4354 = vmatmul.f32.vlgmr.msra.gmra.mxu1 %v3798_v10 }
 0x231   :  { %4372 = vmatpush.msra.mxu2 %v3924_v14  ;;  %v3917_v14 = vld [vmem:[%s11297_s3 + $0x98] sm:$0xff] }
 0x234   :  { %v1455_v57 = vld.sshfl [vmem:[#allocation1] sm:$0xff pattern:$0x75316420] }
 0x235   :  { %1459 = vst [vmem:[#allocation1] ss:$2 sm:$0xff] %v7117_v49  ;;  %v945_v49 = vrot.slane %v6452_v7, 5 }
 0x236   :  { %1460 = vst [vmem:[#allocation1 + $0x1] ss:$2 sm:$0xff] %v7121_v53  ;;  %v966_v53 = vrot.slane %v6668_v28, 5 }
 0x237   :  { %1495 = vst.msk [vmem:[#allocation2 + $0x658] sm:$0xff] %vm881_vm2, %v1455_v57  ;;  %v7154_v57 = vmax.f32 %v273_v3, 0.0  ;;  %v3916_v3 = vld [vmem:[%s11297_s3 + $0x90] sm:$0xff]  ;;  %v947_v27 = vrot.slane %v945_v49, 4 }
 0x239   :  { %11676 = vst [vmem:[#allocation40_spill] sm:$0xff] %v7154_v57 }
 0x23a   :  { %856 = vst [vmem:[#allocation1 + $0x11] ss:$2 sm:$0xff] %v7154_v57 }
 0x23d   :  { %v1467_v2 = vld.sshfl [vmem:[#allocation1] sm:$0xff pattern:$0x75316420] }
 0x23e   :  { %1503 = vst [vmem:[#allocation1] ss:$2 sm:$0xff] %v6295_v26  ;;  %v3923_v26 = vld [vmem:[%s11297_s3 + $0xc8] sm:$0xff] }
 0x23f   :  { %1505 = vst [vmem:[#allocation1 + $0x1] ss:$2 sm:$0xff] %v6307_v30  ;;  %4373 = vmatpush.msra.mxu2 %v3923_v26  ;;  %v3922_v30 = vld [vmem:[%s11297_s3 + $0xc0] sm:$0xff]  ;;  %v275_v26 = vpop.f32.mrf.mxu0 }
 0x240   :  { %1499 = vst.msk [vmem:[#allocation2 + $0x978] sm:$0xff] %vm881_vm2, %v1467_v2  ;;  %v3919_v2 = vld [vmem:[%s11297_s3 + $0xa8] sm:$0xff]  ;;  %v276_v23 = vadd.f32 %v6907_v32, %v275_v26 }
 0x241   :  { %4374 = vmatpush.msra.mxu2 %v3922_v30 }
 0x243   :  { %4375 = vmatpush.msra.mxu2 %v3921_v20 }
 0x245   :  { %4376 = vmatpush.msra.mxu2 %v3920_v21  ;;  %v6025_v21 = vrot.slane %v6313_v31, 9 }
 0x246   :  { %v1518_v9 = vld.sshfl [vmem:[#allocation1] sm:$0xff pattern:$0x75316420] }
 0x247   :  { %1522 = vst [vmem:[#allocation1] ss:$2 sm:$0xff] %v6397_v55  ;;  %4377 = vmatpush.msra.mxu2 %v3919_v2  ;;  %v7178_v2 = vmax.f32 %v276_v23, 0.0 }
 0x248   :  { %1523 = vst [vmem:[#allocation1 + $0x1] ss:$2 sm:$0xff] %v6409_v59  ;;  %v7225_v59 = vrot.slane %v6668_v28, 4 }
 0x249   :  { %1574 = vst.msk [vmem:[#allocation2 + $0x20] sm:$0xff] %vm881_vm2, %v1518_v9  ;;  %v910_v9 = vrot.slane %v6325_v36, 5  ;;  %v7194_v23 = vrot.slane %v7178_v2, 4 }
 0x24a   :  { %11677 = vst [vmem:[#allocation41_spill] sm:$0xff] %v7178_v2 }
 0x24b   :  { %v912_v30 = vrot.slane %v910_v9, 4  ;;  %v7185_v10 = vsel %vm6962_vm5, %v6025_v21, %v910_v9  ;;  %11678 = vst [vmem:[#allocation42_spill] sm:$0xff] %v7194_v23  ;;  %v3914_v9 = vld [vmem:[%s11297_s3 + $0x80] sm:$0xff] }
 0x24c   :  { %857 = vst [vmem:[#allocation1 + $0x20] ss:$2 sm:$0xff] %v7178_v2 }
 0x24d   :  { %858 = vst [vmem:[#allocation1 + $0x21] ss:$2 sm:$0xff] %v7194_v23 }
 0x24f   :  { %v1530_v22 = vld.sshfl [vmem:[#allocation1] sm:$0xff pattern:$0x75316420] }
 0x250   :  { %1534 = vst [vmem:[#allocation1] ss:$2 sm:$0xff] %v6639_v8  ;;  %v7160_v8 = vrot.slane %v6325_v36, 4 }
 0x251   :  { %1535 = vst [vmem:[#allocation1 + $0x1] ss:$2 sm:$0xff] %v6651_v15  ;;  %v3918_v15 = vld [vmem:[%s11297_s3 + $0xa0] sm:$0xff] }
 0x252   :  { %1578 = vst.msk [vmem:[#allocation2 + $0x340] sm:$0xff] %vm881_vm2, %v1530_v22  ;;  %4378 = vmatpush.msra.mxu2 %v3918_v15  ;;  %v913_v20 = vrot.slane %v7160_v8, 5  ;;  %v3915_v15 = vld [vmem:[%s11297_s3 + $0x88] sm:$0xff]  ;;  %v1115_v13 = vrot.slane %v7160_v8, 6 }
 0x254   :  { %4379 = vmatpush.msra.mxu2 %v3917_v14  ;;  %v862_v14 = vld.sshfl [vmem:[#allocation1 + $0x10] sm:$0xff pattern:$0x75316420]  ;;  %v7190_v26 = vsel %vm6962_vm5, %v912_v30, %v913_v20  ;;  %v940_v30 = vrot.slane %v938_v58, 4 }
 0x255   :  { %1017 = vst [vmem:[#allocation1 + $0x10] ss:$2 sm:$0xff] %v7185_v10 }
 0x256   :  { %4380 = vmatpush.msra.mxu2 %v3916_v3  ;;  %v7197_v3 = vrot.slane %v6429_v1, 4  ;;  %1019 = vst [vmem:[#allocation1 + $0x11] ss:$2 sm:$0xff] %v7190_v26 }
 0x257   :  { %895 = vst.msk [vmem:[#allocation2 + $0xa28] sm:$0xff] %vm881_vm2, %v862_v14  ;;  %v920_v14 = vrot.slane %v6358_v45, 5 }
 0x258   :  { %v1542_v22 = vld.sshfl [vmem:[#allocation1] sm:$0xff pattern:$0x75316420]  ;;  %4381 = vmatpush.msra.mxu2 %v3915_v15  ;;  %11679 = vst [vmem:[#allocation43_spill] sm:$0xff] %v7197_v3  ;;  %v941_v20 = vrot.slane %v7197_v3, 5  ;;  %v917_v15 = vrot.slane %v6346_v41, 5 }
 0x259   :  { %1546 = vst [vmem:[#allocation1] ss:$2 sm:$0xff] %v6955_v63  ;;  %v1143_v55 = vrot.slane %v7197_v3, 6 }
 0x25a   :  { %1547 = vst [vmem:[#allocation1 + $0x1] ss:$2 sm:$0xff] %v6981_v35  ;;  %4382 = vmatpush.msra.mxu2 %v3914_v9  ;;  %v7215_v9 = vsel %vm6962_vm5, %v6029_v52, %v938_v58  ;;  %v7221_v34 = vsel %vm6962_vm5, %v940_v30, %v941_v20  ;;  %v919_v35 = vrot.slane %v917_v15, 4  ;;  %v7231_v52 = vsel %vm6962_vm5, %v6026_v43, %v917_v15  ;;  %v863_v58 = vld.sshfl [vmem:[#allocation1 + $0x20] sm:$0xff pattern:$0x75316420] }
 0x25b   :  { %1582 = vst.msk [vmem:[#allocation2 + $0x660] sm:$0xff] %vm881_vm2, %v1542_v22  ;;  %v3499_v22 = vld [vmem:[#allocation2 + $0x8] sm:$0xff]  ;;  %v3945_v30 = vld [vmem:[%s11297_s3 + $0x178] sm:$0xff]  ;;  %v969_v15 = vrot.slane %v7225_v59, 5 }
 0x25c   :  { %4383 = vmatmul.f32.vlgmr.msra.gmra.mxu2 %v3499_v22  ;;  %11680 = vst [vmem:[#allocation44_spill] sm:$0xff] %v7215_v9  ;;  %v7239_v20 = vsel %vm6962_vm5, %v919_v35, %v920_v14  ;;  %4432 = vmatpush.msra.mxu3 %v3945_v30  ;;  %v3944_v43 = vld [vmem:[%s11297_s3 + $0x170] sm:$0xff]  ;;  %v6033_v35 = vrot.slane %v6657_v16, 9  ;;  %v3943_v14 = vld [vmem:[%s11297_s3 + $0x168] sm:$0xff] }
 0x25d   :  { %v1029_v22 = vld.sshfl [vmem:[#allocation1 + $0x10] sm:$0xff pattern:$0x75316420]  ;;  %11681 = vst [vmem:[#allocation45_spill] sm:$0xff] %v7221_v34 }
 0x25e   :  { %1034 = vst [vmem:[#allocation1 + $0x10] ss:$2 sm:$0xff] %v7215_v9  ;;  %4433 = vmatpush.msra.mxu3 %v3944_v43  ;;  %v3823_v30 = vld [vmem:[#allocation2 + $0xa28] sm:$0xff] }
 0x25f   :  { %1035 = vst [vmem:[#allocation1 + $0x11] ss:$2 sm:$0xff] %v7221_v34  ;;  %4357 = vmatmul.f32.gmra.mxu1 %v3823_v30 }
 0x260   :  { %11682 = vst [vmem:[#allocation46_spill] sm:$0xff] %v7231_v52  ;;  %4434 = vmatpush.msra.mxu3 %v3943_v14 }
 0x261   :  { %v1554_v21 = vld.sshfl [vmem:[#allocation1] sm:$0xff pattern:$0x75316420]  ;;  %1085 = vst.msk [vmem:[#allocation2 + $0xd0] sm:$0xff] %vm881_vm2, %v1029_v22 }
 0x262   :  { %1590 = vst [vmem:[#allocation1] ss:$2 sm:$0xff] %v6313_v31  ;;  %4435 = vmatpush.msra.mxu3 %v3942_v25  ;;  %v278_v25 = vpop.f32.mrf.mxu0 }
 0x263   :  { %1592 = vst [vmem:[#allocation1 + $0x1] ss:$2 sm:$0xff] %v6325_v36 }
 0x264   :  { %1586 = vst.msk [vmem:[#allocation2 + $0x980] sm:$0xff] %vm881_vm2, %v1554_v21  ;;  %v968_v21 = vrot.slane %v966_v53, 4 }
 0x265   :  { %11683 = vst [vmem:[#allocation47_spill] sm:$0xff] %v7239_v20 }
 0x266   :  { %1021 = vst [vmem:[#allocation1 + $0x20] ss:$2 sm:$0xff] %v7231_v52  ;;  %v1041_v43 = vld.sshfl [vmem:[#allocation1 + $0x10] sm:$0xff pattern:$0x75316420]  ;;  %v7267_v14 = vsel %vm6962_vm5, %v968_v21, %v969_v15  ;;  %v7282_v21 = vsel %vm6962_vm5, %v947_v27, %v948_v33  ;;  %v976_v27 = vrot.slane %v6932_v47, 5 }
 0x267   :  { %1023 = vst [vmem:[#allocation1 + $0x21] ss:$2 sm:$0xff] %v7239_v20 }
 0x268   :  { %896 = vst.msk [vmem:[#allocation2 + $0xaf0] sm:$0xff] %vm881_vm2, %v863_v58  ;;  %v7258_v58 = vsel %vm6962_vm5, %v6033_v35, %v966_v53  ;;  %v7271_v53 = vrot.slane %v7154_v57, 4  ;;  %v7277_v35 = vsel %vm6962_vm5, %v6030_v19, %v945_v49  ;;  %v973_v19 = vrot.slane %v6921_v38, 5 }
 0x269   :  { %1046 = vst [vmem:[#allocation1 + $0x10] ss:$2 sm:$0xff] %v7258_v58  ;;  %v6037_v49 = vrot.slane %v6989_v44, 9 }
 0x26a   :  { %v1605_v22 = vld.sshfl [vmem:[#allocation1] sm:$0xff pattern:$0x75316420]  ;;  %11684 = vst [vmem:[#allocation48_spill] sm:$0xff] %v7271_v53  ;;  %v997_v29 = vrot.slane %v7271_v53, 5  ;;  %v975_v0 = vrot.slane %v973_v19, 4 }
 0x26b   :  { %1609 = vst [vmem:[#allocation1] ss:$2 sm:$0xff] %v6415_v60 }
 0x26c   :  { %1610 = vst [vmem:[#allocation1 + $0x1] ss:$2 sm:$0xff] %v6429_v1 }
 0x26d   :  { %1661 = vst.msk [vmem:[#allocation2 + $0x28] sm:$0xff] %vm881_vm2, %v1605_v22  ;;  %v994_v22 = vrot.slane %v7154_v57, 5 }
 0x26e   :  { %1047 = vst [vmem:[#allocation1 + $0x11] ss:$2 sm:$0xff] %v7267_v14  ;;  %v1030_v30 = vld.sshfl [vmem:[#allocation1 + $0x20] sm:$0xff pattern:$0x75316420] }
 0x26f   :  { %11685 = vst [vmem:[#allocation49_spill] sm:$0xff] %v7277_v35  ;;  %v996_v42 = vrot.slane %v994_v22, 4  ;;  %v7296_v33 = vsel %vm6962_vm5, %v6037_v49, %v994_v22  ;;  %v279_v49 = vadd.f32 %v6907_v32, %v278_v25 }
 0x270   :  { %1089 = vst.msk [vmem:[#allocation2 + $0x3f0] sm:$0xff] %vm881_vm2, %v1041_v43 }
 0x271   :  { %11686 = vst [vmem:[#allocation50_spill] sm:$0xff] %v7282_v21  ;;  %v7322_v25 = vmax.f32 %v279_v49, 0.0  ;;  %v6038_v49 = vrot.slane %v7178_v2, 9 }
 0x272   :  { %1036 = vst [vmem:[#allocation1 + $0x20] ss:$2 sm:$0xff] %v7277_v35  ;;  %v6049_v35 = vrot.slane %v6657_v16, 10 }
 0x273   :  { %1037 = vst [vmem:[#allocation1 + $0x21] ss:$2 sm:$0xff] %v7282_v21  ;;  %v1617_v15 = vld.sshfl [vmem:[#allocation1] sm:$0xff pattern:$0x75316420] }
 0x274   :  { %1086 = vst.msk [vmem:[#allocation2 + $0x198] sm:$0xff] %vm881_vm2, %v1030_v30  ;;  %v7301_v30 = vsel %vm6962_vm5, %v996_v42, %v997_v29  ;;  %v7314_v29 = vsel %vm6962_vm5, %v975_v0, %v976_v27  ;;  %v1114_v42 = vrot.slane %v1112_v39, 4  ;;  %v1001_v0 = vrot.slane %v7194_v23, 5 }
 0x275   :  { %1621 = vst [vmem:[#allocation1] ss:$2 sm:$0xff] %v6657_v16  ;;  %v1053_v43 = vld.sshfl [vmem:[#allocation1 + $0x10] sm:$0xff pattern:$0x75316420] }
 0x276   :  { %1622 = vst [vmem:[#allocation1 + $0x1] ss:$2 sm:$0xff] %v6668_v28  ;;  %v7334_v63 = vsel %vm7030_vm8, %v1114_v42, %v1115_v13  ;;  %v1003_v42 = vrot.slane %v1001_v0, 4 }
 0x277   :  { %1665 = vst.msk [vmem:[#allocation2 + $0x348] sm:$0xff] %vm881_vm2, %v1617_v15  ;;  %v7308_v15 = vsel %vm6962_vm5, %v6034_v51, %v973_v19  ;;  %v281_v51 = vpop.f32.mrf.mxu0  ;;  %v6041_v19 = vrot.slane %v6313_v31, 10 }
 0x278   :  { %11687 = vst [vmem:[#allocation51_spill] sm:$0xff] %v7296_v33 }
 0x279   :  { %11688 = vst [vmem:[#allocation52_spill] sm:$0xff] %v7301_v30  ;;  %v7328_v27 = vsel %vm7030_vm8, %v6041_v19, %v1112_v39  ;;  %v7341_v39 = vrot.slane %v7322_v25, 4  ;;  %v1004_v19 = vrot.slane %v7322_v25, 5 }
 0x27a   :  { %1058 = vst [vmem:[#allocation1 + $0x10] ss:$2 sm:$0xff] %v7296_v33  ;;  %v1042_v22 = vld.sshfl [vmem:[#allocation1 + $0x20] sm:$0xff pattern:$0x75316420] }
 0x27b   :  { %1059 = vst [vmem:[#allocation1 + $0x11] ss:$2 sm:$0xff] %v7301_v30 }
 0x27c   :  { %11689 = vst [vmem:[#allocation53_spill] sm:$0xff] %v7308_v15 }
 0x27d   :  { %1093 = vst.msk [vmem:[#allocation2 + $0x710] sm:$0xff] %vm881_vm2, %v1053_v43  ;;  %v1629_v24 = vld.sshfl [vmem:[#allocation1] sm:$0xff pattern:$0x75316420] }
 0x27e   :  { %11690 = vst [vmem:[#allocation54_spill] sm:$0xff] %v7314_v29 }
 0x27f   :  { %1048 = vst [vmem:[#allocation1 + $0x20] ss:$2 sm:$0xff] %v7308_v15 }
 0x280   :  { %1049 = vst [vmem:[#allocation1 + $0x21] ss:$2 sm:$0xff] %v7314_v29 }
 0x281   :  { %1090 = vst.msk [vmem:[#allocation2 + $0x4b8] sm:$0xff] %vm881_vm2, %v1042_v22  ;;  %v282_v22 = vadd.f32 %v6907_v32, %v281_v51  ;;  %v7347_v32 = vsel %vm6962_vm5, %v6038_v49, %v1001_v0  ;;  %v6045_v49 = vrot.slane %v6415_v60, 10  ;;  %v1119_v0 = vrot.slane %v6346_v41, 6 }
 0x282   :  { %1633 = vst [vmem:[#allocation1] ss:$2 sm:$0xff] %v6989_v44  ;;  %v1065_v43 = vld.sshfl [vmem:[#allocation1 + $0x10] sm:$0xff pattern:$0x75316420] }
 0x283   :  { %11691 = vst [vmem:[#allocation55_spill] sm:$0xff] %v7322_v25  ;;  %v7350_v51 = vmax.f32 %v282_v22, 0.0 }
 0x284   :  { %1669 = vst.msk [vmem:[#allocation2 + $0x668] sm:$0xff] %vm881_vm2, %v1629_v24  ;;  %v1140_v24 = vrot.slane %v6429_v1, 6 }
 0x285   :  { %1634 = vst [vmem:[#allocation1 + $0x1] ss:$2 sm:$0xff] %v7154_v57 }
 0x286   :  { %1219 = vst [vmem:[#allocation1 + $0x10] ss:$2 sm:$0xff] %v7328_v27  ;;  %v1142_v6 = vrot.slane %v1140_v24, 4  ;;  %v7365_v22 = vsel %vm7030_vm8, %v6045_v49, %v1140_v24  ;;  %v7378_v24 = vrot.slane %v6376_v50, 4  ;;  %v924_v49 = vrot.slane %v6376_v50, 5 }
 0x287   :  { %1221 = vst [vmem:[#allocation1 + $0x11] ss:$2 sm:$0xff] %v7334_v63  ;;  %v1054_v13 = vld.sshfl [vmem:[#allocation1 + $0x20] sm:$0xff pattern:$0x75316420] }
 0x288   :  { %11692 = vst [vmem:[#allocation56_spill] sm:$0xff] %v7341_v39  ;;  %v7369_v54 = vsel %vm7030_vm8, %v1142_v6, %v1143_v55  ;;  %v7383_v55 = vsel %vm7030_vm8, %v6042_v18, %v1119_v0  ;;  %v6027_v6 = vrot.slane %v6364_v46, 9  ;;  %v927_v20 = vrot.slane %v7378_v24, 5 }
 0x289   :  { %1097 = vst.msk [vmem:[#allocation2 + $0xa30] sm:$0xff] %vm881_vm2, %v1065_v43  ;;  %v7357_v43 = vsel %vm6962_vm5, %v1003_v42, %v1004_v19  ;;  %v1168_v19 = vrot.slane %v6668_v28, 6  ;;  %v1122_v42 = vrot.slane %v6358_v45, 6 }
 0x28a   :  { %11693 = vst [vmem:[#allocation57_spill] sm:$0xff] %v7347_v32  ;;  %v7396_v18 = vsel %vm6962_vm5, %v6027_v6, %v924_v49  ;;  %v1196_v6 = vrot.slane %v7154_v57, 6 }
 0x28b   :  { %1060 = vst [vmem:[#allocation1 + $0x20] ss:$2 sm:$0xff] %v7347_v32  ;;  %v1170_v32 = vrot.slane %v1168_v19, 4 }
 0x28c   :  { %11694 = vst [vmem:[#allocation58_spill] sm:$0xff] %v7350_v51 }
 0x28d   :  { %1094 = vst.msk [vmem:[#allocation2 + $0x7d8] sm:$0xff] %vm881_vm2, %v1054_v13 }
 0x28e   :  { %859 = vst [vmem:[#allocation1 + $0x30] ss:$2 sm:$0xff] %v7341_v39  ;;  %v1231_v13 = vld.sshfl [vmem:[#allocation1 + $0x10] sm:$0xff pattern:$0x75316420] }
 0x28f   :  { %11695 = vst [vmem:[#allocation59_spill] sm:$0xff] %v7357_v43 }
 0x290   :  { %1061 = vst [vmem:[#allocation1 + $0x21] ss:$2 sm:$0xff] %v7357_v43  ;;  %v1121_v43 = vrot.slane %v1119_v0, 4  ;;  %v926_v0 = vrot.slane %v924_v49, 4  ;;  %v1150_v49 = vrot.slane %v6464_v11, 6 }
 0x291   :  { %860 = vst [vmem:[#allocation1 + $0x31] ss:$2 sm:$0xff] %v7350_v51 }
 0x292   :  { %11696 = vst [vmem:[#allocation60_spill] sm:$0xff] %v7365_v22  ;;  %v7388_v15 = vsel %vm7030_vm8, %v1121_v43, %v1122_v42  ;;  %v1147_v43 = vrot.slane %v6452_v7, 6  ;;  %v7403_v42 = vsel %vm7030_vm8, %v6049_v35, %v1168_v19  ;;  %v6046_v35 = vrot.slane %v6444_v5, 10 }
 0x293   :  { %11697 = vst [vmem:[#allocation61_spill] sm:$0xff] %v7369_v54 }
 0x294   :  { %1236 = vst [vmem:[#allocation1 + $0x10] ss:$2 sm:$0xff] %v7365_v22  ;;  %v1149_v19 = vrot.slane %v1147_v43, 4  ;;  %v1203_v22 = vrot.slane %v7194_v23, 6 }
 0x295   :  { %1237 = vst [vmem:[#allocation1 + $0x11] ss:$2 sm:$0xff] %v7369_v54 }
 0x296   :  { %1287 = vst.msk [vmem:[#allocation2 + $0xd8] sm:$0xff] %vm881_vm2, %v1231_v13  ;;  %v1171_v13 = vrot.slane %v7225_v59, 6 }
 0x297   :  { %11698 = vst [vmem:[#allocation62_spill] sm:$0xff] %v7378_v24  ;;  %v1066_v29 = vld.sshfl [vmem:[#allocation1 + $0x20] sm:$0xff pattern:$0x75316420] }
 0x298   :  { %11699 = vst [vmem:[#allocation63_spill] sm:$0xff] %v7383_v55  ;;  %v864_v21 = vld.sshfl [vmem:[#allocation1 + $0x30] sm:$0xff pattern:$0x75316420] }
 0x299   :  { %11700 = vst [vmem:[#allocation64_spill] sm:$0xff] %v7388_v15 }
 0x29a   :  { %1223 = vst [vmem:[#allocation1 + $0x20] ss:$2 sm:$0xff] %v7383_v55 }
 0x29b   :  { %1225 = vst [vmem:[#allocation1 + $0x21] ss:$2 sm:$0xff] %v7388_v15  ;;  %v7408_v15 = vsel %vm7030_vm8, %v1170_v32, %v1171_v13  ;;  %v7423_v32 = vsel %vm7030_vm8, %v6046_v35, %v1147_v43  ;;  %v7426_v13 = vrot.slane %v6484_v17, 4  ;;  %v6053_v43 = vrot.slane %v6989_v44, 10 }
 0x29c   :  { %11701 = vst [vmem:[#allocation65_spill] sm:$0xff] %v7396_v18  ;;  %v1243_v55 = vld.sshfl [vmem:[#allocation1 + $0x10] sm:$0xff pattern:$0x75316420] }
 0x29d   :  { %1098 = vst.msk [vmem:[#allocation2 + $0xaf8] sm:$0xff] %vm881_vm2, %v1066_v29  ;;  %v7416_v29 = vsel %vm6962_vm5, %v926_v0, %v927_v20  ;;  %v7432_v20 = vsel %vm7030_vm8, %v1149_v19, %v1150_v49  ;;  %v1199_v0 = vrot.slane %v7271_v53, 6  ;;  %v7443_v49 = vsel %vm7030_vm8, %v6053_v43, %v1196_v6 }
 0x29e   :  { %11702 = vst [vmem:[#allocation66_spill] sm:$0xff] %v7403_v42  ;;  %v6050_v43 = vrot.slane %v6914_v37, 10 }
 0x29f   :  { %1025 = vst [vmem:[#allocation1 + $0x30] ss:$2 sm:$0xff] %v7396_v18  ;;  %v952_v18 = vrot.slane %v6484_v17, 5 }
 0x2a0   :  { %11703 = vst [vmem:[#allocation67_spill] sm:$0xff] %v7408_v15 }
 0x2a1   :  { %1248 = vst [vmem:[#allocation1 + $0x10] ss:$2 sm:$0xff] %v7403_v42  ;;  %v954_v35 = vrot.slane %v952_v18, 4  ;;  %v1313_v42 = vrot.slane %v6325_v36, 7 }
 0x2a2   :  { %1249 = vst [vmem:[#allocation1 + $0x11] ss:$2 sm:$0xff] %v7408_v15  ;;  %v1232_v15 = vld.sshfl [vmem:[#allocation1 + $0x20] sm:$0xff pattern:$0x75316420] }
 0x2a3   :  { %11704 = vst [vmem:[#allocation68_spill] sm:$0xff] %v7416_v29 }
 0x2a4   :  { %1291 = vst.msk [vmem:[#allocation2 + $0x3f8] sm:$0xff] %vm881_vm2, %v1243_v55  ;;  %v1198_v55 = vrot.slane %v1196_v6, 4 }
 0x2a5   :  { %1027 = vst [vmem:[#allocation1 + $0x31] ss:$2 sm:$0xff] %v7416_v29  ;;  %v955_v29 = vrot.slane %v7426_v13, 5 }
 0x2a6   :  { %11705 = vst [vmem:[#allocation69_spill] sm:$0xff] %v7423_v32  ;;  %v7449_v52 = vsel %vm7030_vm8, %v1198_v55, %v1199_v0  ;;  %v980_v0 = vrot.slane %v6950_v62, 5 }
 0x2a7   :  { %11706 = vst [vmem:[#allocation70_spill] sm:$0xff] %v7426_v13  ;;  %v7462_v54 = vsel %vm6962_vm5, %v954_v35, %v955_v29  ;;  %v6057_v35 = vrot.slane %v6313_v31, 11  ;;  %v6035_v31 = vrot.slane %v6944_v61, 9 }
 0x2a8   :  { %897 = vst.msk [vmem:[#allocation2 + $0xbb8] sm:$0xff] %vm881_vm2, %v864_v21  ;;  %v1175_v21 = vrot.slane %v6921_v38, 6 }
 0x2a9   :  { %11707 = vst [vmem:[#allocation71_spill] sm:$0xff] %v7432_v20  ;;  %v1255_v19 = vld.sshfl [vmem:[#allocation1 + $0x10] sm:$0xff pattern:$0x75316420] }
 0x2aa   :  { %1238 = vst [vmem:[#allocation1 + $0x20] ss:$2 sm:$0xff] %v7423_v32  ;;  %v6031_v32 = vrot.slane %v6470_v12, 9  ;;  %v1177_v55 = vrot.slane %v1175_v21, 4 }
 0x2ab   :  { %1239 = vst [vmem:[#allocation1 + $0x21] ss:$2 sm:$0xff] %v7432_v20 }
 0x2ac   :  { %1288 = vst.msk [vmem:[#allocation2 + $0x1a0] sm:$0xff] %vm881_vm2, %v1232_v15  ;;  %v1178_v15 = vrot.slane %v6932_v47, 6  ;;  %v1031_v20 = vld.sshfl [vmem:[#allocation1 + $0x30] sm:$0xff pattern:$0x75316420]  ;;  %v7456_v6 = vsel %vm6962_vm5, %v6031_v32, %v952_v18  ;;  %v7471_v18 = vrot.slane %v6950_v62, 4 }
 0x2ad   :  { %11708 = vst [vmem:[#allocation72_spill] sm:$0xff] %v7443_v49 }
 0x2ae   :  { %11709 = vst [vmem:[#allocation73_spill] sm:$0xff] %v7449_v52  ;;  %v7477_v29 = vsel %vm7030_vm8, %v1177_v55, %v1178_v15  ;;  %v1341_v55 = vrot.slane %v6429_v1, 7 }
 0x2af   :  { %1260 = vst [vmem:[#allocation1 + $0x10] ss:$2 sm:$0xff] %v7443_v49  ;;  %v1316_v49 = vrot.slane %v7160_v8, 7 }
 0x2b0   :  { %1261 = vst [vmem:[#allocation1 + $0x11] ss:$2 sm:$0xff] %v7449_v52  ;;  %v7468_v52 = vsel %vm7030_vm8, %v6050_v43, %v1175_v21  ;;  %v982_v21 = vrot.slane %v980_v0, 4  ;;  %v7485_v43 = vsel %vm7079_vm10, %v6057_v35, %v1313_v42  ;;  %v1205_v35 = vrot.slane %v1203_v22, 4 }
 0x2b1   :  { %11710 = vst [vmem:[#allocation74_spill] sm:$0xff] %v7456_v6 }
 0x2b2   :  { %1295 = vst.msk [vmem:[#allocation2 + $0x718] sm:$0xff] %vm881_vm2, %v1255_v19  ;;  %v1244_v32 = vld.sshfl [vmem:[#allocation1 + $0x20] sm:$0xff pattern:$0x75316420]  ;;  %v1315_v19 = vrot.slane %v1313_v42, 4  ;;  %v1206_v42 = vrot.slane %v7322_v25, 6 }
 0x2b3   :  { %11711 = vst [vmem:[#allocation75_spill] sm:$0xff] %v7462_v54 }
 0x2b4   :  { %1038 = vst [vmem:[#allocation1 + $0x30] ss:$2 sm:$0xff] %v7456_v6  ;;  %v7492_v15 = vsel %vm7079_vm10, %v1315_v19, %v1316_v49 }
 0x2b5   :  { %11712 = vst [vmem:[#allocation76_spill] sm:$0xff] %v7468_v52 }
 0x2b6   :  { %11713 = vst [vmem:[#allocation77_spill] sm:$0xff] %v7471_v18 }
 0x2b7   :  { %1039 = vst [vmem:[#allocation1 + $0x31] ss:$2 sm:$0xff] %v7462_v54  ;;  %v983_v54 = vrot.slane %v7471_v18, 5  ;;  %v1267_v6 = vld.sshfl [vmem:[#allocation1 + $0x10] sm:$0xff pattern:$0x75316420] }
 0x2b8   :  { %11714 = vst [vmem:[#allocation78_spill] sm:$0xff] %v7477_v29 }
 0x2b9   :  { %1250 = vst [vmem:[#allocation1 + $0x20] ss:$2 sm:$0xff] %v7468_v52  ;;  %v7507_v19 = vsel %vm6962_vm5, %v982_v21, %v983_v54  ;;  %v7522_v54 = vsel %vm7030_vm8, %v1205_v35, %v1206_v42  ;;  %v6061_v21 = vrot.slane %v6415_v60, 11  ;;  %v6039_v35 = vrot.slane %v7341_v39, 9 }
 0x2ba   :  { %1251 = vst [vmem:[#allocation1 + $0x21] ss:$2 sm:$0xff] %v7477_v29  ;;  %v7510_v29 = vrot.slane %v7350_v51, 4  ;;  %v1369_v60 = vrot.slane %v6668_v28, 7 }
 0x2bb   :  { %1292 = vst.msk [vmem:[#allocation2 + $0x4c0] sm:$0xff] %vm881_vm2, %v1244_v32  ;;  %v7501_v32 = vsel %vm6962_vm5, %v6035_v31, %v980_v0  ;;  %v1343_v31 = vrot.slane %v1341_v55, 4 }
 0x2bc   :  { %11715 = vst [vmem:[#allocation79_spill] sm:$0xff] %v7485_v43 }
 0x2bd   :  { %1087 = vst.msk [vmem:[#allocation2 + $0x260] sm:$0xff] %vm881_vm2, %v1031_v20  ;;  %v6054_v20 = vrot.slane %v7178_v2, 10 }
 0x2be   :  { %11716 = vst [vmem:[#allocation80_spill] sm:$0xff] %v7492_v15  ;;  %v1043_v49 = vld.sshfl [vmem:[#allocation1 + $0x30] sm:$0xff pattern:$0x75316420] }
 0x2bf   :  { %1420 = vst [vmem:[#allocation1 + $0x10] ss:$2 sm:$0xff] %v7485_v43  ;;  %v7515_v52 = vsel %vm7030_vm8, %v6054_v20, %v1203_v22  ;;  %v1320_v22 = vrot.slane %v6346_v41, 7  ;;  %v7531_v20 = vsel %vm7079_vm10, %v6061_v21, %v1341_v55  ;;  %v1011_v43 = vrot.slane %v7510_v29, 5 }
 0x2c0   :  { %1422 = vst [vmem:[#allocation1 + $0x11] ss:$2 sm:$0xff] %v7492_v15  ;;  %v1344_v15 = vrot.slane %v7197_v3, 7  ;;  %v6058_v55 = vrot.slane %v6340_v40, 11  ;;  %v1126_v21 = vrot.slane %v6376_v50, 6 }
 0x2c1   :  { %11717 = vst [vmem:[#allocation81_spill] sm:$0xff] %v7501_v32  ;;  %v1256_v0 = vld.sshfl [vmem:[#allocation1 + $0x20] sm:$0xff pattern:$0x75316420] }
 0x2c2   :  { %1299 = vst.msk [vmem:[#allocation2 + $0xa38] sm:$0xff] %vm881_vm2, %v1267_v6  ;;  %v1008_v6 = vrot.slane %v7350_v51, 5  ;;  %v7537_v42 = vsel %vm7079_vm10, %v1343_v31, %v1344_v15  ;;  %v1322_v31 = vrot.slane %v1320_v22, 4 }
 0x2c3   :  { %11718 = vst [vmem:[#allocation82_spill] sm:$0xff] %v7507_v19 }
 0x2c4   :  { %11719 = vst [vmem:[#allocation83_spill] sm:$0xff] %v7510_v29 }
 0x2c5   :  { %1050 = vst [vmem:[#allocation1 + $0x30] ss:$2 sm:$0xff] %v7501_v32  ;;  %v1010_v32 = vrot.slane %v1008_v6, 4 }
 0x2c6   :  { %11720 = vst [vmem:[#allocation84_spill] sm:$0xff] %v7515_v52 }
 0x2c7   :  { %1051 = vst [vmem:[#allocation1 + $0x31] ss:$2 sm:$0xff] %v7507_v19  ;;  %v1432_v19 = vld.sshfl [vmem:[#allocation1 + $0x10] sm:$0xff pattern:$0x75316420] }
 0x2c8   :  { %11721 = vst [vmem:[#allocation85_spill] sm:$0xff] %v7522_v54 }
 0x2c9   :  { %1262 = vst [vmem:[#allocation1 + $0x20] ss:$2 sm:$0xff] %v7515_v52  ;;  %v7558_v52 = vsel %vm7079_vm10, %v6058_v55, %v1320_v22  ;;  %v1129_v22 = vrot.slane %v7378_v24, 6  ;;  %v1348_v55 = vrot.slane %v6452_v7, 7 }
 0x2ca   :  { %1263 = vst [vmem:[#allocation1 + $0x21] ss:$2 sm:$0xff] %v7522_v54  ;;  %v7553_v54 = vsel %vm6962_vm5, %v1010_v32, %v1011_v43  ;;  %v6065_v43 = vrot.slane %v6657_v16, 11  ;;  %v1128_v32 = vrot.slane %v1126_v21, 4 }
 0x2cb   :  { %1296 = vst.msk [vmem:[#allocation2 + $0x7e0] sm:$0xff] %vm881_vm2, %v1256_v0  ;;  %v1323_v0 = vrot.slane %v6358_v45, 7 }
 0x2cc   :  { %11722 = vst [vmem:[#allocation86_spill] sm:$0xff] %v7531_v20 }
 0x2cd   :  { %1091 = vst.msk [vmem:[#allocation2 + $0x580] sm:$0xff] %vm881_vm2, %v1043_v49  ;;  %v7548_v49 = vsel %vm6962_vm5, %v6039_v35, %v1008_v6  ;;  %v1371_v6 = vrot.slane %v1369_v60, 4  ;;  %v1372_v35 = vrot.slane %v7225_v59, 7 }
 0x2ce   :  { %11723 = vst [vmem:[#allocation87_spill] sm:$0xff] %v7537_v42  ;;  %v1055_v15 = vld.sshfl [vmem:[#allocation1 + $0x30] sm:$0xff pattern:$0x75316420] }
 0x2cf   :  { %1437 = vst [vmem:[#allocation1 + $0x10] ss:$2 sm:$0xff] %v7531_v20  ;;  %v7580_v16 = vsel %vm7079_vm10, %v1371_v6, %v1372_v35  ;;  %v7594_v6 = vsel %vm7030_vm8, %v1128_v32, %v1129_v22  ;;  %v1350_v35 = vrot.slane %v1348_v55, 4  ;;  %v1400_v32 = vrot.slane %v7271_v53, 7 }
 0x2d0   :  { %1438 = vst [vmem:[#allocation1 + $0x11] ss:$2 sm:$0xff] %v7537_v42  ;;  %v6069_v22 = vrot.slane %v6989_v44, 11 }
 0x2d1   :  { %1488 = vst.msk [vmem:[#allocation2 + $0xe0] sm:$0xff] %vm881_vm2, %v1432_v19  ;;  %v1268_v42 = vld.sshfl [vmem:[#allocation1 + $0x20] sm:$0xff pattern:$0x75316420]  ;;  %v7563_v19 = vsel %vm7079_vm10, %v1322_v31, %v1323_v0  ;;  %v7574_v0 = vsel %vm7079_vm10, %v6065_v43, %v1369_v60  ;;  %v7588_v60 = vsel %vm7030_vm8, %v6043_v4, %v1126_v21 }
 0x2d2   :  { %11724 = vst [vmem:[#allocation88_spill] sm:$0xff] %v7548_v49 }
 0x2d3   :  { %11725 = vst [vmem:[#allocation89_spill] sm:$0xff] %v7553_v54 }
 0x2d4   :  { %1062 = vst [vmem:[#allocation1 + $0x30] ss:$2 sm:$0xff] %v7548_v49  ;;  %v3723_v49 = vld [vmem:[#allocation2 + $0x708] sm:$0xff] }
 0x2d5   :  { %11726 = vst [vmem:[#allocation90_spill] sm:$0xff] %v7558_v52  ;;  %4345 = vmatmul.f32.gmra.mxu0 %v3723_v49 }
 0x2d6   :  { %1063 = vst [vmem:[#allocation1 + $0x31] ss:$2 sm:$0xff] %v7553_v54  ;;  %v1397_v54 = vrot.slane %v7154_v57, 7 }
 0x2d7   :  { %11727 = vst [vmem:[#allocation91_spill] sm:$0xff] %v7563_v19  ;;  %v1444_v31 = vld.sshfl [vmem:[#allocation1 + $0x10] sm:$0xff pattern:$0x75316420] }
 0x2d8   :  { %1424 = vst [vmem:[#allocation1 + $0x20] ss:$2 sm:$0xff] %v7558_v52  ;;  %v1399_v49 = vrot.slane %v1397_v54, 4 }
 0x2d9   :  { %1426 = vst [vmem:[#allocation1 + $0x21] ss:$2 sm:$0xff] %v7563_v19  ;;  %v1154_v19 = vrot.slane %v6484_v17, 6 }
 0x2da   :  { %1300 = vst.msk [vmem:[#allocation2 + $0xb00] sm:$0xff] %vm881_vm2, %v1268_v42  ;;  %v1351_v42 = vrot.slane %v6464_v11, 7  ;;  %v7622_v44 = vsel %vm7079_vm10, %v1399_v49, %v1400_v32  ;;  %v1182_v32 = vrot.slane %v6950_v62, 6 }
 0x2db   :  { %1095 = vst.msk [vmem:[#allocation2 + $0x8a0] sm:$0xff] %vm881_vm2, %v1055_v15  ;;  %v6062_v15 = vrot.slane %v6444_v5, 11 }
 0x2dc   :  { %1449 = vst [vmem:[#allocation1 + $0x10] ss:$2 sm:$0xff] %v7574_v0  ;;  %v7605_v21 = vsel %vm7079_vm10, %v1350_v35, %v1351_v42  ;;  %v7616_v42 = vsel %vm7079_vm10, %v6069_v22, %v1397_v54  ;;  %v6066_v54 = vrot.slane %v6914_v37, 11 }
 0x2dd   :  { %1450 = vst [vmem:[#allocation1 + $0x11] ss:$2 sm:$0xff] %v7580_v16  ;;  %v1067_v43 = vld.sshfl [vmem:[#allocation1 + $0x30] sm:$0xff pattern:$0x75316420]  ;;  %v7600_v52 = vsel %vm7079_vm10, %v6062_v15, %v1348_v55  ;;  %v1157_v55 = vrot.slane %v7426_v13, 6 }
 0x2de   :  { %11728 = vst [vmem:[#allocation92_spill] sm:$0xff] %v7588_v60  ;;  %v1376_v15 = vrot.slane %v6921_v38, 7 }
 0x2df   :  { %1492 = vst.msk [vmem:[#allocation2 + $0x400] sm:$0xff] %vm881_vm2, %v1444_v31  ;;  %v1156_v31 = vrot.slane %v1154_v19, 4 }
 0x2e0   :  { %11729 = vst [vmem:[#allocation93_spill] sm:$0xff] %v7594_v6  ;;  %v1433_v4 = vld.sshfl [vmem:[#allocation1 + $0x20] sm:$0xff pattern:$0x75316420]  ;;  %v1378_v49 = vrot.slane %v1376_v15, 4 }
 0x2e1   :  { %1227 = vst [vmem:[#allocation1 + $0x30] ss:$2 sm:$0xff] %v7588_v60  ;;  %v7635_v22 = vsel %vm7030_vm8, %v1156_v31, %v1157_v55  ;;  %v1184_v31 = vrot.slane %v1182_v32, 4  ;;  %v1185_v55 = vrot.slane %v7471_v18, 6 }
 0x2e2   :  { %11730 = vst [vmem:[#allocation94_spill] sm:$0xff] %v7600_v52 }
 0x2e3   :  { %1229 = vst [vmem:[#allocation1 + $0x31] ss:$2 sm:$0xff] %v7594_v6  ;;  %v6047_v6 = vrot.slane %v6470_v12, 10 }
 0x2e4   :  { %11731 = vst [vmem:[#allocation95_spill] sm:$0xff] %v7605_v21  ;;  %v1456_v35 = vld.sshfl [vmem:[#allocation1 + $0x10] sm:$0xff pattern:$0x75316420] }
 0x2e5   :  { %1439 = vst [vmem:[#allocation1 + $0x20] ss:$2 sm:$0xff] %v7600_v52  ;;  %v7629_v60 = vsel %vm7030_vm8, %v6047_v6, %v1154_v19 }
 0x2e6   :  { %1440 = vst [vmem:[#allocation1 + $0x21] ss:$2 sm:$0xff] %v7605_v21  ;;  %v7641_v21 = vsel %vm7079_vm10, %v6066_v54, %v1376_v15  ;;  %v1404_v15 = vrot.slane %v7194_v23, 7  ;;  %v6051_v54 = vrot.slane %v6944_v61, 10 }
 0x2e7   :  { %1489 = vst.msk [vmem:[#allocation2 + $0x1a8] sm:$0xff] %vm881_vm2, %v1433_v4  ;;  %v1379_v4 = vrot.slane %v6932_v47, 7 }
 0x2e8   :  { %11732 = vst [vmem:[#allocation96_spill] sm:$0xff] %v7616_v42 }
 0x2e9   :  { %1099 = vst.msk [vmem:[#allocation2 + $0xbc0] sm:$0xff] %vm881_vm2, %v1067_v43  ;;  %v7646_v6 = vsel %vm7079_vm10, %v1378_v49, %v1379_v4  ;;  %v1407_v4 = vrot.slane %v7322_v25, 7  ;;  %v7660_v49 = vsel %vm7030_vm8, %v6051_v54, %v1182_v32  ;;  %v1210_v32 = vrot.slane %v7350_v51, 6 }
 0x2ea   :  { %11733 = vst [vmem:[#allocation97_spill] sm:$0xff] %v7622_v44  ;;  %v1233_v43 = vld.sshfl [vmem:[#allocation1 + $0x30] sm:$0xff pattern:$0x75316420]  ;;  %v6055_v54 = vrot.slane %v7341_v39, 10 }
 0x2eb   :  { %1461 = vst [vmem:[#allocation1 + $0x10] ss:$2 sm:$0xff] %v7616_v42 }
 0x2ec   :  { %1462 = vst [vmem:[#allocation1 + $0x11] ss:$2 sm:$0xff] %v7622_v44 }
 0x2ed   :  { %11734 = vst [vmem:[#allocation98_spill] sm:$0xff] %v7629_v60  ;;  %v1445_v19 = vld.sshfl [vmem:[#allocation1 + $0x20] sm:$0xff pattern:$0x75316420] }
 0x2ee   :  { %1496 = vst.msk [vmem:[#allocation2 + $0x720] sm:$0xff] %vm881_vm2, %v1456_v35 }
 0x2ef   :  { %11735 = vst [vmem:[#allocation99_spill] sm:$0xff] %v7635_v22 }
 0x2f0   :  { %1240 = vst [vmem:[#allocation1 + $0x30] ss:$2 sm:$0xff] %v7629_v60  ;;  %v1406_v60 = vrot.slane %v1404_v15, 4 }
 0x2f1   :  { %11736 = vst [vmem:[#allocation100_spill] sm:$0xff] %v7641_v21 }
 0x2f2   :  { %1241 = vst [vmem:[#allocation1 + $0x31] ss:$2 sm:$0xff] %v7635_v22 }
 0x2f3   :  { %11737 = vst [vmem:[#allocation101_spill] sm:$0xff] %v7646_v6  ;;  %v1468_v35 = vld.sshfl [vmem:[#allocation1 + $0x10] sm:$0xff pattern:$0x75316420] }
 0x2f4   :  { %1451 = vst [vmem:[#allocation1 + $0x20] ss:$2 sm:$0xff] %v7641_v21 }
 0x2f5   :  { %1452 = vst [vmem:[#allocation1 + $0x21] ss:$2 sm:$0xff] %v7646_v6 }
 0x2f6   :  { %1493 = vst.msk [vmem:[#allocation2 + $0x4c8] sm:$0xff] %vm881_vm2, %v1445_v19  ;;  %v6070_v19 = vrot.slane %v7178_v2, 11 }
 0x2f7   :  { %1289 = vst.msk [vmem:[#allocation2 + $0x268] sm:$0xff] %vm881_vm2, %v1233_v43  ;;  %v7666_v43 = vsel %vm7030_vm8, %v1184_v31, %v1185_v55  ;;  %v1212_v55 = vrot.slane %v1210_v32, 4 }
 0x2f8   :  { %1507 = vst [vmem:[#allocation1 + $0x10] ss:$2 sm:$0xff] %v6325_v36  ;;  %v7671_v6 = vsel %vm7079_vm10, %v6070_v19, %v1404_v15  ;;  %v1213_v15 = vrot.slane %v7510_v29, 6  ;;  %v1327_v19 = vrot.slane %v6376_v50, 7 }
 0x2f9   :  { %1509 = vst [vmem:[#allocation1 + $0x11] ss:$2 sm:$0xff] %v7160_v8  ;;  %v1245_v22 = vld.sshfl [vmem:[#allocation1 + $0x30] sm:$0xff pattern:$0x75316420] }
 0x2fa   :  { %11738 = vst [vmem:[#allocation102_spill] sm:$0xff] %v7660_v49 }
 0x2fb   :  { %1500 = vst.msk [vmem:[#allocation2 + $0xa40] sm:$0xff] %vm881_vm2, %v1468_v35  ;;  %v7677_v35 = vsel %vm7079_vm10, %v1406_v60, %v1407_v4  ;;  %v7690_v60 = vsel %vm7030_vm8, %v6055_v54, %v1210_v32  ;;  %v1641_v54 = vld.sshfl [vmem:[#allocation1] sm:$0xff pattern:$0x75316420] }
 0x2fc   :  { %11739 = vst [vmem:[#allocation103_spill] sm:$0xff] %v7666_v43  ;;  %v1457_v21 = vld.sshfl [vmem:[#allocation1 + $0x20] sm:$0xff pattern:$0x75316420] }
 0x2fd   :  { %1252 = vst [vmem:[#allocation1 + $0x30] ss:$2 sm:$0xff] %v7660_v49 }
 0x2fe   :  { %11740 = vst [vmem:[#allocation104_spill] sm:$0xff] %v7671_v6 }
 0x2ff   :  { %1253 = vst [vmem:[#allocation1 + $0x31] ss:$2 sm:$0xff] %v7666_v43 }
 0x300   :  { %11741 = vst [vmem:[#allocation105_spill] sm:$0xff] %v7677_v35  ;;  %v1519_v31 = vld.sshfl [vmem:[#allocation1 + $0x10] sm:$0xff pattern:$0x75316420] }
 0x301   :  { %1463 = vst [vmem:[#allocation1 + $0x20] ss:$2 sm:$0xff] %v7671_v6 }
 0x302   :  { %1464 = vst [vmem:[#allocation1 + $0x21] ss:$2 sm:$0xff] %v7677_v35 }
 0x303   :  { %1497 = vst.msk [vmem:[#allocation2 + $0x7e8] sm:$0xff] %vm881_vm2, %v1457_v21  ;;  %v7694_v21 = vsel %vm7030_vm8, %v1212_v55, %v1213_v15 }
 0x304   :  { %1293 = vst.msk [vmem:[#allocation2 + $0x588] sm:$0xff] %vm881_vm2, %v1245_v22 }
 0x305   :  { %1524 = vst [vmem:[#allocation1 + $0x10] ss:$2 sm:$0xff] %v6429_v1 }
 0x306   :  { %1525 = vst [vmem:[#allocation1 + $0x11] ss:$2 sm:$0xff] %v7197_v3  ;;  %v1257_v4 = vld.sshfl [vmem:[#allocation1 + $0x30] sm:$0xff pattern:$0x75316420] }
 0x307   :  { %1575 = vst.msk [vmem:[#allocation2 + $0xe8] sm:$0xff] %vm881_vm2, %v1519_v31  ;;  %v6059_v31 = vrot.slane %v6364_v46, 11 }
 0x308   :  { %11742 = vst [vmem:[#allocation106_spill] sm:$0xff] %v7690_v60 }
 0x309   :  { %11743 = vst [vmem:[#allocation107_spill] sm:$0xff] %v7694_v21  ;;  %v1469_v22 = vld.sshfl [vmem:[#allocation1 + $0x20] sm:$0xff pattern:$0x75316420]  ;;  %v7710_v55 = vsel %vm7079_vm10, %v6059_v31, %v1327_v19 }
 0x30a   :  { %1264 = vst [vmem:[#allocation1 + $0x30] ss:$2 sm:$0xff] %v7690_v60 }
 0x30b   :  { %1265 = vst [vmem:[#allocation1 + $0x31] ss:$2 sm:$0xff] %v7694_v21 }
 0x30c   :  { %1511 = vst [vmem:[#allocation1 + $0x20] ss:$2 sm:$0xff] %v6346_v41 }
 0x30d   :  { %1513 = vst [vmem:[#allocation1 + $0x21] ss:$2 sm:$0xff] %v6358_v45  ;;  %v1531_v32 = vld.sshfl [vmem:[#allocation1 + $0x10] sm:$0xff pattern:$0x75316420] }
 0x30e   :  { %1501 = vst.msk [vmem:[#allocation2 + $0xb08] sm:$0xff] %vm881_vm2, %v1469_v22 }
 0x30f   :  { %1297 = vst.msk [vmem:[#allocation2 + $0x8a8] sm:$0xff] %vm881_vm2, %v1257_v4 }
 0x310   :  { %1536 = vst [vmem:[#allocation1 + $0x10] ss:$2 sm:$0xff] %v6668_v28 }
 0x311   :  { %1537 = vst [vmem:[#allocation1 + $0x11] ss:$2 sm:$0xff] %v7225_v59 }
 0x312   :  { %11744 = vst [vmem:[#allocation108_spill] sm:$0xff] %v7710_v55  ;;  %v7713_v15 = vld.sshfl [vmem:[#allocation1 + $0x30] sm:$0xff pattern:$0x75316420] }
 0x313   :  { %1579 = vst.msk [vmem:[#allocation2 + $0x408] sm:$0xff] %vm881_vm2, %v1531_v32 }
 0x314   :  { %1428 = vst [vmem:[#allocation1 + $0x30] ss:$2 sm:$0xff] %v7710_v55  ;;  %v1520_v4 = vld.sshfl [vmem:[#allocation1 + $0x20] sm:$0xff pattern:$0x75316420]  ;;  %v11768_v55 = vld [vmem:[#allocation64_spill] sm:$0xff] }
 0x315   :  { %1691 = vst [vmem:[#allocation1] ss:$2 sm:$0xff] %v7185_v10 }
 0x316   :  { %1693 = vst [vmem:[#allocation1 + $0x1] ss:$2 sm:$0xff] %v7190_v26  ;;  %v3941_v26 = vld [vmem:[%s11297_s3 + $0x158] sm:$0xff] }
 0x317   :  { %1673 = vst.msk [vmem:[#allocation2 + $0x988] sm:$0xff] %vm881_vm2, %v1641_v54  ;;  %4436 = vmatpush.msra.mxu3 %v3941_v26  ;;  %v3940_v54 = vld [vmem:[%s11297_s3 + $0x150] sm:$0xff]  ;;  %v3938_v26 = vld [vmem:[%s11297_s3 + $0x140] sm:$0xff] }
 0x318   :  { %1526 = vst [vmem:[#allocation1 + $0x20] ss:$2 sm:$0xff] %v6452_v7  ;;  %v1543_v22 = vld.sshfl [vmem:[#allocation1 + $0x10] sm:$0xff pattern:$0x75316420] }
 0x319   :  { %1527 = vst [vmem:[#allocation1 + $0x21] ss:$2 sm:$0xff] %v6464_v11  ;;  %4437 = vmatpush.msra.mxu3 %v3940_v54 }
 0x31a   :  { %1548 = vst [vmem:[#allocation1 + $0x10] ss:$2 sm:$0xff] %v7154_v57 }
 0x31b   :  { %1549 = vst [vmem:[#allocation1 + $0x11] ss:$2 sm:$0xff] %v7271_v53 }
 0x31c   :  { %1583 = vst.msk [vmem:[#allocation2 + $0x728] sm:$0xff] %vm881_vm2, %v1543_v22 }
 0x31d   :  { %v1706_v32 = vld.sshfl [vmem:[#allocation1] sm:$0xff pattern:$0x75316420]  ;;  %1576 = vst.msk [vmem:[#allocation2 + $0x1b0] sm:$0xff] %vm881_vm2, %v1520_v4  ;;  %v3939_v4 = vld [vmem:[%s11297_s3 + $0x148] sm:$0xff] }
 0x31e   :  { %1710 = vst [vmem:[#allocation1] ss:$2 sm:$0xff] %v7215_v9  ;;  %4438 = vmatpush.msra.mxu3 %v3939_v4  ;;  %v11760_v9 = vld [vmem:[#allocation80_spill] sm:$0xff] }
 0x31f   :  { %1711 = vst [vmem:[#allocation1 + $0x1] ss:$2 sm:$0xff] %v7221_v34 }
 0x320   :  { %1762 = vst.msk [vmem:[#allocation2 + $0x30] sm:$0xff] %vm881_vm2, %v1706_v32  ;;  %v1532_v10 = vld.sshfl [vmem:[#allocation1 + $0x20] sm:$0xff pattern:$0x75316420]  ;;  %v3524_v32 = vld [vmem:[#allocation2 + $0xd0] sm:$0xff]  ;;  %4439 = vmatpush.msra.mxu3 %v3938_v26 }
 0x321   :  { %1538 = vst [vmem:[#allocation1 + $0x20] ss:$2 sm:$0xff] %v6921_v38  ;;  %4386 = vmatmul.f32.gmra.mxu2 %v3524_v32 }
 0x322   :  { %v1555_v31 = vld.sshfl [vmem:[#allocation1 + $0x10] sm:$0xff pattern:$0x75316420]  ;;  %1539 = vst [vmem:[#allocation1 + $0x21] ss:$2 sm:$0xff] %v6932_v47 }
 0x323   :  { %1594 = vst [vmem:[#allocation1 + $0x10] ss:$2 sm:$0xff] %v6340_v40 }
 0x324   :  { %1596 = vst [vmem:[#allocation1 + $0x11] ss:$2 sm:$0xff] %v6346_v41 }
 0x325   :  { %1587 = vst.msk [vmem:[#allocation2 + $0xa48] sm:$0xff] %vm881_vm2, %v1555_v31  ;;  %v3848_v31 = vld [vmem:[#allocation2 + $0xaf0] sm:$0xff] }
 0x326   :  { %v1718_v22 = vld.sshfl [vmem:[#allocation1] sm:$0xff pattern:$0x75316420]  ;;  %1580 = vst.msk [vmem:[#allocation2 + $0x4d0] sm:$0xff] %vm881_vm2, %v1532_v10  ;;  %4360 = vmatmul.f32.gmra.mxu1 %v3848_v31 }
 0x327   :  { %1722 = vst [vmem:[#allocation1] ss:$2 sm:$0xff] %v7258_v58 }
 0x328   :  { %1723 = vst [vmem:[#allocation1 + $0x1] ss:$2 sm:$0xff] %v7267_v14 }
 0x329   :  { %1766 = vst.msk [vmem:[#allocation2 + $0x350] sm:$0xff] %vm881_vm2, %v1718_v22  ;;  %v1544_v54 = vld.sshfl [vmem:[#allocation1 + $0x20] sm:$0xff pattern:$0x75316420] }
 0x32a   :  { %1550 = vst [vmem:[#allocation1 + $0x20] ss:$2 sm:$0xff] %v7194_v23 }
 0x32b   :  { %v1606_v10 = vld.sshfl [vmem:[#allocation1 + $0x10] sm:$0xff pattern:$0x75316420]  ;;  %1551 = vst [vmem:[#allocation1 + $0x21] ss:$2 sm:$0xff] %v7322_v25 }
 0x32c   :  { %1611 = vst [vmem:[#allocation1 + $0x10] ss:$2 sm:$0xff] %v6444_v5 }
 0x32d   :  { %1612 = vst [vmem:[#allocation1 + $0x11] ss:$2 sm:$0xff] %v6452_v7 }
 0x32e   :  { %1662 = vst.msk [vmem:[#allocation2 + $0xf0] sm:$0xff] %vm881_vm2, %v1606_v10 }
 0x32f   :  { %v1730_v58 = vld.sshfl [vmem:[#allocation1] sm:$0xff pattern:$0x75316420]  ;;  %1584 = vst.msk [vmem:[#allocation2 + $0x7f0] sm:$0xff] %vm881_vm2, %v1544_v54 }
 0x330   :  { %1734 = vst [vmem:[#allocation1] ss:$2 sm:$0xff] %v7296_v33 }
 0x331   :  { %1735 = vst [vmem:[#allocation1 + $0x1] ss:$2 sm:$0xff] %v7301_v30 }
 0x332   :  { %1770 = vst.msk [vmem:[#allocation2 + $0x670] sm:$0xff] %vm881_vm2, %v1730_v58  ;;  %v1556_v14 = vld.sshfl [vmem:[#allocation1 + $0x20] sm:$0xff pattern:$0x75316420]  ;;  %v3748_v58 = vld [vmem:[#allocation2 + $0x7d0] sm:$0xff] }
 0x333   :  { %1598 = vst [vmem:[#allocation1 + $0x20] ss:$2 sm:$0xff] %v6364_v46  ;;  %4348 = vmatmul.f32.gmra.mxu0 %v3748_v58 }
 0x334   :  { %v1618_v4 = vld.sshfl [vmem:[#allocation1 + $0x10] sm:$0xff pattern:$0x75316420]  ;;  %1600 = vst [vmem:[#allocation1 + $0x21] ss:$2 sm:$0xff] %v6376_v50 }
 0x335   :  { %1623 = vst [vmem:[#allocation1 + $0x10] ss:$2 sm:$0xff] %v6914_v37 }
 0x336   :  { %1624 = vst [vmem:[#allocation1 + $0x11] ss:$2 sm:$0xff] %v6921_v38 }
 0x337   :  { %1666 = vst.msk [vmem:[#allocation2 + $0x410] sm:$0xff] %vm881_vm2, %v1618_v4  ;;  %v11748_v4 = vld [vmem:[#allocation47_spill] sm:$0xff] }
 0x338   :  { %v1742_v22 = vld.sshfl [vmem:[#allocation1] sm:$0xff pattern:$0x75316420]  ;;  %1588 = vst.msk [vmem:[#allocation2 + $0xb10] sm:$0xff] %vm881_vm2, %v1556_v14 }
 0x339   :  { %1792 = vst [vmem:[#allocation1] ss:$2 sm:$0xff] %v7328_v27  ;;  %v11745_v27 = vld [vmem:[#allocation60_spill] sm:$0xff]  ;;  %v11747_v14 = vld [vmem:[#allocation46_spill] sm:$0xff] }
 0x33a   :  { %1794 = vst [vmem:[#allocation1 + $0x1] ss:$2 sm:$0xff] %v7334_v63  ;;  %v11746_v63 = vld [vmem:[#allocation61_spill] sm:$0xff] }
 0x33b   :  { %1774 = vst.msk [vmem:[#allocation2 + $0x990] sm:$0xff] %vm881_vm2, %v1742_v22  ;;  %v1607_v32 = vld.sshfl [vmem:[#allocation1 + $0x20] sm:$0xff pattern:$0x75316420] }
 0x33c   :  { %1613 = vst [vmem:[#allocation1 + $0x20] ss:$2 sm:$0xff] %v6470_v12 }
 0x33d   :  { %v1630_v26 = vld.sshfl [vmem:[#allocation1 + $0x10] sm:$0xff pattern:$0x75316420]  ;;  %1614 = vst [vmem:[#allocation1 + $0x21] ss:$2 sm:$0xff] %v6484_v17 }
 0x33e   :  { %1635 = vst [vmem:[#allocation1 + $0x10] ss:$2 sm:$0xff] %v7178_v2 }
 0x33f   :  { %1636 = vst [vmem:[#allocation1 + $0x11] ss:$2 sm:$0xff] %v7194_v23 }
 0x340   :  { %1670 = vst.msk [vmem:[#allocation2 + $0x730] sm:$0xff] %vm881_vm2, %v1630_v26  ;;  %v11750_v26 = vld [vmem:[#allocation67_spill] sm:$0xff] }
 0x341   :  { %v1807_v31 = vld.sshfl [vmem:[#allocation1] sm:$0xff pattern:$0x75316420]  ;;  %1663 = vst.msk [vmem:[#allocation2 + $0x1b8] sm:$0xff] %vm881_vm2, %v1607_v32 }
 0x342   :  { %1811 = vst [vmem:[#allocation1] ss:$2 sm:$0xff] %v11745_v27  ;;  %v11749_v32 = vld [vmem:[#allocation66_spill] sm:$0xff]  ;;  %v1330_v27 = vrot.slane %v7378_v24, 7 }
 0x343   :  { %1812 = vst [vmem:[#allocation1 + $0x1] ss:$2 sm:$0xff] %v11746_v63  ;;  %v1329_v63 = vrot.slane %v1327_v19, 4  ;;  %v11754_v19 = vld [vmem:[#allocation72_spill] sm:$0xff] }
 0x344   :  { %1863 = vst.msk [vmem:[#allocation2 + $0x38] sm:$0xff] %vm881_vm2, %v1807_v31  ;;  %v1619_v54 = vld.sshfl [vmem:[#allocation1 + $0x20] sm:$0xff pattern:$0x75316420] }
 0x345   :  { %1625 = vst [vmem:[#allocation1 + $0x20] ss:$2 sm:$0xff] %v6944_v61 }
 0x346   :  { %v1642_v10 = vld.sshfl [vmem:[#allocation1 + $0x10] sm:$0xff pattern:$0x75316420]  ;;  %1626 = vst [vmem:[#allocation1 + $0x21] ss:$2 sm:$0xff] %v6950_v62 }
 0x347   :  { %1695 = vst [vmem:[#allocation1 + $0x10] ss:$2 sm:$0xff] %v11747_v14 }
 0x348   :  { %1697 = vst [vmem:[#allocation1 + $0x11] ss:$2 sm:$0xff] %v11748_v4 }
 0x349   :  { %1674 = vst.msk [vmem:[#allocation2 + $0xa50] sm:$0xff] %vm881_vm2, %v1642_v10  ;;  %v11751_v10 = vld [vmem:[#allocation49_spill] sm:$0xff] }
 0x34a   :  { %v1819_v22 = vld.sshfl [vmem:[#allocation1] sm:$0xff pattern:$0x75316420]  ;;  %1667 = vst.msk [vmem:[#allocation2 + $0x4d8] sm:$0xff] %vm881_vm2, %v1619_v54 }
 0x34b   :  { %1823 = vst [vmem:[#allocation1] ss:$2 sm:$0xff] %v11749_v32  ;;  %v11752_v54 = vld [vmem:[#allocation50_spill] sm:$0xff]  ;;  %v7794_v32 = vsel %vm7079_vm10, %v1329_v63, %v1330_v27  ;;  %v6063_v27 = vrot.slane %v6470_v12, 11  ;;  %v11756_v63 = vld [vmem:[#allocation53_spill] sm:$0xff] }
 0x34c   :  { %1824 = vst [vmem:[#allocation1 + $0x1] ss:$2 sm:$0xff] %v11750_v26  ;;  %v11755_v26 = vld [vmem:[#allocation73_spill] sm:$0xff] }
 0x34d   :  { %1867 = vst.msk [vmem:[#allocation2 + $0x358] sm:$0xff] %vm881_vm2, %v1819_v22  ;;  %v1631_v31 = vld.sshfl [vmem:[#allocation1 + $0x20] sm:$0xff pattern:$0x75316420] }
 0x34e   :  { %1637 = vst [vmem:[#allocation1 + $0x20] ss:$2 sm:$0xff] %v7341_v39 }
 0x34f   :  { %v1707_v58 = vld.sshfl [vmem:[#allocation1 + $0x10] sm:$0xff pattern:$0x75316420]  ;;  %1671 = vst.msk [vmem:[#allocation2 + $0x7f8] sm:$0xff] %vm881_vm2, %v1631_v31  ;;  %v1355_v31 = vrot.slane %v6484_v17, 7 }
 0x350   :  { %1712 = vst [vmem:[#allocation1 + $0x10] ss:$2 sm:$0xff] %v11751_v10 }
 0x351   :  { %1713 = vst [vmem:[#allocation1 + $0x11] ss:$2 sm:$0xff] %v11752_v54 }
 0x352   :  { %11753 = vst [vmem:[#allocation46_spill] sm:$0xff] %v7794_v32 }
 0x353   :  { %1763 = vst.msk [vmem:[#allocation2 + $0xf8] sm:$0xff] %vm881_vm2, %v1707_v58  ;;  %v1831_v22 = vld.sshfl [vmem:[#allocation1] sm:$0xff pattern:$0x75316420] }
 0x354   :  { %1430 = vst [vmem:[#allocation1 + $0x31] ss:$2 sm:$0xff] %v7794_v32  ;;  %v11757_v58 = vld [vmem:[#allocation54_spill] sm:$0xff]  ;;  %v1411_v32 = vrot.slane %v7350_v51, 7 }
 0x355   :  { %1835 = vst [vmem:[#allocation1] ss:$2 sm:$0xff] %v11754_v19  ;;  %v1358_v19 = vrot.slane %v7426_v13, 7 }
 0x356   :  { %1836 = vst [vmem:[#allocation1 + $0x1] ss:$2 sm:$0xff] %v11755_v26  ;;  %v7810_v26 = vsel %vm7079_vm10, %v6063_v27, %v1355_v31 }
 0x357   :  { %1871 = vst.msk [vmem:[#allocation2 + $0x678] sm:$0xff] %vm881_vm2, %v1831_v22  ;;  %v1357_v22 = vrot.slane %v1355_v31, 4  ;;  %v1383_v31 = vrot.slane %v6950_v62, 7 }
 0x358   :  { %1638 = vst [vmem:[#allocation1 + $0x21] ss:$2 sm:$0xff] %v7350_v51  ;;  %v1719_v30 = vld.sshfl [vmem:[#allocation1 + $0x10] sm:$0xff pattern:$0x75316420] }
 0x359   :  { %1301 = vst.msk [vmem:[#allocation2 + $0xbc8] sm:$0xff] %vm881_vm2, %v7713_v15  ;;  %v11759_v15 = vld [vmem:[#allocation79_spill] sm:$0xff]  ;;  %v7819_v56 = vsel %vm7079_vm10, %v1357_v22, %v1358_v19  ;;  %v6067_v22 = vrot.slane %v6944_v61, 11 }
 0x35a   :  { %1724 = vst [vmem:[#allocation1 + $0x10] ss:$2 sm:$0xff] %v11756_v63 }
 0x35b   :  { %1725 = vst [vmem:[#allocation1 + $0x11] ss:$2 sm:$0xff] %v11757_v58  ;;  %v1434_v33 = vld.sshfl [vmem:[#allocation1 + $0x30] sm:$0xff pattern:$0x75316420] }
 0x35c   :  { %11758 = vst [vmem:[#allocation47_spill] sm:$0xff] %v7810_v26 }
 0x35d   :  { %1767 = vst.msk [vmem:[#allocation2 + $0x418] sm:$0xff] %vm881_vm2, %v1719_v30  ;;  %v1843_v34 = vld.sshfl [vmem:[#allocation1] sm:$0xff pattern:$0x75316420]  ;;  %v11762_v30 = vld [vmem:[#allocation57_spill] sm:$0xff] }
 0x35e   :  { %1441 = vst [vmem:[#allocation1 + $0x30] ss:$2 sm:$0xff] %v7810_v26  ;;  %v1386_v26 = vrot.slane %v7471_v18, 7 }
 0x35f   :  { %1893 = vst [vmem:[#allocation1] ss:$2 sm:$0xff] %v11759_v15  ;;  %v11763_v15 = vld [vmem:[#allocation59_spill] sm:$0xff] }
 0x360   :  { %1895 = vst [vmem:[#allocation1 + $0x1] ss:$2 sm:$0xff] %v11760_v9  ;;  %v1385_v9 = vrot.slane %v1383_v31, 4 }
 0x361   :  { %11761 = vst [vmem:[#allocation66_spill] sm:$0xff] %v7819_v56 }
 0x362   :  { %1875 = vst.msk [vmem:[#allocation2 + $0x998] sm:$0xff] %vm881_vm2, %v1843_v34  ;;  %v1731_v27 = vld.sshfl [vmem:[#allocation1 + $0x10] sm:$0xff pattern:$0x75316420]  ;;  %v11764_v34 = vld [vmem:[#allocation87_spill] sm:$0xff] }
 0x363   :  { %1442 = vst [vmem:[#allocation1 + $0x31] ss:$2 sm:$0xff] %v7819_v56 }
 0x364   :  { %1490 = vst.msk [vmem:[#allocation2 + $0x270] sm:$0xff] %vm881_vm2, %v1434_v33  ;;  %v7834_v33 = vsel %vm7079_vm10, %v6067_v22, %v1383_v31 }
 0x365   :  { %1736 = vst [vmem:[#allocation1 + $0x10] ss:$2 sm:$0xff] %v11762_v30 }
 0x366   :  { %1771 = vst.msk [vmem:[#allocation2 + $0x738] sm:$0xff] %vm881_vm2, %v1731_v27  ;;  %v7839_v27 = vsel %vm7079_vm10, %v1385_v9, %v1386_v26  ;;  %v1414_v26 = vrot.slane %v7510_v29, 7  ;;  %v6071_v9 = vrot.slane %v7341_v39, 11 }
 0x367   :  { %1737 = vst [vmem:[#allocation1 + $0x11] ss:$2 sm:$0xff] %v11763_v15  ;;  %v1908_v19 = vld.sshfl [vmem:[#allocation1] sm:$0xff pattern:$0x75316420] }
 0x368   :  { %1912 = vst [vmem:[#allocation1] ss:$2 sm:$0xff] %v7531_v20 }
 0x369   :  { %1913 = vst [vmem:[#allocation1 + $0x1] ss:$2 sm:$0xff] %v11764_v34  ;;  %v11767_v34 = vld [vmem:[#allocation63_spill] sm:$0xff] }
 0x36a   :  { %v1446_v56 = vld.sshfl [vmem:[#allocation1 + $0x30] sm:$0xff pattern:$0x75316420]  ;;  %11765 = vst [vmem:[#allocation67_spill] sm:$0xff] %v7834_v33 }
 0x36b   :  { %1964 = vst.msk [vmem:[#allocation2 + $0x40] sm:$0xff] %vm881_vm2, %v1908_v19  ;;  %v1413_v19 = vrot.slane %v1411_v32, 4 }
 0x36c   :  { %11766 = vst [vmem:[#allocation53_spill] sm:$0xff] %v7839_v27 }
 0x36d   :  { %1453 = vst [vmem:[#allocation1 + $0x30] ss:$2 sm:$0xff] %v7834_v33 }
 0x36e   :  { %1454 = vst [vmem:[#allocation1 + $0x31] ss:$2 sm:$0xff] %v7839_v27  ;;  %v1743_v20 = vld.sshfl [vmem:[#allocation1 + $0x10] sm:$0xff pattern:$0x75316420]  ;;  %v7859_v27 = vsel %vm7079_vm10, %v1413_v19, %v1414_v26 }
 0x36f   :  { %1494 = vst.msk [vmem:[#allocation2 + $0x590] sm:$0xff] %vm881_vm2, %v1446_v56  ;;  %v7855_v56 = vsel %vm7079_vm10, %v6071_v9, %v1411_v32  ;;  %v3937_v32 = vld [vmem:[%s11297_s3 + $0x138] sm:$0xff]  ;;  %v3936_v19 = vld [vmem:[%s11297_s3 + $0x130] sm:$0xff]  ;;  %v3935_v9 = vld [vmem:[%s11297_s3 + $0x128] sm:$0xff] }
 0x370   :  { %1796 = vst [vmem:[#allocation1 + $0x10] ss:$2 sm:$0xff] %v11767_v34  ;;  %v1920_v31 = vld.sshfl [vmem:[#allocation1] sm:$0xff pattern:$0x75316420]  ;;  %4440 = vmatpush.msra.mxu3 %v3937_v32  ;;  %v11773_v32 = vld [vmem:[#allocation76_spill] sm:$0xff] }
 0x371   :  { %1798 = vst [vmem:[#allocation1 + $0x11] ss:$2 sm:$0xff] %v11768_v55 }
 0x372   :  { %1775 = vst.msk [vmem:[#allocation2 + $0xa58] sm:$0xff] %vm881_vm2, %v1743_v20  ;;  %4441 = vmatpush.msra.mxu3 %v3936_v19  ;;  %v11774_v19 = vld [vmem:[#allocation78_spill] sm:$0xff] }
 0x373   :  { %1924 = vst [vmem:[#allocation1] ss:$2 sm:$0xff] %v7574_v0  ;;  %v11771_v0 = vld [vmem:[#allocation69_spill] sm:$0xff] }
 0x374   :  { %1925 = vst [vmem:[#allocation1 + $0x1] ss:$2 sm:$0xff] %v7580_v16  ;;  %v11772_v16 = vld [vmem:[#allocation71_spill] sm:$0xff]  ;;  %4442 = vmatpush.msra.mxu3 %v3935_v9 }
 0x375   :  { %1968 = vst.msk [vmem:[#allocation2 + $0x360] sm:$0xff] %vm881_vm2, %v1920_v31  ;;  %v1458_v22 = vld.sshfl [vmem:[#allocation1 + $0x30] sm:$0xff pattern:$0x75316420] }
 0x376   :  { %11769 = vst [vmem:[#allocation54_spill] sm:$0xff] %v7855_v56 }
 0x377   :  { %11770 = vst [vmem:[#allocation79_spill] sm:$0xff] %v7859_v27 }
 0x378   :  { %1465 = vst [vmem:[#allocation1 + $0x30] ss:$2 sm:$0xff] %v7855_v56  ;;  %v1808_v20 = vld.sshfl [vmem:[#allocation1 + $0x10] sm:$0xff pattern:$0x75316420] }
 0x379   :  { %1466 = vst [vmem:[#allocation1 + $0x31] ss:$2 sm:$0xff] %v7859_v27 }
 0x37a   :  { %1498 = vst.msk [vmem:[#allocation2 + $0x8b0] sm:$0xff] %vm881_vm2, %v1458_v22 }
 0x37b   :  { %1813 = vst [vmem:[#allocation1 + $0x10] ss:$2 sm:$0xff] %v11771_v0  ;;  %v1932_v31 = vld.sshfl [vmem:[#allocation1] sm:$0xff pattern:$0x75316420] }
 0x37c   :  { %1814 = vst [vmem:[#allocation1 + $0x11] ss:$2 sm:$0xff] %v11772_v16 }
 0x37d   :  { %1864 = vst.msk [vmem:[#allocation2 + $0x100] sm:$0xff] %vm881_vm2, %v1808_v20  ;;  %v3934_v20 = vld [vmem:[%s11297_s3 + $0x120] sm:$0xff] }
 0x37e   :  { %1936 = vst [vmem:[#allocation1] ss:$2 sm:$0xff] %v7616_v42  ;;  %4443 = vmatpush.msra.mxu3 %v3934_v20  ;;  %v11775_v20 = vld [vmem:[#allocation84_spill] sm:$0xff] }
 0x37f   :  { %1937 = vst [vmem:[#allocation1 + $0x1] ss:$2 sm:$0xff] %v7622_v44 }
 0x380   :  { %1972 = vst.msk [vmem:[#allocation2 + $0x680] sm:$0xff] %vm881_vm2, %v1932_v31  ;;  %v1470_v26 = vld.sshfl [vmem:[#allocation1 + $0x30] sm:$0xff pattern:$0x75316420]  ;;  %v3549_v31 = vld [vmem:[#allocation2 + $0x198] sm:$0xff] }
 0x381   :  { %1515 = vst [vmem:[#allocation1 + $0x30] ss:$2 sm:$0xff] %v6376_v50  ;;  %4389 = vmatmul.f32.gmra.mxu2 %v3549_v31  ;;  %v11776_v31 = vld [vmem:[#allocation85_spill] sm:$0xff] }
 0x382   :  { %1517 = vst [vmem:[#allocation1 + $0x31] ss:$2 sm:$0xff] %v7378_v24 }
 0x383   :  { %v1820_v22 = vld.sshfl [vmem:[#allocation1 + $0x10] sm:$0xff pattern:$0x75316420]  ;;  %1502 = vst.msk [vmem:[#allocation2 + $0xbd0] sm:$0xff] %vm881_vm2, %v1470_v26 }
 0x384   :  { %1825 = vst [vmem:[#allocation1 + $0x10] ss:$2 sm:$0xff] %v11773_v32 }
 0x385   :  { %1826 = vst [vmem:[#allocation1 + $0x11] ss:$2 sm:$0xff] %v11774_v19 }
 0x386   :  { %v1944_v44 = vld.sshfl [vmem:[#allocation1] sm:$0xff pattern:$0x75316420]  ;;  %1868 = vst.msk [vmem:[#allocation2 + $0x420] sm:$0xff] %vm881_vm2, %v1820_v22  ;;  %v11778_v22 = vld [vmem:[#allocation91_spill] sm:$0xff] }
 0x387   :  { %1980 = vst [vmem:[#allocation1] ss:$2 sm:$0xff] %v6325_v36 }
 0x388   :  { %1982 = vst [vmem:[#allocation1 + $0x1] ss:$2 sm:$0xff] %v7160_v8  ;;  %v11777_v8 = vld [vmem:[#allocation90_spill] sm:$0xff] }
 0x389   :  { %1976 = vst.msk [vmem:[#allocation2 + $0x9a0] sm:$0xff] %vm881_vm2, %v1944_v44  ;;  %v1521_v26 = vld.sshfl [vmem:[#allocation1 + $0x30] sm:$0xff pattern:$0x75316420] }
 0x38a   :  { %1528 = vst [vmem:[#allocation1 + $0x30] ss:$2 sm:$0xff] %v6484_v17 }
 0x38b   :  { %1529 = vst [vmem:[#allocation1 + $0x31] ss:$2 sm:$0xff] %v7426_v13 }
 0x38c   :  { %v1832_v9 = vld.sshfl [vmem:[#allocation1 + $0x10] sm:$0xff pattern:$0x75316420]  ;;  %1577 = vst.msk [vmem:[#allocation2 + $0x278] sm:$0xff] %vm881_vm2, %v1521_v26 }
 0x38d   :  { %1837 = vst [vmem:[#allocation1 + $0x10] ss:$2 sm:$0xff] %v11775_v20 }
 0x38e   :  { %1838 = vst [vmem:[#allocation1 + $0x11] ss:$2 sm:$0xff] %v11776_v31 }
 0x38f   :  { %v1995_v42 = vld.sshfl [vmem:[#allocation1] sm:$0xff pattern:$0x75316420]  ;;  %1872 = vst.msk [vmem:[#allocation2 + $0x740] sm:$0xff] %vm881_vm2, %v1832_v9 }
 0x390   :  { %1999 = vst [vmem:[#allocation1] ss:$2 sm:$0xff] %v6429_v1  ;;  %v3773_v1 = vld [vmem:[#allocation2 + $0x898] sm:$0xff] }
 0x391   :  { %2000 = vst [vmem:[#allocation1 + $0x1] ss:$2 sm:$0xff] %v7197_v3  ;;  %v11779_v3 = vld [vmem:[#allocation65_spill] sm:$0xff]  ;;  %4351 = vmatmul.f32.gmra.mxu0 %v3773_v1 }
 0x392   :  { %2051 = vst.msk [vmem:[#allocation2 + $0x48] sm:$0xff] %vm881_vm2, %v1995_v42  ;;  %v1533_v36 = vld.sshfl [vmem:[#allocation1 + $0x30] sm:$0xff pattern:$0x75316420] }
 0x393   :  { %1540 = vst [vmem:[#allocation1 + $0x30] ss:$2 sm:$0xff] %v6950_v62  ;;  %v7908_v42 = vld.sshfl [vmem:[#allocation1 + $0x20] sm:$0xff pattern:$0x75316420] }
 0x394   :  { %1541 = vst [vmem:[#allocation1 + $0x31] ss:$2 sm:$0xff] %v7471_v18  ;;  %v11784_v18 = vld [vmem:[#allocation68_spill] sm:$0xff] }
 0x395   :  { %v1844_v44 = vld.sshfl [vmem:[#allocation1 + $0x10] sm:$0xff pattern:$0x75316420]  ;;  %1581 = vst.msk [vmem:[#allocation2 + $0x598] sm:$0xff] %vm881_vm2, %v1533_v36 }
 0x396   :  { %1897 = vst [vmem:[#allocation1 + $0x10] ss:$2 sm:$0xff] %v11777_v8 }
 0x397   :  { %1899 = vst [vmem:[#allocation1 + $0x11] ss:$2 sm:$0xff] %v11778_v22 }
 0x398   :  { %v2007_v26 = vld.sshfl [vmem:[#allocation1] sm:$0xff pattern:$0x75316420]  ;;  %1876 = vst.msk [vmem:[#allocation2 + $0xa60] sm:$0xff] %vm881_vm2, %v1844_v44  ;;  %v11780_v44 = vld [vmem:[#allocation95_spill] sm:$0xff] }
 0x399   :  { %2011 = vst [vmem:[#allocation1] ss:$2 sm:$0xff] %v6668_v28 }
 0x39a   :  { %2012 = vst [vmem:[#allocation1 + $0x1] ss:$2 sm:$0xff] %v7225_v59 }
 0x39b   :  { %2055 = vst.msk [vmem:[#allocation2 + $0x368] sm:$0xff] %vm881_vm2, %v2007_v26  ;;  %v1545_v9 = vld.sshfl [vmem:[#allocation1 + $0x30] sm:$0xff pattern:$0x75316420]  ;;  %v7923_v26 = vld [vmem:[%s11296_s2] ss:$0 sm:$0xff] }
 0x39c   :  { %1552 = vst [vmem:[#allocation1 + $0x30] ss:$2 sm:$0xff] %v7350_v51  ;;  %v231_v1 = vadd.f32 %v7923_v26, %v11781_v48 }
 0x39d   :  { %1553 = vst [vmem:[#allocation1 + $0x31] ss:$2 sm:$0xff] %v7510_v29  ;;  %v11783_v29 = vld [vmem:[#allocation5_spill] sm:$0xff] }
 0x39e   :  { %v1909_v36 = vld.sshfl [vmem:[#allocation1 + $0x10] sm:$0xff pattern:$0x75316420]  ;;  %1699 = vst [vmem:[#allocation1 + $0x20] ss:$2 sm:$0xff] %v11779_v3 }
 0x39f   :  { %1914 = vst [vmem:[#allocation1 + $0x10] ss:$2 sm:$0xff] %v7600_v52  ;;  %v11782_v3 = vld [vmem:[#allocation4_spill] sm:$0xff] }
 0x3a0   :  { %1915 = vst [vmem:[#allocation1 + $0x11] ss:$2 sm:$0xff] %v11780_v44 }
 0x3a1   :  { %v2019_v28 = vld.sshfl [vmem:[#allocation1] sm:$0xff pattern:$0x75316420]  ;;  %1965 = vst.msk [vmem:[#allocation2 + $0x108] sm:$0xff] %vm881_vm2, %v1909_v36 }
 0x3a2   :  { %2023 = vst [vmem:[#allocation1] ss:$2 sm:$0xff] %v7154_v57  ;;  %v11785_v57 = vld [vmem:[#allocation100_spill] sm:$0xff] }
 0x3a3   :  { %2024 = vst [vmem:[#allocation1 + $0x1] ss:$2 sm:$0xff] %v7271_v53  ;;  %v7931_v53 = vmax.f32 %v231_v1, 0.0 }
 0x3a4   :  { %2059 = vst.msk [vmem:[#allocation2 + $0x688] sm:$0xff] %vm881_vm2, %v2019_v28  ;;  %v1557_v59 = vld.sshfl [vmem:[#allocation1 + $0x30] sm:$0xff pattern:$0x75316420]  ;;  %v11787_v28 = vld [vmem:[#allocation101_spill] sm:$0xff] }
 0x3a5   :  { %1602 = vst [vmem:[#allocation1 + $0x30] ss:$2 sm:$0xff] %v11782_v3  ;;  %v7938_v48 = vrot.slane %v7931_v53, 4 }
 0x3a6   :  { %1604 = vst [vmem:[#allocation1 + $0x31] ss:$2 sm:$0xff] %v11783_v29 }
 0x3a7   :  { %v1921_v36 = vld.sshfl [vmem:[#allocation1 + $0x10] sm:$0xff pattern:$0x75316420]  ;;  %1701 = vst [vmem:[#allocation1 + $0x21] ss:$2 sm:$0xff] %v11784_v18  ;;  %v11789_v18 = vld [vmem:[#allocation74_spill] sm:$0xff] }
 0x3a8   :  { %1926 = vst [vmem:[#allocation1 + $0x10] ss:$2 sm:$0xff] %v11785_v57 }
 0x3a9   :  { %11786 = vst [vmem:[#allocation80_spill] sm:$0xff] %v7931_v53 }
 0x3aa   :  { %1927 = vst [vmem:[#allocation1 + $0x11] ss:$2 sm:$0xff] %v11787_v28  ;;  %v2031_v13 = vld.sshfl [vmem:[#allocation1] sm:$0xff pattern:$0x75316420] }
 0x3ab   :  { %1969 = vst.msk [vmem:[#allocation2 + $0x428] sm:$0xff] %vm881_vm2, %v1921_v36 }
 0x3ac   :  { %2067 = vst [vmem:[#allocation1] ss:$2 sm:$0xff] %v6340_v40 }
 0x3ad   :  { %2069 = vst [vmem:[#allocation1 + $0x1] ss:$2 sm:$0xff] %v6346_v41  ;;  %v7941_v29 = vld.sshfl [vmem:[#allocation1 + $0x30] sm:$0xff pattern:$0x75316420] }
 0x3ae   :  { %11788 = vst [vmem:[#allocation63_spill] sm:$0xff] %v7938_v48  ;;  %v7944_v1 = vld.sshfl [vmem:[#allocation1 + $0x20] sm:$0xff pattern:$0x75316420] }
 0x3af   :  { %2063 = vst.msk [vmem:[#allocation2 + $0x9a8] sm:$0xff] %vm881_vm2, %v2031_v13  ;;  %v11790_v13 = vld [vmem:[#allocation75_spill] sm:$0xff] }
 0x3b0   :  { %1615 = vst [vmem:[#allocation1 + $0x30] ss:$2 sm:$0xff] %v7931_v53 }
 0x3b1   :  { %1616 = vst [vmem:[#allocation1 + $0x31] ss:$2 sm:$0xff] %v7938_v48  ;;  %v1933_v3 = vld.sshfl [vmem:[#allocation1 + $0x10] sm:$0xff pattern:$0x75316420] }
 0x3b2   :  { %1714 = vst [vmem:[#allocation1 + $0x20] ss:$2 sm:$0xff] %v11789_v18 }
 0x3b3   :  { %1938 = vst [vmem:[#allocation1 + $0x10] ss:$2 sm:$0xff] %v7671_v6 }
 0x3b4   :  { %1939 = vst [vmem:[#allocation1 + $0x11] ss:$2 sm:$0xff] %v7677_v35  ;;  %v2082_v40 = vld.sshfl [vmem:[#allocation1] sm:$0xff pattern:$0x75316420] }
 0x3b5   :  { %1973 = vst.msk [vmem:[#allocation2 + $0x748] sm:$0xff] %vm881_vm2, %v1933_v3 }
 0x3b6   :  { %2086 = vst [vmem:[#allocation1] ss:$2 sm:$0xff] %v6444_v5  ;;  %v11792_v5 = vld [vmem:[#allocation82_spill] sm:$0xff] }
 0x3b7   :  { %2087 = vst [vmem:[#allocation1 + $0x1] ss:$2 sm:$0xff] %v6452_v7 }
 0x3b8   :  { %2138 = vst.msk [vmem:[#allocation2 + $0x50] sm:$0xff] %vm881_vm2, %v2082_v40  ;;  %v1620_v40 = vld.sshfl [vmem:[#allocation1 + $0x30] sm:$0xff pattern:$0x75316420] }
 0x3b9   :  { %1715 = vst [vmem:[#allocation1 + $0x21] ss:$2 sm:$0xff] %v11790_v13  ;;  %v11793_v13 = vld [vmem:[#allocation20_spill] sm:$0xff] }
 0x3ba   :  { %1585 = vst.msk [vmem:[#allocation2 + $0x8b8] sm:$0xff] %vm881_vm2, %v1545_v9  ;;  %v11791_v9 = vld [vmem:[#allocation81_spill] sm:$0xff] }
 0x3bb   :  { %v1945_v36 = vld.sshfl [vmem:[#allocation1 + $0x10] sm:$0xff pattern:$0x75316420]  ;;  %1589 = vst.msk [vmem:[#allocation2 + $0xbd8] sm:$0xff] %vm881_vm2, %v1557_v59 }
 0x3bc   :  { %1984 = vst [vmem:[#allocation1 + $0x10] ss:$2 sm:$0xff] %v6346_v41 }
 0x3bd   :  { %1986 = vst [vmem:[#allocation1 + $0x11] ss:$2 sm:$0xff] %v6358_v45 }
 0x3be   :  { %v2094_v18 = vld.sshfl [vmem:[#allocation1] sm:$0xff pattern:$0x75316420]  ;;  %1977 = vst.msk [vmem:[#allocation2 + $0xa68] sm:$0xff] %vm881_vm2, %v1945_v36 }
 0x3bf   :  { %2098 = vst [vmem:[#allocation1] ss:$2 sm:$0xff] %v6914_v37 }
 0x3c0   :  { %2099 = vst [vmem:[#allocation1 + $0x1] ss:$2 sm:$0xff] %v6921_v38  ;;  %v7962_v3 = vld.sshfl [vmem:[#allocation1 + $0x20] sm:$0xff pattern:$0x75316420] }
 0x3c1   :  { %2142 = vst.msk [vmem:[#allocation2 + $0x370] sm:$0xff] %vm881_vm2, %v2094_v18  ;;  %v11794_v18 = vld [vmem:[#allocation88_spill] sm:$0xff] }
 0x3c2   :  { %1726 = vst [vmem:[#allocation1 + $0x20] ss:$2 sm:$0xff] %v11791_v9 }
 0x3c3   :  { %1727 = vst [vmem:[#allocation1 + $0x21] ss:$2 sm:$0xff] %v11792_v5  ;;  %v11795_v5 = vld [vmem:[#allocation89_spill] sm:$0xff] }
 0x3c4   :  { %v1996_v59 = vld.sshfl [vmem:[#allocation1 + $0x10] sm:$0xff pattern:$0x75316420]  ;;  %1627 = vst [vmem:[#allocation1 + $0x30] ss:$2 sm:$0xff] %v11793_v13  ;;  %v3933_v13 = vld [vmem:[%s11297_s3 + $0x118] sm:$0xff] }
 0x3c5   :  { %2001 = vst [vmem:[#allocation1 + $0x10] ss:$2 sm:$0xff] %v6452_v7  ;;  %4444 = vmatpush.msra.mxu3 %v3933_v13  ;;  %v3873_v13 = vld [vmem:[#allocation2 + $0xbb8] sm:$0xff] }
 0x3c6   :  { %2002 = vst [vmem:[#allocation1 + $0x11] ss:$2 sm:$0xff] %v6464_v11  ;;  %v11796_v11 = vld [vmem:[#allocation22_spill] sm:$0xff]  ;;  %4363 = vmatmul.f32.gmra.mxu1 %v3873_v13 }
 0x3c7   :  { %v2106_v36 = vld.sshfl [vmem:[#allocation1] sm:$0xff pattern:$0x75316420]  ;;  %2052 = vst.msk [vmem:[#allocation2 + $0x110] sm:$0xff] %vm881_vm2, %v1996_v59  ;;  %v3932_v59 = vld [vmem:[%s11297_s3 + $0x110] sm:$0xff] }
 0x3c8   :  { %2110 = vst [vmem:[#allocation1] ss:$2 sm:$0xff] %v7178_v2  ;;  %4445 = vmatpush.msra.mxu3 %v3932_v59 }
 0x3c9   :  { %2111 = vst [vmem:[#allocation1 + $0x1] ss:$2 sm:$0xff] %v7194_v23 }
 0x3ca   :  { %2146 = vst.msk [vmem:[#allocation2 + $0x690] sm:$0xff] %vm881_vm2, %v2106_v36  ;;  %v7974_v37 = vld.sshfl [vmem:[#allocation1 + $0x20] sm:$0xff pattern:$0x75316420]  ;;  %v3931_v36 = vld [vmem:[%s11297_s3 + $0x108] sm:$0xff] }
 0x3cb   :  { %1738 = vst [vmem:[#allocation1 + $0x20] ss:$2 sm:$0xff] %v11794_v18  ;;  %4446 = vmatpush.msra.mxu3 %v3931_v36  ;;  %v3500_v18 = vld [vmem:[#allocation2 + $0x10] sm:$0xff] }
 0x3cc   :  { %1739 = vst [vmem:[#allocation1 + $0x21] ss:$2 sm:$0xff] %v11795_v5  ;;  %v3930_v5 = vld [vmem:[%s11297_s3 + $0x100] sm:$0xff] }
 0x3cd   :  { %v2008_v9 = vld.sshfl [vmem:[#allocation1 + $0x10] sm:$0xff pattern:$0x75316420]  ;;  %1628 = vst [vmem:[#allocation1 + $0x31] ss:$2 sm:$0xff] %v11796_v11  ;;  %4447 = vmatpush.msra.mxu3 %v3930_v5 }
 0x3ce   :  { %2013 = vst [vmem:[#allocation1 + $0x10] ss:$2 sm:$0xff] %v6921_v38  ;;  %v11797_v11 = vld [vmem:[#allocation92_spill] sm:$0xff]  ;;  %4448 = vmatmul.f32.vlgmr.msra.gmra.mxu3 %v3500_v18  ;;  %v11800_v18 = vld [vmem:[#allocation99_spill] sm:$0xff] }
 0x3cf   :  { %2014 = vst [vmem:[#allocation1 + $0x11] ss:$2 sm:$0xff] %v6932_v47 }
 0x3d0   :  { %v2118_v2 = vld.sshfl [vmem:[#allocation1] sm:$0xff pattern:$0x75316420]  ;;  %2056 = vst.msk [vmem:[#allocation2 + $0x430] sm:$0xff] %vm881_vm2, %v2008_v9  ;;  %v11798_v9 = vld [vmem:[#allocation93_spill] sm:$0xff] }
 0x3d1   :  { %2168 = vst [vmem:[#allocation1] ss:$2 sm:$0xff] %v11747_v14 }
 0x3d2   :  { %2170 = vst [vmem:[#allocation1 + $0x1] ss:$2 sm:$0xff] %v11748_v4 }
 0x3d3   :  { %2150 = vst.msk [vmem:[#allocation2 + $0x9b0] sm:$0xff] %vm881_vm2, %v2118_v2  ;;  %v7997_v59 = vld.sshfl [vmem:[#allocation1 + $0x20] sm:$0xff pattern:$0x75316420] }
 0x3d4   :  { %1800 = vst [vmem:[#allocation1 + $0x20] ss:$2 sm:$0xff] %v11797_v11  ;;  %v11799_v2 = vld [vmem:[#allocation98_spill] sm:$0xff] }
 0x3d5   :  { %1802 = vst [vmem:[#allocation1 + $0x21] ss:$2 sm:$0xff] %v11798_v9 }
 0x3d6   :  { %v2020_v14 = vld.sshfl [vmem:[#allocation1 + $0x10] sm:$0xff pattern:$0x75316420]  ;;  %1664 = vst.msk [vmem:[#allocation2 + $0x280] sm:$0xff] %vm881_vm2, %v7941_v29 }
 0x3d7   :  { %2025 = vst [vmem:[#allocation1 + $0x10] ss:$2 sm:$0xff] %v7194_v23 }
 0x3d8   :  { %2026 = vst [vmem:[#allocation1 + $0x11] ss:$2 sm:$0xff] %v7322_v25 }
 0x3d9   :  { %v2183_v4 = vld.sshfl [vmem:[#allocation1] sm:$0xff pattern:$0x75316420]  ;;  %2060 = vst.msk [vmem:[#allocation2 + $0x750] sm:$0xff] %vm881_vm2, %v2020_v14  ;;  %v3960_v14 = vld [vmem:[%s11297_s3 + $0x1f0] sm:$0xff] }
 0x3da   :  { %2187 = vst [vmem:[#allocation1] ss:$2 sm:$0xff] %v11751_v10 }
 0x3db   :  { %2188 = vst [vmem:[#allocation1 + $0x1] ss:$2 sm:$0xff] %v11752_v54  ;;  %v3849_v54 = vld [vmem:[#allocation2 + $0xaf8] sm:$0xff] }
 0x3dc   :  { %2239 = vst.msk [vmem:[#allocation2 + $0x58] sm:$0xff] %vm881_vm2, %v2183_v4  ;;  %v8009_v5 = vld.sshfl [vmem:[#allocation1 + $0x20] sm:$0xff pattern:$0x75316420] }
 0x3dd   :  { %1815 = vst [vmem:[#allocation1 + $0x20] ss:$2 sm:$0xff] %v11799_v2 }
 0x3de   :  { %1816 = vst [vmem:[#allocation1 + $0x21] ss:$2 sm:$0xff] %v11800_v18 }
 0x3df   :  { %v2032_v29 = vld.sshfl [vmem:[#allocation1 + $0x10] sm:$0xff pattern:$0x75316420]  ;;  %1668 = vst.msk [vmem:[#allocation2 + $0x5a0] sm:$0xff] %vm881_vm2, %v1620_v40 }
 0x3e0   :  { %2071 = vst [vmem:[#allocation1 + $0x10] ss:$2 sm:$0xff] %v6364_v46 }
 0x3e1   :  { %2073 = vst [vmem:[#allocation1 + $0x11] ss:$2 sm:$0xff] %v6376_v50 }
 0x3e2   :  { %v2195_v36 = vld.sshfl [vmem:[#allocation1] sm:$0xff pattern:$0x75316420]  ;;  %2064 = vst.msk [vmem:[#allocation2 + $0xa70] sm:$0xff] %vm881_vm2, %v2032_v29  ;;  %v3574_v29 = vld [vmem:[#allocation2 + $0x260] sm:$0xff] }
 0x3e3   :  { %2199 = vst [vmem:[#allocation1] ss:$2 sm:$0xff] %v11756_v63  ;;  %v3961_v63 = vld [vmem:[%s11297_s3 + $0x1f8] sm:$0xff]  ;;  %4392 = vmatmul.f32.gmra.mxu2 %v3574_v29  ;;  %v11801_v29 = vld [vmem:[#allocation108_spill] sm:$0xff] }
 0x3e4   :  { %2200 = vst [vmem:[#allocation1 + $0x1] ss:$2 sm:$0xff] %v11757_v58  ;;  %4497 = vmatpush.msrb.mxu1 %v3961_v63 }
 0x3e5   :  { %2243 = vst.msk [vmem:[#allocation2 + $0x378] sm:$0xff] %vm881_vm2, %v2195_v36  ;;  %v8020_v13 = vld.sshfl [vmem:[#allocation1 + $0x20] sm:$0xff pattern:$0x75316420] }
 0x3e6   :  { %1827 = vst [vmem:[#allocation1 + $0x20] ss:$2 sm:$0xff] %v7660_v49  ;;  %4498 = vmatpush.msrb.mxu1 %v3960_v14  ;;  %v3958_v36 = vld [vmem:[%s11297_s3 + $0x1e0] sm:$0xff]  ;;  %v3599_v14 = vld [vmem:[#allocation2 + $0x328] sm:$0xff] }
 0x3e7   :  { %1828 = vst [vmem:[#allocation1 + $0x21] ss:$2 sm:$0xff] %v7666_v43 }
 0x3e8   :  { %v2083_v40 = vld.sshfl [vmem:[#allocation1 + $0x10] sm:$0xff pattern:$0x75316420]  ;;  %1675 = vst.msk [vmem:[#allocation2 + $0xb18] sm:$0xff] %vm881_vm2, %v7908_v42  ;;  %v3959_v42 = vld [vmem:[%s11297_s3 + $0x1e8] sm:$0xff] }
 0x3e9   :  { %2088 = vst [vmem:[#allocation1 + $0x10] ss:$2 sm:$0xff] %v6470_v12  ;;  %4499 = vmatpush.msrb.mxu1 %v3959_v42  ;;  %v3956_v42 = vld [vmem:[%s11297_s3 + $0x1d0] sm:$0xff] }
 0x3ea   :  { %2089 = vst [vmem:[#allocation1 + $0x11] ss:$2 sm:$0xff] %v6484_v17 }
 0x3eb   :  { %v2207_v58 = vld.sshfl [vmem:[#allocation1] sm:$0xff pattern:$0x75316420]  ;;  %2139 = vst.msk [vmem:[#allocation2 + $0x118] sm:$0xff] %vm881_vm2, %v2083_v40  ;;  %4500 = vmatpush.msrb.mxu1 %v3958_v36  ;;  %4395 = vmatmul.f32.gmra.mxu2 %v3599_v14  ;;  %v3955_v36 = vld [vmem:[%s11297_s3 + $0x1c8] sm:$0xff] }
 0x3ec   :  { %2211 = vst [vmem:[#allocation1] ss:$2 sm:$0xff] %v11762_v30 }
 0x3ed   :  { %2247 = vst.msk [vmem:[#allocation2 + $0x698] sm:$0xff] %vm881_vm2, %v2207_v58  ;;  %v3957_v58 = vld [vmem:[%s11297_s3 + $0x1d8] sm:$0xff] }
 0x3ee   :  { %2212 = vst [vmem:[#allocation1 + $0x1] ss:$2 sm:$0xff] %v11763_v15  ;;  %v1833_v4 = vld.sshfl [vmem:[#allocation1 + $0x20] sm:$0xff pattern:$0x75316420]  ;;  %4501 = vmatpush.msrb.mxu1 %v3957_v58  ;;  %v3624_v58 = vld [vmem:[#allocation2 + $0x3f0] sm:$0xff] }
 0x3ef   :  { %1839 = vst [vmem:[#allocation1 + $0x20] ss:$2 sm:$0xff] %v7690_v60  ;;  %v3626_v15 = vld [vmem:[#allocation2 + $0x400] sm:$0xff] }
 0x3f0   :  { %1840 = vst [vmem:[#allocation1 + $0x21] ss:$2 sm:$0xff] %v7694_v21  ;;  %4502 = vmatpush.msrb.mxu1 %v3956_v42  ;;  %v3953_v42 = vld [vmem:[%s11297_s3 + $0x1b8] sm:$0xff] }
 0x3f1   :  { %v2095_v40 = vld.sshfl [vmem:[#allocation1 + $0x10] sm:$0xff pattern:$0x75316420]  ;;  %1764 = vst.msk [vmem:[#allocation2 + $0x1c0] sm:$0xff] %vm881_vm2, %v7944_v1 }
 0x3f2   :  { %2100 = vst [vmem:[#allocation1 + $0x10] ss:$2 sm:$0xff] %v6944_v61  ;;  %4503 = vmatpush.msrb.mxu1 %v3955_v36  ;;  %v11804_v36 = vld [vmem:[#allocation66_spill] sm:$0xff] }
 0x3f3   :  { %2101 = vst [vmem:[#allocation1 + $0x11] ss:$2 sm:$0xff] %v6950_v62  ;;  %4398 = vmatmul.f32.gmra.mxu2 %v3624_v58  ;;  %v284_v58 = vpop.f32.mrf.mxu0 }
 0x3f4   :  { %2143 = vst.msk [vmem:[#allocation2 + $0x438] sm:$0xff] %vm881_vm2, %v2095_v40  ;;  %v3954_v40 = vld [vmem:[%s11297_s3 + $0x1c0] sm:$0xff] }
 0x3f5   :  { %v2219_v63 = vld.sshfl [vmem:[#allocation1] sm:$0xff pattern:$0x75316420]  ;;  %1768 = vst.msk [vmem:[#allocation2 + $0x4e0] sm:$0xff] %vm881_vm2, %v7962_v3  ;;  %4504 = vmatpush.msrb.mxu1 %v3954_v40 }
 0x3f6   :  { %2269 = vst [vmem:[#allocation1] ss:$2 sm:$0xff] %v11767_v34  ;;  %v11802_v3 = vld [vmem:[#allocation46_spill] sm:$0xff] }
 0x3f7   :  { %2271 = vst [vmem:[#allocation1 + $0x1] ss:$2 sm:$0xff] %v11768_v55  ;;  %v1845_v1 = vld.sshfl [vmem:[#allocation1 + $0x20] sm:$0xff pattern:$0x75316420]  ;;  %4505 = vmatpush.msrb.mxu1 %v3953_v42  ;;  %v285_v42 = vadd.f32 %v7923_v26, %v284_v58 }
 0x3f8   :  { %2251 = vst.msk [vmem:[#allocation2 + $0x9b8] sm:$0xff] %vm881_vm2, %v2219_v63  ;;  %v3525_v55 = vld [vmem:[#allocation2 + $0xd8] sm:$0xff] }
 0x3f9   :  { %1901 = vst [vmem:[#allocation1 + $0x20] ss:$2 sm:$0xff] %v11801_v29  ;;  %4451 = vmatmul.f32.gmra.mxu3 %v3525_v55  ;;  %v3951_v55 = vld [vmem:[%s11297_s3 + $0x1a8] sm:$0xff]  ;;  %v3649_v40 = vld [vmem:[#allocation2 + $0x4b8] sm:$0xff] }
 0x3fa   :  { %v2107_v34 = vld.sshfl [vmem:[#allocation1 + $0x10] sm:$0xff pattern:$0x75316420]  ;;  %1903 = vst [vmem:[#allocation1 + $0x21] ss:$2 sm:$0xff] %v11802_v3 }
 0x3fb   :  { %2112 = vst [vmem:[#allocation1 + $0x10] ss:$2 sm:$0xff] %v7341_v39  ;;  %4401 = vmatmul.f32.gmra.mxu2 %v3649_v40  ;;  %v8116_v40 = vmax.f32 %v285_v42, 0.0 }
 0x3fc   :  { %2147 = vst.msk [vmem:[#allocation2 + $0x758] sm:$0xff] %vm881_vm2, %v2107_v34  ;;  %v11803_v34 = vld [vmem:[#allocation47_spill] sm:$0xff] }
 0x3fd   :  { %2113 = vst [vmem:[#allocation1 + $0x11] ss:$2 sm:$0xff] %v7350_v51  ;;  %v8127_v58 = vrot.slane %v8116_v40, 4 }
 0x3fe   :  { %v2284_v63 = vld.sshfl [vmem:[#allocation1] sm:$0xff pattern:$0x75316420]  ;;  %1772 = vst.msk [vmem:[#allocation2 + $0x800] sm:$0xff] %vm881_vm2, %v7974_v37  ;;  %v3952_v37 = vld [vmem:[%s11297_s3 + $0x1b0] sm:$0xff] }
 0x3ff   :  { %2288 = vst [vmem:[#allocation1] ss:$2 sm:$0xff] %v11771_v0  ;;  %4506 = vmatpush.msrb.mxu1 %v3952_v37  ;;  %v11805_v37 = vld [vmem:[#allocation53_spill] sm:$0xff] }
 0x400   :  { %2289 = vst [vmem:[#allocation1 + $0x1] ss:$2 sm:$0xff] %v11772_v16  ;;  %v11820_v16 = vld [vmem:[#allocation65_spill] sm:$0xff] }
 0x401   :  { %2340 = vst.msk [vmem:[#allocation2 + $0x60] sm:$0xff] %vm881_vm2, %v2284_v63  ;;  %v1910_v14 = vld.sshfl [vmem:[#allocation1 + $0x20] sm:$0xff pattern:$0x75316420]  ;;  %4507 = vmatpush.msrb.mxu1 %v3951_v55  ;;  %v3947_v55 = vld [vmem:[%s11297_s3 + $0x188] sm:$0xff]  ;;  %v11824_v0 = vld [vmem:[#allocation5_spill] sm:$0xff] }
 0x402   :  { %1916 = vst [vmem:[#allocation1 + $0x20] ss:$2 sm:$0xff] %v11803_v34 }
 0x403   :  { %1917 = vst [vmem:[#allocation1 + $0x21] ss:$2 sm:$0xff] %v11804_v36 }
 0x404   :  { %1776 = vst.msk [vmem:[#allocation2 + $0xb20] sm:$0xff] %vm881_vm2, %v7997_v59  ;;  %v3950_v59 = vld [vmem:[%s11297_s3 + $0x1a0] sm:$0xff] }
 0x405   :  { %1865 = vst.msk [vmem:[#allocation2 + $0x1c8] sm:$0xff] %vm881_vm2, %v8009_v5  ;;  %4508 = vmatpush.msrb.mxu1 %v3950_v59  ;;  %v3550_v5 = vld [vmem:[#allocation2 + $0x1a0] sm:$0xff]  ;;  %v3946_v59 = vld [vmem:[%s11297_s3 + $0x180] sm:$0xff] }
 0x406   :  { %1869 = vst.msk [vmem:[#allocation2 + $0x4e8] sm:$0xff] %vm881_vm2, %v8020_v13  ;;  %4454 = vmatmul.f32.gmra.mxu3 %v3550_v5  ;;  %v3949_v13 = vld [vmem:[%s11297_s3 + $0x198] sm:$0xff] }
 0x407   :  { %v2296_v63 = vld.sshfl [vmem:[#allocation1] sm:$0xff pattern:$0x75316420]  ;;  %1873 = vst.msk [vmem:[#allocation2 + $0x808] sm:$0xff] %vm881_vm2, %v1833_v4  ;;  %4509 = vmatpush.msrb.mxu1 %v3949_v13  ;;  %v3575_v13 = vld [vmem:[#allocation2 + $0x268] sm:$0xff] }
 0x408   :  { %2300 = vst [vmem:[#allocation1] ss:$2 sm:$0xff] %v11773_v32  ;;  %v3948_v32 = vld [vmem:[%s11297_s3 + $0x190] sm:$0xff] }
 0x409   :  { %2301 = vst [vmem:[#allocation1 + $0x1] ss:$2 sm:$0xff] %v11774_v19  ;;  %4510 = vmatpush.msrb.mxu1 %v3948_v32  ;;  %v1632_v19 = vld.sshfl [vmem:[#allocation1 + $0x30] sm:$0xff pattern:$0x75316420] }
 0x40a   :  { %2344 = vst.msk [vmem:[#allocation2 + $0x380] sm:$0xff] %vm881_vm2, %v2296_v63  ;;  %v1922_v4 = vld.sshfl [vmem:[#allocation1 + $0x20] sm:$0xff pattern:$0x75316420]  ;;  %v3674_v63 = vld [vmem:[#allocation2 + $0x580] sm:$0xff] }
 0x40b   :  { %1928 = vst [vmem:[#allocation1 + $0x20] ss:$2 sm:$0xff] %v7834_v33  ;;  %4511 = vmatpush.msrb.mxu1 %v3947_v55  ;;  %4404 = vmatmul.f32.gmra.mxu2 %v3674_v63  ;;  %v11808_v55 = vld [vmem:[#allocation15_spill] sm:$0xff] }
 0x40c   :  { %1929 = vst [vmem:[#allocation1 + $0x21] ss:$2 sm:$0xff] %v11805_v37  ;;  %v234_v63 = vadd.f32 %v7923_v26, %v11808_v55  ;;  %v6072_v55 = vrot.slane %v7931_v53, 9 }
 0x40d   :  { %1877 = vst.msk [vmem:[#allocation2 + $0xb28] sm:$0xff] %vm881_vm2, %v1845_v1  ;;  %4512 = vmatpush.msrb.mxu1 %v3946_v59  ;;  %v3501_v1 = vld [vmem:[#allocation2 + $0x18] sm:$0xff]  ;;  %v3600_v59 = vld [vmem:[#allocation2 + $0x330] sm:$0xff] }
 0x40e   :  { %1966 = vst.msk [vmem:[#allocation2 + $0x1d0] sm:$0xff] %vm881_vm2, %v1910_v14  ;;  %4513 = vmatmul.f32.vlgmr.msrb.gmra.mxu1 %v3501_v1  ;;  %4457 = vmatmul.f32.gmra.mxu3 %v3575_v13  ;;  %v3526_v1 = vld [vmem:[#allocation2 + $0xe0] sm:$0xff] }
 0x40f   :  { %11806 = vst [vmem:[#allocation64_spill] sm:$0xff] %v8116_v40 }
 0x410   :  { %1970 = vst.msk [vmem:[#allocation2 + $0x4f0] sm:$0xff] %vm881_vm2, %v1922_v4  ;;  %v2308_v5 = vld.sshfl [vmem:[#allocation1] sm:$0xff pattern:$0x75316420]  ;;  %v3699_v4 = vld [vmem:[#allocation2 + $0x648] sm:$0xff] }
 0x411   :  { %1639 = vst [vmem:[#allocation1 + $0x30] ss:$2 sm:$0xff] %v8116_v40 }
 0x412   :  { %2312 = vst [vmem:[#allocation1] ss:$2 sm:$0xff] %v11775_v20  ;;  %v11819_v20 = vld [vmem:[#allocation83_spill] sm:$0xff] }
 0x413   :  { %2313 = vst [vmem:[#allocation1 + $0x1] ss:$2 sm:$0xff] %v11776_v31  ;;  %v1934_v14 = vld.sshfl [vmem:[#allocation1 + $0x20] sm:$0xff pattern:$0x75316420]  ;;  %4407 = vmatmul.f32.gmra.mxu2 %v3699_v4  ;;  %v1679_v4 = vrot.slane %v7938_v48, 5 }
 0x414   :  { %2348 = vst.msk [vmem:[#allocation2 + $0x6a0] sm:$0xff] %vm881_vm2, %v2308_v5  ;;  %v3551_v31 = vld [vmem:[#allocation2 + $0x1a8] sm:$0xff] }
 0x415   :  { %11807 = vst [vmem:[#allocation76_spill] sm:$0xff] %v8127_v58 }
 0x416   :  { %1940 = vst [vmem:[#allocation1 + $0x20] ss:$2 sm:$0xff] %v7855_v56  ;;  %4460 = vmatmul.f32.gmra.mxu3 %v3600_v59  ;;  %4516 = vmatmul.f32.gmra.mxu1 %v3526_v1  ;;  %v1681_v59 = vrot.slane %v1679_v4, 4  ;;  %v11812_v1 = vld [vmem:[#allocation70_spill] sm:$0xff] }
 0x417   :  { %1941 = vst [vmem:[#allocation1 + $0x21] ss:$2 sm:$0xff] %v7859_v27 }
 0x418   :  { %1974 = vst.msk [vmem:[#allocation2 + $0x810] sm:$0xff] %vm881_vm2, %v1934_v14  ;;  %v11811_v14 = vld [vmem:[#allocation27_spill] sm:$0xff] }
 0x419   :  { %1640 = vst [vmem:[#allocation1 + $0x31] ss:$2 sm:$0xff] %v8127_v58 }
 0x41a   :  { %1672 = vst.msk [vmem:[#allocation2 + $0x8c0] sm:$0xff] %vm881_vm2, %v1632_v19  ;;  %v2320_v42 = vld.sshfl [vmem:[#allocation1] sm:$0xff pattern:$0x75316420] }
 0x41b   :  { %2370 = vst [vmem:[#allocation1] ss:$2 sm:$0xff] %v11777_v8  ;;  %v3724_v8 = vld [vmem:[#allocation2 + $0x710] sm:$0xff]  ;;  %v11809_v19 = vld [vmem:[#allocation26_spill] sm:$0xff] }
 0x41c   :  { %2372 = vst [vmem:[#allocation1 + $0x1] ss:$2 sm:$0xff] %v11778_v22  ;;  %4410 = vmatmul.f32.gmra.mxu2 %v3724_v8  ;;  %v8143_v22 = vmax.f32 %v234_v63, 0.0  ;;  %v3625_v63 = vld [vmem:[#allocation2 + $0x3f8] sm:$0xff] }
 0x41d   :  { %2352 = vst.msk [vmem:[#allocation2 + $0x9c0] sm:$0xff] %vm881_vm2, %v2320_v42 }
 0x41e   :  { %v1946_v32 = vld.sshfl [vmem:[#allocation1 + $0x20] sm:$0xff pattern:$0x75316420]  ;;  %11810 = vst [vmem:[#allocation78_spill] sm:$0xff] %v8143_v22  ;;  %v1682_v42 = vrot.slane %v8143_v22, 5  ;;  %4463 = vmatmul.f32.gmra.mxu3 %v3625_v63  ;;  %4519 = vmatmul.f32.gmra.mxu1 %v3551_v31 }
 0x41f   :  { %1988 = vst [vmem:[#allocation1 + $0x20] ss:$2 sm:$0xff] %v6376_v50 }
 0x420   :  { %1990 = vst [vmem:[#allocation1 + $0x21] ss:$2 sm:$0xff] %v7378_v24  ;;  %v1644_v5 = vld.sshfl [vmem:[#allocation1 + $0x30] sm:$0xff pattern:$0x75316420] }
 0x421   :  { %1978 = vst.msk [vmem:[#allocation2 + $0xb30] sm:$0xff] %vm881_vm2, %v1946_v32 }
 0x422   :  { %1703 = vst [vmem:[#allocation1 + $0x30] ss:$2 sm:$0xff] %v11809_v19 }
 0x423   :  { %1705 = vst [vmem:[#allocation1 + $0x31] ss:$2 sm:$0xff] %v11811_v14  ;;  %v2385_v13 = vld.sshfl [vmem:[#allocation1] sm:$0xff pattern:$0x75316420] }
 0x424   :  { %1676 = vst.msk [vmem:[#allocation2 + $0xbe0] sm:$0xff] %vm881_vm2, %v1644_v5  ;;  %v3749_v5 = vld [vmem:[#allocation2 + $0x7d8] sm:$0xff] }
 0x425   :  { %2389 = vst [vmem:[#allocation1] ss:$2 sm:$0xff] %v7600_v52  ;;  %v8157_v52 = vsel %vm6962_vm5, %v6072_v55, %v1679_v4  ;;  %4413 = vmatmul.f32.gmra.mxu2 %v3749_v5  ;;  %v11816_v55 = vld [vmem:[#allocation77_spill] sm:$0xff]  ;;  %v3675_v5 = vld [vmem:[#allocation2 + $0x588] sm:$0xff] }
 0x426   :  { %2390 = vst [vmem:[#allocation1 + $0x1] ss:$2 sm:$0xff] %v11780_v44 }
 0x427   :  { %2441 = vst.msk [vmem:[#allocation2 + $0x68] sm:$0xff] %vm881_vm2, %v2385_v13  ;;  %v1997_v32 = vld.sshfl [vmem:[#allocation1 + $0x20] sm:$0xff pattern:$0x75316420]  ;;  %v8162_v13 = vsel %vm6962_vm5, %v1681_v59, %v1682_v42  ;;  %v3774_v42 = vld [vmem:[#allocation2 + $0x8a0] sm:$0xff]  ;;  %v11817_v59 = vld [vmem:[#allocation28_spill] sm:$0xff] }
 0x428   :  { %2003 = vst [vmem:[#allocation1 + $0x20] ss:$2 sm:$0xff] %v6484_v17 }
 0x429   :  { %2004 = vst [vmem:[#allocation1 + $0x21] ss:$2 sm:$0xff] %v11812_v1 }
 0x42a   :  { %11814 = vst [vmem:[#allocation90_spill] sm:$0xff] %v8157_v52  ;;  %v1709_v44 = vld.sshfl [vmem:[#allocation1 + $0x30] sm:$0xff pattern:$0x75316420] }
 0x42b   :  { %2053 = vst.msk [vmem:[#allocation2 + $0x1d8] sm:$0xff] %vm881_vm2, %v1997_v32  ;;  %v3650_v32 = vld [vmem:[#allocation2 + $0x4c0] sm:$0xff] }
 0x42c   :  { %11815 = vst [vmem:[#allocation91_spill] sm:$0xff] %v8162_v13  ;;  %4466 = vmatmul.f32.gmra.mxu3 %v3650_v32 }
 0x42d   :  { %1716 = vst [vmem:[#allocation1 + $0x30] ss:$2 sm:$0xff] %v8157_v52  ;;  %v2397_v63 = vld.sshfl [vmem:[#allocation1] sm:$0xff pattern:$0x75316420]  ;;  %4416 = vmatmul.f32.gmra.mxu2 %v3774_v42 }
 0x42e   :  { %1717 = vst [vmem:[#allocation1 + $0x31] ss:$2 sm:$0xff] %v8162_v13  ;;  %v2119_v42 = vld.sshfl [vmem:[#allocation1 + $0x10] sm:$0xff pattern:$0x75316420] }
 0x42f   :  { %1765 = vst.msk [vmem:[#allocation2 + $0x288] sm:$0xff] %vm881_vm2, %v1709_v44  ;;  %v11818_v44 = vld [vmem:[#allocation29_spill] sm:$0xff] }
 0x430   :  { %2401 = vst [vmem:[#allocation1] ss:$2 sm:$0xff] %v11785_v57  ;;  %v2009_v4 = vld.sshfl [vmem:[#allocation1 + $0x20] sm:$0xff pattern:$0x75316420]  ;;  %v8175_v57 = vpop.f32.mrf.mxu0 }
 0x431   :  { %2402 = vst [vmem:[#allocation1 + $0x1] ss:$2 sm:$0xff] %v11787_v28 }
 0x432   :  { %2445 = vst.msk [vmem:[#allocation2 + $0x388] sm:$0xff] %vm881_vm2, %v2397_v63  ;;  %v3576_v63 = vld [vmem:[#allocation2 + $0x270] sm:$0xff] }
 0x433   :  { %2015 = vst [vmem:[#allocation1 + $0x20] ss:$2 sm:$0xff] %v6950_v62  ;;  %4522 = vmatmul.f32.gmra.mxu1 %v3576_v63  ;;  %v3601_v63 = vld [vmem:[#allocation2 + $0x338] sm:$0xff] }
 0x434   :  { %2016 = vst [vmem:[#allocation1 + $0x21] ss:$2 sm:$0xff] %v11816_v55  ;;  %4469 = vmatmul.f32.gmra.mxu3 %v3675_v5  ;;  %v3700_v5 = vld [vmem:[#allocation2 + $0x650] sm:$0xff] }
 0x435   :  { %2057 = vst.msk [vmem:[#allocation2 + $0x4f8] sm:$0xff] %vm881_vm2, %v2009_v4  ;;  %v1721_v31 = vld.sshfl [vmem:[#allocation1 + $0x30] sm:$0xff pattern:$0x75316420] }
 0x436   :  { %1728 = vst [vmem:[#allocation1 + $0x30] ss:$2 sm:$0xff] %v11817_v59  ;;  %v3799_v4 = vld [vmem:[#allocation2 + $0x968] sm:$0xff] }
 0x437   :  { %1729 = vst [vmem:[#allocation1 + $0x31] ss:$2 sm:$0xff] %v11818_v44  ;;  %4419 = vmatmul.f32.gmra.mxu2 %v3799_v4  ;;  %v3977_v4 = vld [vmem:[%s11297_s3 + $0x278] sm:$0xff] }
 0x438   :  { %v2409_v28 = vld.sshfl [vmem:[#allocation1] sm:$0xff pattern:$0x75316420]  ;;  %1769 = vst.msk [vmem:[#allocation2 + $0x5a8] sm:$0xff] %vm881_vm2, %v1721_v31  ;;  %v11821_v31 = vld [vmem:[#allocation68_spill] sm:$0xff]  ;;  %4562 = vmatpush.msrb.mxu2 %v3977_v4 }
 0x439   :  { %2413 = vst [vmem:[#allocation1] ss:$2 sm:$0xff] %v7671_v6  ;;  %v3824_v6 = vld [vmem:[#allocation2 + $0xa30] sm:$0xff]  ;;  %v3974_v4 = vld [vmem:[%s11297_s3 + $0x260] sm:$0xff] }
 0x43a   :  { %2414 = vst [vmem:[#allocation1 + $0x1] ss:$2 sm:$0xff] %v7677_v35 }
 0x43b   :  { %2449 = vst.msk [vmem:[#allocation2 + $0x6a8] sm:$0xff] %vm881_vm2, %v2409_v28  ;;  %v2021_v32 = vld.sshfl [vmem:[#allocation1 + $0x20] sm:$0xff pattern:$0x75316420]  ;;  %v8187_v28 = vpop.f32.mrf.mxu0  ;;  %4525 = vmatmul.f32.gmra.mxu1 %v3601_v63  ;;  %v11826_v63 = vld [vmem:[#allocation75_spill] sm:$0xff] }
 0x43c   :  { %2027 = vst [vmem:[#allocation1 + $0x20] ss:$2 sm:$0xff] %v7350_v51  ;;  %4472 = vmatmul.f32.gmra.mxu3 %v3700_v5  ;;  %v11825_v5 = vld [vmem:[#allocation74_spill] sm:$0xff] }
 0x43d   :  { %2028 = vst [vmem:[#allocation1 + $0x21] ss:$2 sm:$0xff] %v11819_v20 }
 0x43e   :  { %2172 = vst [vmem:[#allocation1 + $0x10] ss:$2 sm:$0xff] %v11820_v16 }
 0x43f   :  { %2174 = vst [vmem:[#allocation1 + $0x11] ss:$2 sm:$0xff] %v11821_v31  ;;  %4422 = vmatmul.f32.gmra.mxu2 %v3824_v6 }
 0x440   :  { %2061 = vst.msk [vmem:[#allocation2 + $0x818] sm:$0xff] %vm881_vm2, %v2021_v32 }
 0x441   :  { %v2421_v35 = vld.sshfl [vmem:[#allocation1] sm:$0xff pattern:$0x75316420]  ;;  %2151 = vst.msk [vmem:[#allocation2 + $0xa78] sm:$0xff] %vm881_vm2, %v2119_v42  ;;  %v11823_v42 = vld [vmem:[#allocation4_spill] sm:$0xff] }
 0x442   :  { %11822 = vst [vmem:[#allocation14_spill] sm:$0xff] %v8187_v28  ;;  %v3676_v28 = vld [vmem:[#allocation2 + $0x590] sm:$0xff] }
 0x443   :  { %2457 = vst [vmem:[#allocation1] ss:$2 sm:$0xff] %v6346_v41  ;;  %v3976_v41 = vld [vmem:[%s11297_s3 + $0x270] sm:$0xff]  ;;  %v8211_v30 = vpop.f32.mrf.mxu0  ;;  %4528 = vmatmul.f32.gmra.mxu1 %v3626_v15 }
 0x444   :  { %2459 = vst [vmem:[#allocation1 + $0x1] ss:$2 sm:$0xff] %v6358_v45  ;;  %v2033_v32 = vld.sshfl [vmem:[#allocation1 + $0x20] sm:$0xff pattern:$0x75316420]  ;;  %4563 = vmatpush.msrb.mxu2 %v3976_v41 }
 0x445   :  { %2453 = vst.msk [vmem:[#allocation2 + $0x9c8] sm:$0xff] %vm881_vm2, %v2421_v35  ;;  %v3975_v35 = vld [vmem:[%s11297_s3 + $0x268] sm:$0xff]  ;;  %v3725_v41 = vld [vmem:[#allocation2 + $0x718] sm:$0xff] }
 0x446   :  { %2075 = vst [vmem:[#allocation1 + $0x20] ss:$2 sm:$0xff] %v11823_v42  ;;  %v2184_v45 = vld.sshfl [vmem:[#allocation1 + $0x10] sm:$0xff pattern:$0x75316420]  ;;  %4564 = vmatpush.msrb.mxu2 %v3975_v35  ;;  %4475 = vmatmul.f32.gmra.mxu3 %v3725_v41  ;;  %v11828_v35 = vld [vmem:[#allocation11_spill] sm:$0xff] }
 0x447   :  { %2077 = vst [vmem:[#allocation1 + $0x21] ss:$2 sm:$0xff] %v11824_v0  ;;  %4425 = vmatmul.f32.gmra.mxu2 %v3849_v54  ;;  %v3971_v41 = vld [vmem:[%s11297_s3 + $0x248] sm:$0xff] }
 0x448   :  { %2189 = vst [vmem:[#allocation1 + $0x10] ss:$2 sm:$0xff] %v11825_v5  ;;  %4565 = vmatpush.msrb.mxu2 %v3974_v4  ;;  %v3972_v4 = vld [vmem:[%s11297_s3 + $0x250] sm:$0xff]  ;;  %v3750_v54 = vld [vmem:[#allocation2 + $0x7e0] sm:$0xff] }
 0x449   :  { %2190 = vst [vmem:[#allocation1 + $0x11] ss:$2 sm:$0xff] %v11826_v63 }
 0x44a   :  { %2065 = vst.msk [vmem:[#allocation2 + $0xb38] sm:$0xff] %vm881_vm2, %v2033_v32  ;;  %v3973_v32 = vld [vmem:[%s11297_s3 + $0x258] sm:$0xff] }
 0x44b   :  { %v2472_v6 = vld.sshfl [vmem:[#allocation1] sm:$0xff pattern:$0x75316420]  ;;  %2240 = vst.msk [vmem:[#allocation2 + $0x120] sm:$0xff] %vm881_vm2, %v2184_v45  ;;  %4566 = vmatpush.msrb.mxu2 %v3973_v32  ;;  %v11829_v32 = vld [vmem:[#allocation81_spill] sm:$0xff] }
 0x44c   :  { %2476 = vst [vmem:[#allocation1] ss:$2 sm:$0xff] %v6452_v7  ;;  %v8238_v7 = vpop.f32.mrf.mxu0 }
 0x44d   :  { %11827 = vst [vmem:[#allocation100_spill] sm:$0xff] %v8211_v30  ;;  %4567 = vmatpush.msrb.mxu2 %v3972_v4  ;;  %v3651_v4 = vld [vmem:[#allocation2 + $0x4c8] sm:$0xff]  ;;  %v3874_v30 = vld [vmem:[#allocation2 + $0xbc0] sm:$0xff] }
 0x44e   :  { %2477 = vst [vmem:[#allocation1 + $0x1] ss:$2 sm:$0xff] %v11828_v35  ;;  %v2084_v45 = vld.sshfl [vmem:[#allocation1 + $0x20] sm:$0xff pattern:$0x75316420]  ;;  %4478 = vmatmul.f32.gmra.mxu3 %v3750_v54  ;;  %4531 = vmatmul.f32.gmra.mxu1 %v3651_v4  ;;  %v11832_v54 = vld [vmem:[#allocation20_spill] sm:$0xff] }
 0x44f   :  { %2528 = vst.msk [vmem:[#allocation2 + $0x70] sm:$0xff] %vm881_vm2, %v2472_v6  ;;  %4568 = vmatpush.msrb.mxu2 %v3971_v41  ;;  %v11830_v6 = vld [vmem:[#allocation82_spill] sm:$0xff]  ;;  %v3969_v41 = vld [vmem:[%s11297_s3 + $0x238] sm:$0xff] }
 0x450   :  { %2090 = vst [vmem:[#allocation1 + $0x20] ss:$2 sm:$0xff] %v7931_v53  ;;  %v2196_v15 = vld.sshfl [vmem:[#allocation1 + $0x10] sm:$0xff pattern:$0x75316420]  ;;  %v3970_v35 = vld [vmem:[%s11297_s3 + $0x240] sm:$0xff]  ;;  %4428 = vmatmul.f32.gmra.mxu2 %v3874_v30 }
 0x451   :  { %2091 = vst [vmem:[#allocation1 + $0x21] ss:$2 sm:$0xff] %v7938_v48  ;;  %4569 = vmatpush.msrb.mxu2 %v3970_v35  ;;  %v3968_v35 = vld [vmem:[%s11297_s3 + $0x230] sm:$0xff]  ;;  %v11833_v4 = vld [vmem:[#allocation22_spill] sm:$0xff]  ;;  %v6073_v30 = vrot.slane %v8116_v40, 9 }
 0x452   :  { %2201 = vst [vmem:[#allocation1 + $0x10] ss:$2 sm:$0xff] %v11829_v32 }
 0x453   :  { %2202 = vst [vmem:[#allocation1 + $0x11] ss:$2 sm:$0xff] %v11830_v6  ;;  %4570 = vmatpush.msrb.mxu2 %v3969_v41  ;;  %v11834_v41 = vld [vmem:[#allocation88_spill] sm:$0xff] }
 0x454   :  { %2140 = vst.msk [vmem:[#allocation2 + $0x1e0] sm:$0xff] %vm881_vm2, %v2084_v45 }
 0x455   :  { %v2484_v10 = vld.sshfl [vmem:[#allocation1] sm:$0xff pattern:$0x75316420]  ;;  %2244 = vst.msk [vmem:[#allocation2 + $0x440] sm:$0xff] %vm881_vm2, %v2196_v15  ;;  %v288_v15 = vadd.f32 %v7923_v26, %v8175_v57  ;;  %4571 = vmatpush.msrb.mxu2 %v3968_v35  ;;  %v11835_v26 = vld [vmem:[#allocation89_spill] sm:$0xff]  ;;  %v1686_v57 = vrot.slane %v8127_v58, 5 }
 0x456   :  { %2488 = vst [vmem:[#allocation1] ss:$2 sm:$0xff] %v6921_v38  ;;  %v3967_v38 = vld [vmem:[%s11297_s3 + $0x228] sm:$0xff]  ;;  %4534 = vmatmul.f32.gmra.mxu1 %v3676_v28 }
 0x457   :  { %2489 = vst [vmem:[#allocation1 + $0x1] ss:$2 sm:$0xff] %v6932_v47  ;;  %4572 = vmatpush.msrb.mxu2 %v3967_v38  ;;  %v8258_v35 = vmax.f32 %v288_v15, 0.0  ;;  %v3965_v38 = vld [vmem:[%s11297_s3 + $0x218] sm:$0xff]  ;;  %v8268_v15 = vsel %vm6962_vm5, %v6073_v30, %v1686_v57  ;;  %v1688_v28 = vrot.slane %v1686_v57, 4  ;;  %v3963_v30 = vld [vmem:[%s11297_s3 + $0x208] sm:$0xff] }
 0x458   :  { %11831 = vst [vmem:[#allocation101_spill] sm:$0xff] %v8238_v7  ;;  %v2096_v45 = vld.sshfl [vmem:[#allocation1 + $0x20] sm:$0xff pattern:$0x75316420]  ;;  %v3775_v7 = vld [vmem:[#allocation2 + $0x8a8] sm:$0xff] }
 0x459   :  { %2532 = vst.msk [vmem:[#allocation2 + $0x390] sm:$0xff] %vm881_vm2, %v2484_v10  ;;  %v3966_v10 = vld [vmem:[%s11297_s3 + $0x220] sm:$0xff]  ;;  %4481 = vmatmul.f32.gmra.mxu3 %v3775_v7  ;;  %v3964_v7 = vld [vmem:[%s11297_s3 + $0x210] sm:$0xff] }
 0x45a   :  { %2102 = vst [vmem:[#allocation1 + $0x20] ss:$2 sm:$0xff] %v11832_v54  ;;  %v2208_v47 = vld.sshfl [vmem:[#allocation1 + $0x10] sm:$0xff pattern:$0x75316420]  ;;  %4573 = vmatpush.msrb.mxu2 %v3966_v10  ;;  %v3962_v57 = vld [vmem:[%s11297_s3 + $0x200] sm:$0xff] }
 0x45b   :  { %2103 = vst [vmem:[#allocation1 + $0x21] ss:$2 sm:$0xff] %v11833_v4  ;;  %v1733_v10 = vld.sshfl [vmem:[#allocation1 + $0x30] sm:$0xff pattern:$0x75316420] }
 0x45c   :  { %2213 = vst [vmem:[#allocation1 + $0x10] ss:$2 sm:$0xff] %v11834_v41  ;;  %4574 = vmatpush.msrb.mxu2 %v3965_v38 }
 0x45d   :  { %2214 = vst [vmem:[#allocation1 + $0x11] ss:$2 sm:$0xff] %v11835_v26 }
 0x45e   :  { %11836 = vst [vmem:[#allocation92_spill] sm:$0xff] %v8258_v35  ;;  %v2496_v4 = vld.sshfl [vmem:[#allocation1] sm:$0xff pattern:$0x75316420]  ;;  %4575 = vmatpush.msrb.mxu2 %v3964_v7  ;;  %v3800_v7 = vld [vmem:[#allocation2 + $0x970] sm:$0xff] }
 0x45f   :  { %2144 = vst.msk [vmem:[#allocation2 + $0x500] sm:$0xff] %vm881_vm2, %v2096_v45  ;;  %v1689_v45 = vrot.slane %v8258_v35, 5 }
 0x460   :  { %2248 = vst.msk [vmem:[#allocation2 + $0x760] sm:$0xff] %vm881_vm2, %v2208_v47  ;;  %v8276_v47 = vpop.f32.mrf.mxu0  ;;  %4576 = vmatpush.msrb.mxu2 %v3963_v30  ;;  %v3993_v30 = vld [vmem:[%s11297_s3 + $0x2f8] sm:$0xff] }
 0x461   :  { %2500 = vst [vmem:[#allocation1] ss:$2 sm:$0xff] %v7194_v23  ;;  %4484 = vmatmul.f32.gmra.mxu3 %v3800_v7  ;;  %v11840_v23 = vld [vmem:[#allocation31_spill] sm:$0xff] }
 0x462   :  { %11837 = vst [vmem:[#allocation93_spill] sm:$0xff] %v8268_v15  ;;  %4577 = vmatpush.msrb.mxu2 %v3962_v57  ;;  %4627 = vmatpush.msrb.mxu3 %v3993_v30  ;;  %v3990_v57 = vld [vmem:[%s11297_s3 + $0x2e0] sm:$0xff]  ;;  %v3726_v30 = vld [vmem:[#allocation2 + $0x720] sm:$0xff] }
 0x463   :  { %2501 = vst [vmem:[#allocation1 + $0x1] ss:$2 sm:$0xff] %v7322_v25 }
 0x464   :  { %2536 = vst.msk [vmem:[#allocation2 + $0x6b0] sm:$0xff] %vm881_vm2, %v2496_v4  ;;  %v2220_v38 = vld.sshfl [vmem:[#allocation1 + $0x10] sm:$0xff pattern:$0x75316420]  ;;  %v8289_v4 = vsel %vm6962_vm5, %v1688_v28, %v1689_v45  ;;  %v8301_v45 = vpop.f32.mrf.mxu2 }
 0x465   :  { %11838 = vst [vmem:[#allocation15_spill] sm:$0xff] %v8276_v47  ;;  %v3701_v47 = vld [vmem:[#allocation2 + $0x658] sm:$0xff]  ;;  %v3992_v28 = vld [vmem:[%s11297_s3 + $0x2f0] sm:$0xff] }
 0x466   :  { %1740 = vst [vmem:[#allocation1 + $0x30] ss:$2 sm:$0xff] %v8268_v15  ;;  %4537 = vmatmul.f32.gmra.mxu1 %v3701_v47  ;;  %4628 = vmatpush.msrb.mxu3 %v3992_v28  ;;  %v3991_v47 = vld [vmem:[%s11297_s3 + $0x2e8] sm:$0xff] }
 0x467   :  { %1773 = vst.msk [vmem:[#allocation2 + $0x8c8] sm:$0xff] %vm881_vm2, %v1733_v10  ;;  %v3502_v10 = vld [vmem:[#allocation2 + $0x20] sm:$0xff] }
 0x468   :  { %2273 = vst [vmem:[#allocation1 + $0x10] ss:$2 sm:$0xff] %v11797_v11  ;;  %4578 = vmatmul.f32.vlgmr.msrb.gmra.mxu2 %v3502_v10  ;;  %4629 = vmatpush.msrb.mxu3 %v3991_v47  ;;  %v3527_v10 = vld [vmem:[#allocation2 + $0xe8] sm:$0xff] }
 0x469   :  { %11839 = vst [vmem:[#allocation65_spill] sm:$0xff] %v8289_v4  ;;  %v3988_v47 = vld [vmem:[%s11297_s3 + $0x2d0] sm:$0xff] }
 0x46a   :  { %2275 = vst [vmem:[#allocation1 + $0x11] ss:$2 sm:$0xff] %v11798_v9  ;;  %v2508_v25 = vld.sshfl [vmem:[#allocation1] sm:$0xff pattern:$0x75316420]  ;;  %4630 = vmatpush.msrb.mxu3 %v3990_v57 }
 0x46b   :  { %2252 = vst.msk [vmem:[#allocation2 + $0xa80] sm:$0xff] %vm881_vm2, %v2220_v38  ;;  %v8308_v38 = vpop.f32.mrf.mxu0 }
 0x46c   :  { %1741 = vst [vmem:[#allocation1 + $0x31] ss:$2 sm:$0xff] %v8289_v4 }
 0x46d   :  { %2544 = vst [vmem:[#allocation1] ss:$2 sm:$0xff] %v6364_v46  ;;  %v3825_v46 = vld [vmem:[#allocation2 + $0xa38] sm:$0xff] }
 0x46e   :  { %2546 = vst [vmem:[#allocation1 + $0x1] ss:$2 sm:$0xff] %v6376_v50  ;;  %4487 = vmatmul.f32.gmra.mxu3 %v3825_v46  ;;  %4540 = vmatmul.f32.gmra.mxu1 %v3726_v30  ;;  %v8323_v46 = vpop.f32.mrf.mxu2  ;;  %v3987_v30 = vld [vmem:[%s11297_s3 + $0x2c8] sm:$0xff] }
 0x46f   :  { %2540 = vst.msk [vmem:[#allocation2 + $0x9d0] sm:$0xff] %vm881_vm2, %v2508_v25  ;;  %v3989_v25 = vld [vmem:[%s11297_s3 + $0x2d8] sm:$0xff] }
 0x470   :  { %4581 = vmatmul.f32.gmra.mxu2 %v3527_v10  ;;  %4631 = vmatpush.msrb.mxu3 %v3989_v25  ;;  %11841 = vst [vmem:[#allocation68_spill] sm:$0xff] %v8323_v46  ;;  %v11842_v10 = vld [vmem:[#allocation32_spill] sm:$0xff]  ;;  %v3850_v25 = vld [vmem:[#allocation2 + $0xb00] sm:$0xff]  ;;  %v3981_v46 = vld [vmem:[%s11297_s3 + $0x298] sm:$0xff] }
 0x471   :  { %v2285_v7 = vld.sshfl [vmem:[#allocation1 + $0x10] sm:$0xff pattern:$0x75316420] }
 0x472   :  { %2290 = vst [vmem:[#allocation1 + $0x10] ss:$2 sm:$0xff] %v11799_v2  ;;  %4632 = vmatpush.msrb.mxu3 %v3988_v47  ;;  %v3751_v47 = vld [vmem:[#allocation2 + $0x7e8] sm:$0xff]  ;;  %v3552_v2 = vld [vmem:[#allocation2 + $0x1b0] sm:$0xff] }
 0x473   :  { %2291 = vst [vmem:[#allocation1 + $0x11] ss:$2 sm:$0xff] %v11800_v18  ;;  %v1745_v28 = vld.sshfl [vmem:[#allocation1 + $0x30] sm:$0xff pattern:$0x75316420] }
 0x474   :  { %2341 = vst.msk [vmem:[#allocation2 + $0x128] sm:$0xff] %vm881_vm2, %v2285_v7  ;;  %4633 = vmatpush.msrb.mxu3 %v3987_v30  ;;  %v3986_v7 = vld [vmem:[%s11297_s3 + $0x2c0] sm:$0xff]  ;;  %v1780_v30 = vrot.slane %v7938_v48, 6 }
 0x475   :  { %v2559_v57 = vld.sshfl [vmem:[#allocation1] sm:$0xff pattern:$0x75316420]  ;;  %1804 = vst [vmem:[#allocation1 + $0x30] ss:$2 sm:$0xff] %v11840_v23 }
 0x476   :  { %2563 = vst [vmem:[#allocation1] ss:$2 sm:$0xff] %v6470_v12  ;;  %4634 = vmatpush.msrb.mxu3 %v3986_v7  ;;  %v8336_v12 = vpop.f32.mrf.mxu0  ;;  %4543 = vmatmul.f32.gmra.mxu1 %v3751_v47  ;;  %v8348_v7 = vpop.f32.mrf.mxu2 }
 0x477   :  { %2564 = vst [vmem:[#allocation1 + $0x1] ss:$2 sm:$0xff] %v6484_v17  ;;  %4490 = vmatmul.f32.gmra.mxu3 %v3850_v25  ;;  %v1783_v25 = vrot.slane %v8143_v22, 6 }
 0x478   :  { %2615 = vst.msk [vmem:[#allocation2 + $0x78] sm:$0xff] %vm881_vm2, %v2559_v57  ;;  %v3985_v57 = vld [vmem:[%s11297_s3 + $0x2b8] sm:$0xff]  ;;  %4584 = vmatmul.f32.gmra.mxu2 %v3552_v2  ;;  %v6074_v2 = vrot.slane %v7931_v53, 10 }
 0x479   :  { %1806 = vst [vmem:[#allocation1 + $0x31] ss:$2 sm:$0xff] %v11842_v10  ;;  %4635 = vmatpush.msrb.mxu3 %v3985_v57  ;;  %v1782_v57 = vrot.slane %v1780_v30, 4  ;;  %v3776_v10 = vld [vmem:[#allocation2 + $0x8b0] sm:$0xff] }
 0x47a   :  { %v2297_v18 = vld.sshfl [vmem:[#allocation1 + $0x10] sm:$0xff pattern:$0x75316420]  ;;  %1777 = vst.msk [vmem:[#allocation2 + $0xbe8] sm:$0xff] %vm881_vm2, %v1745_v28  ;;  %v8362_v8 = vsel %vm7030_vm8, %v6074_v2, %v1780_v30  ;;  %v8388_v2 = vpop.f32.mrf.mxu1 }
 0x47b   :  { %11843 = vst [vmem:[#allocation81_spill] sm:$0xff] %v8336_v12  ;;  %v3984_v28 = vld [vmem:[%s11297_s3 + $0x2b0] sm:$0xff] }
 0x47c   :  { %2302 = vst [vmem:[#allocation1 + $0x10] ss:$2 sm:$0xff] %v7660_v49  ;;  %4636 = vmatpush.msrb.mxu3 %v3984_v28  ;;  %v3983_v49 = vld [vmem:[%s11297_s3 + $0x2a8] sm:$0xff]  ;;  %v11855_v28 = vld [vmem:[#allocation36_spill] sm:$0xff] }
 0x47d   :  { %2303 = vst [vmem:[#allocation1 + $0x11] ss:$2 sm:$0xff] %v7666_v43 }
 0x47e   :  { %2345 = vst.msk [vmem:[#allocation2 + $0x448] sm:$0xff] %vm881_vm2, %v2297_v18  ;;  %v2571_v47 = vld.sshfl [vmem:[#allocation1] sm:$0xff pattern:$0x75316420]  ;;  %4637 = vmatpush.msrb.mxu3 %v3983_v49  ;;  %4546 = vmatmul.f32.gmra.mxu1 %v3776_v10  ;;  %v8381_v10 = vpop.f32.mrf.mxu2 }
 0x47f   :  { %11844 = vst [vmem:[#allocation82_spill] sm:$0xff] %v8348_v7  ;;  %v3982_v18 = vld [vmem:[%s11297_s3 + $0x2a0] sm:$0xff]  ;;  %v3875_v7 = vld [vmem:[#allocation2 + $0xbc8] sm:$0xff] }
 0x480   :  { %2575 = vst [vmem:[#allocation1] ss:$2 sm:$0xff] %v6944_v61  ;;  %v1810_v43 = vld.sshfl [vmem:[#allocation1 + $0x30] sm:$0xff pattern:$0x75316420]  ;;  %4638 = vmatpush.msrb.mxu3 %v3982_v18  ;;  %v8367_v61 = vsel %vm7030_vm8, %v1782_v57, %v1783_v25  ;;  %v3577_v49 = vld [vmem:[#allocation2 + $0x278] sm:$0xff] }
 0x481   :  { %2576 = vst [vmem:[#allocation1 + $0x1] ss:$2 sm:$0xff] %v6950_v62  ;;  %4493 = vmatmul.f32.gmra.mxu3 %v3875_v7  ;;  %4587 = vmatmul.f32.gmra.mxu2 %v3577_v49  ;;  %v3980_v25 = vld [vmem:[%s11297_s3 + $0x290] sm:$0xff]  ;;  %v3979_v7 = vld [vmem:[%s11297_s3 + $0x288] sm:$0xff]  ;;  %v3978_v57 = vld [vmem:[%s11297_s3 + $0x280] sm:$0xff] }
 0x482   :  { %11846 = vst [vmem:[#allocation109_spill] sm:$0xff] %v8362_v8  ;;  %4639 = vmatpush.msrb.mxu3 %v3981_v46  ;;  %v3801_v18 = vld [vmem:[#allocation2 + $0x978] sm:$0xff]  ;;  %v3602_v49 = vld [vmem:[#allocation2 + $0x340] sm:$0xff] }
 0x483   :  { %2619 = vst.msk [vmem:[#allocation2 + $0x398] sm:$0xff] %vm881_vm2, %v2571_v47  ;;  %v8375_v47 = vpop.f32.mrf.mxu0 }
 0x484   :  { %11847 = vst [vmem:[#allocation110_spill] sm:$0xff] %v8367_v61  ;;  %v2309_v30 = vld.sshfl [vmem:[#allocation1 + $0x10] sm:$0xff pattern:$0x75316420]  ;;  %4640 = vmatpush.msrb.mxu3 %v3980_v25 }
 0x485   :  { %1817 = vst [vmem:[#allocation1 + $0x30] ss:$2 sm:$0xff] %v8362_v8 }
 0x486   :  { %1818 = vst [vmem:[#allocation1 + $0x31] ss:$2 sm:$0xff] %v8367_v61  ;;  %4641 = vmatpush.msrb.mxu3 %v3979_v7  ;;  %4549 = vmatmul.f32.gmra.mxu1 %v3801_v18  ;;  %v11849_v7 = vld [vmem:[#allocation33_spill] sm:$0xff]  ;;  %v1787_v18 = vrot.slane %v8127_v58, 6 }
 0x487   :  { %2314 = vst [vmem:[#allocation1 + $0x10] ss:$2 sm:$0xff] %v7690_v60  ;;  %v8407_v60 = vpop.f32.mrf.mxu2  ;;  %v3528_v61 = vld [vmem:[#allocation2 + $0xf0] sm:$0xff] }
 0x488   :  { %11848 = vst [vmem:[#allocation111_spill] sm:$0xff] %v8375_v47  ;;  %v2583_v46 = vld.sshfl [vmem:[#allocation1] sm:$0xff pattern:$0x75316420]  ;;  %4642 = vmatpush.msrb.mxu3 %v3978_v57  ;;  %v8405_v57 = vpop.f32.mrf.mxu3 }
 0x489   :  { %2315 = vst [vmem:[#allocation1 + $0x11] ss:$2 sm:$0xff] %v7694_v21  ;;  %4590 = vmatmul.f32.gmra.mxu2 %v3602_v49  ;;  %v11850_v21 = vld [vmem:[#allocation34_spill] sm:$0xff]  ;;  %v4007_v49 = vld [vmem:[%s11297_s3 + $0x368] sm:$0xff] }
 0x48a   :  { %2349 = vst.msk [vmem:[#allocation2 + $0x768] sm:$0xff] %vm881_vm2, %v2309_v30  ;;  %v3503_v30 = vld [vmem:[#allocation2 + $0x28] sm:$0xff] }
 0x48b   :  { %1866 = vst.msk [vmem:[#allocation2 + $0x290] sm:$0xff] %vm881_vm2, %v1810_v43  ;;  %v4009_v43 = vld [vmem:[%s11297_s3 + $0x378] sm:$0xff]  ;;  %4643 = vmatmul.f32.vlgmr.msrb.gmra.mxu3 %v3503_v30  ;;  %v8411_v30 = vpop.f32.mrf.mxu0 }
 0x48c   :  { %2587 = vst [vmem:[#allocation1] ss:$2 sm:$0xff] %v7341_v39  ;;  %4692 = vmatpush.msra.mxu1 %v4009_v43  ;;  %v6075_v43 = vrot.slane %v8116_v40, 10 }
 0x48d   :  { %2623 = vst.msk [vmem:[#allocation2 + $0x6b8] sm:$0xff] %vm881_vm2, %v2583_v46  ;;  %v1822_v25 = vld.sshfl [vmem:[#allocation1 + $0x30] sm:$0xff pattern:$0x75316420] }
 0x48e   :  { %2588 = vst [vmem:[#allocation1 + $0x1] ss:$2 sm:$0xff] %v7350_v51  ;;  %v4008_v46 = vld [vmem:[%s11297_s3 + $0x370] sm:$0xff]  ;;  %v8430_v8 = vsel %vm7030_vm8, %v6075_v43, %v1787_v18 }
 0x48f   :  { %1829 = vst [vmem:[#allocation1 + $0x30] ss:$2 sm:$0xff] %v11849_v7  ;;  %4693 = vmatpush.msra.mxu1 %v4008_v46  ;;  %v8418_v46 = vpop.f32.mrf.mxu1  ;;  %v3826_v7 = vld [vmem:[#allocation2 + $0xa40] sm:$0xff] }
 0x490   :  { %v2321_v39 = vld.sshfl [vmem:[#allocation1 + $0x10] sm:$0xff pattern:$0x75316420]  ;;  %1830 = vst [vmem:[#allocation1 + $0x31] ss:$2 sm:$0xff] %v11850_v21  ;;  %v1790_v21 = vrot.slane %v8258_v35, 6  ;;  %4552 = vmatmul.f32.gmra.mxu1 %v3826_v7 }
 0x491   :  { %2374 = vst [vmem:[#allocation1 + $0x10] ss:$2 sm:$0xff] %v11801_v29  ;;  %4694 = vmatpush.msra.mxu1 %v4007_v49  ;;  %v1789_v29 = vrot.slane %v1787_v18, 4  ;;  %v3627_v49 = vld [vmem:[#allocation2 + $0x408] sm:$0xff]  ;;  %v8443_v18 = vpop.f32.mrf.mxu2 }
 0x492   :  { %11851 = vst [vmem:[#allocation112_spill] sm:$0xff] %v8405_v57  ;;  %4593 = vmatmul.f32.gmra.mxu2 %v3627_v49  ;;  %v3851_v49 = vld [vmem:[#allocation2 + $0xb08] sm:$0xff] }
 0x493   :  { %2376 = vst [vmem:[#allocation1 + $0x11] ss:$2 sm:$0xff] %v11802_v3  ;;  %v4006_v3 = vld [vmem:[%s11297_s3 + $0x360] sm:$0xff]  ;;  %4646 = vmatmul.f32.gmra.mxu3 %v3528_v61  ;;  %v8441_v61 = vpop.f32.mrf.mxu3  ;;  %v8453_v43 = vpop.f32.mrf.mxu0 }
 0x494   :  { %2353 = vst.msk [vmem:[#allocation2 + $0xa88] sm:$0xff] %vm881_vm2, %v2321_v39  ;;  %4695 = vmatpush.msra.mxu1 %v4006_v3  ;;  %v4005_v39 = vld [vmem:[%s11297_s3 + $0x358] sm:$0xff]  ;;  %v4004_v3 = vld [vmem:[%s11297_s3 + $0x350] sm:$0xff] }
 0x495   :  { %1870 = vst.msk [vmem:[#allocation2 + $0x5b0] sm:$0xff] %vm881_vm2, %v1822_v25  ;;  %v8434_v25 = vsel %vm7030_vm8, %v1789_v29, %v1790_v21  ;;  %v4003_v21 = vld [vmem:[%s11297_s3 + $0x348] sm:$0xff] }
 0x496   :  { %11852 = vst [vmem:[#allocation113_spill] sm:$0xff] %v8430_v8  ;;  %4696 = vmatpush.msra.mxu1 %v4005_v39  ;;  %v4002_v39 = vld [vmem:[%s11297_s3 + $0x340] sm:$0xff] }
 0x497   :  { %v1834_v47 = vld.sshfl [vmem:[#allocation1 + $0x30] sm:$0xff pattern:$0x75316420]  ;;  %11853 = vst [vmem:[#allocation114_spill] sm:$0xff] %v8434_v25  ;;  %v8450_v29 = vpop.f32.mrf.mxu1 }
 0x498   :  { %1841 = vst [vmem:[#allocation1 + $0x30] ss:$2 sm:$0xff] %v8430_v8  ;;  %4697 = vmatpush.msra.mxu1 %v4004_v3  ;;  %v3553_v3 = vld [vmem:[#allocation2 + $0x1b8] sm:$0xff]  ;;  %v11857_v8 = vld [vmem:[#allocation37_spill] sm:$0xff] }
 0x499   :  { %1842 = vst [vmem:[#allocation1 + $0x31] ss:$2 sm:$0xff] %v8434_v25  ;;  %4555 = vmatmul.f32.gmra.mxu1 %v3851_v49 }
 0x49a   :  { %v2386_v7 = vld.sshfl [vmem:[#allocation1 + $0x10] sm:$0xff pattern:$0x75316420]  ;;  %11854 = vst [vmem:[#allocation115_spill] sm:$0xff] %v8441_v61  ;;  %4698 = vmatpush.msra.mxu1 %v4003_v21  ;;  %v3652_v21 = vld [vmem:[#allocation2 + $0x4d0] sm:$0xff]  ;;  %v3677_v61 = vld [vmem:[#allocation2 + $0x598] sm:$0xff] }
 0x49b   :  { %2391 = vst [vmem:[#allocation1 + $0x10] ss:$2 sm:$0xff] %v11803_v34  ;;  %4649 = vmatmul.f32.gmra.mxu3 %v3553_v3  ;;  %4596 = vmatmul.f32.gmra.mxu2 %v3652_v21  ;;  %v4000_v34 = vld [vmem:[%s11297_s3 + $0x330] sm:$0xff]  ;;  %v1881_v3 = vrot.slane %v7938_v48, 7  ;;  %v3998_v21 = vld [vmem:[%s11297_s3 + $0x320] sm:$0xff] }
 0x49c   :  { %2392 = vst [vmem:[#allocation1 + $0x11] ss:$2 sm:$0xff] %v11804_v36  ;;  %4699 = vmatpush.msra.mxu1 %v4002_v39  ;;  %v4001_v36 = vld [vmem:[%s11297_s3 + $0x338] sm:$0xff]  ;;  %v8468_v39 = vpop.f32.mrf.mxu2 }
 0x49d   :  { %2442 = vst.msk [vmem:[#allocation2 + $0x130] sm:$0xff] %vm881_vm2, %v2386_v7 }
 0x49e   :  { %1874 = vst.msk [vmem:[#allocation2 + $0x8d0] sm:$0xff] %vm881_vm2, %v1834_v47  ;;  %4700 = vmatpush.msra.mxu1 %v4001_v36  ;;  %v8466_v47 = vpop.f32.mrf.mxu3  ;;  %v3999_v36 = vld [vmem:[%s11297_s3 + $0x328] sm:$0xff] }
 0x49f   :  { %11856 = vst [vmem:[#allocation116_spill] sm:$0xff] %v8466_v47  ;;  %v8475_v49 = vpop.f32.mrf.mxu1  ;;  %v3997_v47 = vld [vmem:[%s11297_s3 + $0x318] sm:$0xff] }
 0x4a0   :  { %v1846_v7 = vld.sshfl [vmem:[#allocation1 + $0x30] sm:$0xff pattern:$0x75316420]  ;;  %4701 = vmatpush.msra.mxu1 %v4000_v34  ;;  %v8482_v34 = vld [vmem:[%s11298_s4] ss:$0 sm:$0xff] }
 0x4a1   :  { %1905 = vst [vmem:[#allocation1 + $0x30] ss:$2 sm:$0xff] %v11855_v28  ;;  %v4334_v28 = vpop.f32.mrf.mxu0 }
 0x4a2   :  { %1907 = vst [vmem:[#allocation1 + $0x31] ss:$2 sm:$0xff] %v11857_v8  ;;  %4702 = vmatpush.msra.mxu1 %v3999_v36  ;;  %v3578_v8 = vld [vmem:[#allocation2 + $0x280] sm:$0xff]  ;;  %v1884_v36 = vrot.slane %v8143_v22, 7 }
 0x4a3   :  { %v2398_v25 = vld.sshfl [vmem:[#allocation1 + $0x10] sm:$0xff pattern:$0x75316420]  ;;  %1878 = vst.msk [vmem:[#allocation2 + $0xbf0] sm:$0xff] %vm881_vm2, %v1846_v7  ;;  %4652 = vmatmul.f32.gmra.mxu3 %v3578_v8  ;;  %4599 = vmatmul.f32.gmra.mxu2 %v3677_v61 }
 0x4a4   :  { %2403 = vst [vmem:[#allocation1 + $0x10] ss:$2 sm:$0xff] %v7834_v33  ;;  %4703 = vmatpush.msra.mxu1 %v3998_v21  ;;  %v3876_v33 = vld [vmem:[#allocation2 + $0xbd0] sm:$0xff]  ;;  %v1883_v21 = vrot.slane %v1881_v3, 4  ;;  %v3996_v7 = vld [vmem:[%s11297_s3 + $0x310] sm:$0xff] }
 0x4a5   :  { %2404 = vst [vmem:[#allocation1 + $0x11] ss:$2 sm:$0xff] %v11805_v37  ;;  %v4329_v37 = vadd.f32 %v8482_v34, %v8411_v30  ;;  %4558 = vmatmul.f32.gmra.mxu1 %v3876_v33  ;;  %v8504_v33 = vpop.f32.mrf.mxu2 }
 0x4a6   :  { %2446 = vst.msk [vmem:[#allocation2 + $0x450] sm:$0xff] %vm881_vm2, %v2398_v25  ;;  %v6076_v25 = vrot.slane %v7931_v53, 11  ;;  %4704 = vmatpush.msra.mxu1 %v3997_v47  ;;  %v4458_v8 = vpop.f32.mrf.mxu3  ;;  %v8508_v47 = vsel %vm7079_vm10, %v1883_v21, %v1884_v36  ;;  %v3994_v36 = vld [vmem:[%s11297_s3 + $0x300] sm:$0xff]  ;;  %v3504_v21 = vld [vmem:[#allocation2 + $0x30] sm:$0xff] }
 0x4a7   :  { %v4394_v12 = vadd.f32 %v8381_v10, %v4329_v37  ;;  %11860 = vst [vmem:[#allocation118_spill] sm:$0xff] %v8508_v47  ;;  %v3995_v37 = vld [vmem:[%s11297_s3 + $0x308] sm:$0xff] }
 0x4a8   :  { %v8502_v23 = vsel %vm7079_vm10, %v6076_v25, %v1881_v3  ;;  %4705 = vmatpush.msra.mxu1 %v3996_v7  ;;  %v8517_v3 = vpop.f32.mrf.mxu1  ;;  %v3603_v25 = vld [vmem:[#allocation2 + $0x348] sm:$0xff]  ;;  %v3702_v7 = vld [vmem:[#allocation2 + $0x660] sm:$0xff] }
 0x4a9   :  { %11859 = vst [vmem:[#allocation117_spill] sm:$0xff] %v8502_v23  ;;  %v1911_v57 = vld.sshfl [vmem:[#allocation1 + $0x30] sm:$0xff pattern:$0x75316420]  ;;  %v8514_v10 = vadd.f32 %v4458_v8, %v4394_v12  ;;  %v4332_v12 = vadd.f32 %v8482_v34, %v8453_v43  ;;  %v4337_v8 = vpop.f32.mrf.mxu0 }
 0x4aa   :  { %1918 = vst [vmem:[#allocation1 + $0x30] ss:$2 sm:$0xff] %v8502_v23  ;;  %4706 = vmatpush.msra.mxu1 %v3995_v37  ;;  %v11862_v23 = vld [vmem:[#allocation38_spill] sm:$0xff] }
 0x4ab   :  { %1919 = vst [vmem:[#allocation1 + $0x31] ss:$2 sm:$0xff] %v8508_v47  ;;  %4655 = vmatmul.f32.gmra.mxu3 %v3603_v25  ;;  %4602 = vmatmul.f32.gmra.mxu2 %v3702_v7  ;;  %v4397_v37 = vadd.f32 %v8407_v60, %v4332_v12  ;;  %v3529_v25 = vld [vmem:[#allocation2 + $0xf8] sm:$0xff]  ;;  %v4335_v60 = vadd.f32 %v8482_v34, %v4334_v28  ;;  %v1888_v12 = vrot.slane %v8127_v58, 7 }
 0x4ac   :  { %v2410_v61 = vld.sshfl [vmem:[#allocation1 + $0x10] sm:$0xff pattern:$0x75316420]  ;;  %11861 = vst [vmem:[#allocation119_spill] sm:$0xff] %v8517_v3  ;;  %4707 = vmatpush.msra.mxu1 %v3994_v36  ;;  %v11863_v3 = vld [vmem:[#allocation39_spill] sm:$0xff] }
 0x4ad   :  { %2415 = vst [vmem:[#allocation1 + $0x10] ss:$2 sm:$0xff] %v7855_v56  ;;  %4708 = vmatmul.f32.vlgmr.msra.gmra.mxu1 %v3504_v21  ;;  %v8529_v56 = vpop.f32.mrf.mxu2  ;;  %v3727_v21 = vld [vmem:[#allocation2 + $0x728] sm:$0xff]  ;;  %v4400_v7 = vadd.f32 %v8443_v18, %v4335_v60  ;;  %v3554_v18 = vld [vmem:[#allocation2 + $0x1c0] sm:$0xff]  ;;  %v1891_v60 = vrot.slane %v8258_v35, 7 }
 0x4ae   :  { %2416 = vst [vmem:[#allocation1 + $0x11] ss:$2 sm:$0xff] %v7859_v27  ;;  %v4461_v27 = vpop.f32.mrf.mxu3 }
 0x4af   :  { %2450 = vst.msk [vmem:[#allocation2 + $0x770] sm:$0xff] %vm881_vm2, %v2410_v61  ;;  %v8531_v47 = vadd.f32 %v4461_v27, %v4397_v37  ;;  %v6077_v27 = vrot.slane %v8116_v40, 11 }
 0x4b0   :  { %1967 = vst.msk [vmem:[#allocation2 + $0x298] sm:$0xff] %vm881_vm2, %v1911_v57  ;;  %v8534_v61 = vpop.f32.mrf.mxu1  ;;  %v3628_v57 = vld [vmem:[#allocation2 + $0x410] sm:$0xff] }
 0x4b1   :  { %v8551_v28 = vsel %vm7079_vm10, %v6077_v27, %v1888_v12  ;;  %v4338_v27 = vadd.f32 %v8482_v34, %v4337_v8 }
 0x4b2   :  { %v1923_v36 = vld.sshfl [vmem:[#allocation1 + $0x30] sm:$0xff pattern:$0x75316420]  ;;  %11864 = vst [vmem:[#allocation120_spill] sm:$0xff] %v8551_v28 }
 0x4b3   :  { %1930 = vst [vmem:[#allocation1 + $0x30] ss:$2 sm:$0xff] %v11862_v23  ;;  %4658 = vmatmul.f32.gmra.mxu3 %v3628_v57  ;;  %4605 = vmatmul.f32.gmra.mxu2 %v3727_v21  ;;  %v4057_v23 = vld [vmem:[%s11297_s3 + $0x4f8] sm:$0xff] }
 0x4b4   :  { %1931 = vst [vmem:[#allocation1 + $0x31] ss:$2 sm:$0xff] %v11863_v3  ;;  %4887 = vmatpush.msra.mxu0 %v4057_v23 }
 0x4b5   :  { %v2422_v43 = vld.sshfl [vmem:[#allocation1 + $0x10] sm:$0xff pattern:$0x75316420]  ;;  %4711 = vmatmul.f32.gmra.mxu1 %v3529_v25  ;;  %1971 = vst.msk [vmem:[#allocation2 + $0x5b8] sm:$0xff] %vm881_vm2, %v1923_v36  ;;  %v8545_v37 = vpop.f32.mrf.mxu2  ;;  %v3653_v36 = vld [vmem:[#allocation2 + $0x4d8] sm:$0xff] }
 0x4b6   :  { %2461 = vst [vmem:[#allocation1 + $0x10] ss:$2 sm:$0xff] %v6376_v50  ;;  %v4464_v50 = vpop.f32.mrf.mxu3  ;;  %v2108_v25 = vld.sshfl [vmem:[#allocation1 + $0x20] sm:$0xff pattern:$0x75316420] }
 0x4b7   :  { %2463 = vst [vmem:[#allocation1 + $0x11] ss:$2 sm:$0xff] %v7378_v24  ;;  %v4340_v24 = vpop.f32.mrf.mxu0  ;;  %v8547_v3 = vadd.f32 %v4464_v50, %v4400_v7  ;;  %v1890_v50 = vrot.slane %v1888_v12, 4  ;;  %v3752_v7 = vld [vmem:[#allocation2 + $0x7f0] sm:$0xff] }
 0x4b8   :  { %2454 = vst.msk [vmem:[#allocation2 + $0xa90] sm:$0xff] %vm881_vm2, %v2422_v43  ;;  %v8555_v57 = vpop.f32.mrf.mxu1 }
 0x4b9   :  { %2114 = vst [vmem:[#allocation1 + $0x20] ss:$2 sm:$0xff] %v8116_v40  ;;  %v8574_v8 = vsel %vm7079_vm10, %v1890_v50, %v1891_v60  ;;  %v4341_v60 = vadd.f32 %v8482_v34, %v4340_v24  ;;  %v4053_v24 = vld [vmem:[%s11297_s3 + $0x4d8] sm:$0xff] }
 0x4ba   :  { %2115 = vst [vmem:[#allocation1 + $0x21] ss:$2 sm:$0xff] %v8127_v58 }
 0x4bb   :  { %v8553_v43 = vld.sshfl [vmem:[#allocation1 + $0x30] sm:$0xff pattern:$0x75316420]  ;;  %4661 = vmatmul.f32.gmra.mxu3 %v3653_v36  ;;  %4608 = vmatmul.f32.gmra.mxu2 %v3752_v7  ;;  %2148 = vst.msk [vmem:[#allocation2 + $0x820] sm:$0xff] %vm881_vm2, %v2108_v25  ;;  %v4055_v25 = vld [vmem:[%s11297_s3 + $0x4e8] sm:$0xff]  ;;  %v4406_v7 = vadd.f32 %v8504_v33, %v4341_v60 }
 0x4bc   :  { %1942 = vst [vmem:[#allocation1 + $0x30] ss:$2 sm:$0xff] %v8551_v28  ;;  %v4403_v28 = vadd.f32 %v8468_v39, %v4338_v27  ;;  %v4056_v39 = vld [vmem:[%s11297_s3 + $0x4f0] sm:$0xff]  ;;  %v3777_v27 = vld [vmem:[#allocation2 + $0x8b8] sm:$0xff] }
 0x4bd   :  { %4714 = vmatmul.f32.gmra.mxu1 %v3554_v18  ;;  %v8569_v12 = vpop.f32.mrf.mxu2  ;;  %11865 = vst [vmem:[#allocation121_spill] sm:$0xff] %v8574_v8  ;;  %4888 = vmatpush.msra.mxu0 %v4056_v39  ;;  %v3703_v60 = vld [vmem:[#allocation2 + $0x668] sm:$0xff] }
 0x4be   :  { %v2473_v21 = vld.sshfl [vmem:[#allocation1 + $0x10] sm:$0xff pattern:$0x75316420]  ;;  %1943 = vst [vmem:[#allocation1 + $0x31] ss:$2 sm:$0xff] %v8574_v8 }
 0x4bf   :  { %2478 = vst [vmem:[#allocation1 + $0x10] ss:$2 sm:$0xff] %v6484_v17  ;;  %v4467_v17 = vpop.f32.mrf.mxu3  ;;  %v4343_v23 = vpop.f32.mrf.mxu0  ;;  %4889 = vmatpush.msra.mxu0 %v4055_v25 }
 0x4c0   :  { %2479 = vst [vmem:[#allocation1 + $0x11] ss:$2 sm:$0xff] %v11812_v1  ;;  %v8576_v36 = vadd.f32 %v4467_v17, %v4403_v28  ;;  %v8582_v18 = vpop.f32.mrf.mxu1  ;;  %v3678_v17 = vld [vmem:[#allocation2 + $0x5a0] sm:$0xff]  ;;  %v3579_v28 = vld [vmem:[#allocation2 + $0x288] sm:$0xff] }
 0x4c1   :  { %2529 = vst.msk [vmem:[#allocation2 + $0x138] sm:$0xff] %vm881_vm2, %v2473_v21  ;;  %v2595_v21 = vld.sshfl [vmem:[#allocation1] sm:$0xff pattern:$0x75316420] }
 0x4c2   :  { %2645 = vst [vmem:[#allocation1] ss:$2 sm:$0xff] %v11820_v16  ;;  %v4054_v16 = vld [vmem:[%s11297_s3 + $0x4e0] sm:$0xff] }
 0x4c3   :  { %2647 = vst [vmem:[#allocation1 + $0x1] ss:$2 sm:$0xff] %v11821_v31  ;;  %4664 = vmatmul.f32.gmra.mxu3 %v3678_v17  ;;  %4611 = vmatmul.f32.gmra.mxu2 %v3777_v27  ;;  %v2120_v31 = vld.sshfl [vmem:[#allocation1 + $0x20] sm:$0xff pattern:$0x75316420]  ;;  %v4052_v17 = vld [vmem:[%s11297_s3 + $0x4d0] sm:$0xff] }
 0x4c4   :  { %2627 = vst.msk [vmem:[#allocation2 + $0x9d8] sm:$0xff] %vm881_vm2, %v2595_v21  ;;  %4890 = vmatpush.msra.mxu0 %v4054_v16  ;;  %v3604_v27 = vld [vmem:[#allocation2 + $0x350] sm:$0xff]  ;;  %v4344_v16 = vadd.f32 %v8482_v34, %v4343_v23 }
 0x4c5   :  { %4717 = vmatmul.f32.gmra.mxu1 %v3579_v28  ;;  %v8601_v39 = vpop.f32.mrf.mxu2  ;;  %2176 = vst [vmem:[#allocation1 + $0x20] ss:$2 sm:$0xff] %v11809_v19 }
 0x4c6   :  { %4891 = vmatpush.msra.mxu0 %v4053_v24  ;;  %2178 = vst [vmem:[#allocation1 + $0x21] ss:$2 sm:$0xff] %v11811_v14  ;;  %v3802_v24 = vld [vmem:[#allocation2 + $0x980] sm:$0xff]  ;;  %v4409_v23 = vadd.f32 %v8529_v56, %v4344_v16  ;;  %v4048_v16 = vld [vmem:[%s11297_s3 + $0x4b0] sm:$0xff] }
 0x4c7   :  { %v2485_v50 = vld.sshfl [vmem:[#allocation1 + $0x10] sm:$0xff pattern:$0x75316420]  ;;  %v4470_v21 = vpop.f32.mrf.mxu3  ;;  %2152 = vst.msk [vmem:[#allocation2 + $0xb40] sm:$0xff] %vm881_vm2, %v2120_v31  ;;  %v4025_v31 = vld [vmem:[%s11297_s3 + $0x3f8] sm:$0xff]  ;;  %v4023_v56 = vld [vmem:[%s11297_s3 + $0x3e8] sm:$0xff] }
 0x4c8   :  { %2490 = vst [vmem:[#allocation1 + $0x10] ss:$2 sm:$0xff] %v6950_v62  ;;  %v8604_v25 = vadd.f32 %v4470_v21, %v4406_v7  ;;  %v8610_v33 = vpop.f32.mrf.mxu1  ;;  %4892 = vmatpush.msra.mxu0 %v4052_v17  ;;  %v4346_v7 = vpop.f32.mrf.mxu0  ;;  %v4050_v21 = vld [vmem:[%s11297_s3 + $0x4c0] sm:$0xff]  ;;  %4757 = vmatpush.msra.mxu2 %v4025_v31  ;;  %v11896_v62 = vld [vmem:[#allocation36_spill] sm:$0xff] }
 0x4c9   :  { %2491 = vst [vmem:[#allocation1 + $0x11] ss:$2 sm:$0xff] %v11816_v55  ;;  %v3730_v55 = vld [vmem:[#allocation2 + $0x740] sm:$0xff] }
 0x4ca   :  { %2533 = vst.msk [vmem:[#allocation2 + $0x458] sm:$0xff] %vm881_vm2, %v2485_v50  ;;  %v2660_v28 = vld.sshfl [vmem:[#allocation1] sm:$0xff pattern:$0x75316420]  ;;  %v4051_v50 = vld [vmem:[%s11297_s3 + $0x4c8] sm:$0xff] }
 0x4cb   :  { %2664 = vst [vmem:[#allocation1] ss:$2 sm:$0xff] %v11825_v5  ;;  %4893 = vmatpush.msra.mxu0 %v4051_v50  ;;  %4667 = vmatmul.f32.gmra.mxu3 %v3703_v60  ;;  %v4024_v50 = vld [vmem:[%s11297_s3 + $0x3f0] sm:$0xff]  ;;  %v4049_v60 = vld [vmem:[%s11297_s3 + $0x4b8] sm:$0xff]  ;;  %v4046_v5 = vld [vmem:[%s11297_s3 + $0x4a0] sm:$0xff] }
 0x4cc   :  { %2665 = vst [vmem:[#allocation1 + $0x1] ss:$2 sm:$0xff] %v11826_v63  ;;  %4614 = vmatmul.f32.gmra.mxu2 %v3802_v24  ;;  %v4021_v63 = vld [vmem:[%s11297_s3 + $0x3d8] sm:$0xff] }
 0x4cd   :  { %4720 = vmatmul.f32.gmra.mxu1 %v3604_v27  ;;  %2716 = vst.msk [vmem:[#allocation2 + $0x80] sm:$0xff] %vm881_vm2, %v2660_v28  ;;  %4894 = vmatpush.msra.mxu0 %v4050_v21  ;;  %v8635_v27 = vpop.f32.mrf.mxu2  ;;  %v2185_v24 = vld.sshfl [vmem:[#allocation1 + $0x20] sm:$0xff pattern:$0x75316420] }
 0x4ce   :  { %4758 = vmatpush.msra.mxu2 %v4024_v50  ;;  %2191 = vst [vmem:[#allocation1 + $0x20] ss:$2 sm:$0xff] %v8157_v52 }
 0x4cf   :  { %v4473_v28 = vpop.f32.mrf.mxu3  ;;  %4895 = vmatpush.msra.mxu0 %v4049_v60  ;;  %2192 = vst [vmem:[#allocation1 + $0x21] ss:$2 sm:$0xff] %v8162_v13  ;;  %v3827_v60 = vld [vmem:[#allocation2 + $0xa48] sm:$0xff] }
 0x4d0   :  { %v2497_v17 = vld.sshfl [vmem:[#allocation1 + $0x10] sm:$0xff pattern:$0x75316420]  ;;  %v8638_v21 = vadd.f32 %v4473_v28, %v4409_v23  ;;  %v8647_v31 = vpop.f32.mrf.mxu1  ;;  %4759 = vmatpush.msra.mxu2 %v4023_v56  ;;  %v4047_v23 = vld [vmem:[%s11297_s3 + $0x4a8] sm:$0xff]  ;;  %2241 = vst.msk [vmem:[#allocation2 + $0x1e8] sm:$0xff] %vm881_vm2, %v2185_v24  ;;  %v3728_v28 = vld [vmem:[#allocation2 + $0x730] sm:$0xff] }
 0x4d1   :  { %2502 = vst [vmem:[#allocation1 + $0x10] ss:$2 sm:$0xff] %v7350_v51  ;;  %4896 = vmatpush.msra.mxu0 %v4048_v16  ;;  %v4347_v16 = vadd.f32 %v8482_v34, %v4346_v7  ;;  %v3629_v56 = vld [vmem:[#allocation2 + $0x418] sm:$0xff] }
 0x4d2   :  { %2503 = vst [vmem:[#allocation1 + $0x11] ss:$2 sm:$0xff] %v11819_v20  ;;  %v11893_v20 = vld [vmem:[#allocation114_spill] sm:$0xff] }
 0x4d3   :  { %2537 = vst.msk [vmem:[#allocation2 + $0x778] sm:$0xff] %vm881_vm2, %v2497_v17  ;;  %v4022_v17 = vld [vmem:[%s11297_s3 + $0x3e0] sm:$0xff]  ;;  %4897 = vmatpush.msra.mxu0 %v4047_v23  ;;  %4670 = vmatmul.f32.gmra.mxu3 %v3728_v28  ;;  %v4412_v7 = vadd.f32 %v8545_v37, %v4347_v16  ;;  %v4045_v23 = vld [vmem:[%s11297_s3 + $0x498] sm:$0xff] }
 0x4d4   :  { %v2672_v50 = vld.sshfl [vmem:[#allocation1] sm:$0xff pattern:$0x75316420]  ;;  %4760 = vmatpush.msra.mxu2 %v4022_v17  ;;  %v4020_v17 = vld [vmem:[%s11297_s3 + $0x3d0] sm:$0xff]  ;;  %1975 = vst.msk [vmem:[#allocation2 + $0x8d8] sm:$0xff] %vm881_vm2, %v8553_v43 }
 0x4d5   :  { %2676 = vst [vmem:[#allocation1] ss:$2 sm:$0xff] %v11829_v32  ;;  %4617 = vmatmul.f32.gmra.mxu2 %v3827_v60  ;;  %4723 = vmatmul.f32.gmra.mxu1 %v3629_v56  ;;  %v4349_v32 = vpop.f32.mrf.mxu0  ;;  %v4018_v16 = vld [vmem:[%s11297_s3 + $0x3c0] sm:$0xff]  ;;  %v4043_v56 = vld [vmem:[%s11297_s3 + $0x488] sm:$0xff] }
 0x4d6   :  { %2677 = vst [vmem:[#allocation1 + $0x1] ss:$2 sm:$0xff] %v11830_v6  ;;  %4761 = vmatpush.msra.mxu2 %v4021_v63  ;;  %4898 = vmatpush.msra.mxu0 %v4046_v5  ;;  %v8675_v6 = vpop.f32.mrf.mxu2  ;;  %v4019_v5 = vld [vmem:[%s11297_s3 + $0x3c8] sm:$0xff]  ;;  %v4044_v63 = vld [vmem:[%s11297_s3 + $0x490] sm:$0xff] }
 0x4d7   :  { %2720 = vst.msk [vmem:[#allocation2 + $0x3a0] sm:$0xff] %vm881_vm2, %v2672_v50  ;;  %v4476_v60 = vpop.f32.mrf.mxu3  ;;  %v2197_v37 = vld.sshfl [vmem:[#allocation1 + $0x20] sm:$0xff pattern:$0x75316420] }
 0x4d8   :  { %v8678_v50 = vadd.f32 %v4476_v60, %v4412_v7  ;;  %4762 = vmatpush.msra.mxu2 %v4020_v17  ;;  %4899 = vmatpush.msra.mxu0 %v4045_v23  ;;  %v8687_v28 = vpop.f32.mrf.mxu1  ;;  %2203 = vst [vmem:[#allocation1 + $0x20] ss:$2 sm:$0xff] %v11817_v59  ;;  %v3852_v7 = vld [vmem:[#allocation2 + $0xb10] sm:$0xff]  ;;  %v3753_v17 = vld [vmem:[#allocation2 + $0x7f8] sm:$0xff]  ;;  %v4350_v23 = vadd.f32 %v8482_v34, %v4349_v32 }
 0x4d9   :  { %v2509_v24 = vld.sshfl [vmem:[#allocation1 + $0x10] sm:$0xff pattern:$0x75316420]  ;;  %2204 = vst [vmem:[#allocation1 + $0x21] ss:$2 sm:$0xff] %v11818_v44  ;;  %v4017_v60 = vld [vmem:[%s11297_s3 + $0x3b8] sm:$0xff] }
 0x4da   :  { %2548 = vst [vmem:[#allocation1 + $0x10] ss:$2 sm:$0xff] %v11823_v42  ;;  %4763 = vmatpush.msra.mxu2 %v4019_v5  ;;  %4900 = vmatpush.msra.mxu0 %v4044_v63  ;;  %v4042_v5 = vld [vmem:[%s11297_s3 + $0x480] sm:$0xff]  ;;  %v3654_v63 = vld [vmem:[#allocation2 + $0x4e0] sm:$0xff]  ;;  %v3507_v42 = vld [vmem:[#allocation2 + $0x48] sm:$0xff]  ;;  %v4415_v32 = vadd.f32 %v8569_v12, %v4350_v23 }
 0x4db   :  { %2550 = vst [vmem:[#allocation1 + $0x11] ss:$2 sm:$0xff] %v11824_v0  ;;  %4673 = vmatmul.f32.gmra.mxu3 %v3753_v17  ;;  %v4015_v12 = vld [vmem:[%s11297_s3 + $0x3a8] sm:$0xff]  ;;  %v1947_v23 = vld.sshfl [vmem:[#allocation1 + $0x30] sm:$0xff pattern:$0x75316420] }
 0x4dc   :  { %2541 = vst.msk [vmem:[#allocation2 + $0xa98] sm:$0xff] %vm881_vm2, %v2509_v24  ;;  %4764 = vmatpush.msra.mxu2 %v4018_v16  ;;  %4901 = vmatpush.msra.mxu0 %v4043_v56 }
 0x4dd   :  { %v2684_v24 = vld.sshfl [vmem:[#allocation1] sm:$0xff pattern:$0x75316420]  ;;  %2245 = vst.msk [vmem:[#allocation2 + $0x508] sm:$0xff] %vm881_vm2, %v2197_v37  ;;  %4620 = vmatmul.f32.gmra.mxu2 %v3852_v7  ;;  %4726 = vmatmul.f32.gmra.mxu1 %v3654_v63  ;;  %v4016_v37 = vld [vmem:[%s11297_s3 + $0x3b0] sm:$0xff] }
 0x4de   :  { %2688 = vst [vmem:[#allocation1] ss:$2 sm:$0xff] %v11834_v41  ;;  %4765 = vmatpush.msra.mxu2 %v4017_v60  ;;  %4902 = vmatpush.msra.mxu0 %v4042_v5  ;;  %v8712_v56 = vpop.f32.mrf.mxu2  ;;  %v4352_v60 = vpop.f32.mrf.mxu0 }
 0x4df   :  { %2689 = vst [vmem:[#allocation1 + $0x1] ss:$2 sm:$0xff] %v11835_v26  ;;  %v4479_v7 = vpop.f32.mrf.mxu3  ;;  %4903 = vmatmul.f32.vlgmr.msra.gmra.mxu0 %v3507_v42  ;;  %v4014_v42 = vld [vmem:[%s11297_s3 + $0x3a0] sm:$0xff]  ;;  %v4353_v5 = vadd.f32 %v8482_v34, %v4352_v60  ;;  %v4012_v60 = vld [vmem:[%s11297_s3 + $0x390] sm:$0xff] }
 0x4e0   :  { %2724 = vst.msk [vmem:[#allocation2 + $0x6c0] sm:$0xff] %vm881_vm2, %v2684_v24  ;;  %v8715_v17 = vadd.f32 %v4479_v7, %v4415_v32  ;;  %4766 = vmatpush.msra.mxu2 %v4016_v37  ;;  %v8721_v63 = vpop.f32.mrf.mxu1  ;;  %v2209_v24 = vld.sshfl [vmem:[#allocation1 + $0x20] sm:$0xff pattern:$0x75316420]  ;;  %v3778_v37 = vld [vmem:[#allocation2 + $0x8c0] sm:$0xff]  ;;  %v4013_v7 = vld [vmem:[%s11297_s3 + $0x398] sm:$0xff] }
 0x4e1   :  { %2215 = vst [vmem:[#allocation1 + $0x20] ss:$2 sm:$0xff] %v8268_v15  ;;  %v3877_v32 = vld [vmem:[#allocation2 + $0xbd8] sm:$0xff]  ;;  %v4418_v26 = vadd.f32 %v8601_v39, %v4353_v5  ;;  %v4011_v39 = vld [vmem:[%s11297_s3 + $0x388] sm:$0xff] }
 0x4e2   :  { %v2560_v16 = vld.sshfl [vmem:[#allocation1 + $0x10] sm:$0xff pattern:$0x75316420]  ;;  %4767 = vmatpush.msra.mxu2 %v4015_v12  ;;  %2249 = vst.msk [vmem:[#allocation2 + $0x828] sm:$0xff] %vm881_vm2, %v2209_v24 }
 0x4e3   :  { %2565 = vst [vmem:[#allocation1 + $0x10] ss:$2 sm:$0xff] %v7931_v53  ;;  %4676 = vmatmul.f32.gmra.mxu3 %v3778_v37  ;;  %v3679_v12 = vld [vmem:[#allocation2 + $0x5a8] sm:$0xff]  ;;  %v3508_v53 = vld [vmem:[#allocation2 + $0x50] sm:$0xff] }
 0x4e4   :  { %2566 = vst [vmem:[#allocation1 + $0x11] ss:$2 sm:$0xff] %v7938_v48  ;;  %4768 = vmatpush.msra.mxu2 %v4014_v42 }
 0x4e5   :  { %2616 = vst.msk [vmem:[#allocation2 + $0x140] sm:$0xff] %vm881_vm2, %v2560_v16  ;;  %4623 = vmatmul.f32.gmra.mxu2 %v3877_v32  ;;  %4729 = vmatmul.f32.gmra.mxu1 %v3679_v12  ;;  %v4041_v12 = vld [vmem:[%s11297_s3 + $0x478] sm:$0xff] }
 0x4e6   :  { %v2696_v16 = vld.sshfl [vmem:[#allocation1] sm:$0xff pattern:$0x75316420]  ;;  %1992 = vst [vmem:[#allocation1 + $0x30] ss:$2 sm:$0xff] %v11824_v0  ;;  %4769 = vmatpush.msra.mxu2 %v4013_v7  ;;  %v8740_v24 = vpop.f32.mrf.mxu2  ;;  %4822 = vmatpush.msra.mxu3 %v4041_v12 }
 0x4e7   :  { %2728 = vst.msk [vmem:[#allocation2 + $0x9e0] sm:$0xff] %vm881_vm2, %v2696_v16  ;;  %v4482_v42 = vpop.f32.mrf.mxu3  ;;  %v11866_v7 = vld [vmem:[#allocation22_spill] sm:$0xff]  ;;  %v4356_v16 = vadd.f32 %v8482_v34, %v8388_v2  ;;  %v4040_v2 = vld [vmem:[%s11297_s3 + $0x470] sm:$0xff] }
 0x4e8   :  { %2746 = vst [vmem:[#allocation1] ss:$2 sm:$0xff] %v11797_v11  ;;  %v8743_v37 = vadd.f32 %v4482_v42, %v4418_v26  ;;  %4770 = vmatpush.msra.mxu2 %v4012_v60  ;;  %v8749_v5 = vpop.f32.mrf.mxu1  ;;  %v4010_v11 = vld [vmem:[%s11297_s3 + $0x380] sm:$0xff]  ;;  %v3803_v42 = vld [vmem:[#allocation2 + $0x988] sm:$0xff]  ;;  %4823 = vmatpush.msra.mxu3 %v4040_v2  ;;  %v3828_v2 = vld [vmem:[#allocation2 + $0xa50] sm:$0xff] }
 0x4e9   :  { %2748 = vst [vmem:[#allocation1 + $0x1] ss:$2 sm:$0xff] %v11798_v9  ;;  %v3532_v9 = vld [vmem:[#allocation2 + $0x110] sm:$0xff]  ;;  %v11867_v26 = vld [vmem:[#allocation6_spill] sm:$0xff] }
 0x4ea   :  { %4771 = vmatpush.msra.mxu2 %v4011_v39  ;;  %1994 = vst [vmem:[#allocation1 + $0x31] ss:$2 sm:$0xff] %v11867_v26  ;;  %v3505_v60 = vld [vmem:[#allocation2 + $0x38] sm:$0xff]  ;;  %4906 = vmatmul.f32.gmra.mxu0 %v3532_v9  ;;  %v3704_v39 = vld [vmem:[#allocation2 + $0x670] sm:$0xff]  ;;  %v4039_v9 = vld [vmem:[%s11297_s3 + $0x468] sm:$0xff] }
 0x4eb   :  { %v2572_v32 = vld.sshfl [vmem:[#allocation1 + $0x10] sm:$0xff pattern:$0x75316420]  ;;  %2216 = vst [vmem:[#allocation1 + $0x21] ss:$2 sm:$0xff] %v8289_v4  ;;  %4679 = vmatmul.f32.gmra.mxu3 %v3803_v42  ;;  %v4359_v42 = vadd.f32 %v8482_v34, %v8418_v46 }
 0x4ec   :  { %2577 = vst [vmem:[#allocation1 + $0x10] ss:$2 sm:$0xff] %v11832_v54  ;;  %4772 = vmatpush.msra.mxu2 %v4010_v11  ;;  %4824 = vmatpush.msra.mxu3 %v4039_v9  ;;  %v3557_v9 = vld [vmem:[#allocation2 + $0x1d8] sm:$0xff]  ;;  %v4036_v46 = vld [vmem:[%s11297_s3 + $0x450] sm:$0xff] }
 0x4ed   :  { %2578 = vst [vmem:[#allocation1 + $0x11] ss:$2 sm:$0xff] %v11866_v7  ;;  %4773 = vmatmul.f32.vlgmr.msra.gmra.mxu2 %v3505_v60  ;;  %4732 = vmatmul.f32.gmra.mxu1 %v3704_v39  ;;  %v3530_v39 = vld [vmem:[#allocation2 + $0x100] sm:$0xff]  ;;  %v3531_v54 = vld [vmem:[#allocation2 + $0x108] sm:$0xff] }
 0x4ee   :  { %2620 = vst.msk [vmem:[#allocation2 + $0x460] sm:$0xff] %vm881_vm2, %v2572_v32  ;;  %v4421_v32 = vadd.f32 %v8635_v27, %v4356_v16  ;;  %v8775_v60 = vpop.f32.mrf.mxu2 }
 0x4ef   :  { %1979 = vst.msk [vmem:[#allocation2 + $0xbf8] sm:$0xff] %vm881_vm2, %v1947_v23  ;;  %v4485_v11 = vpop.f32.mrf.mxu3  ;;  %v4038_v23 = vld [vmem:[%s11297_s3 + $0x460] sm:$0xff] }
 0x4f0   :  { %v8773_v12 = vadd.f32 %v4485_v11, %v4421_v32  ;;  %v8777_v27 = vpop.f32.mrf.mxu1  ;;  %4825 = vmatpush.msra.mxu3 %v4038_v23  ;;  %v4037_v32 = vld [vmem:[%s11297_s3 + $0x458] sm:$0xff]  ;;  %v3729_v11 = vld [vmem:[#allocation2 + $0x738] sm:$0xff]  ;;  %v4424_v23 = vadd.f32 %v8675_v6, %v4359_v42 }
 0x4f1   :  { %v1998_v16 = vld.sshfl [vmem:[#allocation1 + $0x30] sm:$0xff pattern:$0x75316420] }
 0x4f2   :  { %2005 = vst [vmem:[#allocation1 + $0x30] ss:$2 sm:$0xff] %v7938_v48  ;;  %4826 = vmatpush.msra.mxu3 %v4037_v32  ;;  %4909 = vmatmul.f32.gmra.mxu0 %v3557_v9  ;;  %v4035_v32 = vld [vmem:[%s11297_s3 + $0x448] sm:$0xff]  ;;  %v4033_v9 = vld [vmem:[%s11297_s3 + $0x438] sm:$0xff] }
 0x4f3   :  { %2006 = vst [vmem:[#allocation1 + $0x31] ss:$2 sm:$0xff] %v8143_v22  ;;  %4682 = vmatmul.f32.gmra.mxu3 %v3828_v2  ;;  %v4034_v2 = vld [vmem:[%s11297_s3 + $0x440] sm:$0xff] }
 0x4f4   :  { %v2584_v43 = vld.sshfl [vmem:[#allocation1 + $0x10] sm:$0xff pattern:$0x75316420]  ;;  %2054 = vst.msk [vmem:[#allocation2 + $0x2a0] sm:$0xff] %vm881_vm2, %v1998_v16  ;;  %4827 = vmatpush.msra.mxu3 %v4036_v46  ;;  %v4362_v16 = vadd.f32 %v8482_v34, %v8450_v29  ;;  %v3853_v46 = vld [vmem:[#allocation2 + $0xb18] sm:$0xff] }
 0x4f5   :  { %2589 = vst [vmem:[#allocation1 + $0x10] ss:$2 sm:$0xff] %v8116_v40  ;;  %4776 = vmatmul.f32.gmra.mxu2 %v3530_v39  ;;  %4735 = vmatmul.f32.gmra.mxu1 %v3729_v11  ;;  %v3555_v11 = vld [vmem:[#allocation2 + $0x1c8] sm:$0xff] }
 0x4f6   :  { %2590 = vst [vmem:[#allocation1 + $0x11] ss:$2 sm:$0xff] %v8127_v58  ;;  %v8799_v39 = vpop.f32.mrf.mxu2  ;;  %4828 = vmatpush.msra.mxu3 %v4035_v32  ;;  %v4427_v32 = vadd.f32 %v8712_v56, %v4362_v16  ;;  %v4032_v29 = vld [vmem:[%s11297_s3 + $0x430] sm:$0xff]  ;;  %v4031_v56 = vld [vmem:[%s11297_s3 + $0x428] sm:$0xff] }
 0x4f7   :  { %2624 = vst.msk [vmem:[#allocation2 + $0x780] sm:$0xff] %vm881_vm2, %v2584_v43  ;;  %v4488_v43 = vpop.f32.mrf.mxu3 }
 0x4f8   :  { %v8797_v41 = vadd.f32 %v4488_v43, %v4424_v23  ;;  %v8804_v6 = vpop.f32.mrf.mxu1  ;;  %4829 = vmatpush.msra.mxu3 %v4034_v2  ;;  %v3754_v43 = vld [vmem:[#allocation2 + $0x800] sm:$0xff]  ;;  %v11868_v2 = vld [vmem:[#allocation24_spill] sm:$0xff] }
 0x4fa   :  { %v2010_v23 = vld.sshfl [vmem:[#allocation1 + $0x30] sm:$0xff pattern:$0x75316420]  ;;  %4830 = vmatpush.msra.mxu3 %v4033_v9  ;;  %v4030_v9 = vld [vmem:[%s11297_s3 + $0x420] sm:$0xff] }
 0x4fb   :  { %2017 = vst [vmem:[#allocation1 + $0x30] ss:$2 sm:$0xff] %v11866_v7  ;;  %4685 = vmatmul.f32.gmra.mxu3 %v3853_v46 }
 0x4fc   :  { %2018 = vst [vmem:[#allocation1 + $0x31] ss:$2 sm:$0xff] %v11868_v2  ;;  %4831 = vmatpush.msra.mxu3 %v4032_v29  ;;  %v3878_v29 = vld [vmem:[#allocation2 + $0xbe0] sm:$0xff] }
 0x4fd   :  { %v2596_v42 = vld.sshfl [vmem:[#allocation1 + $0x10] sm:$0xff pattern:$0x75316420]  ;;  %4779 = vmatmul.f32.gmra.mxu2 %v3555_v11  ;;  %4738 = vmatmul.f32.gmra.mxu1 %v3754_v43  ;;  %2058 = vst.msk [vmem:[#allocation2 + $0x5c0] sm:$0xff] %vm881_vm2, %v2010_v23  ;;  %v3582_v43 = vld [vmem:[#allocation2 + $0x2a0] sm:$0xff]  ;;  %v3580_v23 = vld [vmem:[#allocation2 + $0x290] sm:$0xff] }
 0x4fe   :  { %2649 = vst [vmem:[#allocation1 + $0x10] ss:$2 sm:$0xff] %v11809_v19  ;;  %v8826_v11 = vpop.f32.mrf.mxu2  ;;  %4832 = vmatpush.msra.mxu3 %v4031_v56  ;;  %4912 = vmatmul.f32.gmra.mxu0 %v3582_v43  ;;  %v3779_v56 = vld [vmem:[#allocation2 + $0x8c8] sm:$0xff]  ;;  %v11871_v19 = vld [vmem:[#allocation119_spill] sm:$0xff] }
 0x4ff   :  { %2651 = vst [vmem:[#allocation1 + $0x11] ss:$2 sm:$0xff] %v11811_v14  ;;  %v4491_v14 = vpop.f32.mrf.mxu3  ;;  %v4028_v43 = vld [vmem:[%s11297_s3 + $0x410] sm:$0xff] }
 0x500   :  { %2628 = vst.msk [vmem:[#allocation2 + $0xaa0] sm:$0xff] %vm881_vm2, %v2596_v42  ;;  %v8824_v42 = vadd.f32 %v4491_v14, %v4427_v32  ;;  %v8831_v16 = vpop.f32.mrf.mxu1  ;;  %4833 = vmatpush.msra.mxu3 %v4030_v9  ;;  %v4365_v14 = vadd.f32 %v8482_v34, %v8475_v49  ;;  %v4029_v32 = vld [vmem:[%s11297_s3 + $0x418] sm:$0xff] }
 0x502   :  { %4834 = vmatpush.msra.mxu3 %v4029_v32  ;;  %v4430_v49 = vadd.f32 %v8740_v24, %v4365_v14  ;;  %v4027_v14 = vld [vmem:[%s11297_s3 + $0x408] sm:$0xff] }
 0x503   :  { %v2022_v9 = vld.sshfl [vmem:[#allocation1 + $0x30] sm:$0xff pattern:$0x75316420]  ;;  %4688 = vmatmul.f32.gmra.mxu3 %v3878_v29 }
 0x504   :  { %2029 = vst [vmem:[#allocation1 + $0x30] ss:$2 sm:$0xff] %v8127_v58  ;;  %4835 = vmatpush.msra.mxu3 %v4028_v43  ;;  %v3607_v43 = vld [vmem:[#allocation2 + $0x368] sm:$0xff] }
 0x505   :  { %4782 = vmatmul.f32.gmra.mxu2 %v3580_v23  ;;  %4741 = vmatmul.f32.gmra.mxu1 %v3779_v56  ;;  %v4524_v23 = vadd.f32 %v8582_v18, %v8514_v10  ;;  %2030 = vst [vmem:[#allocation1 + $0x31] ss:$2 sm:$0xff] %v8258_v35  ;;  %v11869_v10 = vld [vmem:[#allocation112_spill] sm:$0xff] }
 0x506   :  { %v2661_v46 = vld.sshfl [vmem:[#allocation1 + $0x10] sm:$0xff pattern:$0x75316420]  ;;  %v4588_v24 = vpop.f32.mrf.mxu2  ;;  %2062 = vst.msk [vmem:[#allocation2 + $0x8e0] sm:$0xff] %vm881_vm2, %v2022_v9  ;;  %4836 = vmatpush.msra.mxu3 %v4027_v14  ;;  %4915 = vmatmul.f32.gmra.mxu0 %v3607_v43  ;;  %v11872_v14 = vld [vmem:[#allocation81_spill] sm:$0xff] }
 0x507   :  { %2666 = vst [vmem:[#allocation1 + $0x10] ss:$2 sm:$0xff] %v8157_v52  ;;  %v4320_v52 = vadd.f32 %v8482_v34, %v8308_v38  ;;  %v4494_v32 = vpop.f32.mrf.mxu3  ;;  %v8861_v29 = vadd.f32 %v4588_v24, %v4524_v23  ;;  %v4073_v23 = vld [vmem:[%s11297_s3 + $0x578] sm:$0xff]  ;;  %v3506_v24 = vld [vmem:[#allocation2 + $0x40] sm:$0xff] }
 0x508   :  { %2667 = vst [vmem:[#allocation1 + $0x11] ss:$2 sm:$0xff] %v8162_v13  ;;  %v8855_v38 = vadd.f32 %v4494_v32, %v4430_v49  ;;  %v8863_v56 = vpop.f32.mrf.mxu1  ;;  %v3605_v49 = vld [vmem:[#allocation2 + $0x358] sm:$0xff]  ;;  %v11870_v13 = vld [vmem:[#allocation31_spill] sm:$0xff]  ;;  %4952 = vmatpush.msrb.mxu1 %v4073_v23 }
 0x509   :  { %2717 = vst.msk [vmem:[#allocation2 + $0x148] sm:$0xff] %vm881_vm2, %v2661_v46  ;;  %v4385_v46 = vadd.f32 %v8301_v45, %v4320_v52  ;;  %v4026_v52 = vld [vmem:[%s11297_s3 + $0x400] sm:$0xff]  ;;  %v11873_v23 = vld [vmem:[#allocation7_spill] sm:$0xff] }
 0x50a   :  { %v2221_v45 = vld.sshfl [vmem:[#allocation1 + $0x20] sm:$0xff pattern:$0x75316420]  ;;  %4837 = vmatpush.msra.mxu3 %v4026_v52 }
 0x50b   :  { %v4450_v18 = vadd.f32 %v11869_v10, %v4385_v46  ;;  %2277 = vst [vmem:[#allocation1 + $0x20] ss:$2 sm:$0xff] %v11870_v13  ;;  %v3804_v46 = vld [vmem:[#allocation2 + $0x990] sm:$0xff]  ;;  %v4323_v10 = vadd.f32 %v8482_v34, %v11872_v14  ;;  %4838 = vmatmul.f32.vlgmr.msra.gmra.mxu3 %v3506_v24 }
 0x50c   :  { %v2034_v52 = vld.sshfl [vmem:[#allocation1 + $0x30] sm:$0xff pattern:$0x75316420]  ;;  %2253 = vst.msk [vmem:[#allocation2 + $0xb48] sm:$0xff] %vm881_vm2, %v2221_v45 }
 0x50d   :  { %v4515_v9 = vadd.f32 %v11871_v19, %v4450_v18  ;;  %4785 = vmatmul.f32.gmra.mxu2 %v3605_v49  ;;  %v4072_v19 = vld [vmem:[%s11297_s3 + $0x570] sm:$0xff]  ;;  %4744 = vmatmul.f32.gmra.mxu1 %v3804_v46  ;;  %v4527_v49 = vadd.f32 %v8610_v33, %v8531_v47  ;;  %2079 = vst [vmem:[#allocation1 + $0x30] ss:$2 sm:$0xff] %v11873_v23  ;;  %v11877_v33 = vld [vmem:[#allocation115_spill] sm:$0xff] }
 0x50e   :  { %4953 = vmatpush.msrb.mxu1 %v4072_v19  ;;  %v4591_v40 = vpop.f32.mrf.mxu2  ;;  %v11876_v47 = vld [vmem:[#allocation32_spill] sm:$0xff]  ;;  %2066 = vst.msk [vmem:[#allocation2 + $0xc00] sm:$0xff] %vm881_vm2, %v2034_v52  ;;  %v11879_v52 = vld [vmem:[#allocation111_spill] sm:$0xff] }
 0x50f   :  { %v2673_v32 = vld.sshfl [vmem:[#allocation1 + $0x10] sm:$0xff pattern:$0x75316420]  ;;  %v4580_v18 = vadd.f32 %v8775_v60, %v4515_v9  ;;  %v4644_v43 = vpop.f32.mrf.mxu3  ;;  %2279 = vst [vmem:[#allocation1 + $0x21] ss:$2 sm:$0xff] %v11876_v47 }
 0x510   :  { %2678 = vst [vmem:[#allocation1 + $0x10] ss:$2 sm:$0xff] %v11817_v59  ;;  %v4071_v59 = vld [vmem:[%s11297_s3 + $0x568] sm:$0xff]  ;;  %v11875_v9 = vld [vmem:[#allocation8_spill] sm:$0xff]  ;;  %v8895_v46 = vpop.f32.mrf.mxu1 }
 0x511   :  { %2679 = vst [vmem:[#allocation1 + $0x11] ss:$2 sm:$0xff] %v11818_v44  ;;  %v11874_v44 = vld [vmem:[#allocation68_spill] sm:$0xff]  ;;  %v8890_v60 = vadd.f32 %v4644_v43, %v4580_v18  ;;  %4954 = vmatpush.msrb.mxu1 %v4071_v59  ;;  %v3630_v43 = vld [vmem:[#allocation2 + $0x420] sm:$0xff] }
 0x512   :  { %2721 = vst.msk [vmem:[#allocation2 + $0x468] sm:$0xff] %vm881_vm2, %v2673_v32  ;;  %v4388_v14 = vadd.f32 %v11874_v44, %v4323_v10  ;;  %v8893_v32 = vadd.f32 %v4591_v40, %v4527_v49  ;;  %v4070_v44 = vld [vmem:[%s11297_s3 + $0x560] sm:$0xff]  ;;  %v11878_v19 = vld [vmem:[#allocation16_spill] sm:$0xff]  ;;  %v3632_v40 = vld [vmem:[#allocation2 + $0x430] sm:$0xff] }
 0x513   :  { %2081 = vst [vmem:[#allocation1 + $0x31] ss:$2 sm:$0xff] %v11875_v9  ;;  %v8905_v10 = vld [vmem:[%s11296_s2] ss:$0 sm:$0xff]  ;;  %4955 = vmatpush.msrb.mxu1 %v4070_v44  ;;  %v4069_v49 = vld [vmem:[%s11297_s3 + $0x558] sm:$0xff]  ;;  %4918 = vmatmul.f32.gmra.mxu0 %v3632_v40  ;;  %v4326_v44 = vadd.f32 %v8482_v34, %v11879_v52  ;;  %v4530_v40 = vadd.f32 %v8647_v31, %v8547_v3  ;;  %v11883_v31 = vld [vmem:[#allocation116_spill] sm:$0xff] }
 0x514   :  { %v4453_v24 = vadd.f32 %v11877_v33, %v4388_v14  ;;  %v237_v59 = vadd.f32 %v8905_v10, %v11878_v19  ;;  %v3829_v33 = vld [vmem:[#allocation2 + $0xa58] sm:$0xff]  ;;  %4841 = vmatmul.f32.gmra.mxu3 %v3531_v54  ;;  %v4067_v54 = vld [vmem:[%s11297_s3 + $0x548] sm:$0xff] }
 0x515   :  { %4956 = vmatpush.msrb.mxu1 %v4069_v49  ;;  %4788 = vmatmul.f32.gmra.mxu2 %v3630_v43  ;;  %v11882_v43 = vld [vmem:[#allocation82_spill] sm:$0xff] }
 0x516   :  { %v4518_v18 = vadd.f32 %v8534_v61, %v4453_v24  ;;  %v4068_v61 = vld [vmem:[%s11297_s3 + $0x550] sm:$0xff]  ;;  %4747 = vmatmul.f32.gmra.mxu1 %v3829_v33  ;;  %v8923_v24 = vrot.slane %v8143_v22, 4  ;;  %v8925_v19 = vmax.f32 %v237_v59, 0.0  ;;  %v4391_v52 = vadd.f32 %v11882_v43, %v4326_v44  ;;  %v2286_v59 = vld.sshfl [vmem:[#allocation1 + $0x20] sm:$0xff pattern:$0x75316420] }
 0x517   :  { %4957 = vmatpush.msrb.mxu1 %v4068_v61  ;;  %v4647_v34 = vpop.f32.mrf.mxu3  ;;  %v4066_v44 = vld [vmem:[%s11297_s3 + $0x540] sm:$0xff]  ;;  %v11884_v61 = vld [vmem:[#allocation109_spill] sm:$0xff]  ;;  %2342 = vst.msk [vmem:[#allocation2 + $0x1f0] sm:$0xff] %vm881_vm2, %v2286_v59 }
 0x518   :  { %v2685_v14 = vld.sshfl [vmem:[#allocation1 + $0x10] sm:$0xff pattern:$0x75316420]  ;;  %v4583_v45 = vadd.f32 %v8799_v39, %v4518_v18  ;;  %11880 = vst [vmem:[#allocation112_spill] sm:$0xff] %v8923_v24  ;;  %v4594_v39 = vpop.f32.mrf.mxu2  ;;  %v8940_v3 = vpop.f32.mrf.mxu1  ;;  %v4456_v33 = vadd.f32 %v11883_v31, %v4391_v52  ;;  %v3854_v52 = vld [vmem:[#allocation2 + $0xb20] sm:$0xff] }
 0x519   :  { %2690 = vst [vmem:[#allocation1 + $0x10] ss:$2 sm:$0xff] %v8268_v15  ;;  %4958 = vmatpush.msrb.mxu1 %v4067_v54  ;;  %v3655_v54 = vld [vmem:[#allocation2 + $0x4e8] sm:$0xff]  ;;  %v8994_v15 = vrot.slane %v8258_v35, 4 }
 0x51a   :  { %11881 = vst [vmem:[#allocation119_spill] sm:$0xff] %v8925_v19  ;;  %v2085_v49 = vld.sshfl [vmem:[#allocation1 + $0x30] sm:$0xff pattern:$0x75316420]  ;;  %v8935_v18 = vadd.f32 %v4647_v34, %v4583_v45  ;;  %v3657_v45 = vld [vmem:[#allocation2 + $0x4f8] sm:$0xff]  ;;  %v4521_v43 = vadd.f32 %v8555_v57, %v4456_v33  ;;  %v4533_v33 = vadd.f32 %v8687_v28, %v8576_v36 }
 0x51b   :  { %2725 = vst.msk [vmem:[#allocation2 + $0x788] sm:$0xff] %vm881_vm2, %v2685_v14  ;;  %v8938_v14 = vadd.f32 %v4594_v39, %v4530_v40  ;;  %4959 = vmatpush.msrb.mxu1 %v4066_v44  ;;  %v11885_v34 = vld [vmem:[#allocation110_spill] sm:$0xff]  ;;  %v4065_v40 = vld [vmem:[%s11297_s3 + $0x538] sm:$0xff]  ;;  %4921 = vmatmul.f32.gmra.mxu0 %v3657_v45  ;;  %v4064_v31 = vld [vmem:[%s11297_s3 + $0x530] sm:$0xff] }
 0x51c   :  { %2691 = vst [vmem:[#allocation1 + $0x11] ss:$2 sm:$0xff] %v8289_v4  ;;  %v3556_v39 = vld [vmem:[#allocation2 + $0x1d0] sm:$0xff]  ;;  %v4586_v57 = vadd.f32 %v8826_v11, %v4521_v43  ;;  %v4062_v36 = vld [vmem:[%s11297_s3 + $0x520] sm:$0xff]  ;;  %v11887_v28 = vld [vmem:[#allocation40_spill] sm:$0xff] }
 0x51d   :  { %2092 = vst [vmem:[#allocation1 + $0x30] ss:$2 sm:$0xff] %v8923_v24  ;;  %4960 = vmatpush.msrb.mxu1 %v4065_v40  ;;  %4791 = vmatmul.f32.gmra.mxu2 %v3655_v54  ;;  %v11886_v11 = vld [vmem:[#allocation25_spill] sm:$0xff] }
 0x51e   :  { %2093 = vst [vmem:[#allocation1 + $0x31] ss:$2 sm:$0xff] %v8925_v19  ;;  %4750 = vmatmul.f32.gmra.mxu1 %v3854_v52  ;;  %4844 = vmatmul.f32.gmra.mxu3 %v3556_v39  ;;  %v3682_v52 = vld [vmem:[#allocation2 + $0x5c0] sm:$0xff]  ;;  %v11888_v39 = vld [vmem:[#allocation33_spill] sm:$0xff] }
 0x51f   :  { %2292 = vst [vmem:[#allocation1 + $0x20] ss:$2 sm:$0xff] %v11884_v61  ;;  %4961 = vmatpush.msrb.mxu1 %v4064_v31  ;;  %v4650_v44 = vpop.f32.mrf.mxu3  ;;  %v4061_v31 = vld [vmem:[%s11297_s3 + $0x518] sm:$0xff] }
 0x520   :  { %2293 = vst [vmem:[#allocation1 + $0x21] ss:$2 sm:$0xff] %v11885_v34  ;;  %v4597_v45 = vpop.f32.mrf.mxu2  ;;  %v8964_v40 = vadd.f32 %v4650_v44, %v4586_v57  ;;  %v3680_v57 = vld [vmem:[#allocation2 + $0x5b0] sm:$0xff]  ;;  %v3879_v44 = vld [vmem:[#allocation2 + $0xbe8] sm:$0xff] }
 0x521   :  { %2141 = vst.msk [vmem:[#allocation2 + $0x2a8] sm:$0xff] %vm881_vm2, %v2085_v49  ;;  %v4063_v49 = vld [vmem:[%s11297_s3 + $0x528] sm:$0xff]  ;;  %v8966_v54 = vadd.f32 %v4597_v45, %v4533_v33  ;;  %v11889_v33 = vld [vmem:[#allocation34_spill] sm:$0xff]  ;;  %v4060_v45 = vld [vmem:[%s11297_s3 + $0x510] sm:$0xff] }
 0x522   :  { %4962 = vmatpush.msrb.mxu1 %v4063_v49  ;;  %v8968_v4 = vpop.f32.mrf.mxu1  ;;  %v3581_v49 = vld [vmem:[#allocation2 + $0x298] sm:$0xff]  ;;  %11890 = vst [vmem:[#allocation81_spill] sm:$0xff] %v8994_v15 }
 0x523   :  { %4924 = vmatmul.f32.gmra.mxu0 %v3682_v52 }
 0x524   :  { %4963 = vmatpush.msrb.mxu1 %v4062_v36  ;;  %v4536_v36 = vadd.f32 %v8721_v63, %v8604_v25  ;;  %v11891_v25 = vld [vmem:[#allocation14_spill] sm:$0xff] }
 0x525   :  { %v2097_v59 = vld.sshfl [vmem:[#allocation1 + $0x30] sm:$0xff pattern:$0x75316420]  ;;  %4794 = vmatmul.f32.gmra.mxu2 %v3680_v57  ;;  %v291_v63 = vadd.f32 %v8905_v10, %v11891_v25  ;;  %v4539_v25 = vadd.f32 %v8749_v5, %v8638_v21  ;;  %v11897_v21 = vld [vmem:[#allocation37_spill] sm:$0xff] }
 0x526   :  { %2104 = vst [vmem:[#allocation1 + $0x30] ss:$2 sm:$0xff] %v11886_v11  ;;  %4964 = vmatpush.msrb.mxu1 %v4061_v31  ;;  %4847 = vmatmul.f32.gmra.mxu3 %v3581_v49  ;;  %v4059_v31 = vld [vmem:[%s11297_s3 + $0x508] sm:$0xff] }
 0x527   :  { %2105 = vst [vmem:[#allocation1 + $0x31] ss:$2 sm:$0xff] %v11887_v28  ;;  %v2298_v43 = vld.sshfl [vmem:[#allocation1 + $0x20] sm:$0xff pattern:$0x75316420]  ;;  %4753 = vmatmul.f32.gmra.mxu1 %v3879_v44  ;;  %v4653_v52 = vpop.f32.mrf.mxu3  ;;  %v9009_v10 = vmax.f32 %v291_v63, 0.0 }
 0x528   :  { %2304 = vst [vmem:[#allocation1 + $0x20] ss:$2 sm:$0xff] %v11888_v39  ;;  %4965 = vmatpush.msrb.mxu1 %v4060_v45  ;;  %v4600_v57 = vpop.f32.mrf.mxu2  ;;  %v4058_v45 = vld [vmem:[%s11297_s3 + $0x500] sm:$0xff]  ;;  %v3732_v63 = vld [vmem:[#allocation2 + $0x750] sm:$0xff] }
 0x529   :  { %2305 = vst [vmem:[#allocation1 + $0x21] ss:$2 sm:$0xff] %v11889_v33  ;;  %v8996_v44 = vadd.f32 %v4600_v57, %v4536_v36  ;;  %v11892_v36 = vld [vmem:[#allocation113_spill] sm:$0xff]  ;;  %v3606_v57 = vld [vmem:[#allocation2 + $0x360] sm:$0xff]  ;;  %v11903_v33 = vld [vmem:[#allocation118_spill] sm:$0xff] }
 0x52a   :  { %2145 = vst.msk [vmem:[#allocation2 + $0x5c8] sm:$0xff] %vm881_vm2, %v2097_v59  ;;  %v8991_v59 = vadd.f32 %v4653_v52, %v8861_v29  ;;  %4966 = vmatpush.msrb.mxu1 %v4059_v31  ;;  %v3707_v29 = vld [vmem:[#allocation2 + $0x688] sm:$0xff]  ;;  %v3705_v31 = vld [vmem:[#allocation2 + $0x678] sm:$0xff] }
 0x52b   :  { %2346 = vst.msk [vmem:[#allocation2 + $0x510] sm:$0xff] %vm881_vm2, %v2298_v43  ;;  %v8998_v43 = vpop.f32.mrf.mxu1  ;;  %4927 = vmatmul.f32.gmra.mxu0 %v3707_v29 }
 0x52c   :  { %4967 = vmatpush.msrb.mxu1 %v4058_v45  ;;  %11894 = vst [vmem:[#allocation68_spill] sm:$0xff] %v9009_v10 }
 0x52d   :  { %4797 = vmatmul.f32.gmra.mxu2 %v3705_v31 }
 0x52e   :  { %v2109_v49 = vld.sshfl [vmem:[#allocation1 + $0x30] sm:$0xff pattern:$0x75316420]  ;;  %4850 = vmatmul.f32.gmra.mxu3 %v3606_v57  ;;  %v3533_v57 = vld [vmem:[#allocation2 + $0x118] sm:$0xff] }
 0x52f   :  { %2116 = vst [vmem:[#allocation1 + $0x30] ss:$2 sm:$0xff] %v8994_v15  ;;  %4968 = vmatmul.f32.vlgmr.msrb.gmra.mxu1 %v3508_v53  ;;  %v4656_v45 = vpop.f32.mrf.mxu3 }
 0x530   :  { %v2310_v52 = vld.sshfl [vmem:[#allocation1 + $0x20] sm:$0xff pattern:$0x75316420]  ;;  %2149 = vst.msk [vmem:[#allocation2 + $0x8e8] sm:$0xff] %vm881_vm2, %v2109_v49  ;;  %v4603_v49 = vpop.f32.mrf.mxu2  ;;  %v9016_v29 = vadd.f32 %v4656_v45, %v8893_v32  ;;  %v4542_v32 = vadd.f32 %v8777_v27, %v8678_v50  ;;  %v3755_v27 = vld [vmem:[#allocation2 + $0x808] sm:$0xff] }
 0x531   :  { %2316 = vst [vmem:[#allocation1 + $0x20] ss:$2 sm:$0xff] %v11892_v36  ;;  %v9018_v31 = vadd.f32 %v4603_v49, %v4539_v25  ;;  %v3757_v50 = vld [vmem:[#allocation2 + $0x818] sm:$0xff]  ;;  %v4545_v36 = vadd.f32 %v8804_v6, %v8715_v17  ;;  %v3782_v6 = vld [vmem:[#allocation2 + $0x8e0] sm:$0xff] }
 0x532   :  { %2317 = vst [vmem:[#allocation1 + $0x21] ss:$2 sm:$0xff] %v11893_v20  ;;  %v11902_v20 = vld [vmem:[#allocation117_spill] sm:$0xff] }
 0x533   :  { %2350 = vst.msk [vmem:[#allocation2 + $0x830] sm:$0xff] %vm881_vm2, %v2310_v52  ;;  %v9020_v51 = vpop.f32.mrf.mxu1  ;;  %4930 = vmatmul.f32.gmra.mxu0 %v3732_v63  ;;  %v3631_v52 = vld [vmem:[#allocation2 + $0x428] sm:$0xff] }
 0x534   :  { %2117 = vst [vmem:[#allocation1 + $0x31] ss:$2 sm:$0xff] %v9009_v10 }
 0x535   :  { %11895 = vst [vmem:[#allocation115_spill] sm:$0xff] %v9018_v31  ;;  %4800 = vmatmul.f32.gmra.mxu2 %v3730_v55  ;;  %v11898_v55 = vld [vmem:[#allocation44_spill] sm:$0xff]  ;;  %v6079_v31 = vrot.slane %v8994_v15, 9 }
 0x536   :  { %4853 = vmatmul.f32.gmra.mxu3 %v3631_v52  ;;  %v9036_v52 = vrot.slane %v8925_v19, 4 }
 0x537   :  { %4971 = vmatmul.f32.gmra.mxu1 %v3533_v57  ;;  %v4659_v25 = vpop.f32.mrf.mxu3  ;;  %v2156_v57 = vrot.slane %v8925_v19, 5 }
 0x538   :  { %v4606_v45 = vpop.f32.mrf.mxu2  ;;  %v9028_v49 = vadd.f32 %v4659_v25, %v8938_v14  ;;  %11900 = vst [vmem:[#allocation111_spill] sm:$0xff] %v9036_v52  ;;  %v3656_v14 = vld [vmem:[#allocation2 + $0x4f0] sm:$0xff] }
 0x539   :  { %v2322_v53 = vld.sshfl [vmem:[#allocation1 + $0x20] sm:$0xff pattern:$0x75316420]  ;;  %v9031_v63 = vadd.f32 %v4606_v45, %v4542_v32  ;;  %v2158_v25 = vrot.slane %v2156_v57, 4  ;;  %v2159_v32 = vrot.slane %v9036_v52, 5 }
 0x53a   :  { %2378 = vst [vmem:[#allocation1 + $0x20] ss:$2 sm:$0xff] %v11896_v62  ;;  %v6078_v62 = vrot.slane %v8923_v24, 9 }
 0x53b   :  { %2380 = vst [vmem:[#allocation1 + $0x21] ss:$2 sm:$0xff] %v11897_v21  ;;  %v2121_v5 = vld.sshfl [vmem:[#allocation1 + $0x30] sm:$0xff pattern:$0x75316420]  ;;  %v9033_v1 = vpop.f32.mrf.mxu1  ;;  %v11901_v21 = vld [vmem:[#allocation45_spill] sm:$0xff]  ;;  %4933 = vmatmul.f32.gmra.mxu0 %v3757_v50  ;;  %v9061_v17 = vsel %vm6962_vm5, %v2158_v25, %v2159_v32 }
 0x53c   :  { %2354 = vst.msk [vmem:[#allocation2 + $0xb50] sm:$0xff] %vm881_vm2, %v2322_v53  ;;  %v3558_v53 = vld [vmem:[#allocation2 + $0x1e0] sm:$0xff]  ;;  %v9052_v34 = vsel %vm6962_vm5, %v6078_v62, %v2156_v57  ;;  %v3780_v62 = vld [vmem:[#allocation2 + $0x8d0] sm:$0xff]  ;;  %v3583_v57 = vld [vmem:[#allocation2 + $0x2a8] sm:$0xff] }
 0x53d   :  { %2180 = vst [vmem:[#allocation1 + $0x30] ss:$2 sm:$0xff] %v11898_v55  ;;  %4803 = vmatmul.f32.gmra.mxu2 %v3755_v27  ;;  %v11907_v32 = vld [vmem:[#allocation38_spill] sm:$0xff] }
 0x53e   :  { %11899 = vst [vmem:[#allocation16_spill] sm:$0xff] %v9031_v63  ;;  %4856 = vmatmul.f32.gmra.mxu3 %v3656_v14  ;;  %v4120_v63 = vld [vmem:[%s11297_s3 + $0x6f0] sm:$0xff] }
 0x53f   :  { %2182 = vst [vmem:[#allocation1 + $0x31] ss:$2 sm:$0xff] %v11901_v21  ;;  %4974 = vmatmul.f32.gmra.mxu1 %v3558_v53 }
 0x540   :  { %2153 = vst.msk [vmem:[#allocation2 + $0xc08] sm:$0xff] %vm881_vm2, %v2121_v5  ;;  %v4662_v5 = vpop.f32.mrf.mxu3  ;;  %v4609_v50 = vpop.f32.mrf.mxu2 }
 0x541   :  { %v9048_v27 = vadd.f32 %v4662_v5, %v8966_v54  ;;  %11905 = vst [vmem:[#allocation82_spill] sm:$0xff] %v9052_v34  ;;  %v9055_v53 = vadd.f32 %v4609_v50, %v4545_v36  ;;  %v3681_v54 = vld [vmem:[#allocation2 + $0x5b8] sm:$0xff] }
 0x542   :  { %v2387_v45 = vld.sshfl [vmem:[#allocation1 + $0x20] sm:$0xff pattern:$0x75316420]  ;;  %11906 = vst [vmem:[#allocation116_spill] sm:$0xff] %v9061_v17 }
 0x543   :  { %2393 = vst [vmem:[#allocation1 + $0x20] ss:$2 sm:$0xff] %v11902_v20  ;;  %v9057_v20 = vpop.f32.mrf.mxu1  ;;  %4936 = vmatmul.f32.gmra.mxu0 %v3782_v6 }
 0x544   :  { %2394 = vst [vmem:[#allocation1 + $0x21] ss:$2 sm:$0xff] %v11903_v33  ;;  %v11908_v33 = vld [vmem:[#allocation39_spill] sm:$0xff] }
 0x545   :  { %2443 = vst.msk [vmem:[#allocation2 + $0x1f8] sm:$0xff] %vm881_vm2, %v2387_v45  ;;  %4806 = vmatmul.f32.gmra.mxu2 %v3780_v62  ;;  %v4548_v45 = vadd.f32 %v8831_v16, %v8743_v37  ;;  %v9079_v62 = vrot.slane %v9009_v10, 4  ;;  %v11910_v37 = vld [vmem:[#allocation51_spill] sm:$0xff]  ;;  %v3807_v16 = vld [vmem:[#allocation2 + $0x9a8] sm:$0xff] }
 0x546   :  { %v2186_v14 = vld.sshfl [vmem:[#allocation1 + $0x30] sm:$0xff pattern:$0x75316420]  ;;  %4859 = vmatmul.f32.gmra.mxu3 %v3681_v54 }
 0x547   :  { %2193 = vst [vmem:[#allocation1 + $0x30] ss:$2 sm:$0xff] %v9052_v34  ;;  %4977 = vmatmul.f32.gmra.mxu1 %v3583_v57  ;;  %v2163_v57 = vrot.slane %v9009_v10, 5  ;;  %v2166_v61 = vrot.slane %v9079_v62, 5 }
 0x548   :  { %2194 = vst [vmem:[#allocation1 + $0x31] ss:$2 sm:$0xff] %v9061_v17  ;;  %v4665_v25 = vpop.f32.mrf.mxu3  ;;  %v4612_v5 = vpop.f32.mrf.mxu2 }
 0x549   :  { %2242 = vst.msk [vmem:[#allocation2 + $0x2b0] sm:$0xff] %vm881_vm2, %v2186_v14  ;;  %v9070_v50 = vadd.f32 %v4665_v25, %v8996_v44  ;;  %v9073_v14 = vadd.f32 %v4612_v5, %v4548_v45  ;;  %v3805_v44 = vld [vmem:[#allocation2 + $0x998] sm:$0xff]  ;;  %v4089_v45 = vld [vmem:[%s11297_s3 + $0x5f8] sm:$0xff]  ;;  %v3706_v25 = vld [vmem:[#allocation2 + $0x680] sm:$0xff] }
 0x54a   :  { %11909 = vst [vmem:[#allocation14_spill] sm:$0xff] %v9079_v62  ;;  %v3608_v5 = vld [vmem:[#allocation2 + $0x370] sm:$0xff]  ;;  %5017 = vmatpush.msrb.mxu2 %v4089_v45  ;;  %v4118_v45 = vld [vmem:[%s11297_s3 + $0x6e0] sm:$0xff] }
 0x54b   :  { %v2399_v36 = vld.sshfl [vmem:[#allocation1 + $0x20] sm:$0xff pattern:$0x75316420]  ;;  %v9075_v6 = vpop.f32.mrf.mxu1  ;;  %4939 = vmatmul.f32.gmra.mxu0 %v3807_v16  ;;  %v4088_v16 = vld [vmem:[%s11297_s3 + $0x5f0] sm:$0xff] }
 0x54c   :  { %2405 = vst [vmem:[#allocation1 + $0x20] ss:$2 sm:$0xff] %v11907_v32  ;;  %v11911_v32 = vld [vmem:[#allocation52_spill] sm:$0xff]  ;;  %5018 = vmatpush.msrb.mxu2 %v4088_v16 }
 0x54d   :  { %2406 = vst [vmem:[#allocation1 + $0x21] ss:$2 sm:$0xff] %v11908_v33  ;;  %4809 = vmatmul.f32.gmra.mxu2 %v3805_v44  ;;  %v2165_v33 = vrot.slane %v2163_v57, 4 }
 0x54e   :  { %2447 = vst.msk [vmem:[#allocation2 + $0x518] sm:$0xff] %vm881_vm2, %v2399_v36  ;;  %v4121_v36 = vld [vmem:[%s11297_s3 + $0x6f8] sm:$0xff]  ;;  %4862 = vmatmul.f32.gmra.mxu3 %v3706_v25 }
 0x54f   :  { %v2198_v54 = vld.sshfl [vmem:[#allocation1 + $0x30] sm:$0xff pattern:$0x75316420]  ;;  %5147 = vmatpush.msrb.mxu0 %v4121_v36  ;;  %4980 = vmatmul.f32.gmra.mxu1 %v3608_v5  ;;  %v4087_v5 = vld [vmem:[%s11297_s3 + $0x5e8] sm:$0xff] }
 0x550   :  { %2205 = vst [vmem:[#allocation1 + $0x30] ss:$2 sm:$0xff] %v11910_v37  ;;  %v9101_v44 = vpop.f32.mrf.mxu3  ;;  %v4615_v25 = vpop.f32.mrf.mxu2  ;;  %v11912_v37 = vld [vmem:[#allocation120_spill] sm:$0xff]  ;;  %5019 = vmatpush.msrb.mxu2 %v4087_v5 }
 0x551   :  { %2206 = vst [vmem:[#allocation1 + $0x31] ss:$2 sm:$0xff] %v11911_v32  ;;  %5148 = vmatpush.msrb.mxu0 %v4120_v63  ;;  %v4119_v32 = vld [vmem:[%s11297_s3 + $0x6e8] sm:$0xff]  ;;  %v4086_v63 = vld [vmem:[%s11297_s3 + $0x5e0] sm:$0xff]  ;;  %v4116_v5 = vld [vmem:[%s11297_s3 + $0x6d0] sm:$0xff] }
 0x552   :  { %2246 = vst.msk [vmem:[#allocation2 + $0x5d0] sm:$0xff] %vm881_vm2, %v2198_v54  ;;  %v4551_v54 = vadd.f32 %v8863_v56, %v8773_v12  ;;  %v9115_v12 = vsel %vm6962_vm5, %v2165_v33, %v2166_v61  ;;  %v3832_v61 = vld [vmem:[#allocation2 + $0xa70] sm:$0xff]  ;;  %5020 = vmatpush.msrb.mxu2 %v4086_v63 }
 0x553   :  { %5149 = vmatpush.msrb.mxu0 %v4119_v32  ;;  %11913 = vst [vmem:[#allocation122_spill] sm:$0xff] %v9115_v12  ;;  %v9117_v56 = vpop.f32.mrf.mxu1  ;;  %v9128_v32 = vsel %vm6962_vm5, %v6079_v31, %v2163_v57  ;;  %v4085_v33 = vld [vmem:[%s11297_s3 + $0x5d8] sm:$0xff]  ;;  %v3830_v31 = vld [vmem:[#allocation2 + $0xa60] sm:$0xff]  ;;  %v3731_v57 = vld [vmem:[#allocation2 + $0x748] sm:$0xff] }
 0x554   :  { %v2411_v36 = vld.sshfl [vmem:[#allocation1 + $0x20] sm:$0xff pattern:$0x75316420]  ;;  %v9110_v17 = vadd.f32 %v4615_v25, %v4551_v54  ;;  %11914 = vst [vmem:[#allocation123_spill] sm:$0xff] %v9128_v32  ;;  %4942 = vmatmul.f32.gmra.mxu0 %v3832_v61  ;;  %v4117_v54 = vld [vmem:[%s11297_s3 + $0x6d8] sm:$0xff]  ;;  %v4084_v25 = vld [vmem:[%s11297_s3 + $0x5d0] sm:$0xff]  ;;  %5021 = vmatpush.msrb.mxu2 %v4085_v33 }
 0x555   :  { %2417 = vst [vmem:[#allocation1 + $0x20] ss:$2 sm:$0xff] %v11912_v37  ;;  %5150 = vmatpush.msrb.mxu0 %v4118_v45  ;;  %4812 = vmatmul.f32.gmra.mxu2 %v3830_v31  ;;  %v4554_v45 = vadd.f32 %v8895_v46, %v8797_v41  ;;  %v4082_v41 = vld [vmem:[%s11297_s3 + $0x5c0] sm:$0xff] }
 0x556   :  { %2418 = vst [vmem:[#allocation1 + $0x21] ss:$2 sm:$0xff] %v8574_v8  ;;  %4865 = vmatmul.f32.gmra.mxu3 %v3731_v57  ;;  %5022 = vmatpush.msrb.mxu2 %v4084_v25  ;;  %v4114_v46 = vld [vmem:[%s11297_s3 + $0x6c0] sm:$0xff] }
 0x557   :  { %2451 = vst.msk [vmem:[#allocation2 + $0x838] sm:$0xff] %vm881_vm2, %v2411_v36  ;;  %5151 = vmatpush.msrb.mxu0 %v4117_v54  ;;  %v3633_v36 = vld [vmem:[#allocation2 + $0x438] sm:$0xff]  ;;  %v4115_v54 = vld [vmem:[%s11297_s3 + $0x6c8] sm:$0xff] }
 0x558   :  { %v2210_v16 = vld.sshfl [vmem:[#allocation1 + $0x30] sm:$0xff pattern:$0x75316420]  ;;  %4983 = vmatmul.f32.gmra.mxu1 %v3633_v36  ;;  %v9147_v63 = vpop.f32.mrf.mxu3  ;;  %v4618_v61 = vpop.f32.mrf.mxu2  ;;  %v3857_v25 = vld [vmem:[#allocation2 + $0xb38] sm:$0xff] }
 0x559   :  { %2217 = vst [vmem:[#allocation1 + $0x30] ss:$2 sm:$0xff] %v9128_v32  ;;  %5152 = vmatpush.msrb.mxu0 %v4116_v5  ;;  %v9155_v57 = vadd.f32 %v4618_v61, %v4554_v45  ;;  %v4081_v5 = vld [vmem:[%s11297_s3 + $0x5b8] sm:$0xff]  ;;  %v11915_v45 = vld [vmem:[#allocation60_spill] sm:$0xff] }
 0x55a   :  { %2218 = vst [vmem:[#allocation1 + $0x31] ss:$2 sm:$0xff] %v9115_v12  ;;  %v3855_v61 = vld [vmem:[#allocation2 + $0xb28] sm:$0xff] }
 0x55b   :  { %2250 = vst.msk [vmem:[#allocation2 + $0x8f0] sm:$0xff] %vm881_vm2, %v2210_v16  ;;  %v4083_v16 = vld [vmem:[%s11297_s3 + $0x5c8] sm:$0xff]  ;;  %5153 = vmatpush.msrb.mxu0 %v4115_v54  ;;  %v9166_v36 = vpop.f32.mrf.mxu1  ;;  %v3756_v54 = vld [vmem:[#allocation2 + $0x810] sm:$0xff] }
 0x55c   :  { %5023 = vmatpush.msrb.mxu2 %v4083_v16  ;;  %4945 = vmatmul.f32.gmra.mxu0 %v3857_v25  ;;  %v4113_v16 = vld [vmem:[%s11297_s3 + $0x6b8] sm:$0xff]  ;;  %v4112_v25 = vld [vmem:[%s11297_s3 + $0x6b0] sm:$0xff] }
 0x55d   :  { %v2423_v31 = vld.sshfl [vmem:[#allocation1 + $0x20] sm:$0xff pattern:$0x75316420]  ;;  %5154 = vmatpush.msrb.mxu0 %v4114_v46  ;;  %4815 = vmatmul.f32.gmra.mxu2 %v3855_v61  ;;  %v3658_v46 = vld [vmem:[#allocation2 + $0x500] sm:$0xff] }
 0x55e   :  { %2465 = vst [vmem:[#allocation1 + $0x20] ss:$2 sm:$0xff] %v11824_v0  ;;  %5024 = vmatpush.msrb.mxu2 %v4082_v41  ;;  %4868 = vmatmul.f32.gmra.mxu3 %v3756_v54  ;;  %v4080_v0 = vld [vmem:[%s11297_s3 + $0x5b0] sm:$0xff]  ;;  %v4557_v41 = vadd.f32 %v8940_v3, %v8824_v42  ;;  %v4079_v54 = vld [vmem:[%s11297_s3 + $0x5a8] sm:$0xff]  ;;  %v3761_v30 = vld [vmem:[#allocation2 + $0x838] sm:$0xff] }
 0x55f   :  { %2467 = vst [vmem:[#allocation1 + $0x21] ss:$2 sm:$0xff] %v11867_v26  ;;  %v11916_v26 = vld [vmem:[#allocation61_spill] sm:$0xff]  ;;  %5155 = vmatpush.msrb.mxu0 %v4113_v16  ;;  %v4111_v42 = vld [vmem:[%s11297_s3 + $0x6a8] sm:$0xff] }
 0x560   :  { %2455 = vst.msk [vmem:[#allocation2 + $0xb58] sm:$0xff] %vm881_vm2, %v2423_v31  ;;  %v2257_v31 = vrot.slane %v8925_v19, 6  ;;  %4986 = vmatmul.f32.gmra.mxu1 %v3658_v46  ;;  %5025 = vmatpush.msrb.mxu2 %v4081_v5  ;;  %v4621_v8 = vpop.f32.mrf.mxu2  ;;  %v4674_v61 = vpop.f32.mrf.mxu3  ;;  %v2260_v5 = vrot.slane %v9036_v52, 6  ;;  %v4078_v46 = vld [vmem:[%s11297_s3 + $0x5a0] sm:$0xff] }
 0x561   :  { %v2222_v33 = vld.sshfl [vmem:[#allocation1 + $0x30] sm:$0xff pattern:$0x75316420]  ;;  %v9189_v37 = vadd.f32 %v4621_v8, %v4557_v41  ;;  %5156 = vmatpush.msrb.mxu0 %v4112_v25  ;;  %v6080_v8 = vrot.slane %v8923_v24, 10  ;;  %v3882_v41 = vld [vmem:[#allocation2 + $0xc00] sm:$0xff] }
 0x562   :  { %2281 = vst [vmem:[#allocation1 + $0x30] ss:$2 sm:$0xff] %v11915_v45  ;;  %5026 = vmatpush.msrb.mxu2 %v4080_v0  ;;  %v2259_v3 = vrot.slane %v2257_v31, 4  ;;  %v4110_v0 = vld [vmem:[%s11297_s3 + $0x6a0] sm:$0xff] }
 0x563   :  { %2283 = vst [vmem:[#allocation1 + $0x31] ss:$2 sm:$0xff] %v11916_v26  ;;  %5157 = vmatpush.msrb.mxu0 %v4111_v42  ;;  %v9209_v25 = vsel %vm7030_vm8, %v6080_v8, %v2257_v31  ;;  %v9223_v31 = vpop.f32.mrf.mxu1  ;;  %v4560_v8 = vadd.f32 %v8968_v4, %v8855_v38  ;;  %v4075_v38 = vld [vmem:[%s11297_s3 + $0x588] sm:$0xff] }
 0x564   :  { %2254 = vst.msk [vmem:[#allocation2 + $0xc10] sm:$0xff] %vm881_vm2, %v2222_v33  ;;  %v9192_v33 = vadd.f32 %v4674_v61, %v9055_v53  ;;  %5027 = vmatpush.msrb.mxu2 %v4079_v54  ;;  %v3880_v53 = vld [vmem:[#allocation2 + $0xbf0] sm:$0xff]  ;;  %4948 = vmatmul.f32.gmra.mxu0 %v3882_v41  ;;  %v9220_v42 = vsel %vm7030_vm8, %v2259_v3, %v2260_v5  ;;  %v4076_v3 = vld [vmem:[%s11297_s3 + $0x590] sm:$0xff] }
 0x565   :  { %11918 = vst [vmem:[#allocation124_spill] sm:$0xff] %v9209_v25  ;;  %v4077_v54 = vld [vmem:[%s11297_s3 + $0x598] sm:$0xff]  ;;  %5158 = vmatpush.msrb.mxu0 %v4110_v0  ;;  %4818 = vmatmul.f32.gmra.mxu2 %v3880_v53  ;;  %v4108_v5 = vld [vmem:[%s11297_s3 + $0x690] sm:$0xff] }
 0x566   :  { %v2474_v16 = vld.sshfl [vmem:[#allocation1 + $0x20] sm:$0xff pattern:$0x75316420]  ;;  %5028 = vmatpush.msrb.mxu2 %v4078_v46  ;;  %11919 = vst [vmem:[#allocation125_spill] sm:$0xff] %v9220_v42  ;;  %v3683_v46 = vld [vmem:[#allocation2 + $0x5c8] sm:$0xff] }
 0x567   :  { %2480 = vst [vmem:[#allocation1 + $0x20] ss:$2 sm:$0xff] %v7938_v48 }
 0x568   :  { %2481 = vst [vmem:[#allocation1 + $0x21] ss:$2 sm:$0xff] %v8143_v22  ;;  %v4109_v22 = vld [vmem:[%s11297_s3 + $0x698] sm:$0xff]  ;;  %4989 = vmatmul.f32.gmra.mxu1 %v3683_v46  ;;  %5029 = vmatpush.msrb.mxu2 %v4077_v54  ;;  %v4624_v0 = vpop.f32.mrf.mxu2  ;;  %v4677_v53 = vpop.f32.mrf.mxu3 }
 0x569   :  { %2530 = vst.msk [vmem:[#allocation2 + $0x200] sm:$0xff] %vm881_vm2, %v2474_v16  ;;  %v3781_v16 = vld [vmem:[#allocation2 + $0x8d8] sm:$0xff]  ;;  %5159 = vmatpush.msrb.mxu0 %v4109_v22  ;;  %v9235_v41 = vadd.f32 %v4624_v0, %v4560_v8  ;;  %v9238_v4 = vadd.f32 %v4677_v53, %v9073_v14  ;;  %v4105_v54 = vld [vmem:[%s11297_s3 + $0x678] sm:$0xff]  ;;  %v4104_v8 = vld [vmem:[%s11297_s3 + $0x670] sm:$0xff]  ;;  %v4710_v0 = vadd.f32 %v8998_v43, %v8890_v60 }
 0x56a   :  { %v2287_v39 = vld.sshfl [vmem:[#allocation1 + $0x30] sm:$0xff pattern:$0x75316420]  ;;  %4871 = vmatmul.f32.gmra.mxu3 %v3781_v16  ;;  %v4107_v16 = vld [vmem:[%s11297_s3 + $0x688] sm:$0xff]  ;;  %5030 = vmatpush.msrb.mxu2 %v4076_v3  ;;  %v4074_v22 = vld [vmem:[%s11297_s3 + $0x580] sm:$0xff] }
 0x56b   :  { %2294 = vst [vmem:[#allocation1 + $0x30] ss:$2 sm:$0xff] %v9209_v25  ;;  %5160 = vmatpush.msrb.mxu0 %v4108_v5  ;;  %v4106_v14 = vld [vmem:[%s11297_s3 + $0x680] sm:$0xff]  ;;  %5082 = vmatpush.msrb.mxu3 %v4105_v54  ;;  %v3708_v3 = vld [vmem:[#allocation2 + $0x690] sm:$0xff]  ;;  %v11920_v5 = vld [vmem:[#allocation72_spill] sm:$0xff]  ;;  %v9268_v54 = vpop.f32.mrf.mxu1 }
 0x56c   :  { %2295 = vst [vmem:[#allocation1 + $0x31] ss:$2 sm:$0xff] %v9220_v42  ;;  %5031 = vmatpush.msrb.mxu2 %v4075_v38  ;;  %v3806_v53 = vld [vmem:[#allocation2 + $0x9a0] sm:$0xff]  ;;  %v3509_v38 = vld [vmem:[#allocation2 + $0x58] sm:$0xff] }
 0x56d   :  { %2343 = vst.msk [vmem:[#allocation2 + $0x2b8] sm:$0xff] %vm881_vm2, %v2287_v39  ;;  %5161 = vmatpush.msrb.mxu0 %v4107_v16  ;;  %5083 = vmatpush.msrb.mxu3 %v4104_v8  ;;  %v11921_v16 = vld [vmem:[#allocation73_spill] sm:$0xff]  ;;  %v2264_v8 = vrot.slane %v9009_v10, 6 }
 0x56e   :  { %5032 = vmatpush.msrb.mxu2 %v4074_v22  ;;  %v3511_v22 = vld [vmem:[#allocation2 + $0x68] sm:$0xff] }
 0x56f   :  { %v2486_v39 = vld.sshfl [vmem:[#allocation1 + $0x20] sm:$0xff pattern:$0x75316420]  ;;  %5162 = vmatpush.msrb.mxu0 %v4106_v14  ;;  %5033 = vmatmul.f32.vlgmr.msrb.gmra.mxu2 %v3509_v38 }
 0x570   :  { %2492 = vst [vmem:[#allocation1 + $0x20] ss:$2 sm:$0xff] %v11866_v7  ;;  %4992 = vmatmul.f32.gmra.mxu1 %v3708_v3  ;;  %v4774_v14 = vpop.f32.mrf.mxu2  ;;  %5163 = vmatmul.f32.vlgmr.msrb.gmra.mxu0 %v3511_v22  ;;  %v4680_v60 = vpop.f32.mrf.mxu3  ;;  %v4102_v3 = vld [vmem:[%s11297_s3 + $0x660] sm:$0xff]  ;;  %v2266_v7 = vrot.slane %v2264_v8, 4 }
 0x571   :  { %2493 = vst [vmem:[#allocation1 + $0x21] ss:$2 sm:$0xff] %v11868_v2  ;;  %v9271_v43 = vadd.f32 %v4774_v14, %v4710_v0  ;;  %v9278_v2 = vadd.f32 %v4680_v60, %v9110_v17  ;;  %v4101_v0 = vld [vmem:[%s11297_s3 + $0x658] sm:$0xff]  ;;  %v4100_v17 = vld [vmem:[%s11297_s3 + $0x650] sm:$0xff]  ;;  %v4713_v60 = vadd.f32 %v9020_v51, %v8935_v18 }
 0x572   :  { %2534 = vst.msk [vmem:[#allocation2 + $0x520] sm:$0xff] %vm881_vm2, %v2486_v39  ;;  %v4103_v39 = vld [vmem:[%s11297_s3 + $0x668] sm:$0xff]  ;;  %4874 = vmatmul.f32.gmra.mxu3 %v3806_v53  ;;  %v6081_v53 = vrot.slane %v8994_v15, 10 }
 0x573   :  { %v2299_v46 = vld.sshfl [vmem:[#allocation1 + $0x30] sm:$0xff pattern:$0x75316420]  ;;  %5084 = vmatpush.msrb.mxu3 %v4103_v39  ;;  %v3733_v39 = vld [vmem:[#allocation2 + $0x758] sm:$0xff] }
 0x574   :  { %2306 = vst [vmem:[#allocation1 + $0x30] ss:$2 sm:$0xff] %v11920_v5  ;;  %v9293_v22 = vsel %vm7030_vm8, %v6081_v53, %v2264_v8  ;;  %v4099_v8 = vld [vmem:[%s11297_s3 + $0x648] sm:$0xff]  ;;  %v2697_v53 = vld.sshfl [vmem:[#allocation1 + $0x10] sm:$0xff pattern:$0x75316420] }
 0x575   :  { %2307 = vst [vmem:[#allocation1 + $0x31] ss:$2 sm:$0xff] %v11921_v16  ;;  %5085 = vmatpush.msrb.mxu3 %v4102_v3  ;;  %v3831_v3 = vld [vmem:[#allocation2 + $0xa68] sm:$0xff] }
 0x576   :  { %2347 = vst.msk [vmem:[#allocation2 + $0x5d8] sm:$0xff] %vm881_vm2, %v2299_v46  ;;  %v2267_v46 = vrot.slane %v9079_v62, 6 }
 0x577   :  { %5086 = vmatpush.msrb.mxu3 %v4101_v0  ;;  %11922 = vst [vmem:[#allocation126_spill] sm:$0xff] %v9293_v22  ;;  %v3534_v0 = vld [vmem:[#allocation2 + $0x120] sm:$0xff] }
 0x578   :  { %v2498_v38 = vld.sshfl [vmem:[#allocation1 + $0x20] sm:$0xff pattern:$0x75316420]  ;;  %4995 = vmatmul.f32.gmra.mxu1 %v3733_v39  ;;  %5036 = vmatmul.f32.gmra.mxu2 %v3534_v0  ;;  %v4683_v51 = vpop.f32.mrf.mxu3  ;;  %2729 = vst.msk [vmem:[#allocation2 + $0xaa8] sm:$0xff] %vm881_vm2, %v2697_v53  ;;  %v3856_v0 = vld [vmem:[#allocation2 + $0xb30] sm:$0xff] }
 0x579   :  { %2504 = vst [vmem:[#allocation1 + $0x20] ss:$2 sm:$0xff] %v8127_v58  ;;  %5087 = vmatpush.msrb.mxu3 %v4100_v17  ;;  %v4777_v58 = vpop.f32.mrf.mxu2  ;;  %v4098_v39 = vld [vmem:[%s11297_s3 + $0x640] sm:$0xff] }
 0x57a   :  { %2505 = vst [vmem:[#allocation1 + $0x21] ss:$2 sm:$0xff] %v8258_v35  ;;  %v9299_v35 = vsel %vm7030_vm8, %v2266_v7, %v2267_v46  ;;  %4877 = vmatmul.f32.gmra.mxu3 %v3831_v3  ;;  %v9306_v18 = vadd.f32 %v4777_v58, %v4713_v60  ;;  %v9309_v7 = vpop.f32.mrf.mxu1  ;;  %v9312_v46 = vadd.f32 %v4683_v51, %v9155_v57  ;;  %v4097_v58 = vld [vmem:[%s11297_s3 + $0x638] sm:$0xff]  ;;  %v3758_v57 = vld [vmem:[#allocation2 + $0x820] sm:$0xff]  ;;  %v4096_v60 = vld [vmem:[%s11297_s3 + $0x630] sm:$0xff] }
 0x57b   :  { %2538 = vst.msk [vmem:[#allocation2 + $0x840] sm:$0xff] %vm881_vm2, %v2498_v38  ;;  %v3536_v38 = vld [vmem:[#allocation2 + $0x130] sm:$0xff]  ;;  %5088 = vmatpush.msrb.mxu3 %v4099_v8  ;;  %v4716_v3 = vadd.f32 %v9033_v1, %v8964_v40  ;;  %v3561_v8 = vld [vmem:[#allocation2 + $0x1f8] sm:$0xff]  ;;  %v4095_v51 = vld [vmem:[%s11297_s3 + $0x628] sm:$0xff] }
 0x57c   :  { %v2311_v14 = vld.sshfl [vmem:[#allocation1 + $0x30] sm:$0xff pattern:$0x75316420]  ;;  %11923 = vst [vmem:[#allocation127_spill] sm:$0xff] %v9299_v35  ;;  %5166 = vmatmul.f32.gmra.mxu0 %v3536_v38 }
 0x57d   :  { %2318 = vst [vmem:[#allocation1 + $0x30] ss:$2 sm:$0xff] %v9293_v22  ;;  %5089 = vmatpush.msrb.mxu3 %v4098_v39  ;;  %v3559_v38 = vld [vmem:[#allocation2 + $0x1e8] sm:$0xff]  ;;  %v2358_v39 = vrot.slane %v8925_v19, 7 }
 0x57e   :  { %2319 = vst [vmem:[#allocation1 + $0x31] ss:$2 sm:$0xff] %v9299_v35 }
 0x57f   :  { %2750 = vst [vmem:[#allocation1 + $0x10] ss:$2 sm:$0xff] %v11870_v13  ;;  %5090 = vmatpush.msrb.mxu3 %v4097_v58  ;;  %v11924_v58 = vld [vmem:[#allocation86_spill] sm:$0xff] }
 0x580   :  { %2752 = vst [vmem:[#allocation1 + $0x11] ss:$2 sm:$0xff] %v11876_v47  ;;  %4998 = vmatmul.f32.gmra.mxu1 %v3758_v57  ;;  %5039 = vmatmul.f32.gmra.mxu2 %v3559_v38  ;;  %v4686_v1 = vpop.f32.mrf.mxu3  ;;  %v11925_v57 = vld [vmem:[#allocation87_spill] sm:$0xff]  ;;  %v2360_v38 = vrot.slane %v2358_v39, 4  ;;  %v3881_v47 = vld [vmem:[#allocation2 + $0xbf8] sm:$0xff] }
 0x581   :  { %v2510_v17 = vld.sshfl [vmem:[#allocation1 + $0x20] sm:$0xff pattern:$0x75316420]  ;;  %2351 = vst.msk [vmem:[#allocation2 + $0x8f8] sm:$0xff] %vm881_vm2, %v2311_v14  ;;  %5091 = vmatpush.msrb.mxu3 %v4096_v60  ;;  %v4780_v53 = vpop.f32.mrf.mxu2 }
 0x582   :  { %2552 = vst [vmem:[#allocation1 + $0x20] ss:$2 sm:$0xff] %v11873_v23  ;;  %4880 = vmatmul.f32.gmra.mxu3 %v3856_v0  ;;  %v9336_v40 = vadd.f32 %v4780_v53, %v4716_v3  ;;  %v4094_v60 = vld [vmem:[%s11297_s3 + $0x620] sm:$0xff]  ;;  %v9346_v0 = vpop.f32.mrf.mxu1  ;;  %v4093_v3 = vld [vmem:[%s11297_s3 + $0x618] sm:$0xff]  ;;  %v4091_v23 = vld [vmem:[%s11297_s3 + $0x608] sm:$0xff] }
 0x583   :  { %2554 = vst [vmem:[#allocation1 + $0x21] ss:$2 sm:$0xff] %v11875_v9  ;;  %5092 = vmatpush.msrb.mxu3 %v4095_v51  ;;  %v3783_v51 = vld [vmem:[#allocation2 + $0x8e8] sm:$0xff] }
 0x584   :  { %2542 = vst.msk [vmem:[#allocation2 + $0xb60] sm:$0xff] %vm881_vm2, %v2510_v17  ;;  %5169 = vmatmul.f32.gmra.mxu0 %v3561_v8  ;;  %v9340_v17 = vadd.f32 %v4686_v1, %v9189_v37  ;;  %v2361_v8 = vrot.slane %v9036_v52, 7  ;;  %v9352_v37 = vpop.f32.mrf.mxu0  ;;  %v4092_v1 = vld [vmem:[%s11297_s3 + $0x610] sm:$0xff] }
 0x585   :  { %v2323_v14 = vld.sshfl [vmem:[#allocation1 + $0x30] sm:$0xff pattern:$0x75316420]  ;;  %5093 = vmatpush.msrb.mxu3 %v4094_v60  ;;  %v4719_v60 = vadd.f32 %v9057_v20, %v8991_v59 }
 0x586   :  { %2382 = vst [vmem:[#allocation1 + $0x30] ss:$2 sm:$0xff] %v11924_v58 }
 0x587   :  { %2384 = vst [vmem:[#allocation1 + $0x31] ss:$2 sm:$0xff] %v11925_v57  ;;  %5094 = vmatpush.msrb.mxu3 %v4093_v3  ;;  %v3584_v3 = vld [vmem:[#allocation2 + $0x2b0] sm:$0xff] }
 0x588   :  { %2355 = vst.msk [vmem:[#allocation2 + $0xc18] sm:$0xff] %vm881_vm2, %v2323_v14  ;;  %v6082_v14 = vrot.slane %v8923_v24, 11  ;;  %5001 = vmatmul.f32.gmra.mxu1 %v3783_v51  ;;  %5042 = vmatmul.f32.gmra.mxu2 %v3584_v3  ;;  %v4689_v59 = vpop.f32.mrf.mxu3  ;;  %v4135_v3 = vld [vmem:[%s11297_s3 + $0x768] sm:$0xff] }
 0x589   :  { %5095 = vmatpush.msrb.mxu3 %v4092_v1  ;;  %v4783_v13 = vpop.f32.mrf.mxu2  ;;  %v9378_v1 = vadd.f32 %v4689_v59, %v9235_v41 }
 0x58a   :  { %v2561_v53 = vld.sshfl [vmem:[#allocation1 + $0x20] sm:$0xff pattern:$0x75316420]  ;;  %4883 = vmatmul.f32.gmra.mxu3 %v3881_v47  ;;  %v9367_v48 = vsel %vm7079_vm10, %v6082_v14, %v2358_v39  ;;  %v9370_v51 = vadd.f32 %v4783_v13, %v4719_v60  ;;  %v9374_v47 = vsel %vm7079_vm10, %v2360_v38, %v2361_v8  ;;  %v4137_v13 = vld [vmem:[%s11297_s3 + $0x778] sm:$0xff]  ;;  %v9393_v38 = vpop.f32.mrf.mxu1 }
 0x58b   :  { %2567 = vst [vmem:[#allocation1 + $0x20] ss:$2 sm:$0xff] %v8923_v24  ;;  %5096 = vmatpush.msrb.mxu3 %v4091_v23  ;;  %v4090_v39 = vld [vmem:[%s11297_s3 + $0x600] sm:$0xff]  ;;  %5212 = vmatpush.msra.mxu1 %v4137_v13  ;;  %v4136_v23 = vld [vmem:[%s11297_s3 + $0x770] sm:$0xff]  ;;  %v3808_v14 = vld [vmem:[#allocation2 + $0x9b0] sm:$0xff] }
 0x58c   :  { %2568 = vst [vmem:[#allocation1 + $0x21] ss:$2 sm:$0xff] %v8925_v19  ;;  %v9391_v41 = vpop.f32.mrf.mxu0  ;;  %v3609_v60 = vld [vmem:[#allocation2 + $0x378] sm:$0xff] }
 0x58d   :  { %11926 = vst [vmem:[#allocation128_spill] sm:$0xff] %v9367_v48  ;;  %5097 = vmatpush.msrb.mxu3 %v4090_v39  ;;  %5213 = vmatpush.msra.mxu1 %v4136_v23 }
 0x58e   :  { %2617 = vst.msk [vmem:[#allocation2 + $0x208] sm:$0xff] %vm881_vm2, %v2561_v53  ;;  %v2388_v20 = vld.sshfl [vmem:[#allocation1 + $0x30] sm:$0xff pattern:$0x75316420]  ;;  %v4722_v53 = vadd.f32 %v9075_v6, %v9016_v29  ;;  %v4134_v6 = vld [vmem:[%s11297_s3 + $0x760] sm:$0xff] }
 0x58f   :  { %11927 = vst [vmem:[#allocation129_spill] sm:$0xff] %v9374_v47  ;;  %5214 = vmatpush.msra.mxu1 %v4135_v3 }
 0x590   :  { %2395 = vst [vmem:[#allocation1 + $0x30] ss:$2 sm:$0xff] %v9367_v48  ;;  %5004 = vmatmul.f32.gmra.mxu1 %v3808_v14  ;;  %5045 = vmatmul.f32.gmra.mxu2 %v3609_v60  ;;  %v4839_v13 = vpop.f32.mrf.mxu3  ;;  %v11928_v14 = vld [vmem:[#allocation96_spill] sm:$0xff] }
 0x591   :  { %2396 = vst [vmem:[#allocation1 + $0x31] ss:$2 sm:$0xff] %v9374_v47  ;;  %v4786_v59 = vpop.f32.mrf.mxu2  ;;  %v9409_v23 = vadd.f32 %v4839_v13, %v9271_v43  ;;  %5215 = vmatpush.msra.mxu1 %v4134_v6  ;;  %v4132_v43 = vld [vmem:[%s11297_s3 + $0x750] sm:$0xff]  ;;  %v4725_v13 = vadd.f32 %v9117_v56, %v9028_v49  ;;  %v3833_v6 = vld [vmem:[#allocation2 + $0xa78] sm:$0xff] }
 0x592   :  { %2444 = vst.msk [vmem:[#allocation2 + $0x2c0] sm:$0xff] %vm881_vm2, %v2388_v20  ;;  %v3510_v20 = vld [vmem:[#allocation2 + $0x60] sm:$0xff]  ;;  %v9402_v39 = vadd.f32 %v4786_v59, %v4722_v53  ;;  %v4133_v53 = vld [vmem:[%s11297_s3 + $0x758] sm:$0xff] }
 0x593   :  { %v2573_v8 = vld.sshfl [vmem:[#allocation1 + $0x20] sm:$0xff pattern:$0x75316420]  ;;  %5098 = vmatmul.f32.vlgmr.msrb.gmra.mxu3 %v3510_v20  ;;  %5216 = vmatpush.msra.mxu1 %v4133_v53  ;;  %v6083_v20 = vrot.slane %v8994_v15, 11  ;;  %v9430_v53 = vpop.f32.mrf.mxu1 }
 0x594   :  { %2579 = vst [vmem:[#allocation1 + $0x20] ss:$2 sm:$0xff] %v11886_v11  ;;  %v11929_v11 = vld [vmem:[#allocation97_spill] sm:$0xff]  ;;  %v9421_v3 = vpop.f32.mrf.mxu0 }
 0x595   :  { %2580 = vst [vmem:[#allocation1 + $0x21] ss:$2 sm:$0xff] %v11887_v28  ;;  %5217 = vmatpush.msra.mxu1 %v4132_v43  ;;  %v4130_v43 = vld [vmem:[%s11297_s3 + $0x740] sm:$0xff] }
 0x596   :  { %2621 = vst.msk [vmem:[#allocation2 + $0x528] sm:$0xff] %vm881_vm2, %v2573_v8  ;;  %v2365_v8 = vrot.slane %v9009_v10, 7 }
 0x598   :  { %v2400_v29 = vld.sshfl [vmem:[#allocation1 + $0x30] sm:$0xff pattern:$0x75316420]  ;;  %v2367_v59 = vrot.slane %v2365_v8, 4  ;;  %5007 = vmatmul.f32.gmra.mxu1 %v3833_v6  ;;  %v4842_v56 = vpop.f32.mrf.mxu3  ;;  %v9444_v6 = vsel %vm7079_vm10, %v6083_v20, %v2365_v8  ;;  %v3858_v20 = vld [vmem:[#allocation2 + $0xb40] sm:$0xff] }
 0x599   :  { %2407 = vst [vmem:[#allocation1 + $0x30] ss:$2 sm:$0xff] %v11928_v14  ;;  %v3586_v60 = vld [vmem:[#allocation2 + $0x2c0] sm:$0xff]  ;;  %v3535_v14 = vld [vmem:[#allocation2 + $0x128] sm:$0xff]  ;;  %v4789_v47 = vpop.f32.mrf.mxu2  ;;  %v9440_v48 = vadd.f32 %v4842_v56, %v9306_v18 }
 0x59a   :  { %2408 = vst [vmem:[#allocation1 + $0x31] ss:$2 sm:$0xff] %v11929_v11  ;;  %5172 = vmatmul.f32.gmra.mxu0 %v3586_v60  ;;  %v3634_v60 = vld [vmem:[#allocation2 + $0x440] sm:$0xff]  ;;  %v2368_v11 = vrot.slane %v9079_v62, 7  ;;  %v9433_v49 = vadd.f32 %v4789_v47, %v4725_v13  ;;  %v3611_v47 = vld [vmem:[#allocation2 + $0x388] sm:$0xff] }
 0x59b   :  { %2448 = vst.msk [vmem:[#allocation2 + $0x5e0] sm:$0xff] %vm881_vm2, %v2400_v29  ;;  %v4131_v29 = vld [vmem:[%s11297_s3 + $0x748] sm:$0xff]  ;;  %5048 = vmatmul.f32.gmra.mxu2 %v3634_v60  ;;  %5101 = vmatmul.f32.gmra.mxu3 %v3535_v14  ;;  %v4128_v18 = vld [vmem:[%s11297_s3 + $0x730] sm:$0xff] }
 0x59c   :  { %v2585_v24 = vld.sshfl [vmem:[#allocation1 + $0x20] sm:$0xff pattern:$0x75316420]  ;;  %5218 = vmatpush.msra.mxu1 %v4131_v29  ;;  %11930 = vst [vmem:[#allocation130_spill] sm:$0xff] %v9444_v6  ;;  %v9449_v14 = vsel %vm7079_vm10, %v2367_v59, %v2368_v11  ;;  %v9460_v8 = vpop.f32.mrf.mxu0  ;;  %v4728_v11 = vadd.f32 %v9166_v36, %v9048_v27  ;;  %v3659_v59 = vld [vmem:[#allocation2 + $0x508] sm:$0xff]  ;;  %v4127_v13 = vld [vmem:[%s11297_s3 + $0x728] sm:$0xff]  ;;  %v9472_v36 = vpop.f32.mrf.mxu1 }
 0x59d   :  { %2591 = vst [vmem:[#allocation1 + $0x20] ss:$2 sm:$0xff] %v8994_v15  ;;  %v3560_v29 = vld [vmem:[#allocation2 + $0x1f0] sm:$0xff]  ;;  %v4126_v27 = vld [vmem:[%s11297_s3 + $0x720] sm:$0xff] }
 0x59e   :  { %2625 = vst.msk [vmem:[#allocation2 + $0x848] sm:$0xff] %vm881_vm2, %v2585_v24  ;;  %5219 = vmatpush.msra.mxu1 %v4130_v43  ;;  %v4129_v24 = vld [vmem:[%s11297_s3 + $0x738] sm:$0xff] }
 0x59f   :  { %2592 = vst [vmem:[#allocation1 + $0x21] ss:$2 sm:$0xff] %v9009_v10 }
 0x5a0   :  { %11931 = vst [vmem:[#allocation131_spill] sm:$0xff] %v9449_v14  ;;  %5220 = vmatpush.msra.mxu1 %v4129_v24  ;;  %v3636_v24 = vld [vmem:[#allocation2 + $0x450] sm:$0xff] }
 0x5a1   :  { %v2412_v60 = vld.sshfl [vmem:[#allocation1 + $0x30] sm:$0xff pattern:$0x75316420]  ;;  %5010 = vmatmul.f32.gmra.mxu1 %v3858_v20  ;;  %v4792_v56 = vpop.f32.mrf.mxu2  ;;  %v4125_v20 = vld [vmem:[%s11297_s3 + $0x718] sm:$0xff] }
 0x5a2   :  { %2419 = vst [vmem:[#allocation1 + $0x30] ss:$2 sm:$0xff] %v9444_v6  ;;  %5175 = vmatmul.f32.gmra.mxu0 %v3611_v47  ;;  %5221 = vmatpush.msra.mxu1 %v4128_v18  ;;  %v9467_v43 = vadd.f32 %v4792_v56, %v4728_v11  ;;  %v11932_v11 = vld [vmem:[#allocation43_spill] sm:$0xff]  ;;  %v3637_v6 = vld [vmem:[#allocation2 + $0x458] sm:$0xff] }
 0x5a3   :  { %2420 = vst [vmem:[#allocation1 + $0x31] ss:$2 sm:$0xff] %v9449_v14  ;;  %5051 = vmatmul.f32.gmra.mxu2 %v3659_v59  ;;  %5104 = vmatmul.f32.gmra.mxu3 %v3560_v29  ;;  %v4124_v59 = vld [vmem:[%s11297_s3 + $0x710] sm:$0xff]  ;;  %v3684_v29 = vld [vmem:[#allocation2 + $0x5d0] sm:$0xff] }
 0x5a4   :  { %2452 = vst.msk [vmem:[#allocation2 + $0x900] sm:$0xff] %vm881_vm2, %v2412_v60  ;;  %5222 = vmatpush.msra.mxu1 %v4127_v13  ;;  %v4845_v60 = vpop.f32.mrf.mxu3  ;;  %v3883_v13 = vld [vmem:[#allocation2 + $0xc08] sm:$0xff]  ;;  %v9488_v56 = vpop.f32.mrf.mxu0 }
 0x5a5   :  { %v9475_v47 = vadd.f32 %v4845_v60, %v9336_v40  ;;  %v4731_v40 = vadd.f32 %v9223_v31, %v9070_v50  ;;  %v4123_v60 = vld [vmem:[%s11297_s3 + $0x708] sm:$0xff]  ;;  %v4122_v50 = vld [vmem:[%s11297_s3 + $0x700] sm:$0xff]  ;;  %v9501_v15 = vpop.f32.mrf.mxu1 }
 0x5a6   :  { %5223 = vmatpush.msra.mxu1 %v4126_v27  ;;  %v3585_v27 = vld [vmem:[#allocation2 + $0x2b8] sm:$0xff] }
 0x5a8   :  { %5224 = vmatpush.msra.mxu1 %v4125_v20 }
 0x5a9   :  { %5013 = vmatmul.f32.gmra.mxu1 %v3883_v13 }
 0x5aa   :  { %v2424_v18 = vld.sshfl [vmem:[#allocation1 + $0x30] sm:$0xff pattern:$0x75316420]  ;;  %5178 = vmatmul.f32.gmra.mxu0 %v3636_v24  ;;  %5225 = vmatpush.msra.mxu1 %v4124_v59  ;;  %v4795_v24 = vpop.f32.mrf.mxu2  ;;  %v3661_v59 = vld [vmem:[#allocation2 + $0x518] sm:$0xff] }
 0x5ab   :  { %2469 = vst [vmem:[#allocation1 + $0x30] ss:$2 sm:$0xff] %v11875_v9  ;;  %5054 = vmatmul.f32.gmra.mxu2 %v3684_v29  ;;  %5107 = vmatmul.f32.gmra.mxu3 %v3585_v27  ;;  %v9493_v20 = vadd.f32 %v4795_v24, %v4731_v40  ;;  %v3709_v40 = vld [vmem:[#allocation2 + $0x698] sm:$0xff]  ;;  %v3512_v29 = vld [vmem:[#allocation2 + $0x70] sm:$0xff] }
 0x5ac   :  { %2471 = vst [vmem:[#allocation1 + $0x31] ss:$2 sm:$0xff] %v11932_v11  ;;  %5226 = vmatpush.msra.mxu1 %v4123_v60  ;;  %v3610_v60 = vld [vmem:[#allocation2 + $0x380] sm:$0xff]  ;;  %v9508_v24 = vpop.f32.mrf.mxu0  ;;  %v11939_v9 = vld [vmem:[#allocation10_spill] sm:$0xff] }
 0x5ad   :  { %2456 = vst.msk [vmem:[#allocation2 + $0xc20] sm:$0xff] %vm881_vm2, %v2424_v18  ;;  %v4848_v18 = vpop.f32.mrf.mxu3 }
 0x5ae   :  { %v9499_v31 = vadd.f32 %v4848_v18, %v9370_v51  ;;  %5227 = vmatpush.msra.mxu1 %v4122_v50  ;;  %v2597_v50 = vld.sshfl [vmem:[#allocation1 + $0x20] sm:$0xff pattern:$0x75316420] }
 0x5af   :  { %2653 = vst [vmem:[#allocation1 + $0x20] ss:$2 sm:$0xff] %v11898_v55 }
 0x5b0   :  { %2655 = vst [vmem:[#allocation1 + $0x21] ss:$2 sm:$0xff] %v11901_v21 }
 0x5b1   :  { %5228 = vmatmul.f32.vlgmr.msra.gmra.mxu1 %v3512_v29  ;;  %2629 = vst.msk [vmem:[#allocation2 + $0xb68] sm:$0xff] %vm881_vm2, %v2597_v50  ;;  %v3734_v29 = vld [vmem:[#allocation2 + $0x760] sm:$0xff]  ;;  %v3711_v50 = vld [vmem:[#allocation2 + $0x6a8] sm:$0xff] }
 0x5b2   :  { %5181 = vmatmul.f32.gmra.mxu0 %v3661_v59  ;;  %v9506_v27 = vpop.f32.mrf.mxu2  ;;  %v3686_v59 = vld [vmem:[#allocation2 + $0x5e0] sm:$0xff] }
 0x5b3   :  { %v2475_v13 = vld.sshfl [vmem:[#allocation1 + $0x30] sm:$0xff pattern:$0x75316420]  ;;  %5057 = vmatmul.f32.gmra.mxu2 %v3709_v40  ;;  %5110 = vmatmul.f32.gmra.mxu3 %v3610_v60  ;;  %v9516_v40 = vpop.f32.mrf.mxu1  ;;  %v3537_v60 = vld [vmem:[#allocation2 + $0x138] sm:$0xff] }
 0x5b4   :  { %2482 = vst [vmem:[#allocation1 + $0x30] ss:$2 sm:$0xff] %v8925_v19  ;;  %v9526_v19 = vpop.f32.mrf.mxu0 }
 0x5b5   :  { %2483 = vst [vmem:[#allocation1 + $0x31] ss:$2 sm:$0xff] %v9036_v52  ;;  %v4851_v51 = vpop.f32.mrf.mxu3  ;;  %v11933_v52 = vld [vmem:[#allocation48_spill] sm:$0xff] }
 0x5b6   :  { %2531 = vst.msk [vmem:[#allocation2 + $0x2c8] sm:$0xff] %vm881_vm2, %v2475_v13  ;;  %v9511_v18 = vadd.f32 %v4851_v51, %v9402_v39  ;;  %v3635_v39 = vld [vmem:[#allocation2 + $0x448] sm:$0xff] }
 0x5b7   :  { %v2662_v55 = vld.sshfl [vmem:[#allocation1 + $0x20] sm:$0xff pattern:$0x75316420] }
 0x5b8   :  { %2668 = vst [vmem:[#allocation1 + $0x20] ss:$2 sm:$0xff] %v9052_v34  ;;  %v11935_v34 = vld [vmem:[#allocation51_spill] sm:$0xff] }
 0x5b9   :  { %5231 = vmatmul.f32.gmra.mxu1 %v3537_v60  ;;  %2718 = vst.msk [vmem:[#allocation2 + $0x210] sm:$0xff] %vm881_vm2, %v2662_v55  ;;  %v3759_v60 = vld [vmem:[#allocation2 + $0x828] sm:$0xff]  ;;  %v3736_v55 = vld [vmem:[#allocation2 + $0x770] sm:$0xff] }
 0x5ba   :  { %5184 = vmatmul.f32.gmra.mxu0 %v3686_v59  ;;  %v9520_v51 = vpop.f32.mrf.mxu2 }
 0x5bb   :  { %5060 = vmatmul.f32.gmra.mxu2 %v3734_v29  ;;  %5113 = vmatmul.f32.gmra.mxu3 %v3635_v39 }
 0x5bc   :  { %v2487_v13 = vld.sshfl [vmem:[#allocation1 + $0x30] sm:$0xff pattern:$0x75316420] }
 0x5bd   :  { %2494 = vst [vmem:[#allocation1 + $0x30] ss:$2 sm:$0xff] %v11887_v28  ;;  %v4854_v59 = vpop.f32.mrf.mxu3  ;;  %v3562_v28 = vld [vmem:[#allocation2 + $0x200] sm:$0xff]  ;;  %v3587_v11 = vld [vmem:[#allocation2 + $0x2c8] sm:$0xff] }
 0x5be   :  { %2495 = vst [vmem:[#allocation1 + $0x31] ss:$2 sm:$0xff] %v11933_v52  ;;  %v9524_v21 = vadd.f32 %v4854_v59, %v9433_v49  ;;  %v11934_v52 = vld [vmem:[#allocation116_spill] sm:$0xff]  ;;  %v3660_v49 = vld [vmem:[#allocation2 + $0x510] sm:$0xff] }
 0x5bf   :  { %2535 = vst.msk [vmem:[#allocation2 + $0x5e8] sm:$0xff] %vm881_vm2, %v2487_v13  ;;  %v9532_v13 = vpop.f32.mrf.mxu1 }
 0x5c0   :  { %2669 = vst [vmem:[#allocation1 + $0x21] ss:$2 sm:$0xff] %v11934_v52 }
 0x5c1   :  { %5234 = vmatmul.f32.gmra.mxu1 %v3562_v28  ;;  %v3784_v28 = vld [vmem:[#allocation2 + $0x8f0] sm:$0xff] }
 0x5c2   :  { %5187 = vmatmul.f32.gmra.mxu0 %v3711_v50  ;;  %v9534_v39 = vpop.f32.mrf.mxu2 }
 0x5c3   :  { %5063 = vmatmul.f32.gmra.mxu2 %v3759_v60  ;;  %5116 = vmatmul.f32.gmra.mxu3 %v3660_v49  ;;  %v11936_v60 = vld [vmem:[#allocation52_spill] sm:$0xff]  ;;  %v9548_v49 = vld [vmem:[%s11296_s2] ss:$0 sm:$0xff] }
 0x5c5   :  { %v2499_v29 = vld.sshfl [vmem:[#allocation1 + $0x30] sm:$0xff pattern:$0x75316420]  ;;  %v4857_v59 = vpop.f32.mrf.mxu3 }
 0x5c6   :  { %2506 = vst [vmem:[#allocation1 + $0x30] ss:$2 sm:$0xff] %v9009_v10  ;;  %v9539_v50 = vadd.f32 %v4857_v59, %v9467_v43  ;;  %v9542_v10 = vpop.f32.mrf.mxu0 }
 0x5c7   :  { %2507 = vst [vmem:[#allocation1 + $0x31] ss:$2 sm:$0xff] %v9079_v62  ;;  %v2674_v52 = vld.sshfl [vmem:[#allocation1 + $0x20] sm:$0xff pattern:$0x75316420]  ;;  %v11938_v62 = vld [vmem:[#allocation9_spill] sm:$0xff]  ;;  %v9557_v14 = vpop.f32.mrf.mxu1 }
 0x5c8   :  { %2539 = vst.msk [vmem:[#allocation2 + $0x908] sm:$0xff] %vm881_vm2, %v2499_v29  ;;  %v11937_v29 = vld [vmem:[#allocation17_spill] sm:$0xff] }
 0x5c9   :  { %2680 = vst [vmem:[#allocation1 + $0x20] ss:$2 sm:$0xff] %v11935_v34  ;;  %v240_v43 = vadd.f32 %v9548_v49, %v11937_v29  ;;  %5237 = vmatmul.f32.gmra.mxu1 %v3587_v11 }
 0x5ca   :  { %5190 = vmatmul.f32.gmra.mxu0 %v3736_v55  ;;  %2681 = vst [vmem:[#allocation1 + $0x21] ss:$2 sm:$0xff] %v11936_v60  ;;  %v3685_v55 = vld [vmem:[#allocation2 + $0x5d8] sm:$0xff]  ;;  %v9553_v34 = vpop.f32.mrf.mxu2 }
 0x5cb   :  { %2722 = vst.msk [vmem:[#allocation2 + $0x530] sm:$0xff] %vm881_vm2, %v2674_v52  ;;  %5066 = vmatmul.f32.gmra.mxu2 %v3784_v28  ;;  %5119 = vmatmul.f32.gmra.mxu3 %v3685_v55  ;;  %v9563_v52 = vmax.f32 %v240_v43, 0.0  ;;  %v11940_v28 = vld [vmem:[#allocation115_spill] sm:$0xff]  ;;  %v4153_v55 = vld [vmem:[%s11297_s3 + $0x7f8] sm:$0xff] }
 0x5cc   :  { %v4669_v11 = vadd.f32 %v9101_v44, %v11940_v28  ;;  %5277 = vmatpush.msra.mxu2 %v4153_v55  ;;  %v3809_v44 = vld [vmem:[#allocation2 + $0x9b8] sm:$0xff]  ;;  %v3612_v43 = vld [vmem:[#allocation2 + $0x390] sm:$0xff] }
 0x5cd   :  { %v4860_v60 = vpop.f32.mrf.mxu3  ;;  %v9582_v28 = vrot.slane %v9563_v52, 4 }
 0x5ce   :  { %v2511_v59 = vld.sshfl [vmem:[#allocation1 + $0x30] sm:$0xff pattern:$0x75316420]  ;;  %v9561_v29 = vadd.f32 %v4860_v60, %v9493_v20  ;;  %v4734_v20 = vadd.f32 %v9268_v54, %v4669_v11  ;;  %v3710_v11 = vld [vmem:[#allocation2 + $0x6a0] sm:$0xff] }
 0x5cf   :  { %2556 = vst [vmem:[#allocation1 + $0x30] ss:$2 sm:$0xff] %v11938_v62  ;;  %v4152_v60 = vld [vmem:[%s11297_s3 + $0x7f0] sm:$0xff] }
 0x5d0   :  { %2558 = vst [vmem:[#allocation1 + $0x31] ss:$2 sm:$0xff] %v11939_v9  ;;  %v4185_v9 = vld [vmem:[%s11297_s3 + $0x8f8] sm:$0xff]  ;;  %5278 = vmatpush.msra.mxu2 %v4152_v60  ;;  %v4799_v54 = vadd.f32 %v9506_v27, %v4734_v20  ;;  %v3786_v20 = vld [vmem:[#allocation2 + $0x900] sm:$0xff] }
 0x5d1   :  { %2543 = vst.msk [vmem:[#allocation2 + $0xc28] sm:$0xff] %vm881_vm2, %v2511_v59  ;;  %5407 = vmatpush.msra.mxu0 %v4185_v9  ;;  %v2686_v59 = vld.sshfl [vmem:[#allocation1 + $0x20] sm:$0xff pattern:$0x75316420]  ;;  %v9585_v9 = vpop.f32.mrf.mxu0  ;;  %5240 = vmatmul.f32.gmra.mxu1 %v3612_v43  ;;  %v11942_v43 = vld [vmem:[#allocation16_spill] sm:$0xff] }
 0x5d2   :  { %5193 = vmatmul.f32.gmra.mxu0 %v3761_v30  ;;  %v4184_v30 = vld [vmem:[%s11297_s3 + $0x8f0] sm:$0xff]  ;;  %2692 = vst [vmem:[#allocation1 + $0x20] ss:$2 sm:$0xff] %v9128_v32  ;;  %v9588_v55 = vpop.f32.mrf.mxu2 }
 0x5d3   :  { %5408 = vmatpush.msra.mxu0 %v4184_v30  ;;  %11941 = vst [vmem:[#allocation17_spill] sm:$0xff] %v9582_v28  ;;  %5069 = vmatmul.f32.gmra.mxu2 %v3809_v44  ;;  %v4151_v30 = vld [vmem:[%s11297_s3 + $0x7e8] sm:$0xff]  ;;  %v4182_v44 = vld [vmem:[%s11297_s3 + $0x8e0] sm:$0xff] }
 0x5d4   :  { %2693 = vst [vmem:[#allocation1 + $0x21] ss:$2 sm:$0xff] %v9115_v12  ;;  %5122 = vmatmul.f32.gmra.mxu3 %v3710_v11  ;;  %v4183_v12 = vld [vmem:[%s11297_s3 + $0x8e8] sm:$0xff]  ;;  %5279 = vmatpush.msra.mxu2 %v4151_v30  ;;  %v4672_v11 = vadd.f32 %v9147_v63, %v11942_v43  ;;  %v2761_v30 = vld.sshfl [vmem:[#allocation1] sm:$0xff pattern:$0x75316420] }
 0x5d5   :  { %2726 = vst.msk [vmem:[#allocation2 + $0x850] sm:$0xff] %vm881_vm2, %v2686_v59  ;;  %v4863_v60 = vpop.f32.mrf.mxu3  ;;  %5409 = vmatpush.msra.mxu0 %v4183_v12  ;;  %v4150_v59 = vld [vmem:[%s11297_s3 + $0x7e0] sm:$0xff]  ;;  %v4149_v12 = vld [vmem:[%s11297_s3 + $0x7d8] sm:$0xff]  ;;  %v4148_v63 = vld [vmem:[%s11297_s3 + $0x7d0] sm:$0xff] }
 0x5d6   :  { %v9598_v27 = vadd.f32 %v4863_v60, %v4799_v54  ;;  %v9610_v54 = vpop.f32.mrf.mxu1  ;;  %5280 = vmatpush.msra.mxu2 %v4150_v59  ;;  %v4181_v60 = vld [vmem:[%s11297_s3 + $0x8d8] sm:$0xff]  ;;  %v4737_v32 = vadd.f32 %v9309_v7, %v4672_v11  ;;  %2817 = vst.msk [vmem:[#allocation2 + $0x88] sm:$0xff] %vm881_vm2, %v2761_v30  ;;  %v11943_v43 = vld [vmem:[#allocation98_spill] sm:$0xff]  ;;  %v4749_v7 = vadd.f32 %v9472_v36, %v9312_v46  ;;  %v3735_v11 = vld [vmem:[#allocation2 + $0x768] sm:$0xff] }
 0x5d7   :  { %v2562_v62 = vld.sshfl [vmem:[#allocation1 + $0x30] sm:$0xff pattern:$0x75316420]  ;;  %5410 = vmatpush.msra.mxu0 %v4182_v44  ;;  %2765 = vst [vmem:[#allocation1] ss:$2 sm:$0xff] %v11943_v43 }
 0x5d8   :  { %2569 = vst [vmem:[#allocation1 + $0x30] ss:$2 sm:$0xff] %v9563_v52  ;;  %5281 = vmatpush.msra.mxu2 %v4149_v12  ;;  %v4802_v44 = vadd.f32 %v9520_v51, %v4737_v32  ;;  %v4147_v12 = vld [vmem:[%s11297_s3 + $0x7c8] sm:$0xff]  ;;  %v11944_v36 = vld [vmem:[#allocation100_spill] sm:$0xff] }
 0x5d9   :  { %2570 = vst [vmem:[#allocation1 + $0x31] ss:$2 sm:$0xff] %v9582_v28  ;;  %5411 = vmatpush.msra.mxu0 %v4181_v60  ;;  %5243 = vmatmul.f32.gmra.mxu1 %v3637_v6  ;;  %v9636_v43 = vpop.f32.mrf.mxu0  ;;  %v4179_v6 = vld [vmem:[%s11297_s3 + $0x8c8] sm:$0xff]  ;;  %v294_v51 = vadd.f32 %v9548_v49, %v11944_v36 }
 0x5da   :  { %2618 = vst.msk [vmem:[#allocation2 + $0x2d0] sm:$0xff] %vm881_vm2, %v2562_v62  ;;  %5196 = vmatmul.f32.gmra.mxu0 %v3786_v20  ;;  %v3834_v62 = vld [vmem:[#allocation2 + $0xa80] sm:$0xff]  ;;  %v4180_v20 = vld [vmem:[%s11297_s3 + $0x8d0] sm:$0xff]  ;;  %v4813_v60 = vpop.f32.mrf.mxu2  ;;  %5282 = vmatpush.msra.mxu2 %v4148_v63 }
 0x5db   :  { %v2698_v59 = vld.sshfl [vmem:[#allocation1 + $0x20] sm:$0xff pattern:$0x75316420]  ;;  %5072 = vmatmul.f32.gmra.mxu2 %v3834_v62  ;;  %v9638_v46 = vadd.f32 %v4813_v60, %v4749_v7  ;;  %5412 = vmatpush.msra.mxu0 %v4180_v20  ;;  %v11945_v62 = vld [vmem:[#allocation41_spill] sm:$0xff]  ;;  %v3811_v63 = vld [vmem:[#allocation2 + $0x9c8] sm:$0xff] }
 0x5dc   :  { %2730 = vst.msk [vmem:[#allocation2 + $0xb70] sm:$0xff] %vm881_vm2, %v2698_v59  ;;  %5125 = vmatmul.f32.gmra.mxu3 %v3735_v11  ;;  %5283 = vmatpush.msra.mxu2 %v4147_v12  ;;  %v11946_v11 = vld [vmem:[#allocation42_spill] sm:$0xff]  ;;  %v4740_v12 = vadd.f32 %v9346_v0, %v9192_v33  ;;  %v11947_v36 = vld [vmem:[#allocation99_spill] sm:$0xff]  ;;  %v4752_v33 = vadd.f32 %v9501_v15, %v9340_v17 }
 0x5dd   :  { %2754 = vst [vmem:[#allocation1 + $0x20] ss:$2 sm:$0xff] %v11915_v45  ;;  %v4866_v30 = vpop.f32.mrf.mxu3  ;;  %v4146_v7 = vld [vmem:[%s11297_s3 + $0x7c0] sm:$0xff]  ;;  %5413 = vmatpush.msra.mxu0 %v4179_v6  ;;  %v3662_v45 = vld [vmem:[#allocation2 + $0x520] sm:$0xff]  ;;  %v3760_v6 = vld [vmem:[#allocation2 + $0x830] sm:$0xff] }
 0x5de   :  { %2756 = vst [vmem:[#allocation1 + $0x21] ss:$2 sm:$0xff] %v11916_v26  ;;  %v9640_v32 = vadd.f32 %v4866_v30, %v4802_v44  ;;  %v4178_v20 = vld [vmem:[%s11297_s3 + $0x8c0] sm:$0xff]  ;;  %v4145_v44 = vld [vmem:[%s11297_s3 + $0x7b8] sm:$0xff]  ;;  %5284 = vmatpush.msra.mxu2 %v4146_v7  ;;  %v9661_v60 = vpop.f32.mrf.mxu1  ;;  %v3859_v26 = vld [vmem:[#allocation2 + $0xb48] sm:$0xff]  ;;  %v4805_v0 = vadd.f32 %v9534_v39, %v4740_v12 }
 0x5df   :  { %v4177_v30 = vld [vmem:[%s11297_s3 + $0x8b8] sm:$0xff]  ;;  %2766 = vst [vmem:[#allocation1 + $0x1] ss:$2 sm:$0xff] %v11947_v36  ;;  %5414 = vmatpush.msra.mxu0 %v4178_v20  ;;  %v4142_v12 = vld [vmem:[%s11297_s3 + $0x7a0] sm:$0xff] }
 0x5e0   :  { %v2574_v59 = vld.sshfl [vmem:[#allocation1 + $0x30] sm:$0xff pattern:$0x75316420]  ;;  %5285 = vmatpush.msra.mxu2 %v4145_v44  ;;  %v4143_v44 = vld [vmem:[%s11297_s3 + $0x7a8] sm:$0xff]  ;;  %v3836_v39 = vld [vmem:[#allocation2 + $0xa90] sm:$0xff] }
 0x5e1   :  { %2581 = vst [vmem:[#allocation1 + $0x30] ss:$2 sm:$0xff] %v11945_v62  ;;  %5246 = vmatmul.f32.gmra.mxu1 %v3662_v45  ;;  %5415 = vmatpush.msra.mxu0 %v4177_v30  ;;  %v9695_v30 = vpop.f32.mrf.mxu0 }
 0x5e2   :  { %2582 = vst [vmem:[#allocation1 + $0x31] ss:$2 sm:$0xff] %v11946_v11  ;;  %5199 = vmatmul.f32.gmra.mxu0 %v3811_v63  ;;  %v9667_v63 = vmax.f32 %v294_v51, 0.0  ;;  %v4176_v51 = vld [vmem:[%s11297_s3 + $0x8b0] sm:$0xff]  ;;  %v4816_v7 = vpop.f32.mrf.mxu2  ;;  %v11951_v11 = vld [vmem:[#allocation18_spill] sm:$0xff] }
 0x5e3   :  { %2622 = vst.msk [vmem:[#allocation2 + $0x5f0] sm:$0xff] %vm881_vm2, %v2574_v59  ;;  %v4144_v59 = vld [vmem:[%s11297_s3 + $0x7b0] sm:$0xff]  ;;  %5075 = vmatmul.f32.gmra.mxu2 %v3859_v26  ;;  %v9681_v36 = vadd.f32 %v4816_v7, %v4752_v33  ;;  %v4175_v26 = vld [vmem:[%s11297_s3 + $0x8a8] sm:$0xff]  ;;  %5416 = vmatpush.msra.mxu0 %v4176_v51  ;;  %v4743_v51 = vadd.f32 %v9393_v38, %v9238_v4  ;;  %v11949_v38 = vld [vmem:[#allocation109_spill] sm:$0xff] }
 0x5e4   :  { %5128 = vmatmul.f32.gmra.mxu3 %v3760_v6  ;;  %5286 = vmatpush.msra.mxu2 %v4144_v59  ;;  %v9689_v45 = vrot.slane %v9667_v63, 4  ;;  %v4174_v59 = vld [vmem:[%s11297_s3 + $0x8a0] sm:$0xff]  ;;  %v2762_v33 = vld.sshfl [vmem:[#allocation1 + $0x10] sm:$0xff pattern:$0x75316420]  ;;  %v4141_v6 = vld [vmem:[%s11297_s3 + $0x798] sm:$0xff] }
 0x5e5   :  { %v4869_v20 = vpop.f32.mrf.mxu3  ;;  %5417 = vmatpush.msra.mxu0 %v4175_v26  ;;  %v3687_v7 = vld [vmem:[#allocation2 + $0x5e8] sm:$0xff]  ;;  %2818 = vst.msk [vmem:[#allocation2 + $0x150] sm:$0xff] %vm881_vm2, %v2762_v33  ;;  %v4755_v26 = vadd.f32 %v9516_v40, %v9378_v1  ;;  %v11950_v33 = vld [vmem:[#allocation110_spill] sm:$0xff]  ;;  %v243_v1 = vadd.f32 %v9548_v49, %v11951_v11  ;;  %v4171_v11 = vld [vmem:[%s11297_s3 + $0x888] sm:$0xff] }
 0x5e6   :  { %v9683_v15 = vadd.f32 %v4869_v20, %v4805_v0  ;;  %11948 = vst [vmem:[#allocation115_spill] sm:$0xff] %v9689_v45  ;;  %5287 = vmatpush.msra.mxu2 %v4143_v44  ;;  %v3884_v0 = vld [vmem:[#allocation2 + $0xc10] sm:$0xff]  ;;  %v2773_v44 = vld.sshfl [vmem:[#allocation1] sm:$0xff pattern:$0x75316420]  ;;  %v4140_v4 = vld [vmem:[%s11297_s3 + $0x790] sm:$0xff] }
 0x5e7   :  { %5418 = vmatpush.msra.mxu0 %v4174_v59  ;;  %v4173_v20 = vld [vmem:[%s11297_s3 + $0x898] sm:$0xff]  ;;  %2767 = vst [vmem:[#allocation1 + $0x10] ss:$2 sm:$0xff] %v11949_v38  ;;  %v3861_v38 = vld [vmem:[#allocation2 + $0xb58] sm:$0xff] }
 0x5e8   :  { %5288 = vmatpush.msra.mxu2 %v4142_v12  ;;  %v4808_v12 = vadd.f32 %v9553_v34, %v4743_v51  ;;  %2768 = vst [vmem:[#allocation1 + $0x11] ss:$2 sm:$0xff] %v11950_v33  ;;  %v11953_v51 = vld [vmem:[#allocation102_spill] sm:$0xff] }
 0x5e9   :  { %v2586_v17 = vld.sshfl [vmem:[#allocation1 + $0x30] sm:$0xff pattern:$0x75316420]  ;;  %5249 = vmatmul.f32.gmra.mxu1 %v3687_v7  ;;  %5419 = vmatpush.msra.mxu0 %v4173_v20  ;;  %2821 = vst.msk [vmem:[#allocation2 + $0x3a8] sm:$0xff] %vm881_vm2, %v2773_v44  ;;  %v11954_v44 = vld [vmem:[#allocation103_spill] sm:$0xff] }
 0x5ea   :  { %2593 = vst [vmem:[#allocation1 + $0x30] ss:$2 sm:$0xff] %v9667_v63  ;;  %5202 = vmatmul.f32.gmra.mxu0 %v3836_v39  ;;  %v3785_v39 = vld [vmem:[#allocation2 + $0x8f8] sm:$0xff]  ;;  %5289 = vmatpush.msra.mxu2 %v4141_v6  ;;  %v4819_v59 = vpop.f32.mrf.mxu2  ;;  %v4172_v7 = vld [vmem:[%s11297_s3 + $0x890] sm:$0xff]  ;;  %v4139_v6 = vld [vmem:[%s11297_s3 + $0x788] sm:$0xff] }
 0x5eb   :  { %2594 = vst [vmem:[#allocation1 + $0x31] ss:$2 sm:$0xff] %v9689_v45  ;;  %5078 = vmatmul.f32.gmra.mxu2 %v3884_v0  ;;  %v9723_v40 = vadd.f32 %v4819_v59, %v4755_v26  ;;  %v4169_v26 = vld [vmem:[%s11297_s3 + $0x878] sm:$0xff]  ;;  %5420 = vmatpush.msra.mxu0 %v4172_v7  ;;  %v9746_v59 = vmax.f32 %v243_v1, 0.0  ;;  %v4170_v7 = vld [vmem:[%s11297_s3 + $0x880] sm:$0xff]  ;;  %v2633_v1 = vrot.slane %v9582_v28, 5 }
 0x5ec   :  { %2626 = vst.msk [vmem:[#allocation2 + $0x910] sm:$0xff] %vm881_vm2, %v2586_v17  ;;  %v9713_v17 = vpop.f32.mrf.mxu1  ;;  %5131 = vmatmul.f32.gmra.mxu3 %v3785_v39  ;;  %5290 = vmatpush.msra.mxu2 %v4140_v4  ;;  %v11955_v39 = vld [vmem:[#allocation49_spill] sm:$0xff]  ;;  %v4138_v4 = vld [vmem:[%s11297_s3 + $0x780] sm:$0xff] }
 0x5ed   :  { %v4872_v0 = vpop.f32.mrf.mxu3  ;;  %2777 = vst [vmem:[#allocation1] ss:$2 sm:$0xff] %v11953_v51  ;;  %5342 = vmatpush.msra.mxu3 %v4169_v26  ;;  %v9749_v51 = vpop.f32.mrf.mxu0  ;;  %5421 = vmatpush.msra.mxu0 %v4171_v11  ;;  %v3712_v26 = vld [vmem:[#allocation2 + $0x6b0] sm:$0xff]  ;;  %v3810_v11 = vld [vmem:[#allocation2 + $0x9c0] sm:$0xff] }
 0x5ee   :  { %v9729_v34 = vadd.f32 %v4872_v0, %v4808_v12  ;;  %2778 = vst [vmem:[#allocation1 + $0x1] ss:$2 sm:$0xff] %v11954_v44  ;;  %v2763_v12 = vld.sshfl [vmem:[#allocation1 + $0x20] sm:$0xff pattern:$0x75316420]  ;;  %5291 = vmatpush.msra.mxu2 %v4139_v6  ;;  %v4746_v44 = vadd.f32 %v9430_v53, %v9278_v2  ;;  %v4167_v6 = vld [vmem:[%s11297_s3 + $0x868] sm:$0xff] }
 0x5ef   :  { %11956 = vst [vmem:[#allocation100_spill] sm:$0xff] %v9746_v59  ;;  %v11957_v0 = vld [vmem:[#allocation50_spill] sm:$0xff]  ;;  %5422 = vmatpush.msra.mxu0 %v4170_v7  ;;  %v2636_v2 = vrot.slane %v9746_v59, 5  ;;  %v3886_v7 = vld [vmem:[#allocation2 + $0xc20] sm:$0xff] }
 0x5f0   :  { %11952 = vst [vmem:[#allocation16_spill] sm:$0xff] %v9729_v34  ;;  %5292 = vmatpush.msra.mxu2 %v4138_v4  ;;  %v4166_v4 = vld [vmem:[%s11297_s3 + $0x860] sm:$0xff] }
 0x5f1   :  { %11958 = vst [vmem:[#allocation41_spill] sm:$0xff] %v9749_v51  ;;  %v4905_v51 = vadd.f32 %v9352_v37, %v9409_v23  ;;  %5252 = vmatmul.f32.gmra.mxu1 %v3712_v26  ;;  %v4811_v37 = vadd.f32 %v9588_v55, %v4746_v44  ;;  %v2635_v55 = vrot.slane %v2633_v1, 4  ;;  %v4200_v44 = vld [vmem:[%s11297_s3 + $0x970] sm:$0xff] }
 0x5f2   :  { %v2598_v20 = vld.sshfl [vmem:[#allocation1 + $0x30] sm:$0xff pattern:$0x75316420]  ;;  %5205 = vmatmul.f32.gmra.mxu0 %v3861_v38  ;;  %2819 = vst.msk [vmem:[#allocation2 + $0x218] sm:$0xff] %vm881_vm2, %v2763_v12  ;;  %v6084_v12 = vrot.slane %v9563_v52, 9 }
 0x5f3   :  { %2657 = vst [vmem:[#allocation1 + $0x30] ss:$2 sm:$0xff] %v11955_v39  ;;  %v4168_v38 = vld [vmem:[%s11297_s3 + $0x870] sm:$0xff]  ;;  %v4970_v53 = vadd.f32 %v9532_v13, %v4905_v51  ;;  %v4201_v51 = vld [vmem:[%s11297_s3 + $0x978] sm:$0xff] }
 0x5f4   :  { %2659 = vst [vmem:[#allocation1 + $0x31] ss:$2 sm:$0xff] %v11957_v0  ;;  %5343 = vmatpush.msra.mxu3 %v4168_v38  ;;  %v3513_v38 = vld [vmem:[#allocation2 + $0x78] sm:$0xff]  ;;  %v9771_v23 = vpop.f32.mrf.mxu1  ;;  %5472 = vmatpush.msrb.mxu1 %v4201_v51 }
 0x5f5   :  { %2630 = vst.msk [vmem:[#allocation2 + $0xc30] sm:$0xff] %vm881_vm2, %v2598_v20  ;;  %v2774_v20 = vld.sshfl [vmem:[#allocation1 + $0x10] sm:$0xff pattern:$0x75316420]  ;;  %5134 = vmatmul.f32.gmra.mxu3 %v3810_v11  ;;  %5293 = vmatmul.f32.vlgmr.msra.gmra.mxu2 %v3513_v38  ;;  %v4875_v26 = vpop.f32.mrf.mxu3  ;;  %v11964_v51 = vld [vmem:[#allocation106_spill] sm:$0xff] }
 0x5f6   :  { %5344 = vmatpush.msra.mxu3 %v4167_v6  ;;  %2769 = vst [vmem:[#allocation1 + $0x20] ss:$2 sm:$0xff] %v9209_v25  ;;  %v5034_v6 = vpop.f32.mrf.mxu2  ;;  %v2785_v13 = vld.sshfl [vmem:[#allocation1] sm:$0xff pattern:$0x75316420]  ;;  %v9785_v11 = vadd.f32 %v4875_v26, %v4811_v37  ;;  %v9797_v25 = vsel %vm6962_vm5, %v2635_v55, %v2636_v2  ;;  %5473 = vmatpush.msrb.mxu1 %v4200_v44  ;;  %v4164_v26 = vld [vmem:[%s11297_s3 + $0x850] sm:$0xff] }
 0x5f7   :  { %2770 = vst [vmem:[#allocation1 + $0x21] ss:$2 sm:$0xff] %v9220_v42  ;;  %v9787_v38 = vadd.f32 %v5034_v6, %v4970_v53  ;;  %v4199_v53 = vld [vmem:[%s11297_s3 + $0x968] sm:$0xff]  ;;  %v3737_v37 = vld [vmem:[#allocation2 + $0x778] sm:$0xff]  ;;  %v4908_v2 = vadd.f32 %v9391_v41, %v9440_v48  ;;  %v3835_v6 = vld [vmem:[#allocation2 + $0xa88] sm:$0xff] }
 0x5f8   :  { %5345 = vmatpush.msra.mxu3 %v4166_v4  ;;  %2822 = vst.msk [vmem:[#allocation2 + $0x470] sm:$0xff] %vm881_vm2, %v2774_v20  ;;  %v11960_v4 = vld [vmem:[#allocation33_spill] sm:$0xff]  ;;  %v9792_v20 = vsel %vm6962_vm5, %v6084_v12, %v2633_v1  ;;  %v4198_v12 = vld [vmem:[%s11297_s3 + $0x960] sm:$0xff]  ;;  %5474 = vmatpush.msrb.mxu1 %v4199_v53  ;;  %v4163_v41 = vld [vmem:[%s11297_s3 + $0x848] sm:$0xff] }
 0x5f9   :  { %11959 = vst [vmem:[#allocation110_spill] sm:$0xff] %v9785_v11  ;;  %v4165_v1 = vld [vmem:[%s11297_s3 + $0x858] sm:$0xff]  ;;  %5255 = vmatmul.f32.gmra.mxu1 %v3737_v37  ;;  %v11963_v55 = vld [vmem:[#allocation34_spill] sm:$0xff]  ;;  %v3515_v44 = vld [vmem:[#allocation2 + $0x88] sm:$0xff] }
 0x5fa   :  { %5208 = vmatmul.f32.gmra.mxu0 %v3886_v7  ;;  %2779 = vst [vmem:[#allocation1 + $0x10] ss:$2 sm:$0xff] %v11960_v4  ;;  %v9813_v7 = vpop.f32.mrf.mxu0  ;;  %5346 = vmatpush.msra.mxu3 %v4165_v1  ;;  %v4197_v48 = vld [vmem:[%s11297_s3 + $0x958] sm:$0xff] }
 0x5fb   :  { %v2663_v42 = vld.sshfl [vmem:[#allocation1 + $0x30] sm:$0xff pattern:$0x75316420]  ;;  %2825 = vst.msk [vmem:[#allocation2 + $0x6c8] sm:$0xff] %vm881_vm2, %v2785_v13  ;;  %v3538_v13 = vld [vmem:[#allocation2 + $0x140] sm:$0xff]  ;;  %5475 = vmatpush.msrb.mxu1 %v4198_v12  ;;  %v4162_v12 = vld [vmem:[%s11297_s3 + $0x840] sm:$0xff] }
 0x5fc   :  { %2670 = vst [vmem:[#allocation1 + $0x30] ss:$2 sm:$0xff] %v9792_v20  ;;  %5347 = vmatpush.msra.mxu3 %v4164_v26  ;;  %v11967_v26 = vld [vmem:[#allocation101_spill] sm:$0xff] }
 0x5fd   :  { %2671 = vst [vmem:[#allocation1 + $0x31] ss:$2 sm:$0xff] %v9797_v25  ;;  %5137 = vmatmul.f32.gmra.mxu3 %v3835_v6  ;;  %5296 = vmatmul.f32.gmra.mxu2 %v3538_v13  ;;  %v4878_v53 = vpop.f32.mrf.mxu3  ;;  %v297_v11 = vadd.f32 %v9548_v49, %v11967_v26  ;;  %v4194_v49 = vld [vmem:[%s11297_s3 + $0x940] sm:$0xff]  ;;  %v3860_v26 = vld [vmem:[#allocation2 + $0xb50] sm:$0xff] }
 0x5fe   :  { %2719 = vst.msk [vmem:[#allocation2 + $0x2d8] sm:$0xff] %vm881_vm2, %v2663_v42  ;;  %v4973_v42 = vadd.f32 %v9557_v14, %v4908_v2  ;;  %v5037_v37 = vpop.f32.mrf.mxu2  ;;  %v2775_v1 = vld.sshfl [vmem:[#allocation1 + $0x20] sm:$0xff pattern:$0x75316420]  ;;  %v4196_v14 = vld [vmem:[%s11297_s3 + $0x950] sm:$0xff]  ;;  %v9831_v2 = vpop.f32.mrf.mxu1  ;;  %v9834_v6 = vadd.f32 %v4878_v53, %v9638_v46  ;;  %5476 = vmatpush.msrb.mxu1 %v4197_v48  ;;  %5348 = vmatpush.msra.mxu3 %v4163_v41  ;;  %v3762_v48 = vld [vmem:[#allocation2 + $0x840] sm:$0xff] }
 0x5ff   :  { %11962 = vst [vmem:[#allocation18_spill] sm:$0xff] %v9813_v7  ;;  %v11965_v7 = vld [vmem:[#allocation107_spill] sm:$0xff]  ;;  %v4911_v41 = vadd.f32 %v9421_v3, %v9475_v47  ;;  %v4193_v3 = vld [vmem:[%s11297_s3 + $0x938] sm:$0xff] }
 0x600   :  { %2780 = vst [vmem:[#allocation1 + $0x11] ss:$2 sm:$0xff] %v11963_v55  ;;  %v9836_v13 = vadd.f32 %v5037_v37, %v4973_v42  ;;  %v4161_v42 = vld [vmem:[%s11297_s3 + $0x838] sm:$0xff]  ;;  %5477 = vmatpush.msrb.mxu1 %v4196_v14  ;;  %5349 = vmatpush.msra.mxu3 %v4162_v12  ;;  %v11969_v53 = vld [vmem:[#allocation59_spill] sm:$0xff]  ;;  %v4160_v37 = vld [vmem:[%s11297_s3 + $0x830] sm:$0xff]  ;;  %v9863_v14 = vmax.f32 %v297_v11, 0.0 }
 0x601   :  { %2789 = vst [vmem:[#allocation1] ss:$2 sm:$0xff] %v11964_v51  ;;  %5258 = vmatmul.f32.gmra.mxu1 %v3762_v48  ;;  %v4976_v12 = vadd.f32 %v9610_v54, %v4911_v41  ;;  %v4159_v47 = vld [vmem:[%s11297_s3 + $0x828] sm:$0xff]  ;;  %v3540_v54 = vld [vmem:[#allocation2 + $0x150] sm:$0xff]  ;;  %v11972_v41 = vld [vmem:[#allocation108_spill] sm:$0xff] }
 0x602   :  { %2790 = vst [vmem:[#allocation1 + $0x1] ss:$2 sm:$0xff] %v11965_v7  ;;  %5423 = vmatmul.f32.vlgmr.msra.gmra.mxu0 %v3515_v44  ;;  %v4195_v7 = vld [vmem:[%s11297_s3 + $0x948] sm:$0xff]  ;;  %v11968_v44 = vld [vmem:[#allocation57_spill] sm:$0xff]  ;;  %5350 = vmatpush.msra.mxu3 %v4161_v42  ;;  %v9866_v51 = vpop.f32.mrf.mxu0 }
 0x603   :  { %11966 = vst [vmem:[#allocation102_spill] sm:$0xff] %v9834_v6  ;;  %5478 = vmatpush.msrb.mxu1 %v4195_v7  ;;  %v3563_v6 = vld [vmem:[#allocation2 + $0x208] sm:$0xff]  ;;  %v6085_v7 = vrot.slane %v9667_v63, 9 }
 0x604   :  { %2823 = vst.msk [vmem:[#allocation2 + $0x538] sm:$0xff] %vm881_vm2, %v2775_v1  ;;  %v2675_v46 = vld.sshfl [vmem:[#allocation1 + $0x30] sm:$0xff pattern:$0x75316420]  ;;  %5351 = vmatpush.msra.mxu3 %v4160_v37  ;;  %v2643_v37 = vrot.slane %v9863_v14, 5 }
 0x605   :  { %2781 = vst [vmem:[#allocation1 + $0x20] ss:$2 sm:$0xff] %v11920_v5  ;;  %5140 = vmatmul.f32.gmra.mxu3 %v3860_v26  ;;  %5299 = vmatmul.f32.gmra.mxu2 %v3563_v6  ;;  %v4881_v42 = vpop.f32.mrf.mxu3  ;;  %v4192_v6 = vld [vmem:[%s11297_s3 + $0x930] sm:$0xff] }
 0x606   :  { %2782 = vst [vmem:[#allocation1 + $0x21] ss:$2 sm:$0xff] %v11921_v16  ;;  %5479 = vmatpush.msrb.mxu1 %v4194_v49  ;;  %v5040_v48 = vpop.f32.mrf.mxu2  ;;  %v9882_v26 = vadd.f32 %v4881_v42, %v9681_v36  ;;  %v4158_v49 = vld [vmem:[%s11297_s3 + $0x820] sm:$0xff]  ;;  %5352 = vmatpush.msra.mxu3 %v4159_v47  ;;  %v4191_v36 = vld [vmem:[%s11297_s3 + $0x928] sm:$0xff]  ;;  %v4157_v42 = vld [vmem:[%s11297_s3 + $0x818] sm:$0xff] }
 0x607   :  { %2682 = vst [vmem:[#allocation1 + $0x30] ss:$2 sm:$0xff] %v11968_v44  ;;  %v2786_v1 = vld.sshfl [vmem:[#allocation1 + $0x10] sm:$0xff pattern:$0x75316420]  ;;  %v4190_v47 = vld [vmem:[%s11297_s3 + $0x920] sm:$0xff] }
 0x608   :  { %2683 = vst [vmem:[#allocation1 + $0x31] ss:$2 sm:$0xff] %v11969_v53  ;;  %5480 = vmatpush.msrb.mxu1 %v4193_v3  ;;  %5353 = vmatpush.msra.mxu3 %v4158_v49  ;;  %v3885_v49 = vld [vmem:[#allocation2 + $0xc18] sm:$0xff] }
 0x609   :  { %2723 = vst.msk [vmem:[#allocation2 + $0x5f8] sm:$0xff] %vm881_vm2, %v2675_v46  ;;  %v2797_v11 = vld.sshfl [vmem:[#allocation1] sm:$0xff pattern:$0x75316420]  ;;  %v2640_v46 = vrot.slane %v9689_v45, 5 }
 0x60a   :  { %11970 = vst [vmem:[#allocation103_spill] sm:$0xff] %v9863_v14  ;;  %5426 = vmatmul.f32.gmra.mxu0 %v3540_v54  ;;  %v9892_v54 = vpop.f32.mrf.mxu1  ;;  %5481 = vmatpush.msrb.mxu1 %v4192_v6 }
 0x60b   :  { %11971 = vst [vmem:[#allocation49_spill] sm:$0xff] %v9866_v51  ;;  %v11974_v51 = vld [vmem:[#allocation46_spill] sm:$0xff]  ;;  %v2642_v16 = vrot.slane %v2640_v46, 4  ;;  %5354 = vmatpush.msra.mxu3 %v4157_v42  ;;  %v4189_v42 = vld [vmem:[%s11297_s3 + $0x918] sm:$0xff] }
 0x60c   :  { %2826 = vst.msk [vmem:[#allocation2 + $0x790] sm:$0xff] %vm881_vm2, %v2786_v1  ;;  %v9884_v1 = vadd.f32 %v5040_v48, %v4976_v12  ;;  %v3787_v12 = vld [vmem:[#allocation2 + $0x908] sm:$0xff]  ;;  %v11975_v48 = vld [vmem:[#allocation113_spill] sm:$0xff]  ;;  %5482 = vmatpush.msrb.mxu1 %v4191_v36 }
 0x60d   :  { %2847 = vst [vmem:[#allocation1] ss:$2 sm:$0xff] %v11972_v41  ;;  %v4914_v41 = vadd.f32 %v9460_v8, %v9499_v31  ;;  %5261 = vmatmul.f32.gmra.mxu1 %v3787_v12  ;;  %v9918_v6 = vsel %vm6962_vm5, %v2642_v16, %v2643_v37  ;;  %5143 = vmatmul.f32.gmra.mxu3 %v3885_v49  ;;  %v4155_v31 = vld [vmem:[%s11297_s3 + $0x808] sm:$0xff]  ;;  %v3565_v12 = vld [vmem:[#allocation2 + $0x218] sm:$0xff]  ;;  %v9926_v37 = vpop.f32.mrf.mxu0 }
 0x60e   :  { %11973 = vst [vmem:[#allocation50_spill] sm:$0xff] %v9882_v26  ;;  %v3588_v26 = vld [vmem:[#allocation2 + $0x2d0] sm:$0xff]  ;;  %5483 = vmatpush.msrb.mxu1 %v4190_v47  ;;  %v11978_v47 = vld [vmem:[#allocation47_spill] sm:$0xff] }
 0x60f   :  { %2849 = vst [vmem:[#allocation1 + $0x1] ss:$2 sm:$0xff] %v11974_v51  ;;  %v9903_v51 = vsel %vm6962_vm5, %v6085_v7, %v2640_v46  ;;  %v2687_v3 = vld.sshfl [vmem:[#allocation1 + $0x30] sm:$0xff pattern:$0x75316420]  ;;  %v4979_v8 = vadd.f32 %v9661_v60, %v4914_v41  ;;  %5302 = vmatmul.f32.gmra.mxu2 %v3588_v26  ;;  %v4154_v26 = vld [vmem:[%s11297_s3 + $0x800] sm:$0xff] }
 0x610   :  { %2829 = vst.msk [vmem:[#allocation2 + $0x9e8] sm:$0xff] %vm881_vm2, %v2797_v11  ;;  %v11976_v11 = vld [vmem:[#allocation114_spill] sm:$0xff]  ;;  %v4156_v7 = vld [vmem:[%s11297_s3 + $0x810] sm:$0xff]  ;;  %5484 = vmatpush.msrb.mxu1 %v4189_v42 }
 0x611   :  { %2791 = vst [vmem:[#allocation1 + $0x10] ss:$2 sm:$0xff] %v11975_v48  ;;  %v2787_v46 = vld.sshfl [vmem:[#allocation1 + $0x20] sm:$0xff pattern:$0x75316420]  ;;  %5355 = vmatpush.msra.mxu3 %v4156_v7  ;;  %v11980_v7 = vld [vmem:[#allocation36_spill] sm:$0xff] }
 0x612   :  { %2792 = vst [vmem:[#allocation1 + $0x11] ss:$2 sm:$0xff] %v11976_v11  ;;  %v5043_v11 = vpop.f32.mrf.mxu2  ;;  %5429 = vmatmul.f32.gmra.mxu0 %v3565_v12  ;;  %v11979_v41 = vld [vmem:[#allocation66_spill] sm:$0xff]  ;;  %v9945_v49 = vpop.f32.mrf.mxu1 }
 0x613   :  { %2694 = vst [vmem:[#allocation1 + $0x30] ss:$2 sm:$0xff] %v9903_v51  ;;  %v9931_v60 = vadd.f32 %v5043_v11, %v4979_v8  ;;  %5356 = vmatpush.msra.mxu3 %v4155_v31  ;;  %v3812_v11 = vld [vmem:[#allocation2 + $0x9d0] sm:$0xff]  ;;  %v3613_v31 = vld [vmem:[#allocation2 + $0x398] sm:$0xff] }
 0x614   :  { %2727 = vst.msk [vmem:[#allocation2 + $0x918] sm:$0xff] %vm881_vm2, %v2687_v3  ;;  %v4884_v3 = vpop.f32.mrf.mxu3  ;;  %v11981_v8 = vld [vmem:[#allocation37_spill] sm:$0xff] }
 0x615   :  { %2695 = vst [vmem:[#allocation1 + $0x31] ss:$2 sm:$0xff] %v9918_v6  ;;  %v9929_v36 = vadd.f32 %v4884_v3, %v9723_v40  ;;  %5357 = vmatpush.msra.mxu3 %v4154_v26  ;;  %5264 = vmatmul.f32.gmra.mxu1 %v3812_v11  ;;  %v3514_v3 = vld [vmem:[#allocation2 + $0x80] sm:$0xff]  ;;  %v11982_v26 = vld [vmem:[#allocation69_spill] sm:$0xff] }
 0x616   :  { %v2862_v16 = vld.sshfl [vmem:[#allocation1] sm:$0xff pattern:$0x75316420]  ;;  %2827 = vst.msk [vmem:[#allocation2 + $0x858] sm:$0xff] %vm881_vm2, %v2787_v46  ;;  %v4917_v46 = vadd.f32 %v9488_v56, %v9511_v18  ;;  %5358 = vmatmul.f32.vlgmr.msra.gmra.mxu3 %v3514_v3  ;;  %v11983_v56 = vld [vmem:[#allocation71_spill] sm:$0xff] }
 0x617   :  { %11977 = vst [vmem:[#allocation33_spill] sm:$0xff] %v9926_v37  ;;  %5305 = vmatmul.f32.gmra.mxu2 %v3613_v31  ;;  %v4188_v37 = vld [vmem:[%s11297_s3 + $0x910] sm:$0xff]  ;;  %v3837_v31 = vld [vmem:[#allocation2 + $0xa98] sm:$0xff] }
 0x618   :  { %2918 = vst.msk [vmem:[#allocation2 + $0x90] sm:$0xff] %vm881_vm2, %v2862_v16  ;;  %v4982_v16 = vadd.f32 %v9713_v17, %v4917_v46  ;;  %5485 = vmatpush.msrb.mxu1 %v4188_v37  ;;  %v9962_v46 = vpop.f32.mrf.mxu0  ;;  %v3638_v37 = vld [vmem:[#allocation2 + $0x460] sm:$0xff] }
 0x619   :  { %2866 = vst [vmem:[#allocation1] ss:$2 sm:$0xff] %v11978_v47  ;;  %v2798_v40 = vld.sshfl [vmem:[#allocation1 + $0x10] sm:$0xff pattern:$0x75316420] }
 0x61a   :  { %2867 = vst [vmem:[#allocation1 + $0x1] ss:$2 sm:$0xff] %v11979_v41  ;;  %v5046_v42 = vpop.f32.mrf.mxu2  ;;  %v6086_v41 = vrot.slane %v9563_v52, 10 }
 0x61b   :  { %2851 = vst [vmem:[#allocation1 + $0x10] ss:$2 sm:$0xff] %v11980_v7  ;;  %v9953_v18 = vadd.f32 %v5046_v42, %v4982_v16  ;;  %v4920_v16 = vadd.f32 %v9508_v24, %v9524_v21  ;;  %v3539_v42 = vld [vmem:[#allocation2 + $0x148] sm:$0xff] }
 0x61c   :  { %2853 = vst [vmem:[#allocation1 + $0x11] ss:$2 sm:$0xff] %v11981_v8  ;;  %v2699_v12 = vld.sshfl [vmem:[#allocation1 + $0x30] sm:$0xff pattern:$0x75316420]  ;;  %v5099_v11 = vpop.f32.mrf.mxu3  ;;  %v9974_v8 = vpop.f32.mrf.mxu1 }
 0x61d   :  { %2830 = vst.msk [vmem:[#allocation2 + $0xab0] sm:$0xff] %vm881_vm2, %v2798_v40  ;;  %v9959_v40 = vadd.f32 %v5099_v11, %v9787_v38  ;;  %5267 = vmatmul.f32.gmra.mxu1 %v3837_v31  ;;  %v2737_v38 = vrot.slane %v9746_v59, 6  ;;  %v11984_v11 = vld [vmem:[#allocation117_spill] sm:$0xff]  ;;  %v4985_v47 = vadd.f32 %v9771_v23, %v4920_v16  ;;  %v4187_v16 = vld [vmem:[%s11297_s3 + $0x908] sm:$0xff]  ;;  %v3765_v61 = vld [vmem:[#allocation2 + $0x858] sm:$0xff] }
 0x61e   :  { %2731 = vst.msk [vmem:[#allocation2 + $0xc38] sm:$0xff] %vm881_vm2, %v2699_v12  ;;  %v2734_v12 = vrot.slane %v9582_v28, 6  ;;  %5361 = vmatmul.f32.gmra.mxu3 %v3539_v42  ;;  %5486 = vmatpush.msrb.mxu1 %v4187_v16 }
 0x61f   :  { %2758 = vst [vmem:[#allocation1 + $0x30] ss:$2 sm:$0xff] %v11982_v26  ;;  %5308 = vmatmul.f32.gmra.mxu2 %v3638_v37 }
 0x620   :  { %2760 = vst [vmem:[#allocation1 + $0x31] ss:$2 sm:$0xff] %v11983_v56  ;;  %v2736_v21 = vrot.slane %v2734_v12, 4  ;;  %v9980_v7 = vsel %vm7030_vm8, %v6086_v41, %v2734_v12  ;;  %v4923_v12 = vadd.f32 %v9526_v19, %v9539_v50 }
 0x621   :  { %2793 = vst [vmem:[#allocation1 + $0x20] ss:$2 sm:$0xff] %v9293_v22  ;;  %v2874_v17 = vld.sshfl [vmem:[#allocation1] sm:$0xff pattern:$0x75316420]  ;;  %v4929_v22 = vadd.f32 %v9585_v9, %v9598_v27 }
 0x622   :  { %2794 = vst [vmem:[#allocation1 + $0x21] ss:$2 sm:$0xff] %v9299_v35  ;;  %v5049_v31 = vpop.f32.mrf.mxu2  ;;  %v9990_v37 = vsel %vm7030_vm8, %v2736_v21, %v2737_v38  ;;  %v3663_v38 = vld [vmem:[#allocation2 + $0x528] sm:$0xff]  ;;  %v3564_v21 = vld [vmem:[#allocation2 + $0x210] sm:$0xff] }
 0x623   :  { %v2863_v3 = vld.sshfl [vmem:[#allocation1 + $0x10] sm:$0xff pattern:$0x75316420]  ;;  %2922 = vst.msk [vmem:[#allocation2 + $0x3b0] sm:$0xff] %vm881_vm2, %v2874_v17  ;;  %v11985_v17 = vld [vmem:[#allocation118_spill] sm:$0xff] }
 0x624   :  { %2919 = vst.msk [vmem:[#allocation2 + $0x158] sm:$0xff] %vm881_vm2, %v2863_v3  ;;  %v11986_v3 = vld [vmem:[#allocation67_spill] sm:$0xff]  ;;  %v5102_v23 = vpop.f32.mrf.mxu3  ;;  %v10007_v19 = vpop.f32.mrf.mxu1  ;;  %v3840_v5 = vld [vmem:[#allocation2 + $0xab0] sm:$0xff] }
 0x625   :  { %2868 = vst [vmem:[#allocation1 + $0x10] ss:$2 sm:$0xff] %v11984_v11  ;;  %v9983_v11 = vadd.f32 %v5049_v31, %v4985_v47  ;;  %v9994_v42 = vadd.f32 %v5102_v23, %v9836_v13  ;;  %v3862_v47 = vld [vmem:[#allocation2 + $0xb60] sm:$0xff]  ;;  %v4988_v31 = vadd.f32 %v9831_v2, %v4923_v12 }
 0x626   :  { %2869 = vst [vmem:[#allocation1 + $0x11] ss:$2 sm:$0xff] %v11985_v17  ;;  %5270 = vmatmul.f32.gmra.mxu1 %v3862_v47  ;;  %5364 = vmatmul.f32.gmra.mxu3 %v3564_v21  ;;  %v11988_v17 = vld [vmem:[#allocation38_spill] sm:$0xff]  ;;  %v3887_v21 = vld [vmem:[#allocation2 + $0xc28] sm:$0xff] }
 0x627   :  { %v2764_v24 = vld.sshfl [vmem:[#allocation1 + $0x30] sm:$0xff pattern:$0x75316420]  ;;  %2878 = vst [vmem:[#allocation1] ss:$2 sm:$0xff] %v11986_v3  ;;  %5311 = vmatmul.f32.gmra.mxu2 %v3663_v38  ;;  %v11987_v3 = vld [vmem:[#allocation53_spill] sm:$0xff] }
 0x628   :  { %2820 = vst.msk [vmem:[#allocation2 + $0x2e0] sm:$0xff] %vm881_vm2, %v2764_v24  ;;  %v10000_v24 = vpop.f32.mrf.mxu0  ;;  %v11989_v38 = vld [vmem:[#allocation39_spill] sm:$0xff] }
 0x629   :  { %2771 = vst [vmem:[#allocation1 + $0x30] ss:$2 sm:$0xff] %v9980_v7  ;;  %v2799_v41 = vld.sshfl [vmem:[#allocation1 + $0x20] sm:$0xff pattern:$0x75316420] }
 0x62a   :  { %2772 = vst [vmem:[#allocation1 + $0x31] ss:$2 sm:$0xff] %v9990_v37  ;;  %v5052_v16 = vpop.f32.mrf.mxu2 }
 0x62b   :  { %2855 = vst [vmem:[#allocation1 + $0x20] ss:$2 sm:$0xff] %v11924_v58  ;;  %v10009_v50 = vadd.f32 %v5052_v16, %v4988_v31  ;;  %v3688_v16 = vld [vmem:[#allocation2 + $0x5f0] sm:$0xff] }
 0x62c   :  { %2857 = vst [vmem:[#allocation1 + $0x21] ss:$2 sm:$0xff] %v11925_v57  ;;  %v5105_v47 = vpop.f32.mrf.mxu3  ;;  %v3615_v57 = vld [vmem:[#allocation2 + $0x3a8] sm:$0xff] }
 0x62d   :  { %2831 = vst.msk [vmem:[#allocation2 + $0xb78] sm:$0xff] %vm881_vm2, %v2799_v41  ;;  %v2875_v13 = vld.sshfl [vmem:[#allocation1 + $0x10] sm:$0xff pattern:$0x75316420]  ;;  %v4186_v41 = vld [vmem:[%s11297_s3 + $0x900] sm:$0xff]  ;;  %v10016_v2 = vadd.f32 %v5105_v47, %v9884_v1 }
 0x62e   :  { %2879 = vst [vmem:[#allocation1 + $0x1] ss:$2 sm:$0xff] %v11987_v3  ;;  %5487 = vmatpush.msrb.mxu1 %v4186_v41  ;;  %v4926_v3 = vadd.f32 %v9542_v10, %v9561_v29  ;;  %v11993_v29 = vld [vmem:[#allocation129_spill] sm:$0xff] }
 0x62f   :  { %v3590_v23 = vld [vmem:[#allocation2 + $0x2e0] sm:$0xff]  ;;  %2923 = vst.msk [vmem:[#allocation2 + $0x478] sm:$0xff] %vm881_vm2, %v2875_v13  ;;  %v11990_v13 = vld [vmem:[#allocation84_spill] sm:$0xff]  ;;  %5273 = vmatmul.f32.gmra.mxu1 %v3887_v21  ;;  %5314 = vmatmul.f32.gmra.mxu2 %v3688_v16  ;;  %v6087_v21 = vrot.slane %v9667_v63, 10  ;;  %v2744_v16 = vrot.slane %v9863_v14, 6 }
 0x630   :  { %5432 = vmatmul.f32.gmra.mxu0 %v3590_v23  ;;  %2880 = vst [vmem:[#allocation1 + $0x10] ss:$2 sm:$0xff] %v11988_v17  ;;  %v11991_v23 = vld [vmem:[#allocation85_spill] sm:$0xff]  ;;  %v3589_v17 = vld [vmem:[#allocation2 + $0x2d8] sm:$0xff]  ;;  %v4991_v47 = vadd.f32 %v9892_v54, %v4926_v3  ;;  %v10026_v41 = vpop.f32.mrf.mxu0 }
 0x631   :  { %v2776_v12 = vld.sshfl [vmem:[#allocation1 + $0x30] sm:$0xff pattern:$0x75316420]  ;;  %2881 = vst [vmem:[#allocation1 + $0x11] ss:$2 sm:$0xff] %v11989_v38  ;;  %5367 = vmatmul.f32.gmra.mxu3 %v3589_v17  ;;  %v2741_v38 = vrot.slane %v9689_v45, 6 }
 0x632   :  { %2824 = vst.msk [vmem:[#allocation2 + $0x600] sm:$0xff] %vm881_vm2, %v2776_v12  ;;  %v11992_v12 = vld [vmem:[#allocation128_spill] sm:$0xff]  ;;  %v5055_v10 = vpop.f32.mrf.mxu2  ;;  %v4265_v54 = vld [vmem:[%s11297_s3 + $0xb78] sm:$0xff] }
 0x633   :  { %2783 = vst [vmem:[#allocation1 + $0x30] ss:$2 sm:$0xff] %v11990_v13  ;;  %v2864_v31 = vld.sshfl [vmem:[#allocation1 + $0x20] sm:$0xff pattern:$0x75316420]  ;;  %v10032_v58 = vadd.f32 %v5055_v10, %v4991_v47  ;;  %v2743_v3 = vrot.slane %v2741_v38, 4  ;;  %5732 = vmatpush.msra.mxu1 %v4265_v54 }
 0x634   :  { %2784 = vst [vmem:[#allocation1 + $0x31] ss:$2 sm:$0xff] %v11991_v23  ;;  %v11996_v47 = vld [vmem:[#allocation79_spill] sm:$0xff]  ;;  %v3516_v10 = vld [vmem:[#allocation2 + $0x90] sm:$0xff]  ;;  %v3789_v23 = vld [vmem:[#allocation2 + $0x918] sm:$0xff] }
 0x635   :  { %2920 = vst.msk [vmem:[#allocation2 + $0x220] sm:$0xff] %vm881_vm2, %v2864_v31  ;;  %v2886_v1 = vld.sshfl [vmem:[#allocation1] sm:$0xff pattern:$0x75316420]  ;;  %v5108_v31 = vpop.f32.mrf.mxu3  ;;  %v3614_v54 = vld [vmem:[#allocation2 + $0x3a0] sm:$0xff] }
 0x636   :  { %2870 = vst [vmem:[#allocation1 + $0x20] ss:$2 sm:$0xff] %v11992_v12  ;;  %v10040_v12 = vadd.f32 %v5108_v31, %v9931_v60  ;;  %v10056_v60 = vsel %vm7030_vm8, %v2743_v3, %v2744_v16  ;;  %v3713_v31 = vld [vmem:[#allocation2 + $0x6b8] sm:$0xff]  ;;  %v4264_v16 = vld [vmem:[%s11297_s3 + $0xb70] sm:$0xff] }
 0x637   :  { %2871 = vst [vmem:[#allocation1 + $0x21] ss:$2 sm:$0xff] %v11993_v29  ;;  %v11994_v29 = vld [vmem:[#allocation54_spill] sm:$0xff]  ;;  %5488 = vmatmul.f32.vlgmr.msrb.gmra.mxu1 %v3516_v10  ;;  %5317 = vmatmul.f32.gmra.mxu2 %v3713_v31  ;;  %v12001_v10 = vld [vmem:[#allocation97_spill] sm:$0xff] }
 0x638   :  { %5435 = vmatmul.f32.gmra.mxu0 %v3615_v57  ;;  %2926 = vst.msk [vmem:[#allocation2 + $0x6d0] sm:$0xff] %vm881_vm2, %v2886_v1  ;;  %v2887_v17 = vld.sshfl [vmem:[#allocation1 + $0x10] sm:$0xff pattern:$0x75316420]  ;;  %v10043_v57 = vpop.f32.mrf.mxu1  ;;  %v10049_v1 = vsel %vm7030_vm8, %v6087_v21, %v2741_v38  ;;  %v3640_v21 = vld [vmem:[#allocation2 + $0x470] sm:$0xff]  ;;  %5733 = vmatpush.msra.mxu1 %v4264_v16 }
 0x639   :  { %2890 = vst [vmem:[#allocation1] ss:$2 sm:$0xff] %v11994_v29  ;;  %5370 = vmatmul.f32.gmra.mxu3 %v3614_v54  ;;  %v12002_v54 = vld [vmem:[#allocation3_spill] sm:$0xff]  ;;  %v12005_v16 = vld [vmem:[#allocation120_spill] sm:$0xff] }
 0x63a   :  { %11995 = vst [vmem:[#allocation23_spill] sm:$0xff] %v10043_v57  ;;  %v5058_v9 = vpop.f32.mrf.mxu2 }
 0x63b   :  { %2891 = vst [vmem:[#allocation1 + $0x1] ss:$2 sm:$0xff] %v11996_v47  ;;  %v2788_v35 = vld.sshfl [vmem:[#allocation1 + $0x30] sm:$0xff pattern:$0x75316420]  ;;  %v3738_v47 = vld [vmem:[#allocation2 + $0x780] sm:$0xff] }
 0x63c   :  { %2927 = vst.msk [vmem:[#allocation2 + $0x798] sm:$0xff] %vm881_vm2, %v2887_v17  ;;  %v4994_v17 = vadd.f32 %v9945_v49, %v4929_v22  ;;  %v12000_v22 = vld [vmem:[#allocation96_spill] sm:$0xff] }
 0x63d   :  { %11997 = vst [vmem:[#allocation34_spill] sm:$0xff] %v10049_v1  ;;  %v5111_v3 = vpop.f32.mrf.mxu3 }
 0x63e   :  { %2828 = vst.msk [vmem:[#allocation2 + $0x920] sm:$0xff] %vm881_vm2, %v2788_v35  ;;  %v2876_v38 = vld.sshfl [vmem:[#allocation1 + $0x20] sm:$0xff pattern:$0x75316420]  ;;  %v10062_v35 = vpop.f32.mrf.mxu0  ;;  %v10064_v27 = vadd.f32 %v5058_v9, %v4994_v17  ;;  %v10071_v49 = vadd.f32 %v5111_v3, %v9953_v18  ;;  %v4932_v17 = vadd.f32 %v9636_v43, %v9640_v32  ;;  %v3639_v18 = vld [vmem:[#allocation2 + $0x468] sm:$0xff] }
 0x63f   :  { %11998 = vst [vmem:[#allocation101_spill] sm:$0xff] %v10056_v60  ;;  %5320 = vmatmul.f32.gmra.mxu2 %v3738_v47  ;;  %v12009_v47 = vld [vmem:[#allocation121_spill] sm:$0xff] }
 0x640   :  { %2795 = vst [vmem:[#allocation1 + $0x30] ss:$2 sm:$0xff] %v10049_v1  ;;  %5438 = vmatmul.f32.gmra.mxu0 %v3640_v21  ;;  %v12003_v21 = vld [vmem:[#allocation62_spill] sm:$0xff]  ;;  %v10078_v9 = vpop.f32.mrf.mxu1  ;;  %v4997_v29 = vadd.f32 %v9974_v8, %v4932_v17  ;;  %v2835_v17 = vrot.slane %v9582_v28, 7 }
 0x641   :  { %2796 = vst [vmem:[#allocation1 + $0x31] ss:$2 sm:$0xff] %v10056_v60  ;;  %5373 = vmatmul.f32.gmra.mxu3 %v3639_v18  ;;  %v3764_v60 = vld [vmem:[#allocation2 + $0x850] sm:$0xff]  ;;  %v12033_v1 = vld [vmem:[#allocation22_spill] sm:$0xff] }
 0x642   :  { %2924 = vst.msk [vmem:[#allocation2 + $0x540] sm:$0xff] %vm881_vm2, %v2876_v38  ;;  %v2898_v31 = vld.sshfl [vmem:[#allocation1] sm:$0xff pattern:$0x75316420] }
 0x643   :  { %11999 = vst [vmem:[#allocation57_spill] sm:$0xff] %v10064_v27  ;;  %v3541_v38 = vld [vmem:[#allocation2 + $0x158] sm:$0xff] }
 0x644   :  { %2882 = vst [vmem:[#allocation1 + $0x20] ss:$2 sm:$0xff] %v12000_v22  ;;  %5491 = vmatmul.f32.gmra.mxu1 %v3541_v38  ;;  %v12007_v22 = vld [vmem:[#allocation95_spill] sm:$0xff]  ;;  %v12013_v27 = vld [vmem:[#allocation130_spill] sm:$0xff] }
 0x645   :  { %2883 = vst [vmem:[#allocation1 + $0x21] ss:$2 sm:$0xff] %v12001_v10  ;;  %v5061_v10 = vpop.f32.mrf.mxu2  ;;  %v5114_v32 = vpop.f32.mrf.mxu3  ;;  %v3790_v48 = vld [vmem:[#allocation2 + $0x920] sm:$0xff] }
 0x646   :  { %2934 = vst [vmem:[#allocation1] ss:$2 sm:$0xff] %v12002_v54  ;;  %v12006_v54 = vld [vmem:[#allocation94_spill] sm:$0xff]  ;;  %v10085_v43 = vadd.f32 %v5061_v10, %v4997_v29  ;;  %v10092_v8 = vadd.f32 %v5114_v32, %v9983_v11  ;;  %v10096_v18 = vpop.f32.mrf.mxu0  ;;  %v3566_v10 = vld [vmem:[#allocation2 + $0x220] sm:$0xff]  ;;  %v6088_v32 = vrot.slane %v9563_v52, 11 }
 0x647   :  { %2936 = vst [vmem:[#allocation1 + $0x1] ss:$2 sm:$0xff] %v12003_v21  ;;  %v3665_v21 = vld [vmem:[#allocation2 + $0x538] sm:$0xff] }
 0x648   :  { %12004 = vst [vmem:[#allocation59_spill] sm:$0xff] %v10078_v9  ;;  %v2800_v3 = vld.sshfl [vmem:[#allocation1 + $0x30] sm:$0xff pattern:$0x75316420]  ;;  %5441 = vmatmul.f32.gmra.mxu0 %v3665_v21  ;;  %v12010_v21 = vld [vmem:[#allocation13_spill] sm:$0xff]  ;;  %v2838_v9 = vrot.slane %v9746_v59, 7  ;;  %v10107_v57 = vpop.f32.mrf.mxu1 }
 0x649   :  { %2930 = vst.msk [vmem:[#allocation2 + $0x9f0] sm:$0xff] %vm881_vm2, %v2898_v31  ;;  %v4263_v31 = vld [vmem:[%s11297_s3 + $0xb68] sm:$0xff]  ;;  %v12011_v11 = vld [vmem:[#allocation70_spill] sm:$0xff] }
 0x64a   :  { %2892 = vst [vmem:[#allocation1 + $0x10] ss:$2 sm:$0xff] %v12005_v16  ;;  %5734 = vmatpush.msra.mxu1 %v4263_v31  ;;  %v3763_v31 = vld [vmem:[#allocation2 + $0x848] sm:$0xff]  ;;  %v2837_v16 = vrot.slane %v2835_v17, 4 }
 0x64b   :  { %2859 = vst [vmem:[#allocation1 + $0x30] ss:$2 sm:$0xff] %v12006_v54  ;;  %5323 = vmatmul.f32.gmra.mxu2 %v3763_v31  ;;  %v12020_v31 = vld [vmem:[#allocation21_spill] sm:$0xff]  ;;  %v12030_v54 = vld [vmem:[#allocation8_spill] sm:$0xff] }
 0x64c   :  { %2861 = vst [vmem:[#allocation1 + $0x31] ss:$2 sm:$0xff] %v12007_v22  ;;  %v2888_v38 = vld.sshfl [vmem:[#allocation1 + $0x20] sm:$0xff pattern:$0x75316420]  ;;  %5494 = vmatmul.f32.gmra.mxu1 %v3566_v10  ;;  %v3690_v10 = vld [vmem:[#allocation2 + $0x600] sm:$0xff] }
 0x64d   :  { %12008 = vst [vmem:[#allocation108_spill] sm:$0xff] %v10085_v43  ;;  %v4243_v22 = vld [vmem:[%s11297_s3 + $0xac8] sm:$0xff] }
 0x64e   :  { %2832 = vst.msk [vmem:[#allocation2 + $0xc40] sm:$0xff] %vm881_vm2, %v2800_v3  ;;  %v2949_v29 = vld.sshfl [vmem:[#allocation1] sm:$0xff pattern:$0x75316420]  ;;  %v4935_v3 = vadd.f32 %v9695_v30, %v9683_v15  ;;  %v10112_v30 = vsel %vm7079_vm10, %v6088_v32, %v2835_v17  ;;  %v12091_v15 = vld [vmem:[#allocation32_spill] sm:$0xff] }
 0x64f   :  { %2893 = vst [vmem:[#allocation1 + $0x11] ss:$2 sm:$0xff] %v12009_v47  ;;  %v3664_v47 = vld [vmem:[#allocation2 + $0x530] sm:$0xff] }
 0x650   :  { %2928 = vst.msk [vmem:[#allocation2 + $0x860] sm:$0xff] %vm881_vm2, %v2888_v38  ;;  %v5000_v38 = vadd.f32 %v10007_v19, %v4935_v3  ;;  %5376 = vmatmul.f32.gmra.mxu3 %v3664_v47  ;;  %5444 = vmatmul.f32.gmra.mxu0 %v3690_v10  ;;  %v5117_v3 = vpop.f32.mrf.mxu3  ;;  %v4262_v47 = vld [vmem:[%s11297_s3 + $0xb60] sm:$0xff] }
 0x651   :  { %2953 = vst [vmem:[#allocation1] ss:$2 sm:$0xff] %v12010_v21  ;;  %v10126_v32 = vadd.f32 %v5117_v3, %v10009_v50  ;;  %5735 = vmatpush.msra.mxu1 %v4262_v47  ;;  %v3689_v10 = vld [vmem:[#allocation2 + $0x5f8] sm:$0xff]  ;;  %v3715_v3 = vld [vmem:[#allocation2 + $0x6c8] sm:$0xff]  ;;  %v10137_v47 = vpop.f32.mrf.mxu1 }
 0x652   :  { %2954 = vst [vmem:[#allocation1 + $0x1] ss:$2 sm:$0xff] %v12011_v11  ;;  %v5064_v11 = vpop.f32.mrf.mxu2 }
 0x653   :  { %3005 = vst.msk [vmem:[#allocation2 + $0x98] sm:$0xff] %vm881_vm2, %v2949_v29  ;;  %v2865_v43 = vld.sshfl [vmem:[#allocation1 + $0x30] sm:$0xff pattern:$0x75316420]  ;;  %v10117_v29 = vsel %vm7079_vm10, %v2837_v16, %v2838_v9  ;;  %v10119_v19 = vadd.f32 %v5064_v11, %v5000_v38  ;;  %v12019_v16 = vld [vmem:[#allocation6_spill] sm:$0xff]  ;;  %v10131_v11 = vpop.f32.mrf.mxu0  ;;  %v3788_v38 = vld [vmem:[#allocation2 + $0x910] sm:$0xff] }
 0x654   :  { %12012 = vst [vmem:[#allocation46_spill] sm:$0xff] %v10107_v57  ;;  %v12021_v57 = vld [vmem:[#allocation77_spill] sm:$0xff]  ;;  %5326 = vmatmul.f32.gmra.mxu2 %v3788_v38  ;;  %v12023_v38 = vld [vmem:[#allocation131_spill] sm:$0xff] }
 0x655   :  { %2894 = vst [vmem:[#allocation1 + $0x20] ss:$2 sm:$0xff] %v12013_v27 }
 0x656   :  { %12015 = vst [vmem:[#allocation69_spill] sm:$0xff] %v10112_v30  ;;  %v2899_v17 = vld.sshfl [vmem:[#allocation1 + $0x10] sm:$0xff pattern:$0x75316420] }
 0x657   :  { %2921 = vst.msk [vmem:[#allocation2 + $0x2e8] sm:$0xff] %vm881_vm2, %v2865_v43  ;;  %v12018_v43 = vld [vmem:[#allocation5_spill] sm:$0xff] }
 0x658   :  { %12016 = vst [vmem:[#allocation71_spill] sm:$0xff] %v10117_v29  ;;  %5379 = vmatmul.f32.gmra.mxu3 %v3689_v10  ;;  %5447 = vmatmul.f32.gmra.mxu0 %v3715_v3  ;;  %v4216_v10 = vld [vmem:[%s11297_s3 + $0x9f0] sm:$0xff]  ;;  %v4215_v3 = vld [vmem:[%s11297_s3 + $0x9e8] sm:$0xff] }
 0x659   :  { %12017 = vst [vmem:[#allocation67_spill] sm:$0xff] %v10119_v19  ;;  %v2961_v9 = vld.sshfl [vmem:[#allocation1] sm:$0xff pattern:$0x75316420]  ;;  %v3740_v19 = vld [vmem:[#allocation2 + $0x790] sm:$0xff] }
 0x65a   :  { %2872 = vst [vmem:[#allocation1 + $0x30] ss:$2 sm:$0xff] %v10112_v30  ;;  %v3838_v30 = vld [vmem:[#allocation2 + $0xaa0] sm:$0xff] }
 0x65b   :  { %2873 = vst [vmem:[#allocation1 + $0x31] ss:$2 sm:$0xff] %v10117_v29  ;;  %v10169_v27 = vpop.f32.mrf.mxu0 }
 0x65c   :  { %2938 = vst [vmem:[#allocation1 + $0x10] ss:$2 sm:$0xff] %v12018_v43 }
 0x65d   :  { %2940 = vst [vmem:[#allocation1 + $0x11] ss:$2 sm:$0xff] %v12019_v16  ;;  %v5120_v16 = vpop.f32.mrf.mxu3 }
 0x65e   :  { %2965 = vst [vmem:[#allocation1] ss:$2 sm:$0xff] %v12020_v31  ;;  %v3591_v50 = vld [vmem:[#allocation2 + $0x2e8] sm:$0xff]  ;;  %v4261_v31 = vld [vmem:[%s11297_s3 + $0xb58] sm:$0xff] }
 0x65f   :  { %2966 = vst [vmem:[#allocation1 + $0x1] ss:$2 sm:$0xff] %v12021_v57  ;;  %5497 = vmatmul.f32.gmra.mxu1 %v3591_v50  ;;  %v4217_v57 = vld [vmem:[%s11297_s3 + $0x9f8] sm:$0xff]  ;;  %v4248_v50 = vld [vmem:[%s11297_s3 + $0xaf0] sm:$0xff] }
 0x660   :  { %3009 = vst.msk [vmem:[#allocation2 + $0x3b8] sm:$0xff] %vm881_vm2, %v2961_v9  ;;  %v4249_v9 = vld [vmem:[%s11297_s3 + $0xaf8] sm:$0xff]  ;;  %5736 = vmatpush.msra.mxu1 %v4261_v31  ;;  %5537 = vmatpush.msrb.mxu2 %v4217_v57  ;;  %v3813_v31 = vld [vmem:[#allocation2 + $0x9d8] sm:$0xff]  ;;  %v3714_v57 = vld [vmem:[#allocation2 + $0x6c0] sm:$0xff] }
 0x661   :  { %2931 = vst.msk [vmem:[#allocation2 + $0xab8] sm:$0xff] %vm881_vm2, %v2899_v17  ;;  %v10150_v17 = vadd.f32 %v5120_v16, %v10032_v58  ;;  %5667 = vmatpush.msrb.mxu0 %v4249_v9  ;;  %v4247_v58 = vld [vmem:[%s11297_s3 + $0xae8] sm:$0xff]  ;;  %v4214_v9 = vld [vmem:[%s11297_s3 + $0x9e0] sm:$0xff]  ;;  %5329 = vmatmul.f32.gmra.mxu2 %v3813_v31  ;;  %v4260_v31 = vld [vmem:[%s11297_s3 + $0xb50] sm:$0xff] }
 0x662   :  { %12022 = vst [vmem:[#allocation53_spill] sm:$0xff] %v10137_v47  ;;  %5538 = vmatpush.msrb.mxu2 %v4216_v10  ;;  %v2877_v47 = vld.sshfl [vmem:[#allocation1 + $0x30] sm:$0xff pattern:$0x75316420]  ;;  %5382 = vmatmul.f32.gmra.mxu3 %v3714_v57  ;;  %v3616_v10 = vld [vmem:[#allocation2 + $0x3b0] sm:$0xff] }
 0x663   :  { %2895 = vst [vmem:[#allocation1 + $0x21] ss:$2 sm:$0xff] %v12023_v38  ;;  %5668 = vmatpush.msrb.mxu0 %v4248_v50  ;;  %v12024_v38 = vld [vmem:[#allocation104_spill] sm:$0xff]  ;;  %v4246_v50 = vld [vmem:[%s11297_s3 + $0xae0] sm:$0xff]  ;;  %v4213_v57 = vld [vmem:[%s11297_s3 + $0x9d8] sm:$0xff]  ;;  %5737 = vmatpush.msra.mxu1 %v4260_v31 }
 0x664   :  { %2925 = vst.msk [vmem:[#allocation2 + $0x608] sm:$0xff] %vm881_vm2, %v2877_v47  ;;  %5539 = vmatpush.msrb.mxu2 %v4215_v3  ;;  %v12025_v47 = vld [vmem:[#allocation105_spill] sm:$0xff]  ;;  %v12026_v3 = vld [vmem:[#allocation58_spill] sm:$0xff]  ;;  %v2950_v29 = vld.sshfl [vmem:[#allocation1 + $0x10] sm:$0xff pattern:$0x75316420]  ;;  %5450 = vmatmul.f32.gmra.mxu0 %v3740_v19 }
 0x665   :  { %2884 = vst [vmem:[#allocation1 + $0x30] ss:$2 sm:$0xff] %v12024_v38  ;;  %5669 = vmatpush.msrb.mxu0 %v4247_v58  ;;  %v12027_v38 = vld [vmem:[#allocation83_spill] sm:$0xff]  ;;  %v4233_v19 = vld [vmem:[%s11297_s3 + $0xa78] sm:$0xff]  ;;  %v4212_v58 = vld [vmem:[%s11297_s3 + $0x9d0] sm:$0xff] }
 0x666   :  { %v2973_v16 = vld.sshfl [vmem:[#allocation1] sm:$0xff pattern:$0x75316420]  ;;  %2885 = vst [vmem:[#allocation1 + $0x31] ss:$2 sm:$0xff] %v12025_v47  ;;  %5540 = vmatpush.msrb.mxu2 %v4214_v9  ;;  %v4245_v47 = vld [vmem:[%s11297_s3 + $0xad8] sm:$0xff]  ;;  %v10193_v9 = vpop.f32.mrf.mxu1  ;;  %5602 = vmatpush.msrb.mxu3 %v4233_v19 }
 0x667   :  { %5500 = vmatmul.f32.gmra.mxu1 %v3616_v10  ;;  %2977 = vst [vmem:[#allocation1] ss:$2 sm:$0xff] %v12026_v3  ;;  %5670 = vmatpush.msrb.mxu0 %v4246_v50  ;;  %v4244_v10 = vld [vmem:[%s11297_s3 + $0xad0] sm:$0xff]  ;;  %v12028_v50 = vld [vmem:[#allocation63_spill] sm:$0xff]  ;;  %v3641_v19 = vld [vmem:[#allocation2 + $0x478] sm:$0xff] }
 0x668   :  { %2978 = vst [vmem:[#allocation1 + $0x1] ss:$2 sm:$0xff] %v12027_v38  ;;  %5541 = vmatpush.msrb.mxu2 %v4213_v57  ;;  %v12029_v38 = vld [vmem:[#allocation78_spill] sm:$0xff]  ;;  %v3739_v57 = vld [vmem:[#allocation2 + $0x788] sm:$0xff] }
 0x669   :  { %3013 = vst.msk [vmem:[#allocation2 + $0x6d8] sm:$0xff] %vm881_vm2, %v2973_v16  ;;  %5671 = vmatpush.msrb.mxu0 %v4245_v47  ;;  %v4211_v16 = vld [vmem:[%s11297_s3 + $0x9c8] sm:$0xff]  ;;  %5332 = vmatmul.f32.gmra.mxu2 %v3838_v30  ;;  %v4210_v47 = vld [vmem:[%s11297_s3 + $0x9c0] sm:$0xff] }
 0x66a   :  { %2955 = vst [vmem:[#allocation1 + $0x10] ss:$2 sm:$0xff] %v12028_v50  ;;  %v2900_v31 = vld.sshfl [vmem:[#allocation1 + $0x20] sm:$0xff pattern:$0x75316420]  ;;  %5542 = vmatpush.msrb.mxu2 %v4212_v58  ;;  %5385 = vmatmul.f32.gmra.mxu3 %v3739_v57  ;;  %v12031_v58 = vld [vmem:[#allocation43_spill] sm:$0xff] }
 0x66b   :  { %2956 = vst [vmem:[#allocation1 + $0x11] ss:$2 sm:$0xff] %v12029_v38  ;;  %5672 = vmatpush.msrb.mxu0 %v4244_v10  ;;  %v10213_v10 = vpop.f32.mrf.mxu0  ;;  %v4242_v30 = vld [vmem:[%s11297_s3 + $0xac0] sm:$0xff]  ;;  %v4259_v57 = vld [vmem:[%s11297_s3 + $0xb48] sm:$0xff] }
 0x66c   :  { %3006 = vst.msk [vmem:[#allocation2 + $0x160] sm:$0xff] %vm881_vm2, %v2950_v29  ;;  %5543 = vmatpush.msrb.mxu2 %v4211_v16  ;;  %5453 = vmatmul.f32.gmra.mxu0 %v3765_v61  ;;  %v4232_v61 = vld [vmem:[%s11297_s3 + $0xa70] sm:$0xff] }
 0x66d   :  { %2942 = vst [vmem:[#allocation1 + $0x20] ss:$2 sm:$0xff] %v12030_v54  ;;  %v2889_v38 = vld.sshfl [vmem:[#allocation1 + $0x30] sm:$0xff pattern:$0x75316420]  ;;  %5673 = vmatpush.msrb.mxu0 %v4243_v22  ;;  %5738 = vmatpush.msra.mxu1 %v4259_v57  ;;  %v6089_v22 = vrot.slane %v9667_v63, 11 }
 0x66e   :  { %2944 = vst [vmem:[#allocation1 + $0x21] ss:$2 sm:$0xff] %v12031_v58  ;;  %v4209_v58 = vld [vmem:[%s11297_s3 + $0x9b8] sm:$0xff]  ;;  %5544 = vmatpush.msrb.mxu2 %v4210_v47  ;;  %5603 = vmatpush.msrb.mxu3 %v4232_v61  ;;  %v4208_v16 = vld [vmem:[%s11297_s3 + $0x9b0] sm:$0xff]  ;;  %v4239_v57 = vld [vmem:[%s11297_s3 + $0xaa8] sm:$0xff] }
 0x66f   :  { %5503 = vmatmul.f32.gmra.mxu1 %v3641_v19  ;;  %v2985_v29 = vld.sshfl [vmem:[#allocation1] sm:$0xff pattern:$0x75316420]  ;;  %2932 = vst.msk [vmem:[#allocation2 + $0xb80] sm:$0xff] %vm881_vm2, %v2900_v31  ;;  %v12032_v19 = vld [vmem:[#allocation4_spill] sm:$0xff]  ;;  %v4241_v31 = vld [vmem:[%s11297_s3 + $0xab8] sm:$0xff]  ;;  %5674 = vmatpush.msrb.mxu0 %v4242_v30 }
 0x670   :  { %3021 = vst [vmem:[#allocation1] ss:$2 sm:$0xff] %v12032_v19  ;;  %5545 = vmatpush.msrb.mxu2 %v4209_v58  ;;  %v10239_v19 = vpop.f32.mrf.mxu1  ;;  %v4240_v61 = vld [vmem:[%s11297_s3 + $0xab0] sm:$0xff]  ;;  %v4207_v58 = vld [vmem:[%s11297_s3 + $0x9a8] sm:$0xff] }
 0x671   :  { %3023 = vst [vmem:[#allocation1 + $0x1] ss:$2 sm:$0xff] %v12018_v43  ;;  %v3863_v43 = vld [vmem:[#allocation2 + $0xb68] sm:$0xff]  ;;  %5675 = vmatpush.msrb.mxu0 %v4241_v31  ;;  %v3666_v30 = vld [vmem:[#allocation2 + $0x540] sm:$0xff]  ;;  %v4206_v31 = vld [vmem:[%s11297_s3 + $0x9a0] sm:$0xff] }
 0x672   :  { %3017 = vst.msk [vmem:[#allocation2 + $0x9f8] sm:$0xff] %vm881_vm2, %v2985_v29  ;;  %v2962_v47 = vld.sshfl [vmem:[#allocation1 + $0x10] sm:$0xff pattern:$0x75316420]  ;;  %5546 = vmatpush.msrb.mxu2 %v4208_v16  ;;  %5388 = vmatmul.f32.gmra.mxu3 %v3764_v60  ;;  %v12035_v16 = vld [vmem:[#allocation119_spill] sm:$0xff]  ;;  %v4238_v60 = vld [vmem:[%s11297_s3 + $0xaa0] sm:$0xff] }
 0x673   :  { %2929 = vst.msk [vmem:[#allocation2 + $0x928] sm:$0xff] %vm881_vm2, %v2889_v38  ;;  %v12034_v29 = vld [vmem:[#allocation24_spill] sm:$0xff]  ;;  %5335 = vmatmul.f32.gmra.mxu2 %v3863_v43  ;;  %5676 = vmatpush.msrb.mxu0 %v4240_v61  ;;  %v4258_v43 = vld [vmem:[%s11297_s3 + $0xb40] sm:$0xff]  ;;  %v12037_v61 = vrot.slane %v9689_v45, 7 }
 0x674   :  { %2967 = vst [vmem:[#allocation1 + $0x10] ss:$2 sm:$0xff] %v12033_v1  ;;  %5456 = vmatmul.f32.gmra.mxu0 %v3790_v48  ;;  %5547 = vmatpush.msrb.mxu2 %v4207_v58  ;;  %v4205_v48 = vld [vmem:[%s11297_s3 + $0x998] sm:$0xff]  ;;  %v4231_v58 = vld [vmem:[%s11297_s3 + $0xa68] sm:$0xff] }
 0x675   :  { %2968 = vst [vmem:[#allocation1 + $0x11] ss:$2 sm:$0xff] %v12034_v29  ;;  %v2951_v38 = vld.sshfl [vmem:[#allocation1 + $0x20] sm:$0xff pattern:$0x75316420]  ;;  %5677 = vmatpush.msrb.mxu0 %v4239_v57  ;;  %5739 = vmatpush.msra.mxu1 %v4258_v43  ;;  %v10277_v29 = vpop.f32.mrf.mxu0  ;;  %v4204_v43 = vld [vmem:[%s11297_s3 + $0x990] sm:$0xff] }
 0x676   :  { %3010 = vst.msk [vmem:[#allocation2 + $0x480] sm:$0xff] %vm881_vm2, %v2962_v47  ;;  %v12036_v47 = vld [vmem:[#allocation111_spill] sm:$0xff]  ;;  %5548 = vmatpush.msrb.mxu2 %v4206_v31  ;;  %5604 = vmatpush.msrb.mxu3 %v4231_v58  ;;  %v3691_v58 = vld [vmem:[#allocation2 + $0x608] sm:$0xff] }
 0x677   :  { %5506 = vmatmul.f32.gmra.mxu1 %v3666_v30  ;;  %2957 = vst [vmem:[#allocation1 + $0x20] ss:$2 sm:$0xff] %v12035_v16  ;;  %v10268_v30 = vsel %vm7079_vm10, %v6089_v22, %v12037_v61  ;;  %v4237_v22 = vld [vmem:[%s11297_s3 + $0xa98] sm:$0xff]  ;;  %5678 = vmatpush.msrb.mxu0 %v4238_v60  ;;  %v12039_v61 = vld [vmem:[#allocation80_spill] sm:$0xff] }
 0x678   :  { %2958 = vst [vmem:[#allocation1 + $0x21] ss:$2 sm:$0xff] %v12036_v47  ;;  %v3036_v57 = vld.sshfl [vmem:[#allocation1] sm:$0xff pattern:$0x75316420]  ;;  %5549 = vmatpush.msrb.mxu2 %v4205_v48  ;;  %v3888_v47 = vld [vmem:[#allocation2 + $0xc30] sm:$0xff]  ;;  %v10288_v31 = vpop.f32.mrf.mxu1 }
 0x679   :  { %12038 = vst [vmem:[#allocation3_spill] sm:$0xff] %v10268_v30  ;;  %5679 = vmatpush.msrb.mxu0 %v4237_v22  ;;  %v4236_v60 = vld [vmem:[%s11297_s3 + $0xa90] sm:$0xff]  ;;  %v4203_v48 = vld [vmem:[%s11297_s3 + $0x988] sm:$0xff] }
 0x67a   :  { %3007 = vst.msk [vmem:[#allocation2 + $0x228] sm:$0xff] %vm881_vm2, %v2951_v38  ;;  %5391 = vmatmul.f32.gmra.mxu3 %v3789_v23  ;;  %5550 = vmatpush.msrb.mxu2 %v4204_v43  ;;  %v12040_v22 = vld [vmem:[#allocation76_spill] sm:$0xff]  ;;  %v4235_v23 = vld [vmem:[%s11297_s3 + $0xa88] sm:$0xff] }
 0x67b   :  { %2896 = vst [vmem:[#allocation1 + $0x30] ss:$2 sm:$0xff] %v10268_v30  ;;  %5338 = vmatmul.f32.gmra.mxu2 %v3888_v47  ;;  %v4202_v47 = vld [vmem:[%s11297_s3 + $0x980] sm:$0xff]  ;;  %v12041_v30 = vld [vmem:[#allocation92_spill] sm:$0xff]  ;;  %5680 = vmatpush.msrb.mxu0 %v4236_v60  ;;  %v3814_v60 = vld [vmem:[#allocation2 + $0x9e0] sm:$0xff] }
 0x67c   :  { %3040 = vst [vmem:[#allocation1] ss:$2 sm:$0xff] %v12039_v61  ;;  %v2974_v38 = vld.sshfl [vmem:[#allocation1 + $0x10] sm:$0xff pattern:$0x75316420]  ;;  %5551 = vmatpush.msrb.mxu2 %v4203_v48  ;;  %v3517_v48 = vld [vmem:[#allocation2 + $0x98] sm:$0xff] }
 0x67d   :  { %3041 = vst [vmem:[#allocation1 + $0x1] ss:$2 sm:$0xff] %v12028_v50  ;;  %v3815_v61 = vld [vmem:[#allocation2 + $0x9e8] sm:$0xff]  ;;  %5681 = vmatpush.msrb.mxu0 %v4235_v23 }
 0x67e   :  { %3092 = vst.msk [vmem:[#allocation2 + $0xa0] sm:$0xff] %vm881_vm2, %v3036_v57  ;;  %5459 = vmatmul.f32.gmra.mxu0 %v3815_v61  ;;  %v4234_v57 = vld [vmem:[%s11297_s3 + $0xa80] sm:$0xff]  ;;  %v12042_v43 = vld [vmem:[#allocation40_spill] sm:$0xff]  ;;  %5552 = vmatpush.msrb.mxu2 %v4202_v47  ;;  %v10311_v61 = vpop.f32.mrf.mxu0 }
 0x67f   :  { %5509 = vmatmul.f32.gmra.mxu1 %v3691_v58  ;;  %2979 = vst [vmem:[#allocation1 + $0x10] ss:$2 sm:$0xff] %v12040_v22  ;;  %v2963_v50 = vld.sshfl [vmem:[#allocation1 + $0x20] sm:$0xff pattern:$0x75316420]  ;;  %v12043_v58 = vld [vmem:[#allocation48_spill] sm:$0xff]  ;;  %5682 = vmatpush.msrb.mxu0 %v4234_v57 }
 0x680   :  { %2980 = vst [vmem:[#allocation1 + $0x11] ss:$2 sm:$0xff] %v12041_v30  ;;  %v12045_v30 = vld [vmem:[#allocation20_spill] sm:$0xff]  ;;  %v10317_v47 = vpop.f32.mrf.mxu1  ;;  %v12046_v57 = vld [vmem:[#allocation7_spill] sm:$0xff] }
 0x681   :  { %3014 = vst.msk [vmem:[#allocation2 + $0x7a0] sm:$0xff] %vm881_vm2, %v2974_v38  ;;  %v3716_v38 = vld [vmem:[#allocation2 + $0x6d0] sm:$0xff] }
 0x682   :  { %2969 = vst [vmem:[#allocation1 + $0x20] ss:$2 sm:$0xff] %v12042_v43  ;;  %5394 = vmatmul.f32.gmra.mxu3 %v3814_v60  ;;  %v12047_v60 = vld [vmem:[#allocation68_spill] sm:$0xff] }
 0x683   :  { %2970 = vst [vmem:[#allocation1 + $0x21] ss:$2 sm:$0xff] %v12043_v58  ;;  %5553 = vmatmul.f32.vlgmr.msrb.gmra.mxu2 %v3517_v48  ;;  %v3542_v58 = vld [vmem:[#allocation2 + $0x160] sm:$0xff] }
 0x684   :  { %12044 = vst [vmem:[#allocation62_spill] sm:$0xff] %v10311_v61  ;;  %v3048_v13 = vld.sshfl [vmem:[#allocation1] sm:$0xff pattern:$0x75316420]  ;;  %v12050_v61 = vld [vmem:[#allocation64_spill] sm:$0xff] }
 0x685   :  { %3011 = vst.msk [vmem:[#allocation2 + $0x548] sm:$0xff] %vm881_vm2, %v2963_v50  ;;  %v4257_v50 = vld [vmem:[%s11297_s3 + $0xb38] sm:$0xff] }
 0x686   :  { %3052 = vst [vmem:[#allocation1] ss:$2 sm:$0xff] %v12045_v30  ;;  %5462 = vmatmul.f32.gmra.mxu0 %v3840_v5  ;;  %v4230_v30 = vld [vmem:[%s11297_s3 + $0xa60] sm:$0xff]  ;;  %5740 = vmatpush.msra.mxu1 %v4257_v50 }
 0x687   :  { %3053 = vst [vmem:[#allocation1 + $0x1] ss:$2 sm:$0xff] %v12033_v1  ;;  %5512 = vmatmul.f32.gmra.mxu1 %v3716_v38  ;;  %v2986_v23 = vld.sshfl [vmem:[#allocation1 + $0x10] sm:$0xff pattern:$0x75316420]  ;;  %5605 = vmatpush.msrb.mxu3 %v4230_v30  ;;  %v12048_v5 = vld [vmem:[#allocation14_spill] sm:$0xff]  ;;  %v10331_v1 = vpop.f32.mrf.mxu0 }
 0x688   :  { %3096 = vst.msk [vmem:[#allocation2 + $0x3c0] sm:$0xff] %vm881_vm2, %v3048_v13  ;;  %v3839_v38 = vld [vmem:[#allocation2 + $0xaa8] sm:$0xff]  ;;  %v3741_v50 = vld [vmem:[#allocation2 + $0x798] sm:$0xff] }
 0x689   :  { %3025 = vst [vmem:[#allocation1 + $0x10] ss:$2 sm:$0xff] %v12046_v57  ;;  %v3865_v30 = vld [vmem:[#allocation2 + $0xb78] sm:$0xff]  ;;  %v12051_v57 = vld [vmem:[#allocation112_spill] sm:$0xff] }
 0x68a   :  { %3027 = vst [vmem:[#allocation1 + $0x11] ss:$2 sm:$0xff] %v12030_v54  ;;  %v2975_v13 = vld.sshfl [vmem:[#allocation1 + $0x20] sm:$0xff pattern:$0x75316420]  ;;  %5397 = vmatmul.f32.gmra.mxu3 %v3839_v38  ;;  %v3567_v38 = vld [vmem:[#allocation2 + $0x228] sm:$0xff] }
 0x68b   :  { %3018 = vst.msk [vmem:[#allocation2 + $0xac0] sm:$0xff] %vm881_vm2, %v2986_v23  ;;  %5556 = vmatmul.f32.gmra.mxu2 %v3542_v58  ;;  %v3864_v58 = vld [vmem:[#allocation2 + $0xb70] sm:$0xff]  ;;  %v12053_v54 = vld [vmem:[#allocation10_spill] sm:$0xff] }
 0x68c   :  { %2981 = vst [vmem:[#allocation1 + $0x20] ss:$2 sm:$0xff] %v12047_v60 }
 0x68d   :  { %2982 = vst [vmem:[#allocation1 + $0x21] ss:$2 sm:$0xff] %v12048_v5  ;;  %v10337_v5 = vpop.f32.mrf.mxu1 }
 0x68e   :  { %v3060_v48 = vld.sshfl [vmem:[#allocation1] sm:$0xff pattern:$0x75316420]  ;;  %3015 = vst.msk [vmem:[#allocation2 + $0x868] sm:$0xff] %vm881_vm2, %v2975_v13  ;;  %5465 = vmatmul.f32.gmra.mxu0 %v3865_v30  ;;  %v12052_v13 = vld [vmem:[#allocation9_spill] sm:$0xff]  ;;  %v3766_v30 = vld [vmem:[#allocation2 + $0x860] sm:$0xff] }
 0x68f   :  { %12049 = vst [vmem:[#allocation21_spill] sm:$0xff] %v10331_v1  ;;  %5515 = vmatmul.f32.gmra.mxu1 %v3741_v50  ;;  %v10350_v1 = vpop.f32.mrf.mxu2 }
 0x690   :  { %3064 = vst [vmem:[#allocation1] ss:$2 sm:$0xff] %v12050_v61 }
 0x691   :  { %3065 = vst [vmem:[#allocation1 + $0x1] ss:$2 sm:$0xff] %v12040_v22  ;;  %v3037_v23 = vld.sshfl [vmem:[#allocation1 + $0x10] sm:$0xff pattern:$0x75316420]  ;;  %v10345_v22 = vpop.f32.mrf.mxu0 }
 0x692   :  { %3100 = vst.msk [vmem:[#allocation2 + $0x6e0] sm:$0xff] %vm881_vm2, %v3060_v48  ;;  %5400 = vmatmul.f32.gmra.mxu3 %v3864_v58  ;;  %v3890_v48 = vld [vmem:[#allocation2 + $0xc40] sm:$0xff] }
 0x693   :  { %3042 = vst [vmem:[#allocation1 + $0x10] ss:$2 sm:$0xff] %v12051_v57  ;;  %5559 = vmatmul.f32.gmra.mxu2 %v3567_v38  ;;  %v12054_v57 = vld [vmem:[#allocation26_spill] sm:$0xff]  ;;  %v4256_v38 = vld [vmem:[%s11297_s3 + $0xb30] sm:$0xff] }
 0x694   :  { %3043 = vst [vmem:[#allocation1 + $0x11] ss:$2 sm:$0xff] %v12035_v16  ;;  %v2987_v61 = vld.sshfl [vmem:[#allocation1 + $0x20] sm:$0xff pattern:$0x75316420]  ;;  %v12057_v16 = vld [vmem:[#allocation25_spill] sm:$0xff]  ;;  %5741 = vmatpush.msra.mxu1 %v4256_v38 }
 0x695   :  { %3093 = vst.msk [vmem:[#allocation2 + $0x168] sm:$0xff] %vm881_vm2, %v3037_v23  ;;  %v12056_v23 = vld [vmem:[#allocation27_spill] sm:$0xff]  ;;  %v10353_v58 = vpop.f32.mrf.mxu1 }
 0x696   :  { %3029 = vst [vmem:[#allocation1 + $0x20] ss:$2 sm:$0xff] %v12052_v13  ;;  %5468 = vmatmul.f32.gmra.mxu0 %v3890_v48  ;;  %v3791_v48 = vld [vmem:[#allocation2 + $0x928] sm:$0xff] }
 0x697   :  { %3031 = vst [vmem:[#allocation1 + $0x21] ss:$2 sm:$0xff] %v12053_v54  ;;  %5518 = vmatmul.f32.gmra.mxu1 %v3766_v30  ;;  %v3889_v30 = vld [vmem:[#allocation2 + $0xc38] sm:$0xff] }
 0x698   :  { %v3072_v50 = vld.sshfl [vmem:[#allocation1] sm:$0xff pattern:$0x75316420]  ;;  %3019 = vst.msk [vmem:[#allocation2 + $0xb88] sm:$0xff] %vm881_vm2, %v2987_v61 }
 0x699   :  { %3122 = vst [vmem:[#allocation1] ss:$2 sm:$0xff] %v12054_v57  ;;  %v10376_v38 = vpop.f32.mrf.mxu0 }
 0x69a   :  { %12055 = vst [vmem:[#allocation77_spill] sm:$0xff] %v10345_v22  ;;  %5403 = vmatmul.f32.gmra.mxu3 %v3889_v30  ;;  %v12061_v22 = vld [vmem:[#allocation81_spill] sm:$0xff] }
 0x69b   :  { %3124 = vst [vmem:[#allocation1 + $0x1] ss:$2 sm:$0xff] %v12056_v23  ;;  %v3049_v13 = vld.sshfl [vmem:[#allocation1 + $0x10] sm:$0xff pattern:$0x75316420]  ;;  %v4227_v23 = vld [vmem:[%s11297_s3 + $0xa48] sm:$0xff] }
 0x69c   :  { %3104 = vst.msk [vmem:[#allocation2 + $0xa00] sm:$0xff] %vm881_vm2, %v3072_v50  ;;  %v4229_v50 = vld [vmem:[%s11297_s3 + $0xa58] sm:$0xff] }
 0x69d   :  { %3054 = vst [vmem:[#allocation1 + $0x10] ss:$2 sm:$0xff] %v12057_v16  ;;  %v4228_v16 = vld [vmem:[%s11297_s3 + $0xa50] sm:$0xff]  ;;  %5606 = vmatpush.msrb.mxu3 %v4229_v50  ;;  %v12060_v50 = vld [vmem:[#allocation91_spill] sm:$0xff] }
 0x69e   :  { %3055 = vst [vmem:[#allocation1 + $0x11] ss:$2 sm:$0xff] %v12042_v43  ;;  %v3038_v61 = vld.sshfl [vmem:[#allocation1 + $0x20] sm:$0xff pattern:$0x75316420] }
 0x69f   :  { %3097 = vst.msk [vmem:[#allocation2 + $0x488] sm:$0xff] %vm881_vm2, %v3049_v13  ;;  %5521 = vmatmul.f32.gmra.mxu1 %v3791_v48  ;;  %5607 = vmatpush.msrb.mxu3 %v4228_v16  ;;  %v12058_v13 = vld [vmem:[#allocation90_spill] sm:$0xff]  ;;  %v2845_v48 = vrot.slane %v9863_v14, 7  ;;  %v10384_v16 = vpop.f32.mrf.mxu2 }
 0x6a0   :  { %3044 = vst [vmem:[#allocation1 + $0x20] ss:$2 sm:$0xff] %v9563_v52  ;;  %v4226_v52 = vld [vmem:[%s11297_s3 + $0xa40] sm:$0xff] }
 0x6a1   :  { %3045 = vst [vmem:[#allocation1 + $0x21] ss:$2 sm:$0xff] %v9582_v28  ;;  %5608 = vmatpush.msrb.mxu3 %v4227_v23 }
 0x6a2   :  { %v3137_v57 = vld.sshfl [vmem:[#allocation1] sm:$0xff pattern:$0x75316420]  ;;  %3094 = vst.msk [vmem:[#allocation2 + $0x230] sm:$0xff] %vm881_vm2, %v3038_v61  ;;  %v12062_v61 = vrot.slane %v9689_v45, 7 }
 0x6a3   :  { %3193 = vst.msk [vmem:[#allocation2 + $0xa8] sm:$0xff] %vm881_vm2, %v3137_v57  ;;  %5609 = vmatpush.msrb.mxu3 %v4226_v52  ;;  %v10386_v57 = vpop.f32.mrf.mxu3  ;;  %v4224_v52 = vld [vmem:[%s11297_s3 + $0xa30] sm:$0xff] }
 0x6a4   :  { %3141 = vst [vmem:[#allocation1] ss:$2 sm:$0xff] %v12058_v13  ;;  %v2844_v30 = vrot.slane %v12062_v61, 4 }
 0x6a5   :  { %12059 = vst [vmem:[#allocation58_spill] sm:$0xff] %v10376_v38  ;;  %v3061_v43 = vld.sshfl [vmem:[#allocation1 + $0x10] sm:$0xff pattern:$0x75316420]  ;;  %v12064_v38 = vld [vmem:[#allocation42_spill] sm:$0xff] }
 0x6a6   :  { %3142 = vst [vmem:[#allocation1 + $0x1] ss:$2 sm:$0xff] %v12060_v50  ;;  %v10389_v50 = vpop.f32.mrf.mxu1  ;;  %v10395_v61 = vsel %vm7079_vm10, %v2844_v30, %v2845_v48  ;;  %v4223_v48 = vld [vmem:[%s11297_s3 + $0xa28] sm:$0xff] }
 0x6a7   :  { %3066 = vst [vmem:[#allocation1 + $0x10] ss:$2 sm:$0xff] %v12061_v22  ;;  %v3816_v22 = vld [vmem:[#allocation2 + $0x9f0] sm:$0xff] }
 0x6a8   :  { %3067 = vst [vmem:[#allocation1 + $0x11] ss:$2 sm:$0xff] %v12047_v60  ;;  %v3050_v13 = vld.sshfl [vmem:[#allocation1 + $0x20] sm:$0xff pattern:$0x75316420]  ;;  %5524 = vmatmul.f32.gmra.mxu1 %v3816_v22  ;;  %v12067_v22 = vld [vmem:[#allocation44_spill] sm:$0xff] }
 0x6a9   :  { %12063 = vst [vmem:[#allocation4_spill] sm:$0xff] %v10384_v16  ;;  %v4222_v60 = vld [vmem:[%s11297_s3 + $0xa20] sm:$0xff] }
 0x6aa   :  { %3101 = vst.msk [vmem:[#allocation2 + $0x7a8] sm:$0xff] %vm881_vm2, %v3061_v43  ;;  %v3519_v23 = vld [vmem:[#allocation2 + $0xa8] sm:$0xff]  ;;  %v4255_v43 = vld [vmem:[%s11297_s3 + $0xb28] sm:$0xff] }
 0x6ab   :  { %3056 = vst [vmem:[#allocation1 + $0x20] ss:$2 sm:$0xff] %v11945_v62  ;;  %5683 = vmatmul.f32.vlgmr.msrb.gmra.mxu0 %v3519_v23  ;;  %v4225_v62 = vld [vmem:[%s11297_s3 + $0xa38] sm:$0xff]  ;;  %5742 = vmatpush.msra.mxu1 %v4255_v43  ;;  %v10421_v16 = vpop.f32.mrf.mxu3 }
 0x6ac   :  { %3057 = vst [vmem:[#allocation1 + $0x21] ss:$2 sm:$0xff] %v12064_v38  ;;  %5610 = vmatpush.msrb.mxu3 %v4225_v62  ;;  %v12068_v23 = vld [vmem:[#allocation45_spill] sm:$0xff]  ;;  %v3841_v62 = vld [vmem:[#allocation2 + $0xab8] sm:$0xff] }
 0x6ad   :  { %12065 = vst [vmem:[#allocation80_spill] sm:$0xff] %v10395_v61 }
 0x6ae   :  { %3098 = vst.msk [vmem:[#allocation2 + $0x550] sm:$0xff] %vm881_vm2, %v3050_v13  ;;  %v10411_v13 = vpop.f32.mrf.mxu0  ;;  %5611 = vmatpush.msrb.mxu3 %v4224_v52 }
 0x6af   :  { %2897 = vst [vmem:[#allocation1 + $0x31] ss:$2 sm:$0xff] %v10395_v61  ;;  %v3073_v30 = vld.sshfl [vmem:[#allocation1 + $0x10] sm:$0xff pattern:$0x75316420]  ;;  %v10419_v61 = vpop.f32.mrf.mxu2 }
 0x6b0   :  { %12066 = vst [vmem:[#allocation20_spill] sm:$0xff] %v10411_v13  ;;  %5612 = vmatpush.msrb.mxu3 %v4223_v48  ;;  %5527 = vmatmul.f32.gmra.mxu1 %v3841_v62  ;;  %v3866_v62 = vld [vmem:[#allocation2 + $0xb80] sm:$0xff] }
 0x6b1   :  { %3126 = vst [vmem:[#allocation1 + $0x10] ss:$2 sm:$0xff] %v12067_v22  ;;  %v10424_v22 = vpop.f32.mrf.mxu1 }
 0x6b2   :  { %3128 = vst [vmem:[#allocation1 + $0x11] ss:$2 sm:$0xff] %v12068_v23  ;;  %5613 = vmatpush.msrb.mxu3 %v4222_v60 }
 0x6b3   :  { %3105 = vst.msk [vmem:[#allocation2 + $0xac8] sm:$0xff] %vm881_vm2, %v3073_v30  ;;  %v3062_v43 = vld.sshfl [vmem:[#allocation1 + $0x20] sm:$0xff pattern:$0x75316420]  ;;  %v12070_v30 = vld [vmem:[#allocation11_spill] sm:$0xff] }
 0x6b4   :  { %12069 = vst [vmem:[#allocation7_spill] sm:$0xff] %v10419_v61  ;;  %v12073_v61 = vld [vmem:[#allocation116_spill] sm:$0xff] }
 0x6b5   :  { %3068 = vst [vmem:[#allocation1 + $0x20] ss:$2 sm:$0xff] %v9667_v63  ;;  %v12072_v63 = vld [vmem:[#allocation82_spill] sm:$0xff] }
 0x6b6   :  { %3069 = vst [vmem:[#allocation1 + $0x21] ss:$2 sm:$0xff] %v9689_v45  ;;  %v2901_v52 = vld.sshfl [vmem:[#allocation1 + $0x30] sm:$0xff pattern:$0x75316420]  ;;  %v10432_v23 = vpop.f32.mrf.mxu0 }
 0x6b7   :  { %3102 = vst.msk [vmem:[#allocation2 + $0x870] sm:$0xff] %vm881_vm2, %v3062_v43  ;;  %v10437_v43 = vpop.f32.mrf.mxu2 }
 0x6b8   :  { %2946 = vst [vmem:[#allocation1 + $0x30] ss:$2 sm:$0xff] %v12053_v54  ;;  %5530 = vmatmul.f32.gmra.mxu1 %v3866_v62  ;;  %v10439_v54 = vpop.f32.mrf.mxu3 }
 0x6b9   :  { %2948 = vst [vmem:[#allocation1 + $0x31] ss:$2 sm:$0xff] %v12070_v30  ;;  %v3138_v48 = vld.sshfl [vmem:[#allocation1 + $0x10] sm:$0xff pattern:$0x75316420] }
 0x6ba   :  { %2933 = vst.msk [vmem:[#allocation2 + $0xc48] sm:$0xff] %vm881_vm2, %v2901_v52  ;;  %v10442_v52 = vpop.f32.mrf.mxu1 }
 0x6bb   :  { %3194 = vst.msk [vmem:[#allocation2 + $0x170] sm:$0xff] %vm881_vm2, %v3138_v48 }
 0x6bc   :  { %12071 = vst [vmem:[#allocation64_spill] sm:$0xff] %v10432_v23  ;;  %v3617_v23 = vld [vmem:[#allocation2 + $0x3b8] sm:$0xff] }
 0x6bd   :  { %3143 = vst [vmem:[#allocation1 + $0x10] ss:$2 sm:$0xff] %v12072_v63  ;;  %v3074_v60 = vld.sshfl [vmem:[#allocation1 + $0x20] sm:$0xff pattern:$0x75316420] }
 0x6be   :  { %3144 = vst [vmem:[#allocation1 + $0x11] ss:$2 sm:$0xff] %v12073_v61  ;;  %v10448_v61 = vpop.f32.mrf.mxu0 }
 0x6bf   :  { %3130 = vst [vmem:[#allocation1 + $0x20] ss:$2 sm:$0xff] %v11955_v39 }
 0x6c0   :  { %12074 = vst [vmem:[#allocation112_spill] sm:$0xff] %v10437_v43  ;;  %v2952_v48 = vld.sshfl [vmem:[#allocation1 + $0x30] sm:$0xff pattern:$0x75316420] }
 0x6c1   :  { %3132 = vst [vmem:[#allocation1 + $0x21] ss:$2 sm:$0xff] %v11957_v0  ;;  %v3891_v39 = vld [vmem:[#allocation2 + $0xc48] sm:$0xff]  ;;  %v10452_v0 = vpop.f32.mrf.mxu2 }
 0x6c2   :  { %3106 = vst.msk [vmem:[#allocation2 + $0xb90] sm:$0xff] %vm881_vm2, %v3074_v60  ;;  %v3544_v63 = vld [vmem:[#allocation2 + $0x170] sm:$0xff]  ;;  %5533 = vmatmul.f32.gmra.mxu1 %v3891_v39  ;;  %v10454_v60 = vpop.f32.mrf.mxu3  ;;  %v10457_v30 = vpop.f32.mrf.mxu1  ;;  %v3149_v39 = vld.sshfl [vmem:[#allocation1] sm:$0xff pattern:$0x75316420] }
 0x6c3   :  { %2959 = vst [vmem:[#allocation1 + $0x30] ss:$2 sm:$0xff] %v9582_v28  ;;  %5686 = vmatmul.f32.gmra.mxu0 %v3544_v63 }
 0x6c4   :  { %2960 = vst [vmem:[#allocation1 + $0x31] ss:$2 sm:$0xff] %v9746_v59 }
 0x6c5   :  { %3008 = vst.msk [vmem:[#allocation2 + $0x2f0] sm:$0xff] %vm881_vm2, %v2952_v48  ;;  %v12076_v48 = vld [vmem:[#allocation55_spill] sm:$0xff] }
 0x6c6   :  { %12075 = vst [vmem:[#allocation9_spill] sm:$0xff] %v10448_v61  ;;  %v12078_v61 = vld [vmem:[#allocation29_spill] sm:$0xff] }
 0x6c7   :  { %3197 = vst.msk [vmem:[#allocation2 + $0x3c8] sm:$0xff] %vm881_vm2, %v3149_v39 }
 0x6c8   :  { %v3139_v62 = vld.sshfl [vmem:[#allocation1 + $0x20] sm:$0xff pattern:$0x75316420]  ;;  %3154 = vst [vmem:[#allocation1 + $0x1] ss:$2 sm:$0xff] %v12078_v61  ;;  %v12082_v61 = vld [vmem:[#allocation65_spill] sm:$0xff] }
 0x6c9   :  { %3195 = vst.msk [vmem:[#allocation2 + $0x238] sm:$0xff] %vm881_vm2, %v3139_v62  ;;  %v12077_v62 = vld [vmem:[#allocation28_spill] sm:$0xff] }
 0x6ca   :  { %3145 = vst [vmem:[#allocation1 + $0x20] ss:$2 sm:$0xff] %v9792_v20  ;;  %v10467_v13 = vpop.f32.mrf.mxu3 }
 0x6cb   :  { %3146 = vst [vmem:[#allocation1 + $0x21] ss:$2 sm:$0xff] %v9797_v25  ;;  %v2964_v28 = vld.sshfl [vmem:[#allocation1 + $0x30] sm:$0xff pattern:$0x75316420]  ;;  %v10465_v25 = vpop.f32.mrf.mxu0 }
 0x6cc   :  { %v3592_v63 = vld [vmem:[#allocation2 + $0x2f0] sm:$0xff]  ;;  %2971 = vst [vmem:[#allocation1 + $0x30] ss:$2 sm:$0xff] %v12064_v38  ;;  %v3150_v38 = vld.sshfl [vmem:[#allocation1 + $0x10] sm:$0xff pattern:$0x75316420] }
 0x6cd   :  { %5562 = vmatmul.f32.gmra.mxu2 %v3592_v63  ;;  %2972 = vst [vmem:[#allocation1 + $0x31] ss:$2 sm:$0xff] %v12076_v48  ;;  %v10469_v63 = vpop.f32.mrf.mxu2  ;;  %v3642_v48 = vld [vmem:[#allocation2 + $0x480] sm:$0xff] }
 0x6ce   :  { %3012 = vst.msk [vmem:[#allocation2 + $0x610] sm:$0xff] %vm881_vm2, %v2964_v28  ;;  %v10472_v28 = vpop.f32.mrf.mxu1 }
 0x6cf   :  { %3153 = vst [vmem:[#allocation1] ss:$2 sm:$0xff] %v12077_v62 }
 0x6d0   :  { %v3569_v20 = vld [vmem:[#allocation2 + $0x238] sm:$0xff]  ;;  %12079 = vst [vmem:[#allocation26_spill] sm:$0xff] %v10465_v25 }
 0x6d1   :  { %5689 = vmatmul.f32.gmra.mxu0 %v3569_v20  ;;  %12080 = vst [vmem:[#allocation27_spill] sm:$0xff] %v10467_v13  ;;  %v12081_v20 = vld [vmem:[#allocation93_spill] sm:$0xff]  ;;  %v3667_v13 = vld [vmem:[#allocation2 + $0x548] sm:$0xff] }
 0x6d2   :  { %3198 = vst.msk [vmem:[#allocation2 + $0x490] sm:$0xff] %vm881_vm2, %v3150_v38  ;;  %v12088_v38 = vld [vmem:[#allocation19_spill] sm:$0xff] }
 0x6d3   :  { %v10479_v62 = vpop.f32.mrf.mxu0 }
 0x6d4   :  { %v2976_v43 = vld.sshfl [vmem:[#allocation1 + $0x30] sm:$0xff pattern:$0x75316420]  ;;  %12083 = vst [vmem:[#allocation25_spill] sm:$0xff] %v10479_v62 }
 0x6d5   :  { %2983 = vst [vmem:[#allocation1 + $0x30] ss:$2 sm:$0xff] %v9689_v45  ;;  %5565 = vmatmul.f32.gmra.mxu2 %v3617_v23  ;;  %v12084_v23 = vld [vmem:[#allocation12_spill] sm:$0xff]  ;;  %v10483_v45 = vpop.f32.mrf.mxu3 }
 0x6d6   :  { %2984 = vst [vmem:[#allocation1 + $0x31] ss:$2 sm:$0xff] %v9863_v14  ;;  %v3161_v39 = vld.sshfl [vmem:[#allocation1] sm:$0xff pattern:$0x75316420] }
 0x6d7   :  { %3016 = vst.msk [vmem:[#allocation2 + $0x930] sm:$0xff] %vm881_vm2, %v2976_v43  ;;  %v10485_v43 = vpop.f32.mrf.mxu2 }
 0x6d8   :  { %3165 = vst [vmem:[#allocation1] ss:$2 sm:$0xff] %v12081_v20  ;;  %v10488_v20 = vpop.f32.mrf.mxu1 }
 0x6d9   :  { %3166 = vst [vmem:[#allocation1 + $0x1] ss:$2 sm:$0xff] %v12082_v61 }
 0x6da   :  { %3201 = vst.msk [vmem:[#allocation2 + $0x6e8] sm:$0xff] %vm881_vm2, %v3161_v39  ;;  %v12087_v39 = vld [vmem:[#allocation51_spill] sm:$0xff] }
 0x6db   :  { %12085 = vst [vmem:[#allocation90_spill] sm:$0xff] %v10483_v45  ;;  %v12090_v45 = vld [vmem:[#allocation31_spill] sm:$0xff] }
 0x6dc   :  { %12086 = vst [vmem:[#allocation91_spill] sm:$0xff] %v10488_v20 }
 0x6dd   :  { %v2988_v25 = vld.sshfl [vmem:[#allocation1 + $0x30] sm:$0xff pattern:$0x75316420]  ;;  %5568 = vmatmul.f32.gmra.mxu2 %v3642_v48  ;;  %3155 = vst [vmem:[#allocation1 + $0x10] ss:$2 sm:$0xff] %v12087_v39  ;;  %v10505_v39 = vpop.f32.mrf.mxu0 }
 0x6de   :  { %3033 = vst [vmem:[#allocation1 + $0x30] ss:$2 sm:$0xff] %v12084_v23  ;;  %v6152_v48 = vld [vmem:[%s11296_s2] ss:$0 sm:$0xff]  ;;  %v12089_v23 = vld [vmem:[#allocation52_spill] sm:$0xff] }
 0x6df   :  { %3035 = vst [vmem:[#allocation1 + $0x31] ss:$2 sm:$0xff] %v12010_v21  ;;  %v246_v62 = vadd.f32 %v6152_v48, %v12088_v38  ;;  %v10500_v21 = vrot.slane %v9746_v59, 4  ;;  %v3151_v38 = vld.sshfl [vmem:[#allocation1 + $0x20] sm:$0xff pattern:$0x75316420] }
 0x6e0   :  { %3020 = vst.msk [vmem:[#allocation2 + $0xc50] sm:$0xff] %vm881_vm2, %v2988_v25  ;;  %v3173_v61 = vld.sshfl [vmem:[#allocation1] sm:$0xff pattern:$0x75316420] }
 0x6e1   :  { %3156 = vst [vmem:[#allocation1 + $0x11] ss:$2 sm:$0xff] %v12089_v23  ;;  %v10503_v25 = vmax.f32 %v246_v62, 0.0  ;;  %v10511_v23 = vpop.f32.mrf.mxu2  ;;  %v3692_v62 = vld [vmem:[#allocation2 + $0x610] sm:$0xff] }
 0x6e2   :  { %3223 = vst [vmem:[#allocation1] ss:$2 sm:$0xff] %v12090_v45  ;;  %v10509_v45 = vpop.f32.mrf.mxu3 }
 0x6e3   :  { %3225 = vst [vmem:[#allocation1 + $0x1] ss:$2 sm:$0xff] %v12091_v15  ;;  %v10514_v15 = vpop.f32.mrf.mxu1 }
 0x6e4   :  { %3205 = vst.msk [vmem:[#allocation2 + $0xa08] sm:$0xff] %vm881_vm2, %v3173_v61  ;;  %v4950_v61 = vadd.f32 %v9962_v46, %v9929_v36  ;;  %v4221_v46 = vld [vmem:[%s11297_s3 + $0xa18] sm:$0xff] }
 0x6e5   :  { %5571 = vmatmul.f32.gmra.mxu2 %v3667_v13  ;;  %12092 = vst [vmem:[#allocation81_spill] sm:$0xff] %v10505_v39  ;;  %v12093_v39 = vld [vmem:[#allocation109_spill] sm:$0xff]  ;;  %5614 = vmatpush.msrb.mxu3 %v4221_v46  ;;  %v5177_v46 = vadd.f32 %v10131_v11, %v10071_v49 }
 0x6e6   :  { %v3039_v20 = vld.sshfl [vmem:[#allocation1 + $0x30] sm:$0xff pattern:$0x75316420]  ;;  %3199 = vst.msk [vmem:[#allocation2 + $0x558] sm:$0xff] %vm881_vm2, %v3151_v38  ;;  %v10527_v38 = vpop.f32.mrf.mxu0  ;;  %v4253_v49 = vld [vmem:[%s11297_s3 + $0xb18] sm:$0xff] }
 0x6e7   :  { %3046 = vst [vmem:[#allocation1 + $0x30] ss:$2 sm:$0xff] %v10500_v21 }
 0x6e8   :  { %3047 = vst [vmem:[#allocation1 + $0x31] ss:$2 sm:$0xff] %v10503_v25 }
 0x6e9   :  { %3095 = vst.msk [vmem:[#allocation2 + $0x2f8] sm:$0xff] %vm881_vm2, %v3039_v20  ;;  %v5015_v20 = vadd.f32 %v10193_v9, %v4950_v61  ;;  %v4220_v9 = vld [vmem:[%s11297_s3 + $0xa10] sm:$0xff] }
 0x6ea   :  { %3157 = vst [vmem:[#allocation1 + $0x20] ss:$2 sm:$0xff] %v11968_v44  ;;  %v3238_v13 = vld.sshfl [vmem:[#allocation1] sm:$0xff pattern:$0x75316420]  ;;  %v5174_v44 = vadd.f32 %v10096_v18, %v10040_v12  ;;  %v5144_v12 = vpop.f32.mrf.mxu3  ;;  %v5303_v18 = vpop.f32.mrf.mxu2  ;;  %5615 = vmatpush.msrb.mxu3 %v4220_v9  ;;  %v3742_v9 = vld [vmem:[#allocation2 + $0x7a0] sm:$0xff] }
 0x6eb   :  { %3158 = vst [vmem:[#allocation1 + $0x21] ss:$2 sm:$0xff] %v11969_v53  ;;  %v12095_v53 = vld [vmem:[#allocation56_spill] sm:$0xff]  ;;  %v5080_v36 = vadd.f32 %v10452_v0, %v5015_v20  ;;  %v10549_v20 = vpop.f32.mrf.mxu1 }
 0x6ec   :  { %3294 = vst.msk [vmem:[#allocation2 + $0xb0] sm:$0xff] %vm881_vm2, %v3238_v13  ;;  %v5239_v13 = vadd.f32 %v10337_v5, %v5174_v44  ;;  %v12097_v5 = vld [vmem:[#allocation15_spill] sm:$0xff]  ;;  %v3717_v44 = vld [vmem:[#allocation2 + $0x6d8] sm:$0xff] }
 0x6ed   :  { %5574 = vmatmul.f32.gmra.mxu2 %v3692_v62  ;;  %3242 = vst [vmem:[#allocation1] ss:$2 sm:$0xff] %v12093_v39  ;;  %v3162_v62 = vld.sshfl [vmem:[#allocation1 + $0x10] sm:$0xff pattern:$0x75316420]  ;;  %v12096_v39 = vld [vmem:[#allocation123_spill] sm:$0xff]  ;;  %v300_v0 = vadd.f32 %v6152_v48, %v12097_v5  ;;  %v5165_v48 = vadd.f32 %v10000_v24, %v9959_v40 }
 0x6ee   :  { %3243 = vst [vmem:[#allocation1 + $0x1] ss:$2 sm:$0xff] %v11950_v33  ;;  %v4254_v33 = vld [vmem:[%s11297_s3 + $0xb20] sm:$0xff]  ;;  %v10547_v61 = vadd.f32 %v5303_v18, %v5239_v13  ;;  %v10560_v13 = vrot.slane %v9863_v14, 4  ;;  %v12100_v5 = vld [vmem:[#allocation60_spill] sm:$0xff] }
 0x6ef   :  { %v3051_v59 = vld.sshfl [vmem:[#allocation1 + $0x30] sm:$0xff pattern:$0x75316420]  ;;  %12094 = vst [vmem:[#allocation44_spill] sm:$0xff] %v10527_v38  ;;  %5743 = vmatpush.msra.mxu1 %v4254_v33  ;;  %v4219_v38 = vld [vmem:[%s11297_s3 + $0xa08] sm:$0xff]  ;;  %v10566_v33 = vmax.f32 %v300_v0, 0.0 }
 0x6f0   :  { %3058 = vst [vmem:[#allocation1 + $0x30] ss:$2 sm:$0xff] %v12095_v53  ;;  %v12098_v53 = vld [vmem:[#allocation122_spill] sm:$0xff]  ;;  %5616 = vmatpush.msrb.mxu3 %v4219_v38  ;;  %v12101_v0 = vld [vmem:[#allocation61_spill] sm:$0xff] }
 0x6f1   :  { %3059 = vst [vmem:[#allocation1 + $0x31] ss:$2 sm:$0xff] %v12026_v3  ;;  %5744 = vmatpush.msra.mxu1 %v4253_v49  ;;  %v3767_v49 = vld [vmem:[#allocation2 + $0x868] sm:$0xff] }
 0x6f2   :  { %3099 = vst.msk [vmem:[#allocation2 + $0x618] sm:$0xff] %vm881_vm2, %v3051_v59  ;;  %v10545_v59 = vadd.f32 %v5144_v12, %v5080_v36  ;;  %v4218_v36 = vld [vmem:[%s11297_s3 + $0xa00] sm:$0xff]  ;;  %v10575_v12 = vpop.f32.mrf.mxu0  ;;  %v5306_v11 = vpop.f32.mrf.mxu2 }
 0x6f3   :  { %3167 = vst [vmem:[#allocation1 + $0x10] ss:$2 sm:$0xff] %v12096_v39  ;;  %v3163_v39 = vld.sshfl [vmem:[#allocation1 + $0x20] sm:$0xff pattern:$0x75316420]  ;;  %5617 = vmatpush.msrb.mxu3 %v4218_v36  ;;  %v10586_v18 = vpop.f32.mrf.mxu1 }
 0x6f4   :  { %3168 = vst [vmem:[#allocation1 + $0x11] ss:$2 sm:$0xff] %v12098_v53 }
 0x6f5   :  { %5577 = vmatmul.f32.gmra.mxu2 %v3717_v44  ;;  %3202 = vst.msk [vmem:[#allocation2 + $0x7b0] sm:$0xff] %vm881_vm2, %v3162_v62  ;;  %v5230_v62 = vadd.f32 %v10239_v19, %v5165_v48  ;;  %v5359_v19 = vpop.f32.mrf.mxu3  ;;  %v5168_v44 = vadd.f32 %v10026_v41, %v9994_v42  ;;  %v5180_v48 = vadd.f32 %v10169_v27, %v10092_v8  ;;  %v12102_v42 = vld [vmem:[#allocation74_spill] sm:$0xff]  ;;  %v3543_v41 = vld [vmem:[#allocation2 + $0x168] sm:$0xff] }
 0x6f6   :  { %3169 = vst [vmem:[#allocation1 + $0x20] ss:$2 sm:$0xff] %v9903_v51  ;;  %v5242_v51 = vadd.f32 %v10353_v58, %v5177_v46 }
 0x6f7   :  { %3170 = vst [vmem:[#allocation1 + $0x21] ss:$2 sm:$0xff] %v9918_v6  ;;  %v5295_v24 = vadd.f32 %v10469_v63, %v5230_v62  ;;  %v3518_v6 = vld [vmem:[#allocation2 + $0xa0] sm:$0xff]  ;;  %v5245_v62 = vadd.f32 %v10389_v50, %v5180_v48 }
 0x6f8   :  { %v3063_v40 = vld.sshfl [vmem:[#allocation1 + $0x30] sm:$0xff pattern:$0x75316420]  ;;  %3203 = vst.msk [vmem:[#allocation2 + $0x878] sm:$0xff] %vm881_vm2, %v3163_v39  ;;  %5618 = vmatmul.f32.vlgmr.msrb.gmra.mxu3 %v3518_v6  ;;  %v10582_v58 = vadd.f32 %v5306_v11, %v5242_v51  ;;  %v5233_v39 = vadd.f32 %v10288_v31, %v5168_v44  ;;  %v3110_v31 = vrot.slane %v10503_v25, 5  ;;  %v5171_v11 = vadd.f32 %v10062_v35, %v10016_v2 }
 0x6f9   :  { %3070 = vst [vmem:[#allocation1 + $0x30] ss:$2 sm:$0xff] %v10560_v13  ;;  %v10584_v63 = vadd.f32 %v5359_v19, %v5295_v24  ;;  %v12105_v19 = vld [vmem:[#allocation124_spill] sm:$0xff] }
 0x6fa   :  { %12099 = vst [vmem:[#allocation45_spill] sm:$0xff] %v10575_v12  ;;  %v5298_v46 = vadd.f32 %v10485_v43, %v5233_v39  ;;  %v5309_v27 = vpop.f32.mrf.mxu2  ;;  %v10611_v50 = vpop.f32.mrf.mxu0  ;;  %v5236_v44 = vadd.f32 %v10317_v47, %v5171_v11  ;;  %v6090_v39 = vrot.slane %v10500_v21, 9 }
 0x6fb   :  { %3071 = vst [vmem:[#allocation1 + $0x31] ss:$2 sm:$0xff] %v10566_v33  ;;  %v3174_v38 = vld.sshfl [vmem:[#allocation1 + $0x10] sm:$0xff pattern:$0x75316420]  ;;  %v10613_v43 = vadd.f32 %v5309_v27, %v5245_v62  ;;  %v10617_v24 = vpop.f32.mrf.mxu1 }
 0x6fc   :  { %3103 = vst.msk [vmem:[#allocation2 + $0x938] sm:$0xff] %vm881_vm2, %v3063_v40  ;;  %v10603_v40 = vrot.slane %v10503_v25, 4  ;;  %v5301_v35 = vadd.f32 %v10511_v23, %v5236_v44  ;;  %v3111_v47 = vsel %vm6962_vm5, %v6090_v39, %v3110_v31  ;;  %v3250_v62 = vld.sshfl [vmem:[#allocation1] sm:$0xff pattern:$0x75316420]  ;;  %v10673_v44 = vrot.slane %v10566_v33, 4 }
 0x6fd   :  { %3227 = vst [vmem:[#allocation1 + $0x10] ss:$2 sm:$0xff] %v12100_v5  ;;  %5580 = vmatmul.f32.gmra.mxu2 %v3742_v9  ;;  %v5362_v8 = vpop.f32.mrf.mxu3  ;;  %v3112_v5 = vrot.slane %v3110_v31, 4 }
 0x6fe   :  { %3229 = vst [vmem:[#allocation1 + $0x11] ss:$2 sm:$0xff] %v12101_v0  ;;  %v3175_v53 = vld.sshfl [vmem:[#allocation1 + $0x20] sm:$0xff pattern:$0x75316420]  ;;  %v10615_v51 = vadd.f32 %v5362_v8, %v5298_v46  ;;  %v3113_v0 = vrot.slane %v10603_v40, 5 }
 0x6ff   :  { %3206 = vst.msk [vmem:[#allocation2 + $0xad0] sm:$0xff] %vm881_vm2, %v3174_v38  ;;  %v12106_v38 = vld [vmem:[#allocation125_spill] sm:$0xff] }
 0x700   :  { %3231 = vst [vmem:[#allocation1 + $0x20] ss:$2 sm:$0xff] %v11982_v26  ;;  %v12103_v26 = vld [vmem:[#allocation75_spill] sm:$0xff]  ;;  %5621 = vmatmul.f32.gmra.mxu3 %v3543_v41 }
 0x701   :  { %3233 = vst [vmem:[#allocation1 + $0x21] ss:$2 sm:$0xff] %v11983_v56  ;;  %v4252_v56 = vld [vmem:[%s11297_s3 + $0xb10] sm:$0xff] }
 0x702   :  { %v3075_v36 = vld.sshfl [vmem:[#allocation1 + $0x30] sm:$0xff pattern:$0x75316420]  ;;  %3207 = vst.msk [vmem:[#allocation2 + $0xb98] sm:$0xff] %vm881_vm2, %v3175_v53  ;;  %5745 = vmatpush.msra.mxu1 %v4252_v56  ;;  %v5183_v53 = vadd.f32 %v10213_v10, %v10126_v32  ;;  %v4251_v32 = vld [vmem:[%s11297_s3 + $0xb08] sm:$0xff]  ;;  %v5312_v10 = vpop.f32.mrf.mxu2  ;;  %v10648_v41 = vpop.f32.mrf.mxu0  ;;  %v5186_v56 = vadd.f32 %v10277_v29, %v10150_v17  ;;  %v12109_v17 = vld [vmem:[#allocation73_spill] sm:$0xff] }
 0x703   :  { %3134 = vst [vmem:[#allocation1 + $0x30] ss:$2 sm:$0xff] %v12102_v42  ;;  %v10646_v46 = vpop.f32.mrf.mxu1  ;;  %v3792_v42 = vld [vmem:[#allocation2 + $0x930] sm:$0xff] }
 0x704   :  { %3136 = vst [vmem:[#allocation1 + $0x31] ss:$2 sm:$0xff] %v12103_v26  ;;  %v5248_v2 = vadd.f32 %v10424_v22, %v5183_v53  ;;  %v3114_v22 = vsel %vm6962_vm5, %v3112_v5, %v3113_v0  ;;  %5746 = vmatpush.msra.mxu1 %v4251_v32  ;;  %v5251_v8 = vadd.f32 %v10442_v52, %v5186_v56  ;;  %v3817_v5 = vld [vmem:[#allocation2 + $0x9f8] sm:$0xff]  ;;  %v12111_v0 = vld [vmem:[#allocation88_spill] sm:$0xff]  ;;  %v12112_v53 = vld [vmem:[#allocation89_spill] sm:$0xff] }
 0x705   :  { %3107 = vst.msk [vmem:[#allocation2 + $0xc58] sm:$0xff] %vm881_vm2, %v3075_v36  ;;  %v3239_v6 = vld.sshfl [vmem:[#allocation1 + $0x10] sm:$0xff pattern:$0x75316420]  ;;  %5583 = vmatmul.f32.gmra.mxu2 %v3767_v49  ;;  %v3568_v36 = vld [vmem:[#allocation2 + $0x230] sm:$0xff] }
 0x706   :  { %12104 = vst [vmem:[#allocation82_spill] sm:$0xff] %v10611_v50  ;;  %v10642_v23 = vadd.f32 %v5312_v10, %v5248_v2  ;;  %v12108_v49 = vld [vmem:[#allocation72_spill] sm:$0xff]  ;;  %v12115_v10 = vld [vmem:[#allocation113_spill] sm:$0xff]  ;;  %v12144_v50 = vld [vmem:[#allocation71_spill] sm:$0xff] }
 0x707   :  { %3295 = vst.msk [vmem:[#allocation2 + $0x178] sm:$0xff] %vm881_vm2, %v3239_v6  ;;  %v3593_v6 = vld [vmem:[#allocation2 + $0x2f8] sm:$0xff]  ;;  %v12113_v2 = vld [vmem:[#allocation84_spill] sm:$0xff] }
 0x708   :  { %3244 = vst [vmem:[#allocation1 + $0x10] ss:$2 sm:$0xff] %v12105_v19  ;;  %v3240_v9 = vld.sshfl [vmem:[#allocation1 + $0x20] sm:$0xff pattern:$0x75316420]  ;;  %5624 = vmatmul.f32.gmra.mxu3 %v3568_v36  ;;  %v3618_v36 = vld [vmem:[#allocation2 + $0x3c0] sm:$0xff] }
 0x709   :  { %3245 = vst [vmem:[#allocation1 + $0x11] ss:$2 sm:$0xff] %v12106_v38  ;;  %v3619_v32 = vld [vmem:[#allocation2 + $0x3c8] sm:$0xff] }
 0x70a   :  { %3296 = vst.msk [vmem:[#allocation2 + $0x240] sm:$0xff] %vm881_vm2, %v3240_v9  ;;  %v5315_v11 = vpop.f32.mrf.mxu2  ;;  %v3520_v9 = vld [vmem:[#allocation2 + $0xb0] sm:$0xff] }
 0x70b   :  { %3246 = vst [vmem:[#allocation1 + $0x20] ss:$2 sm:$0xff] %v9980_v7  ;;  %v3140_v48 = vld.sshfl [vmem:[#allocation1 + $0x30] sm:$0xff pattern:$0x75316420]  ;;  %v5365_v7 = vpop.f32.mrf.mxu3  ;;  %v10662_v29 = vadd.f32 %v5315_v11, %v5251_v8  ;;  %v10667_v38 = vpop.f32.mrf.mxu1 }
 0x70c   :  { %3247 = vst [vmem:[#allocation1 + $0x21] ss:$2 sm:$0xff] %v9990_v37  ;;  %v10644_v37 = vadd.f32 %v5365_v7, %v5301_v35  ;;  %v6091_v35 = vrot.slane %v10560_v13, 9 }
 0x70d   :  { %3196 = vst.msk [vmem:[#allocation2 + $0x300] sm:$0xff] %vm881_vm2, %v3140_v48  ;;  %5586 = vmatmul.f32.gmra.mxu2 %v3792_v42  ;;  %v3117_v48 = vrot.slane %v10566_v33, 5  ;;  %v4281_v42 = vld [vmem:[%s11297_s3 + $0xbf8] sm:$0xff] }
 0x70e   :  { %3147 = vst [vmem:[#allocation1 + $0x30] ss:$2 sm:$0xff] %v3111_v47  ;;  %v12114_v47 = vld [vmem:[#allocation85_spill] sm:$0xff]  ;;  %6112 = vmatpush.msra.mxu2 %v4281_v42 }
 0x70f   :  { %12107 = vst [vmem:[#allocation116_spill] sm:$0xff] %v10644_v37  ;;  %v3118_v11 = vsel %vm6962_vm5, %v6091_v35, %v3117_v48  ;;  %v12189_v37 = vld [vmem:[#allocation20_spill] sm:$0xff] }
 0x710   :  { %3148 = vst [vmem:[#allocation1 + $0x31] ss:$2 sm:$0xff] %v3114_v22  ;;  %v3251_v26 = vld.sshfl [vmem:[#allocation1 + $0x10] sm:$0xff pattern:$0x75316420]  ;;  %5627 = vmatmul.f32.gmra.mxu3 %v3593_v6  ;;  %v3120_v22 = vrot.slane %v10673_v44, 5 }
 0x711   :  { %3298 = vst.msk [vmem:[#allocation2 + $0x3d0] sm:$0xff] %vm881_vm2, %v3250_v62  ;;  %v3119_v62 = vrot.slane %v3117_v48, 4  ;;  %v3545_v6 = vld [vmem:[#allocation2 + $0x178] sm:$0xff] }
 0x712   :  { %3254 = vst [vmem:[#allocation1] ss:$2 sm:$0xff] %v11960_v4  ;;  %v4250_v4 = vld [vmem:[%s11297_s3 + $0xb00] sm:$0xff] }
 0x713   :  { %3255 = vst [vmem:[#allocation1 + $0x1] ss:$2 sm:$0xff] %v11963_v55  ;;  %v3252_v27 = vld.sshfl [vmem:[#allocation1 + $0x20] sm:$0xff pattern:$0x75316420]  ;;  %v5368_v19 = vpop.f32.mrf.mxu3  ;;  %5747 = vmatpush.msra.mxu1 %v4250_v4 }
 0x714   :  { %3299 = vst.msk [vmem:[#allocation2 + $0x498] sm:$0xff] %vm881_vm2, %v3251_v26  ;;  %v3594_v31 = vld [vmem:[#allocation2 + $0x300] sm:$0xff]  ;;  %v10665_v52 = vadd.f32 %v5368_v19, %v10547_v61  ;;  %5748 = vmatmul.f32.vlgmr.msra.gmra.mxu1 %v3520_v9  ;;  %v10676_v61 = vpop.f32.mrf.mxu0  ;;  %v10687_v26 = vpop.f32.mrf.mxu2  ;;  %v12118_v4 = vld [vmem:[#allocation126_spill] sm:$0xff] }
 0x715   :  { %3256 = vst [vmem:[#allocation1 + $0x10] ss:$2 sm:$0xff] %v12108_v49  ;;  %5692 = vmatmul.f32.gmra.mxu0 %v3594_v31  ;;  %5589 = vmatmul.f32.gmra.mxu2 %v3817_v5  ;;  %v10693_v31 = vpop.f32.mrf.mxu1  ;;  %v3842_v49 = vld [vmem:[#allocation2 + $0xac0] sm:$0xff]  ;;  %v3643_v5 = vld [vmem:[#allocation2 + $0x488] sm:$0xff] }
 0x716   :  { %3257 = vst [vmem:[#allocation1 + $0x11] ss:$2 sm:$0xff] %v12109_v17  ;;  %5797 = vmatpush.msrb.mxu1 %v4281_v42  ;;  %v12119_v17 = vld [vmem:[#allocation127_spill] sm:$0xff]  ;;  %v12125_v42 = vld [vmem:[#allocation98_spill] sm:$0xff] }
 0x717   :  { %v3152_v55 = vld.sshfl [vmem:[#allocation1 + $0x30] sm:$0xff pattern:$0x75316420]  ;;  %12110 = vst [vmem:[#allocation28_spill] sm:$0xff] %v10665_v52 }
 0x718   :  { %3300 = vst.msk [vmem:[#allocation2 + $0x560] sm:$0xff] %vm881_vm2, %v3252_v27  ;;  %5630 = vmatmul.f32.gmra.mxu3 %v3618_v36  ;;  %v12116_v27 = vld [vmem:[#allocation114_spill] sm:$0xff]  ;;  %v3570_v36 = vld [vmem:[#allocation2 + $0x240] sm:$0xff] }
 0x719   :  { %3200 = vst.msk [vmem:[#allocation2 + $0x620] sm:$0xff] %vm881_vm2, %v3152_v55  ;;  %v3644_v55 = vld [vmem:[#allocation2 + $0x490] sm:$0xff] }
 0x71a   :  { %3159 = vst [vmem:[#allocation1 + $0x30] ss:$2 sm:$0xff] %v12111_v0  ;;  %v3262_v39 = vld.sshfl [vmem:[#allocation1] sm:$0xff pattern:$0x75316420] }
 0x71b   :  { %3160 = vst [vmem:[#allocation1 + $0x31] ss:$2 sm:$0xff] %v12112_v53  ;;  %v5371_v56 = vpop.f32.mrf.mxu3  ;;  %v4280_v53 = vld [vmem:[%s11297_s3 + $0xbf0] sm:$0xff] }
 0x71c   :  { %3258 = vst [vmem:[#allocation1 + $0x20] ss:$2 sm:$0xff] %v12113_v2  ;;  %v10691_v8 = vadd.f32 %v5371_v56, %v10582_v58  ;;  %5751 = vmatmul.f32.gmra.mxu1 %v3545_v6  ;;  %v3121_v58 = vsel %vm6962_vm5, %v3119_v62, %v3120_v22  ;;  %v10703_v9 = vpop.f32.mrf.mxu0  ;;  %v12120_v2 = vld [vmem:[#allocation36_spill] sm:$0xff]  ;;  %6113 = vmatpush.msra.mxu2 %v4280_v53  ;;  %v12124_v22 = vld [vmem:[#allocation87_spill] sm:$0xff]  ;;  %v3211_v56 = vrot.slane %v10503_v25, 6  ;;  %v3668_v6 = vld [vmem:[#allocation2 + $0x550] sm:$0xff] }
 0x71d   :  { %3259 = vst [vmem:[#allocation1 + $0x21] ss:$2 sm:$0xff] %v12114_v47  ;;  %v3263_v7 = vld.sshfl [vmem:[#allocation1 + $0x10] sm:$0xff pattern:$0x75316420]  ;;  %5695 = vmatmul.f32.gmra.mxu0 %v3619_v32  ;;  %5592 = vmatmul.f32.gmra.mxu2 %v3842_v49  ;;  %v10715_v48 = vpop.f32.mrf.mxu1  ;;  %v12122_v32 = vld [vmem:[#allocation37_spill] sm:$0xff] }
 0x71e   :  { %3266 = vst [vmem:[#allocation1] ss:$2 sm:$0xff] %v12115_v10  ;;  %5798 = vmatpush.msrb.mxu1 %v4280_v53  ;;  %v3867_v47 = vld [vmem:[#allocation2 + $0xb88] sm:$0xff]  ;;  %v4279_v49 = vld [vmem:[%s11297_s3 + $0xbe8] sm:$0xff] }
 0x71f   :  { %3267 = vst [vmem:[#allocation1 + $0x1] ss:$2 sm:$0xff] %v12116_v27  ;;  %v3669_v27 = vld [vmem:[#allocation2 + $0x558] sm:$0xff]  ;;  %6114 = vmatpush.msra.mxu2 %v4279_v49 }
 0x720   :  { %12117 = vst [vmem:[#allocation29_spill] sm:$0xff] %v10691_v8  ;;  %5633 = vmatmul.f32.gmra.mxu3 %v3643_v5  ;;  %5799 = vmatpush.msrb.mxu1 %v4279_v49  ;;  %v3892_v5 = vld [vmem:[#allocation2 + $0xc50] sm:$0xff]  ;;  %v12145_v8 = vld [vmem:[#allocation62_spill] sm:$0xff] }
 0x721   :  { %3302 = vst.msk [vmem:[#allocation2 + $0x6f0] sm:$0xff] %vm881_vm2, %v3262_v39  ;;  %v10709_v39 = vpop.f32.mrf.mxu2 }
 0x722   :  { %3268 = vst [vmem:[#allocation1 + $0x10] ss:$2 sm:$0xff] %v12118_v4  ;;  %v3164_v19 = vld.sshfl [vmem:[#allocation1 + $0x30] sm:$0xff pattern:$0x75316420] }
 0x723   :  { %3269 = vst [vmem:[#allocation1 + $0x11] ss:$2 sm:$0xff] %v12119_v17  ;;  %v5374_v34 = vpop.f32.mrf.mxu3 }
 0x724   :  { %3171 = vst [vmem:[#allocation1 + $0x30] ss:$2 sm:$0xff] %v3118_v11  ;;  %v10713_v35 = vadd.f32 %v5374_v34, %v10613_v43  ;;  %5754 = vmatmul.f32.gmra.mxu1 %v3570_v36  ;;  %v12126_v43 = vld [vmem:[#allocation99_spill] sm:$0xff]  ;;  %v10731_v17 = vpop.f32.mrf.mxu0  ;;  %v3264_v53 = vld.sshfl [vmem:[#allocation1 + $0x20] sm:$0xff pattern:$0x75316420] }
 0x725   :  { %3172 = vst [vmem:[#allocation1 + $0x31] ss:$2 sm:$0xff] %v3121_v58  ;;  %5698 = vmatmul.f32.gmra.mxu0 %v3644_v55  ;;  %5595 = vmatmul.f32.gmra.mxu2 %v3867_v47  ;;  %v10736_v55 = vpop.f32.mrf.mxu1  ;;  %v12129_v34 = vld [vmem:[#allocation118_spill] sm:$0xff]  ;;  %v3214_v36 = vrot.slane %v10603_v40, 6  ;;  %v6092_v47 = vrot.slane %v10500_v21, 10 }
 0x726   :  { %3204 = vst.msk [vmem:[#allocation2 + $0x940] sm:$0xff] %vm881_vm2, %v3164_v19  ;;  %v3274_v0 = vld.sshfl [vmem:[#allocation1] sm:$0xff pattern:$0x75316420] }
 0x727   :  { %3303 = vst.msk [vmem:[#allocation2 + $0x7b8] sm:$0xff] %vm881_vm2, %v3263_v7  ;;  %v12123_v7 = vld [vmem:[#allocation86_spill] sm:$0xff] }
 0x728   :  { %3324 = vst [vmem:[#allocation1] ss:$2 sm:$0xff] %v12120_v2  ;;  %5636 = vmatmul.f32.gmra.mxu3 %v3668_v6  ;;  %v3213_v2 = vrot.slane %v3211_v56, 4 }
 0x729   :  { %12121 = vst [vmem:[#allocation93_spill] sm:$0xff] %v10715_v48  ;;  %v10728_v4 = vpop.f32.mrf.mxu2  ;;  %v3322_v48 = vrot.slane %v10673_v44, 7 }
 0x72a   :  { %3326 = vst [vmem:[#allocation1 + $0x1] ss:$2 sm:$0xff] %v12122_v32  ;;  %v3275_v10 = vld.sshfl [vmem:[#allocation1 + $0x10] sm:$0xff pattern:$0x75316420]  ;;  %v12130_v32 = vld [vmem:[#allocation34_spill] sm:$0xff] }
 0x72b   :  { %3306 = vst.msk [vmem:[#allocation2 + $0xa10] sm:$0xff] %vm881_vm2, %v3274_v0  ;;  %v5377_v11 = vpop.f32.mrf.mxu3  ;;  %v12128_v0 = vld [vmem:[#allocation117_spill] sm:$0xff] }
 0x72c   :  { %3328 = vst [vmem:[#allocation1 + $0x10] ss:$2 sm:$0xff] %v12123_v7  ;;  %v3176_v62 = vld.sshfl [vmem:[#allocation1 + $0x30] sm:$0xff pattern:$0x75316420]  ;;  %v10734_v58 = vadd.f32 %v5377_v11, %v10642_v23  ;;  %v12149_v7 = vld [vmem:[#allocation67_spill] sm:$0xff] }
 0x72d   :  { %3330 = vst [vmem:[#allocation1 + $0x11] ss:$2 sm:$0xff] %v12124_v22  ;;  %5701 = vmatmul.f32.gmra.mxu0 %v3669_v27  ;;  %5598 = vmatmul.f32.gmra.mxu2 %v3892_v5  ;;  %v3215_v22 = vsel %vm7030_vm8, %v3213_v2, %v3214_v36  ;;  %v4278_v27 = vld [vmem:[%s11297_s3 + $0xbe0] sm:$0xff]  ;;  %v10758_v11 = vpop.f32.mrf.mxu1  ;;  %v10762_v5 = vpop.f32.mrf.mxu0 }
 0x72e   :  { %3235 = vst [vmem:[#allocation1 + $0x30] ss:$2 sm:$0xff] %v12125_v42  ;;  %v3694_v42 = vld [vmem:[#allocation2 + $0x620] sm:$0xff]  ;;  %5800 = vmatpush.msrb.mxu1 %v4278_v27  ;;  %6115 = vmatpush.msra.mxu2 %v4278_v27 }
 0x72f   :  { %3237 = vst [vmem:[#allocation1 + $0x31] ss:$2 sm:$0xff] %v12126_v43  ;;  %v3693_v43 = vld [vmem:[#allocation2 + $0x618] sm:$0xff] }
 0x730   :  { %3208 = vst.msk [vmem:[#allocation2 + $0xc60] sm:$0xff] %vm881_vm2, %v3176_v62  ;;  %v3212_v62 = vsel %vm7030_vm8, %v6092_v47, %v3211_v56  ;;  %5639 = vmatmul.f32.gmra.mxu3 %v3693_v43  ;;  %v12136_v47 = vld [vmem:[#allocation94_spill] sm:$0xff] }
 0x731   :  { %3307 = vst.msk [vmem:[#allocation2 + $0xad8] sm:$0xff] %vm881_vm2, %v3275_v10  ;;  %v3339_v19 = vld.sshfl [vmem:[#allocation1] sm:$0xff pattern:$0x75316420]  ;;  %v12131_v10 = vld [vmem:[#allocation101_spill] sm:$0xff]  ;;  %v10753_v6 = vpop.f32.mrf.mxu2 }
 0x732   :  { %12127 = vst [vmem:[#allocation65_spill] sm:$0xff] %v10736_v55  ;;  %v4275_v55 = vld [vmem:[%s11297_s3 + $0xbc8] sm:$0xff] }
 0x733   :  { %3343 = vst [vmem:[#allocation1] ss:$2 sm:$0xff] %v12128_v0  ;;  %v5380_v49 = vpop.f32.mrf.mxu3  ;;  %v12134_v0 = vld [vmem:[#allocation38_spill] sm:$0xff] }
 0x734   :  { %3344 = vst [vmem:[#allocation1 + $0x1] ss:$2 sm:$0xff] %v12129_v34  ;;  %v10756_v56 = vadd.f32 %v5380_v49, %v10662_v29  ;;  %v12135_v34 = vld [vmem:[#allocation39_spill] sm:$0xff]  ;;  %v3340_v43 = vld.sshfl [vmem:[#allocation1 + $0x10] sm:$0xff pattern:$0x75316420] }
 0x735   :  { %3395 = vst.msk [vmem:[#allocation2 + $0xb8] sm:$0xff] %vm881_vm2, %v3339_v19  ;;  %5704 = vmatmul.f32.gmra.mxu0 %v3694_v42  ;;  %v12137_v29 = vld [vmem:[#allocation95_spill] sm:$0xff]  ;;  %v12138_v42 = vld [vmem:[#allocation106_spill] sm:$0xff]  ;;  %v10775_v27 = vpop.f32.mrf.mxu1 }
 0x736   :  { %3270 = vst [vmem:[#allocation1 + $0x20] ss:$2 sm:$0xff] %v12130_v32  ;;  %v3241_v23 = vld.sshfl [vmem:[#allocation1 + $0x30] sm:$0xff pattern:$0x75316420]  ;;  %v12139_v49 = vld [vmem:[#allocation107_spill] sm:$0xff] }
 0x737   :  { %3271 = vst [vmem:[#allocation1 + $0x21] ss:$2 sm:$0xff] %v12131_v10  ;;  %v3719_v32 = vld [vmem:[#allocation2 + $0x6e8] sm:$0xff] }
 0x738   :  { %3297 = vst.msk [vmem:[#allocation2 + $0x308] sm:$0xff] %vm881_vm2, %v3241_v23  ;;  %v3718_v23 = vld [vmem:[#allocation2 + $0x6e0] sm:$0xff] }
 0x739   :  { %3248 = vst [vmem:[#allocation1 + $0x30] ss:$2 sm:$0xff] %v3212_v62  ;;  %5642 = vmatmul.f32.gmra.mxu3 %v3718_v23  ;;  %v10772_v62 = vpop.f32.mrf.mxu2  ;;  %v10786_v23 = vpop.f32.mrf.mxu0 }
 0x73a   :  { %3249 = vst [vmem:[#allocation1 + $0x31] ss:$2 sm:$0xff] %v3215_v22 }
 0x73b   :  { %12133 = vst [vmem:[#allocation12_spill] sm:$0xff] %v10758_v11  ;;  %v3351_v19 = vld.sshfl [vmem:[#allocation1] sm:$0xff pattern:$0x75316420]  ;;  %v5383_v22 = vpop.f32.mrf.mxu3  ;;  %v3743_v11 = vld [vmem:[#allocation2 + $0x7a8] sm:$0xff] }
 0x73c   :  { %3304 = vst.msk [vmem:[#allocation2 + $0x880] sm:$0xff] %vm881_vm2, %v3264_v53  ;;  %v4277_v53 = vld [vmem:[%s11297_s3 + $0xbd8] sm:$0xff] }
 0x73d   :  { %3399 = vst.msk [vmem:[#allocation2 + $0x3d8] sm:$0xff] %vm881_vm2, %v3351_v19  ;;  %5707 = vmatmul.f32.gmra.mxu0 %v3719_v32  ;;  %5801 = vmatpush.msrb.mxu1 %v4277_v53  ;;  %v3218_v19 = vrot.slane %v10566_v33, 6  ;;  %v3221_v32 = vrot.slane %v10673_v44, 6 }
 0x73e   :  { %3355 = vst [vmem:[#allocation1] ss:$2 sm:$0xff] %v12134_v0  ;;  %v3276_v2 = vld.sshfl [vmem:[#allocation1 + $0x20] sm:$0xff pattern:$0x75316420]  ;;  %6116 = vmatpush.msra.mxu2 %v4277_v53  ;;  %v12140_v0 = vld [vmem:[#allocation128_spill] sm:$0xff] }
 0x73f   :  { %3356 = vst [vmem:[#allocation1 + $0x1] ss:$2 sm:$0xff] %v12135_v34  ;;  %v3595_v36 = vld [vmem:[#allocation2 + $0x308] sm:$0xff]  ;;  %v6093_v34 = vrot.slane %v10560_v13, 10  ;;  %v3620_v53 = vld [vmem:[#allocation2 + $0x3d0] sm:$0xff] }
 0x740   :  { %3332 = vst [vmem:[#allocation1 + $0x20] ss:$2 sm:$0xff] %v12136_v47  ;;  %5757 = vmatmul.f32.gmra.mxu1 %v3595_v36  ;;  %v12141_v36 = vld [vmem:[#allocation57_spill] sm:$0xff] }
 0x741   :  { %3334 = vst [vmem:[#allocation1 + $0x21] ss:$2 sm:$0xff] %v12137_v29  ;;  %v3253_v10 = vld.sshfl [vmem:[#allocation1 + $0x30] sm:$0xff pattern:$0x75316420]  ;;  %v5124_v47 = vadd.f32 %v10386_v57, %v12141_v36  ;;  %v12142_v29 = vld [vmem:[#allocation129_spill] sm:$0xff]  ;;  %5645 = vmatmul.f32.gmra.mxu3 %v3743_v11 }
 0x742   :  { %3308 = vst.msk [vmem:[#allocation2 + $0xba0] sm:$0xff] %vm881_vm2, %v3276_v2  ;;  %v3220_v2 = vrot.slane %v3218_v19, 4  ;;  %v4276_v36 = vld [vmem:[%s11297_s3 + $0xbd0] sm:$0xff] }
 0x743   :  { %3260 = vst [vmem:[#allocation1 + $0x30] ss:$2 sm:$0xff] %v12138_v42  ;;  %v5189_v57 = vadd.f32 %v12145_v8, %v5124_v47  ;;  %v12146_v11 = vld [vmem:[#allocation16_spill] sm:$0xff]  ;;  %v12147_v47 = vld [vmem:[#allocation41_spill] sm:$0xff]  ;;  %5802 = vmatpush.msrb.mxu1 %v4276_v36  ;;  %6117 = vmatpush.msra.mxu2 %v4276_v36 }
 0x744   :  { %3261 = vst [vmem:[#allocation1 + $0x31] ss:$2 sm:$0xff] %v12139_v49  ;;  %v3222_v8 = vsel %vm7030_vm8, %v3220_v2, %v3221_v32  ;;  %v12150_v32 = vld [vmem:[#allocation23_spill] sm:$0xff]  ;;  %v12152_v36 = vld [vmem:[#allocation77_spill] sm:$0xff] }
 0x745   :  { %3301 = vst.msk [vmem:[#allocation2 + $0x628] sm:$0xff] %vm881_vm2, %v3253_v10  ;;  %v12143_v10 = vld [vmem:[#allocation69_spill] sm:$0xff]  ;;  %v5254_v2 = vadd.f32 %v10457_v30, %v5189_v57  ;;  %5803 = vmatpush.msrb.mxu1 %v4275_v55  ;;  %6118 = vmatpush.msra.mxu2 %v4275_v55  ;;  %v3769_v55 = vld [vmem:[#allocation2 + $0x878] sm:$0xff] }
 0x746   :  { %3345 = vst [vmem:[#allocation1 + $0x10] ss:$2 sm:$0xff] %v12140_v0  ;;  %v3363_v49 = vld.sshfl [vmem:[#allocation1] sm:$0xff pattern:$0x75316420]  ;;  %v3744_v0 = vld [vmem:[#allocation2 + $0x7b0] sm:$0xff] }
 0x747   :  { %3346 = vst [vmem:[#allocation1 + $0x11] ss:$2 sm:$0xff] %v12142_v29  ;;  %5710 = vmatmul.f32.gmra.mxu0 %v3744_v0  ;;  %v10800_v29 = vpop.f32.mrf.mxu2  ;;  %v10812_v0 = vpop.f32.mrf.mxu1  ;;  %v12151_v30 = vld [vmem:[#allocation21_spill] sm:$0xff] }
 0x748   :  { %3396 = vst.msk [vmem:[#allocation2 + $0x180] sm:$0xff] %vm881_vm2, %v3340_v43  ;;  %v3341_v42 = vld.sshfl [vmem:[#allocation1 + $0x20] sm:$0xff pattern:$0x75316420]  ;;  %5760 = vmatmul.f32.gmra.mxu1 %v3620_v53  ;;  %v10798_v43 = vld [vmem:[%s11297_s3 + $0xc78] sm:$0xff]  ;;  %v10802_v53 = vpop.f32.mrf.mxu3 }
 0x749   :  { %3347 = vst [vmem:[#allocation1 + $0x20] ss:$2 sm:$0xff] %v12143_v10  ;;  %v4938_v10 = vadd.f32 %v12147_v47, %v12146_v11  ;;  %6128 = vmatpush.msra.mxu3 %v10798_v43  ;;  %v4274_v47 = vld [vmem:[%s11297_s3 + $0xbc0] sm:$0xff] }
 0x74a   :  { %3348 = vst [vmem:[#allocation1 + $0x21] ss:$2 sm:$0xff] %v12144_v50  ;;  %v3219_v50 = vsel %vm7030_vm8, %v6093_v34, %v3218_v19  ;;  %v5130_v34 = vadd.f32 %v10439_v54, %v12149_v7  ;;  %5804 = vmatpush.msrb.mxu1 %v4274_v47  ;;  %6119 = vmatpush.msra.mxu2 %v4274_v47  ;;  %v12154_v7 = vld [vmem:[#allocation97_spill] sm:$0xff]  ;;  %v12156_v47 = vld [vmem:[#allocation104_spill] sm:$0xff] }
 0x74b   :  { %3397 = vst.msk [vmem:[#allocation2 + $0x248] sm:$0xff] %vm881_vm2, %v3341_v42  ;;  %v3265_v12 = vld.sshfl [vmem:[#allocation1 + $0x30] sm:$0xff pattern:$0x75316420]  ;;  %v5003_v11 = vadd.f32 %v12150_v32, %v4938_v10 }
 0x74c   :  { %3403 = vst.msk [vmem:[#allocation2 + $0x6f8] sm:$0xff] %vm881_vm2, %v3363_v49  ;;  %v12148_v42 = vld [vmem:[#allocation108_spill] sm:$0xff]  ;;  %v5319_v49 = vadd.f32 %v10687_v26, %v5254_v2  ;;  %v12155_v2 = vld [vmem:[#allocation91_spill] sm:$0xff] }
 0x74d   :  { %v5127_v19 = vadd.f32 %v10421_v16, %v12148_v42  ;;  %3272 = vst [vmem:[#allocation1 + $0x30] ss:$2 sm:$0xff] %v3219_v50  ;;  %v5068_v54 = vadd.f32 %v10350_v1, %v5003_v11  ;;  %v3645_v16 = vld [vmem:[#allocation2 + $0x498] sm:$0xff]  ;;  %v5195_v50 = vadd.f32 %v12152_v36, %v5130_v34  ;;  %v3768_v1 = vld [vmem:[#allocation2 + $0x870] sm:$0xff] }
 0x74e   :  { %3273 = vst [vmem:[#allocation1 + $0x31] ss:$2 sm:$0xff] %v3222_v8  ;;  %v3352_v52 = vld.sshfl [vmem:[#allocation1 + $0x10] sm:$0xff pattern:$0x75316420]  ;;  %v5384_v10 = vadd.f32 %v5383_v22, %v5319_v49  ;;  %5648 = vmatmul.f32.gmra.mxu3 %v3768_v1  ;;  %v4273_v22 = vld [vmem:[%s11297_s3 + $0xbb8] sm:$0xff] }
 0x74f   :  { %3305 = vst.msk [vmem:[#allocation2 + $0x948] sm:$0xff] %vm881_vm2, %v3265_v12  ;;  %v5192_v57 = vadd.f32 %v12151_v30, %v5127_v19  ;;  %v12153_v8 = vld [vmem:[#allocation96_spill] sm:$0xff]  ;;  %v5133_v26 = vadd.f32 %v10454_v60, %v5068_v54  ;;  %v10835_v12 = vpop.f32.mrf.mxu0  ;;  %v5260_v19 = vadd.f32 %v12155_v2, %v5195_v50  ;;  %5713 = vmatmul.f32.gmra.mxu0 %v3769_v55  ;;  %v10848_v34 = vpop.f32.mrf.mxu2  ;;  %v12157_v36 = vld [vmem:[#allocation105_spill] sm:$0xff]  ;;  %v12158_v50 = vld [vmem:[#allocation58_spill] sm:$0xff] }
 0x750   :  { %3400 = vst.msk [vmem:[#allocation2 + $0x4a0] sm:$0xff] %vm881_vm2, %v3352_v52  ;;  %5763 = vmatmul.f32.gmra.mxu1 %v3645_v16  ;;  %v10846_v60 = vld [vmem:[%s11297_s3 + $0xc70] sm:$0xff]  ;;  %v5389_v32 = vpop.f32.mrf.mxu3  ;;  %6120 = vmatpush.msra.mxu2 %v4273_v22  ;;  %v10855_v11 = vpop.f32.mrf.mxu1  ;;  %v4271_v16 = vld [vmem:[%s11297_s3 + $0xba8] sm:$0xff]  ;;  %v10864_v30 = vadd.f32 %v10731_v17, %v5384_v10  ;;  %v12160_v1 = vld [vmem:[#allocation66_spill] sm:$0xff]  ;;  %v3312_v17 = vrot.slane %v10503_v25, 7 }
 0x751   :  { %3357 = vst [vmem:[#allocation1 + $0x10] ss:$2 sm:$0xff] %v12153_v8  ;;  %v3353_v42 = vld.sshfl [vmem:[#allocation1 + $0x20] sm:$0xff pattern:$0x75316420]  ;;  %v5257_v52 = vadd.f32 %v10472_v28, %v5192_v57  ;;  %v4272_v28 = vld [vmem:[%s11297_s3 + $0xbb0] sm:$0xff]  ;;  %6129 = vmatpush.msra.mxu3 %v10846_v60  ;;  %v5325_v54 = vadd.f32 %v10728_v4, %v5260_v19  ;;  %5805 = vmatpush.msrb.mxu1 %v4273_v22 }
 0x752   :  { %3358 = vst [vmem:[#allocation1 + $0x11] ss:$2 sm:$0xff] %v12154_v7  ;;  %v5198_v8 = vadd.f32 %v12158_v50, %v5133_v26  ;;  %6121 = vmatpush.msra.mxu2 %v4272_v28  ;;  %v4270_v4 = vld [vmem:[%s11297_s3 + $0xba0] sm:$0xff]  ;;  %v3670_v7 = vld [vmem:[#allocation2 + $0x560] sm:$0xff]  ;;  %v12161_v26 = vld [vmem:[#allocation120_spill] sm:$0xff] }
 0x753   :  { %3401 = vst.msk [vmem:[#allocation2 + $0x568] sm:$0xff] %vm881_vm2, %v3353_v42  ;;  %v5322_v49 = vadd.f32 %v10709_v39, %v5257_v52  ;;  %v12159_v42 = vld [vmem:[#allocation47_spill] sm:$0xff]  ;;  %v5390_v55 = vadd.f32 %v5389_v32, %v5325_v54  ;;  %5806 = vmatpush.msrb.mxu1 %v4272_v28  ;;  %v3793_v19 = vld [vmem:[#allocation2 + $0x938] sm:$0xff]  ;;  %v12162_v22 = vld [vmem:[#allocation121_spill] sm:$0xff] }
 0x754   :  { %3359 = vst [vmem:[#allocation1 + $0x20] ss:$2 sm:$0xff] %v12156_v47  ;;  %v5263_v10 = vadd.f32 %v10514_v15, %v5198_v8  ;;  %6122 = vmatpush.msra.mxu2 %v4271_v16  ;;  %v3794_v52 = vld [vmem:[#allocation2 + $0x940] sm:$0xff]  ;;  %v4269_v15 = vld [vmem:[%s11297_s3 + $0xb98] sm:$0xff] }
 0x755   :  { %v3277_v57 = vld.sshfl [vmem:[#allocation1 + $0x30] sm:$0xff pattern:$0x75316420]  ;;  %3360 = vst [vmem:[#allocation1 + $0x21] ss:$2 sm:$0xff] %v12157_v36  ;;  %v5387_v39 = vadd.f32 %v10802_v53, %v5322_v49  ;;  %5807 = vmatpush.msrb.mxu1 %v4271_v16  ;;  %v10886_v32 = vld [vmem:[%s11297_s3 + $0xc68] sm:$0xff]  ;;  %v10897_v54 = vadd.f32 %v10786_v23, %v5390_v55 }
 0x756   :  { %3336 = vst [vmem:[#allocation1 + $0x30] ss:$2 sm:$0xff] %v12159_v42  ;;  %v5328_v2 = vadd.f32 %v10753_v6, %v5263_v10  ;;  %6123 = vmatpush.msra.mxu2 %v4270_v4  ;;  %5651 = vmatmul.f32.gmra.mxu3 %v3793_v19  ;;  %v4268_v6 = vld [vmem:[%s11297_s3 + $0xb90] sm:$0xff]  ;;  %v12165_v16 = vld [vmem:[#allocation130_spill] sm:$0xff]  ;;  %v3315_v36 = vrot.slane %v10603_v40, 7  ;;  %v6094_v23 = vrot.slane %v10500_v21, 11 }
 0x757   :  { %3338 = vst [vmem:[#allocation1 + $0x31] ss:$2 sm:$0xff] %v12160_v1  ;;  %5716 = vmatmul.f32.gmra.mxu0 %v3794_v52  ;;  %v10888_v28 = vpop.f32.mrf.mxu2  ;;  %v10894_v49 = vadd.f32 %v10762_v5, %v5387_v39  ;;  %6130 = vmatpush.msra.mxu3 %v10886_v32  ;;  %v10907_v42 = vld [vmem:[%s11297_s3 + $0xc60] sm:$0xff]  ;;  %v12167_v5 = vld [vmem:[#allocation131_spill] sm:$0xff]  ;;  %v10911_v39 = vpop.f32.mrf.mxu0  ;;  %v10919_v1 = vld [vmem:[%s11297_s3 + $0xc58] sm:$0xff] }
 0x758   :  { %3309 = vst.msk [vmem:[#allocation2 + $0xc68] sm:$0xff] %vm881_vm2, %v3277_v57  ;;  %5766 = vmatmul.f32.gmra.mxu1 %v3670_v7  ;;  %v5392_v47 = vpop.f32.mrf.mxu3  ;;  %v3314_v57 = vrot.slane %v3312_v17, 4  ;;  %6124 = vmatpush.msra.mxu2 %v4269_v15  ;;  %v10902_v8 = vpop.f32.mrf.mxu1  ;;  %v4267_v55 = vld [vmem:[%s11297_s3 + $0xb88] sm:$0xff]  ;;  %v4266_v52 = vld [vmem:[%s11297_s3 + $0xb80] sm:$0xff]  ;;  %v3819_v19 = vld [vmem:[#allocation2 + $0xa08] sm:$0xff] }
 0x759   :  { %3367 = vst [vmem:[#allocation1] ss:$2 sm:$0xff] %v12161_v26  ;;  %v3364_v53 = vld.sshfl [vmem:[#allocation1 + $0x10] sm:$0xff pattern:$0x75316420]  ;;  %v5393_v50 = vadd.f32 %v5392_v47, %v5328_v2  ;;  %5808 = vmatpush.msrb.mxu1 %v4270_v4  ;;  %6131 = vmatpush.msra.mxu3 %v10907_v42  ;;  %v3313_v26 = vsel %vm7079_vm10, %v6094_v23, %v3312_v17  ;;  %v10943_v17 = vld [vmem:[%s11297_s3 + $0xc48] sm:$0xff] }
 0x75a   :  { %3368 = vst [vmem:[#allocation1 + $0x1] ss:$2 sm:$0xff] %v12162_v22  ;;  %6125 = vmatpush.msra.mxu2 %v4268_v6  ;;  %v10935_v4 = vld [vmem:[%s11297_s3 + $0xc50] sm:$0xff]  ;;  %v3818_v22 = vld [vmem:[#allocation2 + $0xa00] sm:$0xff]  ;;  %v12173_v23 = vld [vmem:[#allocation18_spill] sm:$0xff] }
 0x75b   :  { %12163 = vst [vmem:[#allocation51_spill] sm:$0xff] %v10894_v49  ;;  %v10924_v21 = vadd.f32 %v10835_v12, %v5393_v50  ;;  %5809 = vmatpush.msrb.mxu1 %v4269_v15  ;;  %v3695_v12 = vld [vmem:[#allocation2 + $0x628] sm:$0xff]  ;;  %6132 = vmatpush.msra.mxu3 %v10919_v1  ;;  %v12170_v15 = vld [vmem:[#allocation5_spill] sm:$0xff]  ;;  %v12182_v49 = vld [vmem:[#allocation79_spill] sm:$0xff] }
 0x75c   :  { %12164 = vst [vmem:[#allocation19_spill] sm:$0xff] %v10897_v54  ;;  %6126 = vmatpush.msra.mxu2 %v4267_v55 }
 0x75d   :  { %3369 = vst [vmem:[#allocation1 + $0x10] ss:$2 sm:$0xff] %v12165_v16  ;;  %6133 = vmatpush.msra.mxu3 %v10935_v4  ;;  %5810 = vmatpush.msrb.mxu1 %v4268_v6 }
 0x75e   :  { %12166 = vst [vmem:[#allocation52_spill] sm:$0xff] %v10902_v8  ;;  %v3342_v10 = vld.sshfl [vmem:[#allocation1 + $0x30] sm:$0xff pattern:$0x75316420]  ;;  %6127 = vmatpush.msra.mxu2 %v4266_v52  ;;  %5654 = vmatmul.f32.gmra.mxu3 %v3818_v22  ;;  %v12176_v22 = vld [vmem:[#allocation59_spill] sm:$0xff]  ;;  %v3621_v8 = vld [vmem:[#allocation2 + $0x3d8] sm:$0xff] }
 0x75f   :  { %3370 = vst [vmem:[#allocation1 + $0x11] ss:$2 sm:$0xff] %v12167_v5  ;;  %5719 = vmatmul.f32.gmra.mxu0 %v3819_v19  ;;  %v10949_v16 = vpop.f32.mrf.mxu2  ;;  %v12172_v5 = vld [vmem:[#allocation110_spill] sm:$0xff]  ;;  %6134 = vmatpush.msra.mxu3 %v10943_v17  ;;  %v10974_v6 = vpop.f32.mrf.mxu0 }
 0x760   :  { %3404 = vst.msk [vmem:[#allocation2 + $0x7c0] sm:$0xff] %vm881_vm2, %v3364_v53  ;;  %v3316_v53 = vsel %vm7079_vm10, %v3314_v57, %v3315_v36  ;;  %5769 = vmatmul.f32.gmra.mxu1 %v3695_v12  ;;  %v10947_v47 = vpop.f32.mrf.mxu3  ;;  %v10954_v57 = vld [vmem:[%s11297_s3 + $0xc40] sm:$0xff]  ;;  %v12175_v12 = vld [vmem:[#allocation8_spill] sm:$0xff] }
 0x761   :  { %12168 = vst [vmem:[#allocation31_spill] sm:$0xff] %v10924_v21  ;;  %v3375_v2 = vld.sshfl [vmem:[#allocation1] sm:$0xff pattern:$0x75316420]  ;;  %6135 = vmatpush.msra.mxu3 %v10954_v57  ;;  %5811 = vmatpush.msrb.mxu1 %v4267_v55  ;;  %v3720_v21 = vld [vmem:[#allocation2 + $0x6f0] sm:$0xff]  ;;  %v12179_v55 = vld [vmem:[#allocation3_spill] sm:$0xff] }
 0x762   :  { %3398 = vst.msk [vmem:[#allocation2 + $0x310] sm:$0xff] %vm881_vm2, %v3342_v10  ;;  %v12171_v36 = vld [vmem:[#allocation6_spill] sm:$0xff]  ;;  %v4941_v10 = vadd.f32 %v12173_v23, %v12172_v5  ;;  %v12177_v5 = vld [vmem:[#allocation43_spill] sm:$0xff]  ;;  %v12178_v23 = vld [vmem:[#allocation4_spill] sm:$0xff] }
 0x763   :  { %3349 = vst [vmem:[#allocation1 + $0x30] ss:$2 sm:$0xff] %v3313_v26  ;;  %v10959_v26 = vpop.f32.mrf.mxu1  ;;  %v10969_v19 = vld.sshfl [vmem:[#allocation1 + $0x20] sm:$0xff pattern:$0x75316420]  ;;  %5812 = vmatpush.msrb.mxu1 %v4266_v52 }
 0x764   :  { %3350 = vst [vmem:[#allocation1 + $0x31] ss:$2 sm:$0xff] %v3316_v53  ;;  %v10966_v53 = vld [vmem:[%s11297_s3 + $0xc38] sm:$0xff] }
 0x765   :  { %3411 = vst [vmem:[#allocation1] ss:$2 sm:$0xff] %v12170_v15  ;;  %v5006_v15 = vadd.f32 %v12176_v22, %v4941_v10  ;;  %6136 = vmatpush.msra.mxu3 %v10966_v53  ;;  %v3843_v22 = vld [vmem:[#allocation2 + $0xac8] sm:$0xff]  ;;  %5862 = vmatpush.msra.mxu1 %v10798_v43  ;;  %v6095_v43 = vrot.slane %v10560_v13, 11 }
 0x766   :  { %3413 = vst [vmem:[#allocation1 + $0x1] ss:$2 sm:$0xff] %v12171_v36  ;;  %v3376_v50 = vld.sshfl [vmem:[#allocation1 + $0x10] sm:$0xff pattern:$0x75316420]  ;;  %5657 = vmatmul.f32.gmra.mxu3 %v3843_v22 }
 0x767   :  { %12174 = vst [vmem:[#allocation32_spill] sm:$0xff] %v10959_v26  ;;  %v3844_v26 = vld [vmem:[#allocation2 + $0xad0] sm:$0xff]  ;;  %v10992_v52 = vpop.f32.mrf.mxu2  ;;  %5863 = vmatpush.msra.mxu1 %v10846_v60  ;;  %v12191_v60 = vld [vmem:[#allocation7_spill] sm:$0xff] }
 0x768   :  { %3407 = vst.msk [vmem:[#allocation2 + $0xa18] sm:$0xff] %vm881_vm2, %v3375_v2  ;;  %v10979_v2 = vld [vmem:[%s11297_s3 + $0xc30] sm:$0xff]  ;;  %5772 = vmatmul.f32.gmra.mxu1 %v3720_v21  ;;  %5722 = vmatmul.f32.gmra.mxu0 %v3844_v26  ;;  %v3319_v21 = vrot.slane %v10566_v33, 7 }
 0x769   :  { %3415 = vst [vmem:[#allocation1 + $0x10] ss:$2 sm:$0xff] %v12175_v12  ;;  %v3596_v36 = vld [vmem:[#allocation2 + $0x310] sm:$0xff]  ;;  %v5071_v12 = vadd.f32 %v12178_v23, %v5006_v15  ;;  %6137 = vmatpush.msra.mxu3 %v10979_v2  ;;  %v10990_v15 = vpop.f32.mrf.mxu3  ;;  %v12184_v23 = vld [vmem:[#allocation102_spill] sm:$0xff]  ;;  %5864 = vmatpush.msra.mxu1 %v10886_v32 }
 0x76a   :  { %3417 = vst [vmem:[#allocation1 + $0x11] ss:$2 sm:$0xff] %v12177_v5  ;;  %5822 = vmatmul.f32.vlgmr.msra.gmra.mxu2 %v3596_v36  ;;  %v12180_v5 = vld [vmem:[#allocation54_spill] sm:$0xff]  ;;  %v12181_v36 = vld [vmem:[#allocation27_spill] sm:$0xff]  ;;  %v3321_v22 = vrot.slane %v3319_v21, 4 }
 0x76b   :  { %3408 = vst.msk [vmem:[#allocation2 + $0xae0] sm:$0xff] %vm881_vm2, %v3376_v50  ;;  %v3354_v10 = vld.sshfl [vmem:[#allocation1 + $0x30] sm:$0xff pattern:$0x75316420]  ;;  %v5136_v54 = vadd.f32 %v12181_v36, %v5071_v12  ;;  %v12185_v12 = vld [vmem:[#allocation49_spill] sm:$0xff]  ;;  %v12186_v36 = vld [vmem:[#allocation63_spill] sm:$0xff]  ;;  %5865 = vmatpush.msra.mxu1 %v10907_v42 }
 0x76c   :  { %3371 = vst [vmem:[#allocation1 + $0x20] ss:$2 sm:$0xff] %v12179_v55  ;;  %v4944_v55 = vadd.f32 %v12185_v12, %v12184_v23  ;;  %v12190_v23 = vld [vmem:[#allocation119_spill] sm:$0xff]  ;;  %v3323_v32 = vsel %vm7079_vm10, %v3321_v22, %v3322_v48 }
 0x76d   :  { %3361 = vst [vmem:[#allocation1 + $0x30] ss:$2 sm:$0xff] %v12180_v5  ;;  %v3426_v50 = vld.sshfl [vmem:[#allocation1] sm:$0xff pattern:$0x75316420]  ;;  %v10998_v5 = vpop.f32.mrf.mxu1  ;;  %5866 = vmatpush.msra.mxu1 %v10919_v1  ;;  %v12196_v1 = vld [vmem:[#allocation53_spill] sm:$0xff] }
 0x76e   :  { %3362 = vst [vmem:[#allocation1 + $0x31] ss:$2 sm:$0xff] %v12182_v49  ;;  %v12187_v49 = vld [vmem:[#allocation78_spill] sm:$0xff] }
 0x76f   :  { %12183 = vst [vmem:[#allocation109_spill] sm:$0xff] %v10992_v52  ;;  %v5201_v52 = vadd.f32 %v12189_v37, %v5136_v54  ;;  %v3320_v37 = vsel %vm7079_vm10, %v6095_v43, %v3319_v21  ;;  %v11016_v54 = vpop.f32.mrf.mxu0  ;;  %v11026_v21 = vpop.f32.mrf.mxu2  ;;  %v12194_v43 = vld [vmem:[#allocation50_spill] sm:$0xff]  ;;  %5867 = vmatpush.msra.mxu1 %v10935_v4  ;;  %v3770_v4 = vld [vmem:[#allocation2 + $0x880] sm:$0xff] }
 0x770   :  { %3402 = vst.msk [vmem:[#allocation2 + $0x630] sm:$0xff] %vm881_vm2, %v3354_v10  ;;  %v12188_v10 = vld [vmem:[#allocation46_spill] sm:$0xff] }
 0x771   :  { %3430 = vst [vmem:[#allocation1] ss:$2 sm:$0xff] %v12186_v36  ;;  %v3427_v26 = vld.sshfl [vmem:[#allocation1 + $0x10] sm:$0xff pattern:$0x75316420]  ;;  %v5009_v14 = vadd.f32 %v12188_v10, %v4944_v55  ;;  %v5266_v12 = vadd.f32 %v10549_v20, %v5201_v52  ;;  %v3745_v36 = vld [vmem:[#allocation2 + $0x7b8] sm:$0xff]  ;;  %v11024_v42 = vpop.f32.mrf.mxu3  ;;  %5868 = vmatpush.msra.mxu1 %v10943_v17 }
 0x772   :  { %3431 = vst [vmem:[#allocation1 + $0x1] ss:$2 sm:$0xff] %v12187_v49  ;;  %5825 = vmatmul.f32.gmra.mxu2 %v3621_v8  ;;  %v12192_v49 = vld [vmem:[#allocation111_spill] sm:$0xff]  ;;  %5775 = vmatmul.f32.gmra.mxu1 %v3745_v36  ;;  %v3869_v52 = vld [vmem:[#allocation2 + $0xb98] sm:$0xff]  ;;  %v3868_v55 = vld [vmem:[#allocation2 + $0xb90] sm:$0xff] }
 0x773   :  { %3482 = vst.msk [vmem:[#allocation2 + $0xc0] sm:$0xff] %vm881_vm2, %v3426_v50  ;;  %v5074_v13 = vadd.f32 %v12191_v60, %v5009_v14  ;;  %v12193_v14 = vld [vmem:[#allocation90_spill] sm:$0xff]  ;;  %v5331_v20 = vadd.f32 %v10772_v62, %v5266_v12  ;;  %5725 = vmatmul.f32.gmra.mxu0 %v3869_v52  ;;  %5660 = vmatmul.f32.gmra.mxu3 %v3868_v55  ;;  %v3894_v17 = vld [vmem:[#allocation2 + $0xc60] sm:$0xff]  ;;  %v4285_v55 = vld [vmem:[%s11297_s3 + $0xc18] sm:$0xff] }
 0x774   :  { %3432 = vst [vmem:[#allocation1 + $0x10] ss:$2 sm:$0xff] %v12190_v23  ;;  %v12197_v23 = vld [vmem:[#allocation64_spill] sm:$0xff]  ;;  %v12198_v12 = vld [vmem:[#allocation22_spill] sm:$0xff]  ;;  %5869 = vmatpush.msra.mxu1 %v10954_v57 }
 0x775   :  { %3433 = vst [vmem:[#allocation1 + $0x11] ss:$2 sm:$0xff] %v12192_v49  ;;  %v3366_v50 = vld.sshfl [vmem:[#allocation1 + $0x30] sm:$0xff pattern:$0x75316420]  ;;  %v5139_v8 = vadd.f32 %v12193_v14, %v5074_v13  ;;  %v5396_v48 = vadd.f32 %v10947_v47, %v5331_v20  ;;  %v11031_v22 = vpop.f32.mrf.mxu1  ;;  %v3646_v13 = vld [vmem:[#allocation2 + $0x4a0] sm:$0xff] }
 0x776   :  { %3483 = vst.msk [vmem:[#allocation2 + $0x188] sm:$0xff] %vm881_vm2, %v3427_v26  ;;  %v12195_v26 = vld [vmem:[#allocation33_spill] sm:$0xff]  ;;  %v12199_v47 = vld [vmem:[#allocation24_spill] sm:$0xff]  ;;  %v4286_v14 = vld [vmem:[%s11297_s3 + $0xc20] sm:$0xff]  ;;  %5870 = vmatpush.msra.mxu1 %v10966_v53 }
 0x777   :  { %3373 = vst [vmem:[#allocation1 + $0x30] ss:$2 sm:$0xff] %v3320_v37  ;;  %v4947_v7 = vadd.f32 %v12195_v26, %v12194_v43  ;;  %v5204_v60 = vadd.f32 %v12197_v23, %v5139_v8  ;;  %v12200_v49 = vld [vmem:[#allocation112_spill] sm:$0xff]  ;;  %v11050_v8 = vadd.f32 %v10911_v39, %v5396_v48  ;;  %v11062_v26 = vpop.f32.mrf.mxu0  ;;  %v3893_v57 = vld [vmem:[#allocation2 + $0xc58] sm:$0xff]  ;;  %v12203_v53 = vld [vmem:[#allocation13_spill] sm:$0xff] }
 0x778   :  { %3374 = vst [vmem:[#allocation1 + $0x31] ss:$2 sm:$0xff] %v3323_v32  ;;  %v4287_v32 = vld [vmem:[%s11297_s3 + $0xc28] sm:$0xff]  ;;  %v12202_v39 = vld [vmem:[#allocation48_spill] sm:$0xff]  ;;  %5871 = vmatpush.msra.mxu1 %v10979_v2 }
 0x779   :  { %3406 = vst.msk [vmem:[#allocation2 + $0x950] sm:$0xff] %vm881_vm2, %v3366_v50  ;;  %v3438_v62 = vld.sshfl [vmem:[#allocation1] sm:$0xff pattern:$0x75316420]  ;;  %v5012_v10 = vadd.f32 %v12196_v1, %v4947_v7  ;;  %v5269_v50 = vadd.f32 %v10586_v18, %v5204_v60  ;;  %6138 = vmatpush.msra.mxu3 %v4287_v32  ;;  %v12201_v18 = vld [vmem:[#allocation40_spill] sm:$0xff]  ;;  %v11064_v7 = vpop.f32.mrf.mxu2  ;;  %v4283_v2 = vld [vmem:[%s11297_s3 + $0xc08] sm:$0xff] }
 0x77a   :  { %3486 = vst.msk [vmem:[#allocation2 + $0x3e0] sm:$0xff] %vm881_vm2, %v3438_v62  ;;  %5828 = vmatmul.f32.gmra.mxu2 %v3646_v13  ;;  %5778 = vmatmul.f32.gmra.mxu1 %v3770_v4  ;;  %v4284_v48 = vld [vmem:[%s11297_s3 + $0xc10] sm:$0xff]  ;;  %v12204_v1 = vld [vmem:[#allocation70_spill] sm:$0xff] }
 0x77b   :  { %3442 = vst [vmem:[#allocation1] ss:$2 sm:$0xff] %v12198_v12  ;;  %v5077_v37 = vadd.f32 %v12200_v49, %v5012_v10  ;;  %v5334_v52 = vadd.f32 %v10800_v29, %v5269_v50  ;;  %5728 = vmatmul.f32.gmra.mxu0 %v3894_v17  ;;  %6139 = vmatpush.msra.mxu3 %v4286_v14  ;;  %v5404_v29 = vpop.f32.mrf.mxu3  ;;  %v12205_v10 = vld [vmem:[#allocation9_spill] sm:$0xff]  ;;  %v3671_v60 = vld [vmem:[#allocation2 + $0x568] sm:$0xff] }
 0x77c   :  { %3443 = vst [vmem:[#allocation1 + $0x1] ss:$2 sm:$0xff] %v12199_v47  ;;  %v3439_v36 = vld.sshfl [vmem:[#allocation1 + $0x10] sm:$0xff pattern:$0x75316420]  ;;  %5663 = vmatmul.f32.gmra.mxu3 %v3893_v57  ;;  %5872 = vmatpush.msra.mxu1 %v4287_v32  ;;  %v3820_v57 = vld [vmem:[#allocation2 + $0xa10] sm:$0xff] }
 0x77d   :  { %3487 = vst.msk [vmem:[#allocation2 + $0x4a8] sm:$0xff] %vm881_vm2, %v3439_v36  ;;  %v5142_v20 = vadd.f32 %v10509_v45, %v5077_v37  ;;  %v5399_v45 = vadd.f32 %v10990_v15, %v5334_v52  ;;  %v11071_v62 = vpop.f32.mrf.mxu1  ;;  %6140 = vmatpush.msra.mxu3 %v4285_v55  ;;  %v12206_v13 = vld [vmem:[#allocation80_spill] sm:$0xff]  ;;  %v4282_v36 = vld [vmem:[%s11297_s3 + $0xc00] sm:$0xff] }
 0x77e   :  { %3444 = vst [vmem:[#allocation1 + $0x10] ss:$2 sm:$0xff] %v12201_v18  ;;  %v3795_v47 = vld [vmem:[#allocation2 + $0x948] sm:$0xff]  ;;  %5873 = vmatpush.msra.mxu1 %v4286_v14 }
 0x77f   :  { %v3378_v43 = vld.sshfl [vmem:[#allocation1 + $0x30] sm:$0xff pattern:$0x75316420]  ;;  %3445 = vst [vmem:[#allocation1 + $0x11] ss:$2 sm:$0xff] %v12202_v39  ;;  %v5207_v23 = vadd.f32 %v12205_v10, %v5142_v20  ;;  %6141 = vmatpush.msra.mxu3 %v4284_v48  ;;  %v11088_v49 = vadd.f32 %v10974_v6, %v5399_v45  ;;  %v11101_v18 = vpop.f32.mrf.mxu0  ;;  %v12210_v20 = vld [vmem:[#allocation26_spill] sm:$0xff]  ;;  %v5440_v39 = vadd.f32 %v10648_v41, %v10713_v35 }
 0x780   :  { %3410 = vst.msk [vmem:[#allocation2 + $0xc70] sm:$0xff] %vm881_vm2, %v3378_v43  ;;  %v12208_v50 = vld [vmem:[#allocation92_spill] sm:$0xff]  ;;  %5874 = vmatpush.msra.mxu1 %v4285_v55  ;;  %v5210_v52 = vadd.f32 %v12210_v20, %v10545_v59  ;;  %v3696_v55 = vld [vmem:[#allocation2 + $0x630] sm:$0xff]  ;;  %v12212_v59 = vld [vmem:[#allocation11_spill] sm:$0xff]  ;;  %v5446_v20 = vadd.f32 %v10703_v9, %v10756_v56 }
 0x781   :  { %3423 = vst [vmem:[#allocation1 + $0x30] ss:$2 sm:$0xff] %v12203_v53  ;;  %v5272_v12 = vadd.f32 %v10617_v24, %v5207_v23  ;;  %6142 = vmatpush.msra.mxu3 %v4283_v2  ;;  %v11094_v4 = vpop.f32.mrf.mxu2  ;;  %v12209_v14 = vld [vmem:[#allocation68_spill] sm:$0xff]  ;;  %v5505_v53 = vadd.f32 %v10775_v27, %v5440_v39  ;;  %v12220_v56 = vld [vmem:[#allocation81_spill] sm:$0xff] }
 0x782   :  { %3425 = vst [vmem:[#allocation1 + $0x31] ss:$2 sm:$0xff] %v12204_v1  ;;  %5831 = vmatmul.f32.gmra.mxu2 %v3671_v60  ;;  %5781 = vmatmul.f32.gmra.mxu1 %v3795_v47  ;;  %v3721_v60 = vld [vmem:[#allocation2 + $0x6f8] sm:$0xff]  ;;  %v5511_v39 = vadd.f32 %v10855_v11, %v5446_v20  ;;  %v5428_v11 = vadd.f32 %v12220_v56, %v10615_v51  ;;  %v12230_v56 = vld [vmem:[#allocation19_spill] sm:$0xff] }
 0x783   :  { %3372 = vst [vmem:[#allocation1 + $0x21] ss:$2 sm:$0xff] %v12206_v13  ;;  %v3450_v15 = vld.sshfl [vmem:[#allocation1] sm:$0xff pattern:$0x75316420]  ;;  %v5337_v37 = vadd.f32 %v10848_v34, %v5272_v12  ;;  %6143 = vmatpush.msra.mxu3 %v4282_v36  ;;  %5875 = vmatpush.msra.mxu1 %v4284_v48  ;;  %v11107_v43 = vpop.f32.mrf.mxu3 }
 0x784   :  { %3405 = vst.msk [vmem:[#allocation2 + $0x888] sm:$0xff] %vm881_vm2, %v10969_v19  ;;  %v12207_v19 = vld [vmem:[#allocation76_spill] sm:$0xff]  ;;  %v12211_v48 = vld [vmem:[#allocation10_spill] sm:$0xff] }
 0x785   :  { %3490 = vst.msk [vmem:[#allocation2 + $0x700] sm:$0xff] %vm881_vm2, %v3450_v15  ;;  %v5402_v6 = vadd.f32 %v11024_v42, %v5337_v37  ;;  %v11098_v17 = vpop.f32.mrf.mxu1  ;;  %5876 = vmatpush.msra.mxu1 %v4283_v2  ;;  %v5275_v42 = vadd.f32 %v10646_v46, %v5210_v52  ;;  %v12213_v46 = vld [vmem:[#allocation14_spill] sm:$0xff]  ;;  %v12214_v2 = vld [vmem:[#allocation17_spill] sm:$0xff]  ;;  %v3870_v52 = vld [vmem:[#allocation2 + $0xba0] sm:$0xff] }
 0x786   :  { %3454 = vst [vmem:[#allocation1] ss:$2 sm:$0xff] %v12207_v19  ;;  %v3451_v24 = vld.sshfl [vmem:[#allocation1 + $0x10] sm:$0xff pattern:$0x75316420]  ;;  %v3845_v15 = vld [vmem:[#allocation2 + $0xad8] sm:$0xff] }
 0x787   :  { %3455 = vst [vmem:[#allocation1 + $0x1] ss:$2 sm:$0xff] %v12208_v50  ;;  %v5467_v45 = vadd.f32 %v11016_v54, %v5402_v6  ;;  %5877 = vmatpush.msra.mxu1 %v4282_v36  ;;  %v5340_v1 = vadd.f32 %v10888_v28, %v5275_v42  ;;  %v11127_v28 = vpop.f32.mrf.mxu0  ;;  %v12215_v19 = vld [vmem:[#allocation100_spill] sm:$0xff]  ;;  %v3622_v50 = vld [vmem:[#allocation2 + $0x3e0] sm:$0xff] }
 0x788   :  { %3491 = vst.msk [vmem:[#allocation2 + $0x7c8] sm:$0xff] %vm881_vm2, %v3451_v24 }
 0x789   :  { %v3429_v32 = vld.sshfl [vmem:[#allocation1 + $0x30] sm:$0xff pattern:$0x75316420]  ;;  %3456 = vst [vmem:[#allocation1 + $0x10] ss:$2 sm:$0xff] %v12209_v14  ;;  %v5405_v41 = vadd.f32 %v5404_v29, %v5340_v1  ;;  %v5443_v29 = vadd.f32 %v10676_v61, %v10734_v58  ;;  %v12216_v58 = vld [vmem:[#allocation83_spill] sm:$0xff] }
 0x78a   :  { %3485 = vst.msk [vmem:[#allocation2 + $0x318] sm:$0xff] %vm881_vm2, %v3429_v32  ;;  %v3377_v34 = vld.sshfl [vmem:[#allocation1 + $0x20] sm:$0xff pattern:$0x75316420]  ;;  %5834 = vmatmul.f32.gmra.mxu2 %v3696_v55  ;;  %5784 = vmatmul.f32.gmra.mxu1 %v3820_v57  ;;  %v3746_v32 = vld [vmem:[#allocation2 + $0x7c0] sm:$0xff]  ;;  %v3895_v1 = vld [vmem:[#allocation2 + $0xc68] sm:$0xff] }
 0x78b   :  { %3436 = vst [vmem:[#allocation1 + $0x30] ss:$2 sm:$0xff] %v10503_v25  ;;  %v11125_v13 = vpop.f32.mrf.mxu3  ;;  %v5470_v12 = vadd.f32 %v11062_v26, %v5405_v41  ;;  %v5508_v36 = vadd.f32 %v10812_v0, %v5443_v29  ;;  %v12221_v41 = vld [vmem:[#allocation52_spill] sm:$0xff] }
 0x78c   :  { %3437 = vst [vmem:[#allocation1 + $0x31] ss:$2 sm:$0xff] %v10603_v40  ;;  %v5569_v40 = vpop.f32.mrf.mxu2 }
 0x78d   :  { %3419 = vst [vmem:[#allocation1 + $0x20] ss:$2 sm:$0xff] %v12211_v48  ;;  %v11120_v10 = vadd.f32 %v5569_v40, %v5505_v53  ;;  %v5531_v54 = vpop.f32.mrf.mxu1 }
 0x78e   :  { %3421 = vst [vmem:[#allocation1 + $0x21] ss:$2 sm:$0xff] %v12212_v59  ;;  %v3462_v25 = vld.sshfl [vmem:[#allocation1] sm:$0xff pattern:$0x75316420]  ;;  %v11123_v23 = vadd.f32 %v5531_v54, %v5467_v45  ;;  %v3647_v59 = vld [vmem:[#allocation2 + $0x4a8] sm:$0xff] }
 0x78f   :  { %3409 = vst.msk [vmem:[#allocation2 + $0xba8] sm:$0xff] %vm881_vm2, %v3377_v34  ;;  %v11149_v55 = vpop.f32.mrf.mxu0  ;;  %v12222_v54 = vld [vmem:[#allocation109_spill] sm:$0xff] }
 0x790   :  { %3457 = vst [vmem:[#allocation1 + $0x11] ss:$2 sm:$0xff] %v12213_v46 }
 0x791   :  { %v3597_v35 = vld [vmem:[#allocation2 + $0x318] sm:$0xff]  ;;  %3494 = vst.msk [vmem:[#allocation2 + $0xa20] sm:$0xff] %vm881_vm2, %v3462_v25  ;;  %v12219_v25 = vld [vmem:[#allocation55_spill] sm:$0xff] }
 0x792   :  { %5887 = vmatmul.f32.vlgmr.msra.gmra.mxu3 %v3597_v35  ;;  %5837 = vmatmul.f32.gmra.mxu2 %v3721_v60  ;;  %v5514_v35 = vadd.f32 %v12221_v41, %v10864_v30  ;;  %v12225_v30 = vld [vmem:[#allocation44_spill] sm:$0xff] }
 0x793   :  { %v3441_v27 = vld.sshfl [vmem:[#allocation1 + $0x30] sm:$0xff pattern:$0x75316420]  ;;  %5787 = vmatmul.f32.gmra.mxu1 %v3845_v15  ;;  %v5625_v14 = vpop.f32.mrf.mxu3 }
 0x794   :  { %3489 = vst.msk [vmem:[#allocation2 + $0x638] sm:$0xff] %vm881_vm2, %v3441_v27  ;;  %v5572_v37 = vpop.f32.mrf.mxu2 }
 0x795   :  { %v3428_v47 = vld.sshfl [vmem:[#allocation1 + $0x20] sm:$0xff pattern:$0x75316420]  ;;  %3448 = vst [vmem:[#allocation1 + $0x30] ss:$2 sm:$0xff] %v12026_v3  ;;  %v11138_v6 = vadd.f32 %v5572_v37, %v5508_v36  ;;  %v5534_v61 = vpop.f32.mrf.mxu1  ;;  %v12217_v3 = vld [vmem:[#allocation25_spill] sm:$0xff] }
 0x796   :  { %3434 = vst [vmem:[#allocation1 + $0x20] ss:$2 sm:$0xff] %v12214_v2  ;;  %v11141_v26 = vadd.f32 %v5534_v61, %v5470_v12  ;;  %v5425_v0 = vadd.f32 %v12217_v3, %v10584_v63  ;;  %v12218_v63 = vld [vmem:[#allocation42_spill] sm:$0xff]  ;;  %v12224_v12 = vld [vmem:[#allocation116_spill] sm:$0xff]  ;;  %v3796_v2 = vld [vmem:[#allocation2 + $0x950] sm:$0xff] }
 0x797   :  { %3435 = vst [vmem:[#allocation1 + $0x21] ss:$2 sm:$0xff] %v12215_v19  ;;  %v3463_v24 = vld.sshfl [vmem:[#allocation1 + $0x10] sm:$0xff pattern:$0x75316420]  ;;  %v11173_v27 = vpop.f32.mrf.mxu0  ;;  %v12226_v19 = vld [vmem:[#allocation103_spill] sm:$0xff] }
 0x798   :  { %3484 = vst.msk [vmem:[#allocation2 + $0x250] sm:$0xff] %vm881_vm2, %v3428_v47  ;;  %v5490_v34 = vadd.f32 %v10667_v38, %v5425_v0  ;;  %v5431_v47 = vadd.f32 %v12225_v30, %v12224_v12  ;;  %v12228_v3 = vld [vmem:[#allocation51_spill] sm:$0xff]  ;;  %v12229_v0 = vld [vmem:[#allocation32_spill] sm:$0xff]  ;;  %v12235_v12 = vld [vmem:[#allocation29_spill] sm:$0xff] }
 0x799   :  { %3449 = vst [vmem:[#allocation1 + $0x31] ss:$2 sm:$0xff] %v12216_v58  ;;  %v12236_v30 = vld [vmem:[#allocation82_spill] sm:$0xff] }
 0x79a   :  { %5890 = vmatmul.f32.gmra.mxu3 %v3622_v50  ;;  %3495 = vst.msk [vmem:[#allocation2 + $0xae8] sm:$0xff] %vm881_vm2, %v3463_v24  ;;  %5840 = vmatmul.f32.gmra.mxu2 %v3746_v32  ;;  %v5555_v57 = vadd.f32 %v10949_v16, %v5490_v34  ;;  %v3771_v16 = vld [vmem:[#allocation2 + $0x888] sm:$0xff]  ;;  %v3521_v50 = vld [vmem:[#allocation2 + $0xb8] sm:$0xff]  ;;  %v5517_v32 = vadd.f32 %v12229_v0, %v12228_v3  ;;  %v3522_v3 = vld [vmem:[#allocation2 + $0xc0] sm:$0xff] }
 0x79b   :  { %5790 = vmatmul.f32.gmra.mxu1 %v3870_v52  ;;  %v11162_v53 = vpop.f32.mrf.mxu3 }
 0x79c   :  { %v5575_v45 = vpop.f32.mrf.mxu2  ;;  %v5620_v38 = vadd.f32 %v11107_v43, %v5555_v57  ;;  %v5493_v43 = vadd.f32 %v10693_v31, %v5428_v11 }
 0x79d   :  { %v11157_v9 = vadd.f32 %v5575_v45, %v5511_v39  ;;  %v5749_v46 = vpop.f32.mrf.mxu1  ;;  %v3697_v39 = vld [vmem:[#allocation2 + $0x638] sm:$0xff] }
 0x79e   :  { %v3440_v42 = vld.sshfl [vmem:[#allocation1 + $0x20] sm:$0xff pattern:$0x75316420]  ;;  %v5685_v40 = vadd.f32 %v11101_v18, %v5620_v38  ;;  %v5558_v51 = vadd.f32 %v12222_v54, %v5493_v43  ;;  %v12223_v18 = vld [vmem:[#allocation115_spill] sm:$0xff]  ;;  %v12232_v43 = vld [vmem:[#allocation45_spill] sm:$0xff] }
 0x79f   :  { %3488 = vst.msk [vmem:[#allocation2 + $0x570] sm:$0xff] %vm881_vm2, %v3440_v42 }
 0x7a0   :  { %3446 = vst [vmem:[#allocation1 + $0x20] ss:$2 sm:$0xff] %v12218_v63  ;;  %v3453_v48 = vld.sshfl [vmem:[#allocation1 + $0x30] sm:$0xff pattern:$0x75316420]  ;;  %v11171_v60 = vadd.f32 %v5749_v46, %v5685_v40  ;;  %v5696_v63 = vpop.f32.mrf.mxu0  ;;  %v3722_v46 = vld [vmem:[#allocation2 + $0x700] sm:$0xff] }
 0x7a1   :  { %3447 = vst [vmem:[#allocation1 + $0x21] ss:$2 sm:$0xff] %v12219_v25 }
 0x7a2   :  { %5893 = vmatmul.f32.gmra.mxu3 %v3647_v59  ;;  %3493 = vst.msk [vmem:[#allocation2 + $0x958] sm:$0xff] %vm881_vm2, %v3453_v48  ;;  %5843 = vmatmul.f32.gmra.mxu2 %v3771_v16  ;;  %v3821_v48 = vld [vmem:[#allocation2 + $0xa18] sm:$0xff]  ;;  %v3546_v59 = vld [vmem:[#allocation2 + $0x180] sm:$0xff]  ;;  %v12231_v16 = vld [vmem:[#allocation28_spill] sm:$0xff] }
 0x7a3   :  { %3460 = vst [vmem:[#allocation1 + $0x30] ss:$2 sm:$0xff] %v10566_v33  ;;  %5793 = vmatmul.f32.gmra.mxu1 %v3895_v1  ;;  %v11182_v36 = vpop.f32.mrf.mxu3  ;;  %v5434_v1 = vadd.f32 %v12232_v43, %v12231_v16 }
 0x7a4   :  { %3461 = vst [vmem:[#allocation1 + $0x31] ss:$2 sm:$0xff] %v10673_v44  ;;  %v5578_v33 = vpop.f32.mrf.mxu2  ;;  %v5623_v44 = vadd.f32 %v11125_v13, %v5558_v51  ;;  %v12227_v13 = vld [vmem:[#allocation93_spill] sm:$0xff] }
 0x7a5   :  { %v11176_v31 = vadd.f32 %v5578_v33, %v5514_v35  ;;  %v5496_v37 = vadd.f32 %v12227_v13, %v5431_v47  ;;  %v5752_v58 = vpop.f32.mrf.mxu1  ;;  %v12233_v35 = vld [vmem:[#allocation65_spill] sm:$0xff]  ;;  %v5437_v47 = vadd.f32 %v12236_v30, %v12235_v12  ;;  %v12237_v13 = vld [vmem:[#allocation12_spill] sm:$0xff] }
 0x7a6   :  { %v3672_v15 = vld [vmem:[#allocation2 + $0x570] sm:$0xff]  ;;  %v5688_v61 = vadd.f32 %v11127_v28, %v5623_v44  ;;  %v5499_v54 = vadd.f32 %v12233_v35, %v5434_v1 }
 0x7a7   :  { %v5561_v34 = vadd.f32 %v11026_v21, %v5496_v37  ;;  %v5502_v37 = vadd.f32 %v12237_v13, %v5437_v47  ;;  %v3572_v1 = vld [vmem:[#allocation2 + $0x250] sm:$0xff] }
 0x7a8   :  { %v3452_v29 = vld.sshfl [vmem:[#allocation1 + $0x20] sm:$0xff pattern:$0x75316420]  ;;  %v11191_v20 = vadd.f32 %v5752_v58, %v5688_v61  ;;  %v5699_v33 = vpop.f32.mrf.mxu0 }
 0x7a9   :  { %3492 = vst.msk [vmem:[#allocation2 + $0x890] sm:$0xff] %vm881_vm2, %v3452_v29  ;;  %v5626_v42 = vadd.f32 %v5625_v14, %v5561_v34  ;;  %v5520_v14 = vadd.f32 %v10998_v5, %v12230_v56  ;;  %v3571_v29 = vld [vmem:[#allocation2 + $0x248] sm:$0xff]  ;;  %v5526_v34 = vadd.f32 %v11071_v62, %v11050_v8  ;;  %v3797_v62 = vld [vmem:[#allocation2 + $0x958] sm:$0xff] }
 0x7aa   :  { %5896 = vmatmul.f32.gmra.mxu3 %v3672_v15  ;;  %3458 = vst [vmem:[#allocation1 + $0x20] ss:$2 sm:$0xff] %v12223_v18  ;;  %5846 = vmatmul.f32.gmra.mxu2 %v3796_v2  ;;  %v12234_v15 = vld [vmem:[#allocation31_spill] sm:$0xff] }
 0x7ab   :  { %3459 = vst [vmem:[#allocation1 + $0x21] ss:$2 sm:$0xff] %v12226_v19  ;;  %v3465_v24 = vld.sshfl [vmem:[#allocation1 + $0x30] sm:$0xff pattern:$0x75316420]  ;;  %5813 = vmatmul.f32.vlgmr.msrb.gmra.mxu1 %v3521_v50  ;;  %v5634_v38 = vpop.f32.mrf.mxu3  ;;  %v5691_v21 = vadd.f32 %v11149_v55, %v5626_v42  ;;  %v5564_v55 = vadd.f32 %v11064_v7, %v5499_v54  ;;  %v5523_v18 = vadd.f32 %v11031_v22, %v12234_v15 }
 0x7ac   :  { %3497 = vst.msk [vmem:[#allocation2 + $0xc78] sm:$0xff] %vm881_vm2, %v3465_v24  ;;  %v5581_v52 = vpop.f32.mrf.mxu2  ;;  %v5635_v28 = vadd.f32 %v5634_v38, %v11120_v10  ;;  %v3846_v10 = vld [vmem:[#allocation2 + $0xae0] sm:$0xff]  ;;  %v3747_v19 = vld [vmem:[#allocation2 + $0x7c8] sm:$0xff] }
 0x7ad   :  { %v11193_v57 = vadd.f32 %v5581_v52, %v5517_v32  ;;  %v5755_v25 = vpop.f32.mrf.mxu1  ;;  %v5629_v44 = vadd.f32 %v11162_v53, %v5564_v55  ;;  %v5567_v53 = vadd.f32 %v11094_v4, %v5502_v37  ;;  %v3896_v4 = vld [vmem:[#allocation2 + $0xc70] sm:$0xff]  ;;  %v3847_v55 = vld [vmem:[#allocation2 + $0xae8] sm:$0xff] }
 0x7ae   :  { %v11200_v11 = vadd.f32 %v5755_v25, %v5691_v21  ;;  %v5700_v56 = vadd.f32 %v5699_v33, %v5635_v28 }
 0x7af   :  { %v5694_v7 = vadd.f32 %v11173_v27, %v5629_v44  ;;  %v5632_v32 = vadd.f32 %v11182_v36, %v5567_v53  ;;  %v5529_v36 = vadd.f32 %v11098_v17, %v11088_v49 }
 0x7b0   :  { %v5702_v0 = vpop.f32.mrf.mxu0  ;;  %v3772_v27 = vld [vmem:[#allocation2 + $0x890] sm:$0xff] }
 0x7b2   :  { %5899 = vmatmul.f32.gmra.mxu3 %v3697_v39  ;;  %v3464_v45 = vld.sshfl [vmem:[#allocation1 + $0x20] sm:$0xff pattern:$0x75316420]  ;;  %5849 = vmatmul.f32.gmra.mxu2 %v3821_v48  ;;  %v5697_v39 = vadd.f32 %v5696_v63, %v5632_v32 }
 0x7b3   :  { %3496 = vst.msk [vmem:[#allocation2 + $0xbb0] sm:$0xff] %vm881_vm2, %v3464_v45  ;;  %5816 = vmatmul.f32.gmra.mxu1 %v3546_v59  ;;  %v5637_v51 = vpop.f32.mrf.mxu3  ;;  %v3547_v59 = vld [vmem:[#allocation2 + $0x188] sm:$0xff]  ;;  %v3897_v13 = vld [vmem:[#allocation2 + $0xc78] sm:$0xff] }
 0x7b4   :  { %v5584_v40 = vpop.f32.mrf.mxu2  ;;  %v5638_v5 = vadd.f32 %v5637_v51, %v11138_v6  ;;  %v3871_v6 = vld [vmem:[#allocation2 + $0xba8] sm:$0xff] }
 0x7b5   :  { %v11204_v41 = vadd.f32 %v5584_v40, %v5520_v14  ;;  %v3822_v40 = vld [vmem:[#allocation2 + $0xa20] sm:$0xff] }
 0x7b6   :  { %v5703_v49 = vadd.f32 %v5702_v0, %v5638_v5 }
 0x7b8   :  { %v5705_v21 = vpop.f32.mrf.mxu0 }
 0x7ba   :  { %5902 = vmatmul.f32.gmra.mxu3 %v3722_v46  ;;  %5852 = vmatmul.f32.gmra.mxu2 %v3846_v10  ;;  %v3872_v12 = vld [vmem:[#allocation2 + $0xbb0] sm:$0xff] }
 0x7bb   :  { %5819 = vmatmul.f32.gmra.mxu1 %v3571_v29  ;;  %v5640_v61 = vpop.f32.mrf.mxu3 }
 0x7bc   :  { %v5587_v2 = vpop.f32.mrf.mxu2  ;;  %v5641_v22 = vadd.f32 %v5640_v61, %v11157_v9 }
 0x7bd   :  { %v5588_v24 = vadd.f32 %v5587_v2, %v5523_v18  ;;  %v5758_v50 = vpop.f32.mrf.mxu1 }
 0x7be   :  { %v11217_v58 = vadd.f32 %v5758_v50, %v5694_v7 }
 0x7c0   :  { %v5708_v35 = vpop.f32.mrf.mxu0 }
 0x7c2   :  { %5905 = vmatmul.f32.gmra.mxu3 %v3747_v19  ;;  %5855 = vmatmul.f32.gmra.mxu2 %v3871_v6 }
 0x7c3   :  { %5878 = vmatmul.f32.vlgmr.msra.gmra.mxu1 %v3522_v3  ;;  %v5643_v48 = vpop.f32.mrf.mxu3 }
 0x7c4   :  { %v5590_v52 = vpop.f32.mrf.mxu2  ;;  %v5644_v9 = vadd.f32 %v5643_v48, %v11176_v31 }
 0x7c5   :  { %v5591_v42 = vadd.f32 %v5590_v52, %v5526_v34  ;;  %v5761_v45 = vpop.f32.mrf.mxu1 }
 0x7c6   :  { %v11223_v38 = vadd.f32 %v5761_v45, %v5697_v39  ;;  %v5709_v5 = vadd.f32 %v5708_v35, %v5644_v9 }
 0x7c8   :  { %v5711_v18 = vpop.f32.mrf.mxu0 }
 0x7ca   :  { %5908 = vmatmul.f32.gmra.mxu3 %v3772_v27  ;;  %5858 = vmatmul.f32.gmra.mxu2 %v3896_v4 }
 0x7cb   :  { %5881 = vmatmul.f32.gmra.mxu1 %v3547_v59  ;;  %v5646_v14 = vpop.f32.mrf.mxu3 }
 0x7cc   :  { %v5593_v8 = vpop.f32.mrf.mxu2  ;;  %v5647_v43 = vadd.f32 %v5646_v14, %v11193_v57  ;;  %v5706_v57 = vadd.f32 %v5705_v21, %v5641_v22 }
 0x7cd   :  { %v5594_v25 = vadd.f32 %v5593_v8, %v5529_v36  ;;  %v5764_v63 = vpop.f32.mrf.mxu1 }
 0x7ce   :  { %v11228_v16 = vadd.f32 %v5764_v63, %v5700_v56 }
 0x7d0   :  { %v5714_v19 = vpop.f32.mrf.mxu0 }
 0x7d2   :  { %5911 = vmatmul.f32.gmra.mxu3 %v3797_v62 }
 0x7d3   :  { %5884 = vmatmul.f32.gmra.mxu1 %v3572_v1  ;;  %v5649_v54 = vpop.f32.mrf.mxu3 }
 0x7d4   :  { %v5596_v31 = vpop.f32.mrf.mxu2  ;;  %v5650_v28 = vadd.f32 %v5649_v54, %v11204_v41 }
 0x7d5   :  { %v5597_v46 = vadd.f32 %v5596_v31, %v11123_v23  ;;  %v5767_v17 = vpop.f32.mrf.mxu1 }
 0x7d6   :  { %v11232_v10 = vadd.f32 %v5767_v17, %v5703_v49 }
 0x7d8   :  { %v5717_v61 = vpop.f32.mrf.mxu0 }
 0x7da   :  { %5914 = vmatmul.f32.gmra.mxu3 %v3822_v40 }
 0x7db   :  { %v5652_v44 = vpop.f32.mrf.mxu3 }
 0x7dc   :  { %v5599_v51 = vpop.f32.mrf.mxu2  ;;  %v5653_v23 = vadd.f32 %v5652_v44, %v5588_v24  ;;  %v5715_v24 = vadd.f32 %v5714_v19, %v5650_v28 }
 0x7dd   :  { %v5600_v33 = vadd.f32 %v5599_v51, %v11141_v26  ;;  %v5770_v29 = vpop.f32.mrf.mxu1  ;;  %v5712_v26 = vadd.f32 %v5711_v18, %v5647_v43 }
 0x7de   :  { %v11236_v15 = vadd.f32 %v5770_v29, %v5706_v57  ;;  %v5718_v32 = vadd.f32 %v5717_v61, %v5653_v23 }
 0x7e0   :  { %v5720_v34 = vpop.f32.mrf.mxu0 }
 0x7e2   :  { %5917 = vmatmul.f32.gmra.mxu3 %v3847_v55 }
 0x7e3   :  { %v5655_v47 = vpop.f32.mrf.mxu3 }
 0x7e4   :  { %v5656_v41 = vadd.f32 %v5655_v47, %v5591_v42 }
 0x7e5   :  { %v5773_v30 = vpop.f32.mrf.mxu1 }
 0x7e6   :  { %v11238_v2 = vadd.f32 %v5773_v30, %v5709_v5  ;;  %v5721_v45 = vadd.f32 %v5720_v34, %v5656_v41 }
 0x7e8   :  { %v5723_v9 = vpop.f32.mrf.mxu0 }
 0x7ea   :  { %5920 = vmatmul.f32.gmra.mxu3 %v3872_v12 }
 0x7eb   :  { %v5658_v7 = vpop.f32.mrf.mxu3 }
 0x7ec   :  { %v5659_v6 = vadd.f32 %v5658_v7, %v5594_v25 }
 0x7ed   :  { %v5823_v35 = vpop.f32.mrf.mxu2 }
 0x7ee   :  { %v5724_v59 = vadd.f32 %v5723_v9, %v5659_v6 }
 0x7ef   :  { %v5776_v37 = vpop.f32.mrf.mxu1 }
 0x7f0   :  { %v11240_v50 = vadd.f32 %v5776_v37, %v5712_v26  ;;  %v5726_v8 = vpop.f32.mrf.mxu0 }
 0x7f2   :  { %5923 = vmatmul.f32.gmra.mxu3 %v3897_v13 }
 0x7f5   :  { %v5826_v55 = vpop.f32.mrf.mxu2 }
 0x7f6   :  { %v5661_v22 = vpop.f32.mrf.mxu3 }
 0x7f7   :  { %v5779_v53 = vpop.f32.mrf.mxu1  ;;  %v5662_v0 = vadd.f32 %v5661_v22, %v5597_v46 }
 0x7f8   :  { %v11242_v3 = vadd.f32 %v5779_v53, %v5715_v24  ;;  %v5729_v63 = vpop.f32.mrf.mxu0 }
 0x7f9   :  { %v5727_v62 = vadd.f32 %v5726_v8, %v5662_v0 }
 0x7fd   :  { %v5829_v18 = vpop.f32.mrf.mxu2 }
 0x7ff   :  { %v5782_v52 = vpop.f32.mrf.mxu1  ;;  %v5664_v42 = vpop.f32.mrf.mxu3 }
 0x800   :  { %v11244_v27 = vadd.f32 %v5782_v52, %v5718_v32  ;;  %v5665_v39 = vadd.f32 %v5664_v42, %v5600_v33 }
 0x802   :  { %v5730_v14 = vadd.f32 %v5729_v63, %v5665_v39 }
 0x805   :  { %v5832_v13 = vpop.f32.mrf.mxu2 }
 0x807   :  { %v5785_v4 = vpop.f32.mrf.mxu1 }
 0x808   :  { %v11246_v48 = vadd.f32 %v5785_v4, %v5721_v45 }
 0x80d   :  { %v5835_v6 = vpop.f32.mrf.mxu2 }
 0x80e   :  { %v5836_v42 = vadd.f32 %v5835_v6, %v11236_v15 }
 0x810   :  { %v5788_v36 = vpop.f32.mrf.mxu1 }
 0x811   :  { %v11248_v21 = vadd.f32 %v5788_v36, %v5724_v59 }
 0x815   :  { %v5888_v49 = vpop.f32.mrf.mxu3  ;;  %v5838_v0 = vpop.f32.mrf.mxu2 }
 0x816   :  { %v5839_v9 = vadd.f32 %v5838_v0, %v11238_v2 }
 0x818   :  { %v5791_v25 = vpop.f32.mrf.mxu1 }
 0x819   :  { %v11250_v56 = vadd.f32 %v5791_v25, %v5727_v62 }
 0x81d   :  { %v5891_v33 = vpop.f32.mrf.mxu3 }
 0x820   :  { %v5794_v43 = vpop.f32.mrf.mxu1 }
 0x821   :  { %v11252_v1 = vadd.f32 %v5794_v43, %v5730_v14 }
 0x825   :  { %v5894_v5 = vpop.f32.mrf.mxu3 }
 0x828   :  { %v5814_v31 = vpop.f32.mrf.mxu1 }
 0x829   :  { %v5815_v17 = vadd.f32 %v5814_v31, %v11171_v60  ;;  %v5824_v60 = vadd.f32 %v5823_v35, %v11217_v58  ;;  %v5833_v58 = vadd.f32 %v5832_v13, %v11232_v10 }
 0x82b   :  { %v5889_v19 = vadd.f32 %v5888_v49, %v5824_v60 }
 0x82d   :  { %v5897_v26 = vpop.f32.mrf.mxu3  ;;  %v5930_v37 = vmax.f32 %v5889_v19, 0.0 }
 0x82e   :  { %v5898_v34 = vadd.f32 %v5897_v26, %v5833_v58 }
 0x830   :  { %v5817_v40 = vpop.f32.mrf.mxu1  ;;  %v5933_v52 = vmax.f32 %v5898_v34, 0.0 }
 0x831   :  { %v5818_v57 = vadd.f32 %v5817_v40, %v11191_v20  ;;  %v5827_v20 = vadd.f32 %v5826_v55, %v11223_v38  ;;  %v5841_v38 = vpop.f32.mrf.mxu2 }
 0x832   :  { %v5842_v10 = vadd.f32 %v5841_v38, %v11240_v50 }
 0x833   :  { %v5892_v7 = vadd.f32 %v5891_v33, %v5827_v20 }
 0x835   :  { %v5931_v61 = vmax.f32 %v5892_v7, 0.0  ;;  %v5900_v24 = vpop.f32.mrf.mxu3 }
 0x836   :  { %v5901_v39 = vadd.f32 %v5900_v24, %v5836_v42 }
 0x838   :  { %v5820_v46 = vpop.f32.mrf.mxu1  ;;  %v5934_v4 = vmax.f32 %v5901_v39, 0.0 }
 0x839   :  { %v5821_v12 = vadd.f32 %v5820_v46, %v11200_v11  ;;  %v5830_v11 = vadd.f32 %v5829_v18, %v11228_v16  ;;  %v5844_v59 = vpop.f32.mrf.mxu2 }
 0x83a   :  { %v5845_v15 = vadd.f32 %v5844_v59, %v11242_v3 }
 0x83b   :  { %v5895_v53 = vadd.f32 %v5894_v5, %v5830_v11 }
 0x83d   :  { %v5932_v22 = vmax.f32 %v5895_v53, 0.0  ;;  %v5903_v32 = vpop.f32.mrf.mxu3 }
 0x83e   :  { %v5904_v16 = vadd.f32 %v5903_v32, %v5839_v9 }
 0x840   :  { %v5879_v54 = vpop.f32.mrf.mxu1  ;;  %v5935_v8 = vmax.f32 %v5904_v16, 0.0 }
 0x841   :  { %v5880_v28 = vadd.f32 %v5879_v54, %v5815_v17  ;;  %v5847_v25 = vpop.f32.mrf.mxu2 }
 0x842   :  { %v5848_v2 = vadd.f32 %v5847_v25, %v11244_v27 }
 0x843   :  { %v5927_v51 = vmax.f32 %v5880_v28, 0.0 }
 0x845   :  { %5943 = vxpose.xlu0.b32.start [1/16] (narrow) %v5927_v51, 64  ;;  %v5906_v45 = vpop.f32.mrf.mxu3 }
 0x846   :  { %v5907_v62 = vadd.f32 %v5906_v45, %v5842_v10 }
 0x848   :  { %v5882_v29 = vpop.f32.mrf.mxu1  ;;  %v5936_v63 = vmax.f32 %v5907_v62, 0.0 }
 0x849   :  { %v5883_v44 = vadd.f32 %v5882_v29, %v5818_v57  ;;  %v5850_v40 = vpop.f32.mrf.mxu2 }
 0x84a   :  { %v5851_v17 = vadd.f32 %v5850_v40, %v11246_v48 }
 0x84b   :  { %v5928_v23 = vmax.f32 %v5883_v44, 0.0 }
 0x84d   :  { %5944 = vxpose.xlu0.b32.cont [2/16] (narrow) %v5928_v23, 64  ;;  %v5909_v36 = vpop.f32.mrf.mxu3 }
 0x84e   :  { %v5910_v43 = vadd.f32 %v5909_v36, %v5845_v15 }
 0x850   :  { %v5885_v30 = vpop.f32.mrf.mxu1  ;;  %v5937_v31 = vmax.f32 %v5910_v43, 0.0 }
 0x851   :  { %v5886_v47 = vadd.f32 %v5885_v30, %v5821_v12  ;;  %v5853_v50 = vpop.f32.mrf.mxu2 }
 0x852   :  { %v5854_v55 = vadd.f32 %v5853_v50, %v11248_v21 }
 0x853   :  { %v5929_v41 = vmax.f32 %v5886_v47, 0.0 }
 0x855   :  { %5945 = vxpose.xlu0.b32.cont [3/16] (narrow) %v5929_v41, 64  ;;  %v5912_v14 = vpop.f32.mrf.mxu3 }
 0x856   :  { %v5913_v35 = vadd.f32 %v5912_v14, %v5848_v2 }
 0x858   :  { %v5938_v49 = vmax.f32 %v5913_v35, 0.0 }
 0x859   :  { %v5856_v33 = vpop.f32.mrf.mxu2 }
 0x85a   :  { %v5857_v27 = vadd.f32 %v5856_v33, %v11250_v56 }
 0x85d   :  { %5946 = vxpose.xlu0.b32.cont [4/16] (narrow) %v5930_v37, 64  ;;  %v5915_v46 = vpop.f32.mrf.mxu3 }
 0x85e   :  { %v5916_v54 = vadd.f32 %v5915_v46, %v5851_v17 }
 0x860   :  { %v5939_v51 = vmax.f32 %v5916_v54, 0.0 }
 0x861   :  { %v5859_v23 = vpop.f32.mrf.mxu2 }
 0x862   :  { %v5860_v48 = vadd.f32 %v5859_v23, %v11252_v1 }
 0x865   :  { %5947 = vxpose.xlu0.b32.cont [5/16] (narrow) %v5931_v61, 64  ;;  %v5918_v28 = vpop.f32.mrf.mxu3 }
 0x866   :  { %v5919_v3 = vadd.f32 %v5918_v28, %v5854_v55 }
 0x868   :  { %v5940_v29 = vmax.f32 %v5919_v3, 0.0 }
 0x86d   :  { %5948 = vxpose.xlu0.b32.cont [6/16] (narrow) %v5932_v22, 64  ;;  %v5921_v57 = vpop.f32.mrf.mxu3 }
 0x86e   :  { %v5922_v44 = vadd.f32 %v5921_v57, %v5857_v27 }
 0x870   :  { %v5941_v18 = vmax.f32 %v5922_v44, 0.0 }
 0x875   :  { %5949 = vxpose.xlu0.b32.cont [7/16] (narrow) %v5933_v52, 64  ;;  %v5924_v12 = vpop.f32.mrf.mxu3 }
 0x876   :  { %v5925_v5 = vadd.f32 %v5924_v12, %v5860_v48 }
 0x878   :  { %v5942_v30 = vmax.f32 %v5925_v5, 0.0 }
 0x87d   :  { %5950 = vxpose.xlu0.b32.cont [8/16] (narrow) %v5934_v4, 64 }
 0x885   :  { %5951 = vxpose.xlu0.b32.cont [9/16] (narrow) %v5935_v8, 64 }
 0x88d   :  { %5952 = vxpose.xlu0.b32.cont [10/16] (narrow) %v5936_v63, 64 }
 0x895   :  { %5953 = vxpose.xlu0.b32.cont [11/16] (narrow) %v5937_v31, 64 }
 0x89d   :  { %5954 = vxpose.xlu0.b32.cont [12/16] (narrow) %v5938_v49, 64 }
 0x8a5   :  { %5955 = vxpose.xlu0.b32.cont [13/16] (narrow) %v5939_v51, 64 }
 0x8ad   :  { %5956 = vxpose.xlu0.b32.cont [14/16] (narrow) %v5940_v29, 64 }
 0x8b5   :  { %5957 = vxpose.xlu0.b32.cont [15/16] (narrow) %v5941_v18, 64 }
 0x8bd   :  { %5958 = vxpose.xlu0.b32.end [16/16] (narrow) %v5942_v30, 64 }
 0x8e9   :  { %v5959_v47 = vpop.trf.xlu0 }
 0x8ea   :  { %5975 = vst [vmem:[%s11299_s5] sm:$0xff] %v5959_v47 }
 0x8f1   :  { %v5960_v21 = vpop.trf.xlu0 }
 0x8f2   :  { %5976 = vst [vmem:[%s11299_s5 + $0x8] sm:$0xff] %v5960_v21 }
 0x8f9   :  { %v5961_v56 = vpop.trf.xlu0 }
 0x8fa   :  { %5977 = vst [vmem:[%s11299_s5 + $0x10] sm:$0xff] %v5961_v56 }
 0x901   :  { %v5962_v1 = vpop.trf.xlu0 }
 0x902   :  { %5978 = vst [vmem:[%s11299_s5 + $0x18] sm:$0xff] %v5962_v1 }
 0x909   :  { %v5963_v41 = vpop.trf.xlu0 }
 0x90a   :  { %5979 = vst [vmem:[%s11299_s5 + $0x20] sm:$0xff] %v5963_v41 }
 0x911   :  { %v5964_v60 = vpop.trf.xlu0 }
 0x912   :  { %5980 = vst [vmem:[%s11299_s5 + $0x28] sm:$0xff] %v5964_v60 }
 0x919   :  { %v5965_v19 = vpop.trf.xlu0 }
 0x91a   :  { %5981 = vst [vmem:[%s11299_s5 + $0x30] sm:$0xff] %v5965_v19 }
 0x921   :  { %v5966_v13 = vpop.trf.xlu0 }
 0x922   :  { %5982 = vst [vmem:[%s11299_s5 + $0x38] sm:$0xff] %v5966_v13 }

</bundles_post_ra>
